<compile_context>
chip_gen: v7x
topology: tpu7x:2x2x1
jax: 0.10.0
libtpu: 0.0.40
codegen_flags: <defaults>
</compile_context>

<pallas_src>
import jax
import jax.numpy as jnp
from jax.experimental import pallas as pl
from jax.experimental.pallas import tpu as pltpu


def _fused_stage_kernel(x_ref, w1_ref, b1_ref, w2_ref, b2_ref, h_ref, o_ref):
    # x_ref: (TM, Cin) bf16   w1_ref: (Cin, C1) bf16   b1_ref: (1, C1) f32
    # w2_ref: (C1, Cd) bf16   b2_ref: (1, Cd) f32
    # h_ref: (TM, C1) bf16 (backbone feature, feeds next stage)
    # o_ref: (TM, Cd) f32  (1x1 projection output of the module)
    h = jnp.dot(x_ref[...], w1_ref[...], preferred_element_type=jnp.float32)
    h = jnp.maximum(h + b1_ref[...], 0.0)
    h_ref[...] = h.astype(h_ref.dtype)
    o = jnp.dot(h.astype(w2_ref.dtype), w2_ref[...], preferred_element_type=jnp.float32)
    o_ref[...] = (o + b2_ref[...]).astype(o_ref.dtype)


def _pick_tm(m):
    """Row-tile size: no padding for the tiny stages, ~512-row tiles (and >=2
    grid steps, so v7x's two TensorCores both get work) for the large stages."""
    if m <= 256:
        return m
    for tm in (512, 256, 128):
        if m % tm == 0 and m // tm >= 2:
            return tm
    return 128  # fallback (padded); not hit for the shapes in this script


def fused_stage(x2, w1, b1, w2, b2):
    """x2: (M, Cin) -> (h: (M, C1) bf16, o: (M, Cd) f32) via one fused kernel."""
    m, cin = x2.shape
    c1 = w1.shape[1]
    cd = w2.shape[1]
    tm = _pick_tm(m)
    m_pad = pl.cdiv(m, tm) * tm
    x2 = x2.astype(jnp.bfloat16)
    if m_pad != m:  # pad only when actually needed (never for this config)
        x2 = jnp.pad(x2, ((0, m_pad - m), (0, 0)))

    h, o = pl.pallas_call(
        _fused_stage_kernel,
        out_shape=(
            jax.ShapeDtypeStruct((m_pad, c1), jnp.bfloat16),
            jax.ShapeDtypeStruct((m_pad, cd), jnp.float32),
        ),
        grid_spec=pltpu.PrefetchScalarGridSpec(
            num_scalar_prefetch=0,
            grid=(m_pad // tm,),
            in_specs=[
                pl.BlockSpec((tm, cin), lambda i: (i, 0)),
                # Weight / bias blocks have a constant index, so they are only
                # DMA'd once; their double-buffer cost is <10 MiB even for the
                # 1024x2048 bf16 weight, well inside the 48 MiB limit below.
                pl.BlockSpec((cin, c1), lambda i: (0, 0)),
                pl.BlockSpec((1, c1), lambda i: (0, 0)),
                pl.BlockSpec((c1, cd), lambda i: (0, 0)),
                pl.BlockSpec((1, cd), lambda i: (0, 0)),
            ],
            out_specs=[
                pl.BlockSpec((tm, c1), lambda i: (i, 0)),
                pl.BlockSpec((tm, cd), lambda i: (i, 0)),
            ],
        ),
        compiler_params=pltpu.CompilerParams(
            dimension_semantics=("parallel",),
            vmem_limit_bytes=48 << 20,  # fits v7x's 64 MiB physical VMEM
        ),
    )(x2, w1, b1, w2, b2)

    if m_pad != m:
        h, o = h[:m], o[:m]
    return h, o


def avgpool2x2(x):
    """Stride-2 2x2 average pool, NHWC. XLA glue; output bf16 for the MXU.
    # TODO(synk): pooling stays in XLA (fusing it into the matmul kernel forces
    # a sublane-sparse 5-D block layout that costs more than it saves here)."""
    n, h, w, c = x.shape
    x = x.reshape(n, h // 2, 2, w // 2, 2, c)
    return x.mean(axis=(2, 4), dtype=jnp.float32).astype(jnp.bfloat16)


def _init_linear(key, cin, cout):
    # Mirrors PyTorch Conv2d(1x1) default init: U(-1/sqrt(fan_in), 1/sqrt(fan_in)).
    kw, kb = jax.random.split(key)
    bound = 1.0 / float(cin) ** 0.5
    w = jax.random.uniform(kw, (cin, cout), jnp.float32, -bound, bound)
    b = jax.random.uniform(kb, (cout,), jnp.float32, -bound, bound)
    return w, b


class EfficientDetBackbonePallas:
    """Pallas version of Efficient_Det_old's cnn_backbone (resnet_backbone):
    synthetic 5-stage pyramid + the five 1x1 projection convs, fused per stage."""

    _FEATS = [64, 256, 512, 1024, 2048]  # ResNet-50 feature channels per stride

    def __init__(self, key, dims=128, n_pnts_features=128):
        cins = [n_pnts_features] + self._FEATS[:-1]
        keys = jax.random.split(key, 2 * len(self._FEATS))
        self.stages = []
        for i, (cin, c1) in enumerate(zip(cins, self._FEATS)):
            w1, b1 = _init_linear(keys[2 * i], cin, c1)       # backbone 1x1
            w2, b2 = _init_linear(keys[2 * i + 1], c1, dims)  # conv00..conv4
            self.stages.append(
                (w1.astype(jnp.bfloat16), b1.reshape(1, c1),
                 w2.astype(jnp.bfloat16), b2.reshape(1, dims))
            )
        self.dims = dims

    def __call__(self, x_nchw):
        x = jnp.transpose(x_nchw, (0, 2, 3, 1))  # NCHW -> NHWC (channels on lanes)
        outs = []
        h = x
        for w1, b1, w2, b2 in self.stages:
            h = avgpool2x2(h)  # stride-2 downsample
            n, hh, ww, cin = h.shape
            h2, o2 = fused_stage(h.reshape(n * hh * ww, cin), w1, b1, w2, b2)
            outs.append(jnp.transpose(o2.reshape(n, hh, ww, self.dims), (0, 3, 1, 2)))
            h = h2.reshape(n, hh, ww, w1.shape[1])
        return tuple(outs)


if __name__ == "__main__":
    key = jax.random.PRNGKey(0)
    k_params, k_x = jax.random.split(key)

    # Efficient_Det_old feeds a 128-channel (n_pnts_features) BEV image, NCHW.
    x = jax.random.normal(k_x, (2, 128, 64, 64), jnp.float32)

    model = EfficientDetBackbonePallas(k_params, dims=128, n_pnts_features=128)
    fwd = jax.jit(lambda inp: model(inp))
    outs = jax.block_until_ready(fwd(x))

    expected = [
        (2, 128, 32, 32),
        (2, 128, 16, 16),
        (2, 128, 8, 8),
        (2, 128, 4, 4),
        (2, 128, 2, 2),
    ]
    assert tuple(o.shape for o in outs) == tuple(expected), [o.shape for o in outs]
    assert all(o.dtype == jnp.float32 for o in outs)
    print("KERNEL_OK")
</pallas_src>

<mosaic_0001>
module attributes {stable_mosaic.version = 11 : i64} {
  func.func @_fused_stage_kernel(%arg0: i32, %arg1: memref<512x128xbf16, #tpu.memory_space<vmem>>, %arg2: memref<128x64xbf16, #tpu.memory_space<vmem>>, %arg3: memref<1x64xf32, #tpu.memory_space<vmem>>, %arg4: memref<64x128xbf16, #tpu.memory_space<vmem>>, %arg5: memref<1x128xf32, #tpu.memory_space<vmem>>, %arg6: memref<512x64xbf16, #tpu.memory_space<vmem>>, %arg7: memref<512x128xf32, #tpu.memory_space<vmem>>) attributes {dimension_semantics = [#tpu.dimension_semantics<parallel>], iteration_bounds = array<i64: 4>, scalar_prefetch = 0 : i64, scratch_operands = 0 : i64, tpu.core_type = #tpu.core_type<tc>, window_params = [{transform_indices = @transform_0, window_bounds = array<i64: 512, 128>}, {pipeline_mode = #tpu.pipeline_mode<synchronous>, transform_indices = @transform_1, window_bounds = array<i64: 128, 64>}, {pipeline_mode = #tpu.pipeline_mode<synchronous>, transform_indices = @transform_2, window_bounds = array<i64: 1, 64>}, {pipeline_mode = #tpu.pipeline_mode<synchronous>, transform_indices = @transform_3, window_bounds = array<i64: 64, 128>}, {pipeline_mode = #tpu.pipeline_mode<synchronous>, transform_indices = @transform_4, window_bounds = array<i64: 1, 128>}, {transform_indices = @transform_5, window_bounds = array<i64: 512, 64>}, {transform_indices = @transform_6, window_bounds = array<i64: 512, 128>}]} {
    %c0 = arith.constant 0 : index
    %c0_0 = arith.constant 0 : index
    %0 = vector.load %arg1[%c0, %c0_0] : memref<512x128xbf16, #tpu.memory_space<vmem>>, vector<512x128xbf16>
    %c0_1 = arith.constant 0 : index
    %c0_2 = arith.constant 0 : index
    %1 = vector.load %arg2[%c0_1, %c0_2] : memref<128x64xbf16, #tpu.memory_space<vmem>>, vector<128x64xbf16>
    %cst = arith.constant dense<0.000000e+00> : vector<512x64xf32>
    %2 = tpu.matmul %0, %1, %cst {dimension_numbers = #tpu.dot_dimension_numbers<[1], [0], [0], [1], [0, 0, 1, 1], [], []>} : vector<512x128xbf16>, vector<128x64xbf16>, vector<512x64xf32> -> vector<512x64xf32>
    %c0_3 = arith.constant 0 : index
    %c0_4 = arith.constant 0 : index
    %3 = vector.load %arg3[%c0_3, %c0_4] : memref<1x64xf32, #tpu.memory_space<vmem>>, vector<1x64xf32>
    %4 = vector.broadcast %3 : vector<1x64xf32> to vector<512x64xf32>
    %5 = arith.addf %2, %4 : vector<512x64xf32>
    %cst_5 = arith.constant 0.000000e+00 : f32
    %6 = vector.broadcast %cst_5 : f32 to vector<512x64xf32>
    %7 = arith.maximumf %5, %6 : vector<512x64xf32>
    %8 = arith.truncf %7 : vector<512x64xf32> to vector<512x64xbf16>
    %c0_6 = arith.constant 0 : index
    %c0_7 = arith.constant 0 : index
    %9 = vector.load %arg6[%c0_6, %c0_7] : memref<512x64xbf16, #tpu.memory_space<vmem>>, vector<512x64xbf16>
    tpu.vector_store %arg6[%c0_6, %c0_7], %8 {strides = array<i32>} : memref<512x64xbf16, #tpu.memory_space<vmem>>, vector<512x64xbf16>,
    %10 = arith.truncf %7 : vector<512x64xf32> to vector<512x64xbf16>
    %c0_8 = arith.constant 0 : index
    %c0_9 = arith.constant 0 : index
    %11 = vector.load %arg4[%c0_8, %c0_9] : memref<64x128xbf16, #tpu.memory_space<vmem>>, vector<64x128xbf16>
    %cst_10 = arith.constant dense<0.000000e+00> : vector<512x128xf32>
    %12 = tpu.matmul %10, %11, %cst_10 {dimension_numbers = #tpu.dot_dimension_numbers<[1], [0], [0], [1], [0, 0, 1, 1], [], []>} : vector<512x64xbf16>, vector<64x128xbf16>, vector<512x128xf32> -> vector<512x128xf32>
    %c0_11 = arith.constant 0 : index
    %c0_12 = arith.constant 0 : index
    %13 = vector.load %arg5[%c0_11, %c0_12] : memref<1x128xf32, #tpu.memory_space<vmem>>, vector<1x128xf32>
    %14 = vector.broadcast %13 : vector<1x128xf32> to vector<512x128xf32>
    %15 = arith.addf %12, %14 : vector<512x128xf32>
    %c0_13 = arith.constant 0 : index
    %c0_14 = arith.constant 0 : index
    %16 = vector.load %arg7[%c0_13, %c0_14] : memref<512x128xf32, #tpu.memory_space<vmem>>, vector<512x128xf32>
    tpu.vector_store %arg7[%c0_13, %c0_14], %15 {strides = array<i32>} : memref<512x128xf32, #tpu.memory_space<vmem>>, vector<512x128xf32>,
    return
  }
  func.func @transform_0(%arg0: i32) -> (i32, i32) {
    %c0_i32 = arith.constant 0 : i32
    %c0_i32_0 = arith.constant 0 : i32
    return %arg0, %c0_i32 : i32, i32
  }
  func.func @transform_1(%arg0: i32) -> (i32, i32) {
    %c0_i32 = arith.constant 0 : i32
    %c0_i32_0 = arith.constant 0 : i32
    %c0_i32_1 = arith.constant 0 : i32
    return %c0_i32, %c0_i32_0 : i32, i32
  }
  func.func @transform_2(%arg0: i32) -> (i32, i32) {
    %c0_i32 = arith.constant 0 : i32
    %c0_i32_0 = arith.constant 0 : i32
    %c0_i32_1 = arith.constant 0 : i32
    return %c0_i32, %c0_i32_0 : i32, i32
  }
  func.func @transform_3(%arg0: i32) -> (i32, i32) {
    %c0_i32 = arith.constant 0 : i32
    %c0_i32_0 = arith.constant 0 : i32
    %c0_i32_1 = arith.constant 0 : i32
    return %c0_i32, %c0_i32_0 : i32, i32
  }
  func.func @transform_4(%arg0: i32) -> (i32, i32) {
    %c0_i32 = arith.constant 0 : i32
    %c0_i32_0 = arith.constant 0 : i32
    %c0_i32_1 = arith.constant 0 : i32
    return %c0_i32, %c0_i32_0 : i32, i32
  }
  func.func @transform_5(%arg0: i32) -> (i32, i32) {
    %c0_i32 = arith.constant 0 : i32
    %c0_i32_0 = arith.constant 0 : i32
    return %arg0, %c0_i32 : i32, i32
  }
  func.func @transform_6(%arg0: i32) -> (i32, i32) {
    %c0_i32 = arith.constant 0 : i32
    %c0_i32_0 = arith.constant 0 : i32
    return %arg0, %c0_i32 : i32, i32
  }
}

module attributes {stable_mosaic.version = 11 : i64} {
  func.func @_fused_stage_kernel(%arg0: i32, %arg1: memref<256x64xbf16, #tpu.memory_space<vmem>>, %arg2: memref<64x256xbf16, #tpu.memory_space<vmem>>, %arg3: memref<1x256xf32, #tpu.memory_space<vmem>>, %arg4: memref<256x128xbf16, #tpu.memory_space<vmem>>, %arg5: memref<1x128xf32, #tpu.memory_space<vmem>>, %arg6: memref<256x256xbf16, #tpu.memory_space<vmem>>, %arg7: memref<256x128xf32, #tpu.memory_space<vmem>>) attributes {dimension_semantics = [#tpu.dimension_semantics<parallel>], iteration_bounds = array<i64: 2>, scalar_prefetch = 0 : i64, scratch_operands = 0 : i64, tpu.core_type = #tpu.core_type<tc>, window_params = [{transform_indices = @transform_0, window_bounds = array<i64: 256, 64>}, {pipeline_mode = #tpu.pipeline_mode<synchronous>, transform_indices = @transform_1, window_bounds = array<i64: 64, 256>}, {pipeline_mode = #tpu.pipeline_mode<synchronous>, transform_indices = @transform_2, window_bounds = array<i64: 1, 256>}, {pipeline_mode = #tpu.pipeline_mode<synchronous>, transform_indices = @transform_3, window_bounds = array<i64: 256, 128>}, {pipeline_mode = #tpu.pipeline_mode<synchronous>, transform_indices = @transform_4, window_bounds = array<i64: 1, 128>}, {transform_indices = @transform_5, window_bounds = array<i64: 256, 256>}, {transform_indices = @transform_6, window_bounds = array<i64: 256, 128>}]} {
    %c0 = arith.constant 0 : index
    %c0_0 = arith.constant 0 : index
    %0 = vector.load %arg1[%c0, %c0_0] : memref<256x64xbf16, #tpu.memory_space<vmem>>, vector<256x64xbf16>
    %c0_1 = arith.constant 0 : index
    %c0_2 = arith.constant 0 : index
    %1 = vector.load %arg2[%c0_1, %c0_2] : memref<64x256xbf16, #tpu.memory_space<vmem>>, vector<64x256xbf16>
    %cst = arith.constant dense<0.000000e+00> : vector<256x256xf32>
    %2 = tpu.matmul %0, %1, %cst {dimension_numbers = #tpu.dot_dimension_numbers<[1], [0], [0], [1], [0, 0, 1, 1], [], []>} : vector<256x64xbf16>, vector<64x256xbf16>, vector<256x256xf32> -> vector<256x256xf32>
    %c0_3 = arith.constant 0 : index
    %c0_4 = arith.constant 0 : index
    %3 = vector.load %arg3[%c0_3, %c0_4] : memref<1x256xf32, #tpu.memory_space<vmem>>, vector<1x256xf32>
    %4 = vector.broadcast %3 : vector<1x256xf32> to vector<256x256xf32>
    %5 = arith.addf %2, %4 : vector<256x256xf32>
    %cst_5 = arith.constant 0.000000e+00 : f32
    %6 = vector.broadcast %cst_5 : f32 to vector<256x256xf32>
    %7 = arith.maximumf %5, %6 : vector<256x256xf32>
    %8 = arith.truncf %7 : vector<256x256xf32> to vector<256x256xbf16>
    %c0_6 = arith.constant 0 : index
    %c0_7 = arith.constant 0 : index
    %9 = vector.load %arg6[%c0_6, %c0_7] : memref<256x256xbf16, #tpu.memory_space<vmem>>, vector<256x256xbf16>
    tpu.vector_store %arg6[%c0_6, %c0_7], %8 {strides = array<i32>} : memref<256x256xbf16, #tpu.memory_space<vmem>>, vector<256x256xbf16>,
    %10 = arith.truncf %7 : vector<256x256xf32> to vector<256x256xbf16>
    %c0_8 = arith.constant 0 : index
    %c0_9 = arith.constant 0 : index
    %11 = vector.load %arg4[%c0_8, %c0_9] : memref<256x128xbf16, #tpu.memory_space<vmem>>, vector<256x128xbf16>
    %cst_10 = arith.constant dense<0.000000e+00> : vector<256x128xf32>
    %12 = tpu.matmul %10, %11, %cst_10 {dimension_numbers = #tpu.dot_dimension_numbers<[1], [0], [0], [1], [0, 0, 1, 1], [], []>} : vector<256x256xbf16>, vector<256x128xbf16>, vector<256x128xf32> -> vector<256x128xf32>
    %c0_11 = arith.constant 0 : index
    %c0_12 = arith.constant 0 : index
    %13 = vector.load %arg5[%c0_11, %c0_12] : memref<1x128xf32, #tpu.memory_space<vmem>>, vector<1x128xf32>
    %14 = vector.broadcast %13 : vector<1x128xf32> to vector<256x128xf32>
    %15 = arith.addf %12, %14 : vector<256x128xf32>
    %c0_13 = arith.constant 0 : index
    %c0_14 = arith.constant 0 : index
    %16 = vector.load %arg7[%c0_13, %c0_14] : memref<256x128xf32, #tpu.memory_space<vmem>>, vector<256x128xf32>
    tpu.vector_store %arg7[%c0_13, %c0_14], %15 {strides = array<i32>} : memref<256x128xf32, #tpu.memory_space<vmem>>, vector<256x128xf32>,
    return
  }
  func.func @transform_0(%arg0: i32) -> (i32, i32) {
    %c0_i32 = arith.constant 0 : i32
    %c0_i32_0 = arith.constant 0 : i32
    return %arg0, %c0_i32 : i32, i32
  }
  func.func @transform_1(%arg0: i32) -> (i32, i32) {
    %c0_i32 = arith.constant 0 : i32
    %c0_i32_0 = arith.constant 0 : i32
    %c0_i32_1 = arith.constant 0 : i32
    return %c0_i32, %c0_i32_0 : i32, i32
  }
  func.func @transform_2(%arg0: i32) -> (i32, i32) {
    %c0_i32 = arith.constant 0 : i32
    %c0_i32_0 = arith.constant 0 : i32
    %c0_i32_1 = arith.constant 0 : i32
    return %c0_i32, %c0_i32_0 : i32, i32
  }
  func.func @transform_3(%arg0: i32) -> (i32, i32) {
    %c0_i32 = arith.constant 0 : i32
    %c0_i32_0 = arith.constant 0 : i32
    %c0_i32_1 = arith.constant 0 : i32
    return %c0_i32, %c0_i32_0 : i32, i32
  }
  func.func @transform_4(%arg0: i32) -> (i32, i32) {
    %c0_i32 = arith.constant 0 : i32
    %c0_i32_0 = arith.constant 0 : i32
    %c0_i32_1 = arith.constant 0 : i32
    return %c0_i32, %c0_i32_0 : i32, i32
  }
  func.func @transform_5(%arg0: i32) -> (i32, i32) {
    %c0_i32 = arith.constant 0 : i32
    %c0_i32_0 = arith.constant 0 : i32
    return %arg0, %c0_i32 : i32, i32
  }
  func.func @transform_6(%arg0: i32) -> (i32, i32) {
    %c0_i32 = arith.constant 0 : i32
    %c0_i32_0 = arith.constant 0 : i32
    return %arg0, %c0_i32 : i32, i32
  }
}

module attributes {stable_mosaic.version = 11 : i64} {
  func.func @_fused_stage_kernel(%arg0: i32, %arg1: memref<128x256xbf16, #tpu.memory_space<vmem>>, %arg2: memref<256x512xbf16, #tpu.memory_space<vmem>>, %arg3: memref<1x512xf32, #tpu.memory_space<vmem>>, %arg4: memref<512x128xbf16, #tpu.memory_space<vmem>>, %arg5: memref<1x128xf32, #tpu.memory_space<vmem>>, %arg6: memref<128x512xbf16, #tpu.memory_space<vmem>>, %arg7: memref<128x128xf32, #tpu.memory_space<vmem>>) attributes {dimension_semantics = [#tpu.dimension_semantics<parallel>], iteration_bounds = array<i64: 1>, scalar_prefetch = 0 : i64, scratch_operands = 0 : i64, tpu.core_type = #tpu.core_type<tc>, window_params = [{transform_indices = @transform_0, window_bounds = array<i64: 128, 256>}, {pipeline_mode = #tpu.pipeline_mode<synchronous>, transform_indices = @transform_1, window_bounds = array<i64: 256, 512>}, {pipeline_mode = #tpu.pipeline_mode<synchronous>, transform_indices = @transform_2, window_bounds = array<i64: 1, 512>}, {pipeline_mode = #tpu.pipeline_mode<synchronous>, transform_indices = @transform_3, window_bounds = array<i64: 512, 128>}, {pipeline_mode = #tpu.pipeline_mode<synchronous>, transform_indices = @transform_4, window_bounds = array<i64: 1, 128>}, {transform_indices = @transform_5, window_bounds = array<i64: 128, 512>}, {transform_indices = @transform_6, window_bounds = array<i64: 128, 128>}]} {
    %c0 = arith.constant 0 : index
    %c0_0 = arith.constant 0 : index
    %0 = vector.load %arg1[%c0, %c0_0] : memref<128x256xbf16, #tpu.memory_space<vmem>>, vector<128x256xbf16>
    %c0_1 = arith.constant 0 : index
    %c0_2 = arith.constant 0 : index
    %1 = vector.load %arg2[%c0_1, %c0_2] : memref<256x512xbf16, #tpu.memory_space<vmem>>, vector<256x512xbf16>
    %cst = arith.constant dense<0.000000e+00> : vector<128x512xf32>
    %2 = tpu.matmul %0, %1, %cst {dimension_numbers = #tpu.dot_dimension_numbers<[1], [0], [0], [1], [0, 0, 1, 1], [], []>} : vector<128x256xbf16>, vector<256x512xbf16>, vector<128x512xf32> -> vector<128x512xf32>
    %c0_3 = arith.constant 0 : index
    %c0_4 = arith.constant 0 : index
    %3 = vector.load %arg3[%c0_3, %c0_4] : memref<1x512xf32, #tpu.memory_space<vmem>>, vector<1x512xf32>
    %4 = vector.broadcast %3 : vector<1x512xf32> to vector<128x512xf32>
    %5 = arith.addf %2, %4 : vector<128x512xf32>
    %cst_5 = arith.constant 0.000000e+00 : f32
    %6 = vector.broadcast %cst_5 : f32 to vector<128x512xf32>
    %7 = arith.maximumf %5, %6 : vector<128x512xf32>
    %8 = arith.truncf %7 : vector<128x512xf32> to vector<128x512xbf16>
    %c0_6 = arith.constant 0 : index
    %c0_7 = arith.constant 0 : index
    %9 = vector.load %arg6[%c0_6, %c0_7] : memref<128x512xbf16, #tpu.memory_space<vmem>>, vector<128x512xbf16>
    tpu.vector_store %arg6[%c0_6, %c0_7], %8 {strides = array<i32>} : memref<128x512xbf16, #tpu.memory_space<vmem>>, vector<128x512xbf16>,
    %10 = arith.truncf %7 : vector<128x512xf32> to vector<128x512xbf16>
    %c0_8 = arith.constant 0 : index
    %c0_9 = arith.constant 0 : index
    %11 = vector.load %arg4[%c0_8, %c0_9] : memref<512x128xbf16, #tpu.memory_space<vmem>>, vector<512x128xbf16>
    %cst_10 = arith.constant dense<0.000000e+00> : vector<128x128xf32>
    %12 = tpu.matmul %10, %11, %cst_10 {dimension_numbers = #tpu.dot_dimension_numbers<[1], [0], [0], [1], [0, 0, 1, 1], [], []>} : vector<128x512xbf16>, vector<512x128xbf16>, vector<128x128xf32> -> vector<128x128xf32>
    %c0_11 = arith.constant 0 : index
    %c0_12 = arith.constant 0 : index
    %13 = vector.load %arg5[%c0_11, %c0_12] : memref<1x128xf32, #tpu.memory_space<vmem>>, vector<1x128xf32>
    %14 = vector.broadcast %13 : vector<1x128xf32> to vector<128x128xf32>
    %15 = arith.addf %12, %14 : vector<128x128xf32>
    %c0_13 = arith.constant 0 : index
    %c0_14 = arith.constant 0 : index
    %16 = vector.load %arg7[%c0_13, %c0_14] : memref<128x128xf32, #tpu.memory_space<vmem>>, vector<128x128xf32>
    tpu.vector_store %arg7[%c0_13, %c0_14], %15 {strides = array<i32>} : memref<128x128xf32, #tpu.memory_space<vmem>>, vector<128x128xf32>,
    return
  }
  func.func @transform_0(%arg0: i32) -> (i32, i32) {
    %c0_i32 = arith.constant 0 : i32
    %c0_i32_0 = arith.constant 0 : i32
    return %arg0, %c0_i32 : i32, i32
  }
  func.func @transform_1(%arg0: i32) -> (i32, i32) {
    %c0_i32 = arith.constant 0 : i32
    %c0_i32_0 = arith.constant 0 : i32
    %c0_i32_1 = arith.constant 0 : i32
    return %c0_i32, %c0_i32_0 : i32, i32
  }
  func.func @transform_2(%arg0: i32) -> (i32, i32) {
    %c0_i32 = arith.constant 0 : i32
    %c0_i32_0 = arith.constant 0 : i32
    %c0_i32_1 = arith.constant 0 : i32
    return %c0_i32, %c0_i32_0 : i32, i32
  }
  func.func @transform_3(%arg0: i32) -> (i32, i32) {
    %c0_i32 = arith.constant 0 : i32
    %c0_i32_0 = arith.constant 0 : i32
    %c0_i32_1 = arith.constant 0 : i32
    return %c0_i32, %c0_i32_0 : i32, i32
  }
  func.func @transform_4(%arg0: i32) -> (i32, i32) {
    %c0_i32 = arith.constant 0 : i32
    %c0_i32_0 = arith.constant 0 : i32
    %c0_i32_1 = arith.constant 0 : i32
    return %c0_i32, %c0_i32_0 : i32, i32
  }
  func.func @transform_5(%arg0: i32) -> (i32, i32) {
    %c0_i32 = arith.constant 0 : i32
    %c0_i32_0 = arith.constant 0 : i32
    return %arg0, %c0_i32 : i32, i32
  }
  func.func @transform_6(%arg0: i32) -> (i32, i32) {
    %c0_i32 = arith.constant 0 : i32
    %c0_i32_0 = arith.constant 0 : i32
    return %arg0, %c0_i32 : i32, i32
  }
}

module attributes {stable_mosaic.version = 11 : i64} {
  func.func @_fused_stage_kernel(%arg0: i32, %arg1: memref<32x512xbf16, #tpu.memory_space<vmem>>, %arg2: memref<512x1024xbf16, #tpu.memory_space<vmem>>, %arg3: memref<1x1024xf32, #tpu.memory_space<vmem>>, %arg4: memref<1024x128xbf16, #tpu.memory_space<vmem>>, %arg5: memref<1x128xf32, #tpu.memory_space<vmem>>, %arg6: memref<32x1024xbf16, #tpu.memory_space<vmem>>, %arg7: memref<32x128xf32, #tpu.memory_space<vmem>>) attributes {dimension_semantics = [#tpu.dimension_semantics<parallel>], iteration_bounds = array<i64: 1>, scalar_prefetch = 0 : i64, scratch_operands = 0 : i64, tpu.core_type = #tpu.core_type<tc>, window_params = [{transform_indices = @transform_0, window_bounds = array<i64: 32, 512>}, {pipeline_mode = #tpu.pipeline_mode<synchronous>, transform_indices = @transform_1, window_bounds = array<i64: 512, 1024>}, {pipeline_mode = #tpu.pipeline_mode<synchronous>, transform_indices = @transform_2, window_bounds = array<i64: 1, 1024>}, {pipeline_mode = #tpu.pipeline_mode<synchronous>, transform_indices = @transform_3, window_bounds = array<i64: 1024, 128>}, {pipeline_mode = #tpu.pipeline_mode<synchronous>, transform_indices = @transform_4, window_bounds = array<i64: 1, 128>}, {transform_indices = @transform_5, window_bounds = array<i64: 32, 1024>}, {transform_indices = @transform_6, window_bounds = array<i64: 32, 128>}]} {
    %c0 = arith.constant 0 : index
    %c0_0 = arith.constant 0 : index
    %0 = vector.load %arg1[%c0, %c0_0] : memref<32x512xbf16, #tpu.memory_space<vmem>>, vector<32x512xbf16>
    %c0_1 = arith.constant 0 : index
    %c0_2 = arith.constant 0 : index
    %1 = vector.load %arg2[%c0_1, %c0_2] : memref<512x1024xbf16, #tpu.memory_space<vmem>>, vector<512x1024xbf16>
    %cst = arith.constant dense<0.000000e+00> : vector<32x1024xf32>
    %2 = tpu.matmul %0, %1, %cst {dimension_numbers = #tpu.dot_dimension_numbers<[1], [0], [0], [1], [0, 0, 1, 1], [], []>} : vector<32x512xbf16>, vector<512x1024xbf16>, vector<32x1024xf32> -> vector<32x1024xf32>
    %c0_3 = arith.constant 0 : index
    %c0_4 = arith.constant 0 : index
    %3 = vector.load %arg3[%c0_3, %c0_4] : memref<1x1024xf32, #tpu.memory_space<vmem>>, vector<1x1024xf32>
    %4 = vector.broadcast %3 : vector<1x1024xf32> to vector<32x1024xf32>
    %5 = arith.addf %2, %4 : vector<32x1024xf32>
    %cst_5 = arith.constant 0.000000e+00 : f32
    %6 = vector.broadcast %cst_5 : f32 to vector<32x1024xf32>
    %7 = arith.maximumf %5, %6 : vector<32x1024xf32>
    %8 = arith.truncf %7 : vector<32x1024xf32> to vector<32x1024xbf16>
    %c0_6 = arith.constant 0 : index
    %c0_7 = arith.constant 0 : index
    %9 = vector.load %arg6[%c0_6, %c0_7] : memref<32x1024xbf16, #tpu.memory_space<vmem>>, vector<32x1024xbf16>
    tpu.vector_store %arg6[%c0_6, %c0_7], %8 {strides = array<i32>} : memref<32x1024xbf16, #tpu.memory_space<vmem>>, vector<32x1024xbf16>,
    %10 = arith.truncf %7 : vector<32x1024xf32> to vector<32x1024xbf16>
    %c0_8 = arith.constant 0 : index
    %c0_9 = arith.constant 0 : index
    %11 = vector.load %arg4[%c0_8, %c0_9] : memref<1024x128xbf16, #tpu.memory_space<vmem>>, vector<1024x128xbf16>
    %cst_10 = arith.constant dense<0.000000e+00> : vector<32x128xf32>
    %12 = tpu.matmul %10, %11, %cst_10 {dimension_numbers = #tpu.dot_dimension_numbers<[1], [0], [0], [1], [0, 0, 1, 1], [], []>} : vector<32x1024xbf16>, vector<1024x128xbf16>, vector<32x128xf32> -> vector<32x128xf32>
    %c0_11 = arith.constant 0 : index
    %c0_12 = arith.constant 0 : index
    %13 = vector.load %arg5[%c0_11, %c0_12] : memref<1x128xf32, #tpu.memory_space<vmem>>, vector<1x128xf32>
    %14 = vector.broadcast %13 : vector<1x128xf32> to vector<32x128xf32>
    %15 = arith.addf %12, %14 : vector<32x128xf32>
    %c0_13 = arith.constant 0 : index
    %c0_14 = arith.constant 0 : index
    %16 = vector.load %arg7[%c0_13, %c0_14] : memref<32x128xf32, #tpu.memory_space<vmem>>, vector<32x128xf32>
    tpu.vector_store %arg7[%c0_13, %c0_14], %15 {strides = array<i32>} : memref<32x128xf32, #tpu.memory_space<vmem>>, vector<32x128xf32>,
    return
  }
  func.func @transform_0(%arg0: i32) -> (i32, i32) {
    %c0_i32 = arith.constant 0 : i32
    %c0_i32_0 = arith.constant 0 : i32
    return %arg0, %c0_i32 : i32, i32
  }
  func.func @transform_1(%arg0: i32) -> (i32, i32) {
    %c0_i32 = arith.constant 0 : i32
    %c0_i32_0 = arith.constant 0 : i32
    %c0_i32_1 = arith.constant 0 : i32
    return %c0_i32, %c0_i32_0 : i32, i32
  }
  func.func @transform_2(%arg0: i32) -> (i32, i32) {
    %c0_i32 = arith.constant 0 : i32
    %c0_i32_0 = arith.constant 0 : i32
    %c0_i32_1 = arith.constant 0 : i32
    return %c0_i32, %c0_i32_0 : i32, i32
  }
  func.func @transform_3(%arg0: i32) -> (i32, i32) {
    %c0_i32 = arith.constant 0 : i32
    %c0_i32_0 = arith.constant 0 : i32
    %c0_i32_1 = arith.constant 0 : i32
    return %c0_i32, %c0_i32_0 : i32, i32
  }
  func.func @transform_4(%arg0: i32) -> (i32, i32) {
    %c0_i32 = arith.constant 0 : i32
    %c0_i32_0 = arith.constant 0 : i32
    %c0_i32_1 = arith.constant 0 : i32
    return %c0_i32, %c0_i32_0 : i32, i32
  }
  func.func @transform_5(%arg0: i32) -> (i32, i32) {
    %c0_i32 = arith.constant 0 : i32
    %c0_i32_0 = arith.constant 0 : i32
    return %arg0, %c0_i32 : i32, i32
  }
  func.func @transform_6(%arg0: i32) -> (i32, i32) {
    %c0_i32 = arith.constant 0 : i32
    %c0_i32_0 = arith.constant 0 : i32
    return %arg0, %c0_i32 : i32, i32
  }
}

module attributes {stable_mosaic.version = 11 : i64} {
  func.func @_fused_stage_kernel(%arg0: i32, %arg1: memref<8x1024xbf16, #tpu.memory_space<vmem>>, %arg2: memref<1024x2048xbf16, #tpu.memory_space<vmem>>, %arg3: memref<1x2048xf32, #tpu.memory_space<vmem>>, %arg4: memref<2048x128xbf16, #tpu.memory_space<vmem>>, %arg5: memref<1x128xf32, #tpu.memory_space<vmem>>, %arg6: memref<8x2048xbf16, #tpu.memory_space<vmem>>, %arg7: memref<8x128xf32, #tpu.memory_space<vmem>>) attributes {dimension_semantics = [#tpu.dimension_semantics<parallel>], iteration_bounds = array<i64: 1>, scalar_prefetch = 0 : i64, scratch_operands = 0 : i64, tpu.core_type = #tpu.core_type<tc>, window_params = [{transform_indices = @transform_0, window_bounds = array<i64: 8, 1024>}, {pipeline_mode = #tpu.pipeline_mode<synchronous>, transform_indices = @transform_1, window_bounds = array<i64: 1024, 2048>}, {pipeline_mode = #tpu.pipeline_mode<synchronous>, transform_indices = @transform_2, window_bounds = array<i64: 1, 2048>}, {pipeline_mode = #tpu.pipeline_mode<synchronous>, transform_indices = @transform_3, window_bounds = array<i64: 2048, 128>}, {pipeline_mode = #tpu.pipeline_mode<synchronous>, transform_indices = @transform_4, window_bounds = array<i64: 1, 128>}, {transform_indices = @transform_5, window_bounds = array<i64: 8, 2048>}, {transform_indices = @transform_6, window_bounds = array<i64: 8, 128>}]} {
    %c0 = arith.constant 0 : index
    %c0_0 = arith.constant 0 : index
    %0 = vector.load %arg1[%c0, %c0_0] : memref<8x1024xbf16, #tpu.memory_space<vmem>>, vector<8x1024xbf16>
    %c0_1 = arith.constant 0 : index
    %c0_2 = arith.constant 0 : index
    %1 = vector.load %arg2[%c0_1, %c0_2] : memref<1024x2048xbf16, #tpu.memory_space<vmem>>, vector<1024x2048xbf16>
    %cst = arith.constant dense<0.000000e+00> : vector<8x2048xf32>
    %2 = tpu.matmul %0, %1, %cst {dimension_numbers = #tpu.dot_dimension_numbers<[1], [0], [0], [1], [0, 0, 1, 1], [], []>} : vector<8x1024xbf16>, vector<1024x2048xbf16>, vector<8x2048xf32> -> vector<8x2048xf32>
    %c0_3 = arith.constant 0 : index
    %c0_4 = arith.constant 0 : index
    %3 = vector.load %arg3[%c0_3, %c0_4] : memref<1x2048xf32, #tpu.memory_space<vmem>>, vector<1x2048xf32>
    %4 = vector.broadcast %3 : vector<1x2048xf32> to vector<8x2048xf32>
    %5 = arith.addf %2, %4 : vector<8x2048xf32>
    %cst_5 = arith.constant 0.000000e+00 : f32
    %6 = vector.broadcast %cst_5 : f32 to vector<8x2048xf32>
    %7 = arith.maximumf %5, %6 : vector<8x2048xf32>
    %8 = arith.truncf %7 : vector<8x2048xf32> to vector<8x2048xbf16>
    %c0_6 = arith.constant 0 : index
    %c0_7 = arith.constant 0 : index
    %9 = vector.load %arg6[%c0_6, %c0_7] : memref<8x2048xbf16, #tpu.memory_space<vmem>>, vector<8x2048xbf16>
    tpu.vector_store %arg6[%c0_6, %c0_7], %8 {strides = array<i32>} : memref<8x2048xbf16, #tpu.memory_space<vmem>>, vector<8x2048xbf16>,
    %10 = arith.truncf %7 : vector<8x2048xf32> to vector<8x2048xbf16>
    %c0_8 = arith.constant 0 : index
    %c0_9 = arith.constant 0 : index
    %11 = vector.load %arg4[%c0_8, %c0_9] : memref<2048x128xbf16, #tpu.memory_space<vmem>>, vector<2048x128xbf16>
    %cst_10 = arith.constant dense<0.000000e+00> : vector<8x128xf32>
    %12 = tpu.matmul %10, %11, %cst_10 {dimension_numbers = #tpu.dot_dimension_numbers<[1], [0], [0], [1], [0, 0, 1, 1], [], []>} : vector<8x2048xbf16>, vector<2048x128xbf16>, vector<8x128xf32> -> vector<8x128xf32>
    %c0_11 = arith.constant 0 : index
    %c0_12 = arith.constant 0 : index
    %13 = vector.load %arg5[%c0_11, %c0_12] : memref<1x128xf32, #tpu.memory_space<vmem>>, vector<1x128xf32>
    %14 = vector.broadcast %13 : vector<1x128xf32> to vector<8x128xf32>
    %15 = arith.addf %12, %14 : vector<8x128xf32>
    %c0_13 = arith.constant 0 : index
    %c0_14 = arith.constant 0 : index
    %16 = vector.load %arg7[%c0_13, %c0_14] : memref<8x128xf32, #tpu.memory_space<vmem>>, vector<8x128xf32>
    tpu.vector_store %arg7[%c0_13, %c0_14], %15 {strides = array<i32>} : memref<8x128xf32, #tpu.memory_space<vmem>>, vector<8x128xf32>,
    return
  }
  func.func @transform_0(%arg0: i32) -> (i32, i32) {
    %c0_i32 = arith.constant 0 : i32
    %c0_i32_0 = arith.constant 0 : i32
    return %arg0, %c0_i32 : i32, i32
  }
  func.func @transform_1(%arg0: i32) -> (i32, i32) {
    %c0_i32 = arith.constant 0 : i32
    %c0_i32_0 = arith.constant 0 : i32
    %c0_i32_1 = arith.constant 0 : i32
    return %c0_i32, %c0_i32_0 : i32, i32
  }
  func.func @transform_2(%arg0: i32) -> (i32, i32) {
    %c0_i32 = arith.constant 0 : i32
    %c0_i32_0 = arith.constant 0 : i32
    %c0_i32_1 = arith.constant 0 : i32
    return %c0_i32, %c0_i32_0 : i32, i32
  }
  func.func @transform_3(%arg0: i32) -> (i32, i32) {
    %c0_i32 = arith.constant 0 : i32
    %c0_i32_0 = arith.constant 0 : i32
    %c0_i32_1 = arith.constant 0 : i32
    return %c0_i32, %c0_i32_0 : i32, i32
  }
  func.func @transform_4(%arg0: i32) -> (i32, i32) {
    %c0_i32 = arith.constant 0 : i32
    %c0_i32_0 = arith.constant 0 : i32
    %c0_i32_1 = arith.constant 0 : i32
    return %c0_i32, %c0_i32_0 : i32, i32
  }
  func.func @transform_5(%arg0: i32) -> (i32, i32) {
    %c0_i32 = arith.constant 0 : i32
    %c0_i32_0 = arith.constant 0 : i32
    return %arg0, %c0_i32 : i32, i32
  }
  func.func @transform_6(%arg0: i32) -> (i32, i32) {
    %c0_i32 = arith.constant 0 : i32
    %c0_i32_0 = arith.constant 0 : i32
    return %arg0, %c0_i32 : i32, i32
  }
}

</mosaic_0001>

<bundles_post_ra>
// kernel: _lambda_.5
= control target key start
LH: loop header
LB: loop body
LE: loop exit
PB: predicated region body
PF: predicated region fallthrough
CT: control target
= control target key end

     0   :  { %12 = vsyncpa [#allocation3], 0  ;;  %s3057_s0 = inlined_call_operand.vmem [shape: bf16[2048,128], index: 0, kind: input, shape index: {}]   ;;  %s3058_s1 = inlined_call_operand.vmem [shape: bf16[128,64], index: 1, kind: input, shape index: {}]   ;;  %s3059_s2 = inlined_call_operand.vmem [shape: f32[1,64], index: 2, kind: input, shape index: {}]   ;;  %s3060_s3 = inlined_call_operand.vmem [shape: bf16[64,128], index: 3, kind: input, shape index: {}]   ;;  %s3061_s4 = inlined_call_operand.vmem [shape: f32[1,128], index: 4, kind: input, shape index: {}]   ;;  %s3062_s5 = inlined_call_operand.vmem [shape: bf16[2048,64], index: 5, kind: output, shape index: {0}]   ;;  %s3063_s6 = inlined_call_operand.hbm [shape: f32[2048,128], index: 6, kind: output, shape index: {1}]  }
   0x1   :  { %14 = vsyncpa [#allocation3 + $0x1], 0  ;;  %s2504_s21 = smov 0   ;;  %s2506_s22 = smov 0  }
   0x2   :  { %s2508_s23 = smov 0   ;;  %s2510_s24 = smov 0  }
   0x3 LB: > { %s2525_s25 = sadd.s32 4294967295, %s2464_s24   ;;  %s1868_s26 = sadd.s32 4294967294, %s2464_s24   ;;  %s2464_s24 = sphi %s2510_s24, %s3069_s24   ;;  %s2460_s23 = sphi %s2508_s23, %s3068_s23   ;;  %s2456_s22 = sphi %s2506_s22, %s3067_s22   ;;  %s2452_s21 = sphi %s2504_s21, %s3066_s21  }
   0x4   : > { %s2529_s27 = sadd.s32 1, %s2464_s24   ;;  %s163_s28 = sadd.s32 1, %s2460_s23 }
   0x5   : > { %s160_s29 = ssub.s32 %s2464_s24, %s2529_s27  ;;  %p173_p0 = scmp.ne.s32.totalorder %s2460_s23, %s2456_s22 }
   0x6   : > { %p161_p1 = scmp.eq.s32.totalorder %s160_s29, 0  ;;  %p174_p2 = scmp.eq.s32.totalorder %s2525_s25, 3 }
   0x7   : > { %p179_p3 = scmp.ne.s32.totalorder %s2456_s22, %s2452_s21  ;;  %p180_p4 = scmp.eq.s32.totalorder %s1868_s26, 3 }
   0x8   : > { %s2540_s30 = scalar_select %p161_p1, %s2460_s23, %s163_s28  }
   0x9   : > { %p2542_p5 = por %p174_p2, %p173_p0  ;;  %p2546_p6 = por %p180_p4, %p179_p3 }
   0xa   : > { %p1871_p7 = scmp.ge.s32.totalorder %s2464_s24, 1  ;;  %p219_p8 = scmp.lt.s32.totalorder %s2464_s24, 5 }
   0xc   : > { %p220_p9 = pnand %p1871_p7, %p219_p8 }
   0xd   : > { %v2358_v0 = vld [vmem:[%s3058_s1] sm:$0xff] (!%p220_p9)   ;;  %s1873_s11 = sshll.u32 (!%p220_p9), %s2525_s25, 6  ;;  %v2359_v1 = vld [vmem:[%s3058_s1 + $0x8] sm:$0xff] (!%p220_p9)   ;;  %v2360_v2 = vld [vmem:[%s3058_s1 + $0x10] sm:$0xff] (!%p220_p9)   ;;  %vm1204_vm0 = vcmask (!%p220_p9), 519168   ;;  %vm1308_vm1 = vcmask (!%p220_p9), 523264  }
   0xe   : > { %223 = sbr.rel (%p220_p9) target bundleno = 620 (0x26c), region = 40  ;;  %p255_p10 = scmp.lt.s32.totalorder (!%p220_p9), %s1873_s11, 255  ;;  %2165 = vmatprep.subr.bf16.mxu0 (!%p220_p9), %v2358_v0  ;;  %v2361_v3 = vld [vmem:[%s3058_s1 + $0x18] sm:$0xff] (!%p220_p9)   ;;  %v2362_v5 = vld [vmem:[%s3058_s1 + $0x20] sm:$0xff] (!%p220_p9)   ;;  %v2363_v6 = vld [vmem:[%s3058_s1 + $0x28] sm:$0xff] (!%p220_p9)  }
   0xf   : > { %2166 = vmatpush3.bf16.msra.mxu0 (!%p220_p9), %v2358_v0  ;;  %v2364_v7 = vld [vmem:[%s3058_s1 + $0x30] sm:$0xff] (!%p220_p9)   ;;  %v2365_v8 = vld [vmem:[%s3058_s1 + $0x38] sm:$0xff] (!%p220_p9)   ;;  %v2398_v13 = vld [vmem:[%s3060_s3] sm:$0xff] (!%p220_p9)   ;;  %s2088_s26 = sshll.u32 (!%p220_p9), %s2525_s25, 13  ;;  %s2466_s13 = smov (!%p220_p9), [#allocation2]  }
  0x10   : > { %2167 = vmatprep.subr.bf16.mxu0 (!%p220_p9), %v2359_v1  ;;  %v2399_v14 = vld [vmem:[%s3060_s3 + $0x8] sm:$0xff] (!%p220_p9)   ;;  %2245 = vmatprep.subr.bf16.mxu1 (!%p220_p9), %v2398_v13  ;;  %v2400_v34 = vld [vmem:[%s3060_s3 + $0x10] sm:$0xff] (!%p220_p9)   ;;  %v2401_v36 = vld [vmem:[%s3060_s3 + $0x18] sm:$0xff] (!%p220_p9)   ;;  %s3006_s10 = scalar_lea.hbm (!%p220_p9), %s3063_s6, %s2088_s26  ;;  %s2406_s14 = sshll.u32 (!%p220_p9), %s2466_s13, 4  ;;  %s2407_s14 = int_to_ptr.vmem [resolvable:$false] %s2406_s14 }
  0x11   : > { %2246 = vmatpush3.bf16.msra.mxu1 (!%p220_p9), %v2398_v13  ;;  %v2634_v44 = vld [vmem:[%s3059_s2] ss:$0 sm:$0xff] (!%p220_p9) }
  0x12   : > { %2247 = vmatprep.subr.bf16.mxu1 (!%p220_p9), %v2399_v14 }
  0x13   : > { %2168 = vmatpush3.bf16.msra.mxu0 (!%p220_p9), %v2359_v1 }
  0x14   : > { %2169 = vmatprep.subr.bf16.mxu0 (!%p220_p9), %v2360_v2 }
  0x15   : > { %s3071_s11 = smov (!%p255_p10, %s1873_s11), 255  ;;  %2248 = vmatpush3.bf16.msra.mxu1 %v2399_v14 }
  0x16   : > { %s1874_s16 = sshll.u32 %s3071_s11, 2  ;;  %2249 = vmatprep.subr.bf16.mxu1 %v2400_v34  ;;  %s251_s11 = sand.u32 1, %s2456_s22  }
  0x17   : > { %s2570_s19 = scalar_lea.vmem %s3057_s0, %s1874_s16  ;;  %2170 = vmatpush3.bf16.msra.mxu0 %v2360_v2  ;;  %s2644_s15 = scalar_lea.vmem %s3062_s5, %s1874_s16 }
  0x18   : > { %v2366_v4 = vld [vmem:[%s2570_s19] sm:$0xff]   ;;  %2171 = vmatprep.subr.bf16.mxu0 %v2361_v3  ;;  %v2367_v9 = vld [vmem:[%s2570_s19 + $0x8] sm:$0xff]   ;;  %v2368_v10 = vld [vmem:[%s2570_s19 + $0x10] sm:$0xff]   ;;  %s1872_s16 = sshll.u32 %s251_s11, 9  ;;  %s3016_s25 = scalar_lea.sflag [#allocation3], %s251_s11 }
  0x19   : > { %2181 = vmatprep.mubr.bf16.mxu0 %v2366_v4  ;;  %v2369_v11 = vld [vmem:[%s2570_s19 + $0x18] sm:$0xff]   ;;  %v2370_v12 = vld [vmem:[%s2570_s19 + $0x20] sm:$0xff]   ;;  %v2371_v15 = vld [vmem:[%s2570_s19 + $0x28] sm:$0xff]   ;;  %2250 = vmatpush3.bf16.msra.mxu1 %v2400_v34  ;;  %s2877_s20 = scalar_lea.vmem [#allocation2], %s1872_s16 }
  0x1a   : > { %v2372_v16 = vld [vmem:[%s2570_s19 + $0x30] sm:$0xff]   ;;  %v2373_v17 = vld [vmem:[%s2570_s19 + $0x38] sm:$0xff]   ;;  %v2374_v18 = vld [vmem:[%s2570_s19 + $0x40] sm:$0xff]   ;;  %2251 = vmatprep.subr.bf16.mxu1 %v2401_v36  ;;  %s1781_s28 = sshll.u32 %s2877_s20, 4  ;;  %s3008_s28 = int_to_ptr.vmem [resolvable:$true] %s1781_s28 }
  0x1b   : > { %2172 = vmatpush3.bf16.msra.mxu0 %v2361_v3  ;;  %v2375_v19 = vld [vmem:[%s2570_s19 + $0x48] sm:$0xff]   ;;  %v2376_v20 = vld [vmem:[%s2570_s19 + $0x50] sm:$0xff]   ;;  %v2377_v21 = vld [vmem:[%s2570_s19 + $0x58] sm:$0xff]   ;;  %s2402_s12 = scalar_lea.vmem %s3008_s28, 8192  ;;  %p2409_p0 = scmp.lt.s32.totalorder %s3008_s28, %s2407_s14 }
  0x1c   : > { %2173 = vmatprep.subr.bf16.mxu0 %v2362_v5  ;;  %v2378_v22 = vld [vmem:[%s2570_s19 + $0x60] sm:$0xff]   ;;  %v2379_v23 = vld [vmem:[%s2570_s19 + $0x68] sm:$0xff]   ;;  %v2380_v24 = vld [vmem:[%s2570_s19 + $0x70] sm:$0xff]   ;;  %p2403_p11 = scmp.ne.s32.totalorder %s3008_s28, %s2402_s12 }
  0x1d   : > { %v2381_v25 = vld [vmem:[%s2570_s19 + $0x78] sm:$0xff]   ;;  %v2382_v26 = vld [vmem:[%s2570_s19 + $0x80] sm:$0xff]   ;;  %v2383_v27 = vld [vmem:[%s2570_s19 + $0x88] sm:$0xff]   ;;  %2252 = vmatpush3.bf16.msra.mxu1 %v2401_v36 }
  0x1e   : > { %v2384_v28 = vld [vmem:[%s2570_s19 + $0x90] sm:$0xff]   ;;  %v2385_v29 = vld [vmem:[%s2570_s19 + $0x98] sm:$0xff]   ;;  %v2386_v30 = vld [vmem:[%s2570_s19 + $0xa0] sm:$0xff]   ;;  %p2404_p12 = pnand %p2403_p11, %p2542_p5 }
  0x1f   : > { %2174 = vmatpush3.bf16.msra.mxu0 %v2362_v5  ;;  %v2387_v31 = vld [vmem:[%s2570_s19 + $0xa8] sm:$0xff]   ;;  %v2388_v32 = vld [vmem:[%s2570_s19 + $0xb0] sm:$0xff]   ;;  %v2389_v33 = vld [vmem:[%s2570_s19 + $0xb8] sm:$0xff]  }
  0x20   : > { %2175 = vmatprep.subr.bf16.mxu0 %v2363_v6  ;;  %v2390_v35 = vld [vmem:[%s2570_s19 + $0xc0] sm:$0xff]   ;;  %v2391_v37 = vld [vmem:[%s2570_s19 + $0xc8] sm:$0xff]   ;;  %v2392_v38 = vld [vmem:[%s2570_s19 + $0xd0] sm:$0xff]   ;;  %p2405_p13 = pneg %p2404_p12 }
  0x21   : > { %v2393_v39 = vld [vmem:[%s2570_s19 + $0xd8] sm:$0xff]   ;;  %v2394_v40 = vld [vmem:[%s2570_s19 + $0xe0] sm:$0xff]   ;;  %v2395_v41 = vld [vmem:[%s2570_s19 + $0xe8] sm:$0xff]  }
  0x22   : > { %v2396_v42 = vld [vmem:[%s2570_s19 + $0xf0] sm:$0xff]   ;;  %v2397_v43 = vld [vmem:[%s2570_s19 + $0xf8] sm:$0xff]   ;;  %s2408_s19 = scalar_lea.vmem %s2407_s14, 16384 }
  0x23   : > { %2176 = vmatpush3.bf16.msra.mxu0 %v2363_v6  ;;  %p2410_p1 = scmp.lt.s32.totalorder %s2408_s19, %s2402_s12 }
  0x24   : > { %2177 = vmatprep.subr.bf16.mxu0 %v2364_v7 }
  0x25   : > { %p2411_p2 = por %p2410_p1, %p2409_p0 }
  0x27   : > { %2178 = vmatpush3.bf16.msra.mxu0 %v2364_v7  ;;  %p2412_p3 = pnand %p2411_p2, %p2405_p13 }
  0x28   : > { %2179 = vmatprep.subr.bf16.mxu0 %v2365_v8 }
  0x2b   : > { %2180 = vmatpush3.bf16.msra.mxu0 %v2365_v8 }
  0x2e   : > { %2182 = vmatmul.mubr.bf16.vlgmr.msra.gmra.mrb[0].mxu0 %v2367_v9 }
  0x2f   : > { %2185 = vmatprep.mubr.bf16.mxu0 %v2368_v10 }
  0x36   : > { %2186 = vmatmul.mubr.bf16.gmra.mrb[4].mxu0 %v2369_v11 }
  0x37   : > { %2189 = vmatprep.mubr.bf16.mxu0 %v2370_v12 }
  0x3e   : > { %2190 = vmatmul.mubr.bf16.gmra.mrb[8].mxu0 %v2371_v15 }
  0x3f   : > { %2193 = vmatprep.mubr.bf16.mxu0 %v2372_v16 }
  0x46   : > { %2194 = vmatmul.mubr.bf16.gmra.mrb[12].mxu0 %v2373_v17 }
  0x47   : > { %2197 = vmatprep.mubr.bf16.mxu0 %v2374_v18 }
  0x4e   : > { %2198 = vmatmul.mubr.bf16.gmra.mrb[16].mxu0 %v2375_v19 }
  0x4f   : > { %2201 = vmatprep.mubr.bf16.mxu0 %v2376_v20 }
  0x56   : > { %2202 = vmatmul.mubr.bf16.gmra.mrb[20].mxu0 %v2377_v21 }
  0x57   : > { %2205 = vmatprep.mubr.bf16.mxu0 %v2378_v22 }
  0x5e   : > { %2206 = vmatmul.mubr.bf16.gmra.mrb[24].mxu0 %v2379_v23 }
  0x5f   : > { %2209 = vmatprep.mubr.bf16.mxu0 %v2380_v24 }
  0x66   : > { %2210 = vmatmul.mubr.bf16.gmra.mrb[28].mxu0 %v2381_v25 }
  0x67   : > { %2213 = vmatprep.mubr.bf16.mxu0 %v2382_v26 }
  0x6e   : > { %2214 = vmatmul.mubr.bf16.gmra.mrb[32].mxu0 %v2383_v27 }
  0x6f   : > { %2217 = vmatprep.mubr.bf16.mxu0 %v2384_v28 }
  0x76   : > { %2218 = vmatmul.mubr.bf16.gmra.mrb[36].mxu0 %v2385_v29 }
  0x77   : > { %2221 = vmatprep.mubr.bf16.mxu0 %v2386_v30 }
  0x7e   : > { %2222 = vmatmul.mubr.bf16.gmra.mrb[40].mxu0 %v2387_v31 }
  0x7f   : > { %2225 = vmatprep.mubr.bf16.mxu0 %v2388_v32 }
  0x86   : > { %2226 = vmatmul.mubr.bf16.gmra.mrb[44].mxu0 %v2389_v33 }
  0x87   : > { %2229 = vmatprep.mubr.bf16.mxu0 %v2390_v35 }
  0x8e   : > { %2230 = vmatmul.mubr.bf16.gmra.mrb[48].mxu0 %v2391_v37 }
  0x8f   : > { %2233 = vmatprep.mubr.bf16.mxu0 %v2392_v38 }
  0x96   : > { %2234 = vmatmul.mubr.bf16.gmra.mrb[52].mxu0 %v2393_v39 }
  0x97   : > { %2237 = vmatprep.mubr.bf16.mxu0 %v2394_v40 }
  0x9e   : > { %2238 = vmatmul.mubr.bf16.gmra.mrb[56].mxu0 %v2395_v41 }
  0x9f   : > { %2241 = vmatprep.mubr.bf16.mxu0 %v2396_v42 }
  0xa6   : > { %2242 = vmatmul.mubr.bf16.gmra.mrb[60].mxu0 %v2397_v43 }
 0x101   : > { %v2183_v45 = vpop.f32.mrb[0].mxu0 }
 0x102   : > { %v638_v46 = vadd.f32 %v2183_v45, %v2634_v44  ;;  %v629_v47 = vpop.f32.mrb[1].mxu0 }
 0x103   : > { %v630_v48 = vadd.f32 %v2634_v44, %v629_v47  ;;  %v2184_v49 = vpop.f32.mrb[2].mxu0 }
 0x104   : > { %v886_v50 = vmax.f32 %v638_v46, 0.0  ;;  %v641_v51 = vadd.f32 %v2184_v49, %v2634_v44  ;;  %v632_v52 = vpop.f32.mrb[3].mxu0 }
 0x105   : > { %v884_v53 = vmax.f32 %v630_v48, 0.0  ;;  %v633_v54 = vadd.f32 %v2634_v44, %v632_v52 }
 0x106   : > { %v2026_v55 = vpack.c.bf16 %v886_v50, %v886_v50  ;;  %v887_v56 = vmax.f32 %v641_v51, 0.0 }
 0x107   : > { %v2024_v57 = vpack.c.bf16 %v884_v53, %v884_v53  ;;  %v885_v58 = vmax.f32 %v633_v54, 0.0 }
 0x108   : > { %1207 = vst.msk [vmem:[%s2644_s15 + $0x8] sm:$0xf] %vm1204_vm0, %v2026_v55  ;;  %v949_v59 = vpack.c.bf16 %v887_v56, %v886_v50  ;;  %v2027_v60 = vpack.c.bf16 %v887_v56, %v887_v56 }
 0x109   : > { %1205 = vst.msk [vmem:[%s2644_s15] sm:$0xf] %vm1204_vm0, %v2024_v57  ;;  %v2025_v61 = vpack.c.bf16 %v885_v58, %v885_v58  ;;  %v2187_v62 = vpop.f32.mrb[4].mxu0  ;;  %v948_v63 = vpack.c.bf16 %v885_v58, %v884_v53 }
 0x10a   : > { %1208 = vst.msk [vmem:[%s2644_s15 + $0xc] sm:$0xf] %vm1204_vm0, %v2027_v60  ;;  %v654_v0 = vadd.f32 %v2187_v62, %v2634_v44  ;;  %v645_v1 = vpop.f32.mrb[5].mxu0 }
 0x10b   : > { %1206 = vst.msk [vmem:[%s2644_s15 + $0x4] sm:$0xf] %vm1204_vm0, %v2025_v61  ;;  %v646_v2 = vadd.f32 %v2634_v44, %v645_v1  ;;  %v2188_v3 = vpop.f32.mrb[6].mxu0  ;;  %2253 = vmatprep.mubr.msk.bf16.mxu1 %vm1308_vm1, %v948_v63 }
 0x10c   : > { %v890_v4 = vmax.f32 %v654_v0, 0.0  ;;  %v657_v5 = vadd.f32 %v2188_v3, %v2634_v44  ;;  %v648_v6 = vpop.f32.mrb[7].mxu0  ;;  %2254 = vmatmul.mubr.msk.bf16.vlgmr.msra.gmra.mrb[0].mxu1 %vm1308_vm1, %v949_v59 }
 0x10d   : > { %v888_v7 = vmax.f32 %v646_v2, 0.0  ;;  %v649_v8 = vadd.f32 %v2634_v44, %v648_v6 }
 0x10e   : > { %v2030_v9 = vpack.c.bf16 %v890_v4, %v890_v4  ;;  %v891_v10 = vmax.f32 %v657_v5, 0.0 }
 0x10f   : > { %v2028_v11 = vpack.c.bf16 %v888_v7, %v888_v7  ;;  %v889_v12 = vmax.f32 %v649_v8, 0.0 }
 0x110   : > { %1211 = vst.msk [vmem:[%s2644_s15 + $0x18] sm:$0xf] %vm1204_vm0, %v2030_v9  ;;  %v951_v13 = vpack.c.bf16 %v891_v10, %v890_v4  ;;  %v2031_v14 = vpack.c.bf16 %v891_v10, %v891_v10 }
 0x111   : > { %1209 = vst.msk [vmem:[%s2644_s15 + $0x10] sm:$0xf] %vm1204_vm0, %v2028_v11  ;;  %v950_v15 = vpack.c.bf16 %v889_v12, %v888_v7  ;;  %v2029_v16 = vpack.c.bf16 %v889_v12, %v889_v12  ;;  %v2191_v17 = vpop.f32.mrb[8].mxu0 }
 0x112   : > { %1212 = vst.msk [vmem:[%s2644_s15 + $0x1c] sm:$0xf] %vm1204_vm0, %v2031_v14  ;;  %v670_v18 = vadd.f32 %v2191_v17, %v2634_v44  ;;  %v661_v19 = vpop.f32.mrb[9].mxu0 }
 0x113   : > { %1210 = vst.msk [vmem:[%s2644_s15 + $0x14] sm:$0xf] %vm1204_vm0, %v2029_v16  ;;  %v662_v20 = vadd.f32 %v2634_v44, %v661_v19  ;;  %v2192_v21 = vpop.f32.mrb[10].mxu0  ;;  %2257 = vmatprep.mubr.msk.bf16.mxu1 %vm1308_vm1, %v950_v15 }
 0x114   : > { %v894_v22 = vmax.f32 %v670_v18, 0.0  ;;  %v673_v23 = vadd.f32 %v2192_v21, %v2634_v44  ;;  %v664_v24 = vpop.f32.mrb[11].mxu0  ;;  %2258 = vmatmul.mubr.msk.bf16.gmra.mrb[4].mxu1 %vm1308_vm1, %v951_v13 }
 0x115   : > { %v892_v25 = vmax.f32 %v662_v20, 0.0  ;;  %v665_v26 = vadd.f32 %v2634_v44, %v664_v24 }
 0x116   : > { %v2034_v27 = vpack.c.bf16 %v894_v22, %v894_v22  ;;  %v895_v28 = vmax.f32 %v673_v23, 0.0 }
 0x117   : > { %v2032_v29 = vpack.c.bf16 %v892_v25, %v892_v25  ;;  %v893_v30 = vmax.f32 %v665_v26, 0.0 }
 0x118   : > { %1215 = vst.msk [vmem:[%s2644_s15 + $0x28] sm:$0xf] %vm1204_vm0, %v2034_v27  ;;  %v953_v31 = vpack.c.bf16 %v895_v28, %v894_v22  ;;  %v2035_v32 = vpack.c.bf16 %v895_v28, %v895_v28 }
 0x119   : > { %1213 = vst.msk [vmem:[%s2644_s15 + $0x20] sm:$0xf] %vm1204_vm0, %v2032_v29  ;;  %v952_v33 = vpack.c.bf16 %v893_v30, %v892_v25  ;;  %v2033_v34 = vpack.c.bf16 %v893_v30, %v893_v30  ;;  %v2195_v35 = vpop.f32.mrb[12].mxu0 }
 0x11a   : > { %1216 = vst.msk [vmem:[%s2644_s15 + $0x2c] sm:$0xf] %vm1204_vm0, %v2035_v32  ;;  %v686_v36 = vadd.f32 %v2195_v35, %v2634_v44  ;;  %v677_v37 = vpop.f32.mrb[13].mxu0 }
 0x11b   : > { %1214 = vst.msk [vmem:[%s2644_s15 + $0x24] sm:$0xf] %vm1204_vm0, %v2033_v34  ;;  %v678_v38 = vadd.f32 %v2634_v44, %v677_v37  ;;  %v2196_v39 = vpop.f32.mrb[14].mxu0  ;;  %2261 = vmatprep.mubr.msk.bf16.mxu1 %vm1308_vm1, %v952_v33 }
 0x11c   : > { %v898_v40 = vmax.f32 %v686_v36, 0.0  ;;  %v689_v41 = vadd.f32 %v2196_v39, %v2634_v44  ;;  %v680_v42 = vpop.f32.mrb[15].mxu0  ;;  %2262 = vmatmul.mubr.msk.bf16.gmra.mrb[8].mxu1 %vm1308_vm1, %v953_v31 }
 0x11d   : > { %v896_v43 = vmax.f32 %v678_v38, 0.0  ;;  %v681_v45 = vadd.f32 %v2634_v44, %v680_v42 }
 0x11e   : > { %v2038_v46 = vpack.c.bf16 %v898_v40, %v898_v40  ;;  %v899_v47 = vmax.f32 %v689_v41, 0.0 }
 0x11f   : > { %v2036_v48 = vpack.c.bf16 %v896_v43, %v896_v43  ;;  %v897_v49 = vmax.f32 %v681_v45, 0.0 }
 0x120   : > { %1219 = vst.msk [vmem:[%s2644_s15 + $0x38] sm:$0xf] %vm1204_vm0, %v2038_v46  ;;  %v955_v50 = vpack.c.bf16 %v899_v47, %v898_v40  ;;  %v2039_v51 = vpack.c.bf16 %v899_v47, %v899_v47 }
 0x121   : > { %1217 = vst.msk [vmem:[%s2644_s15 + $0x30] sm:$0xf] %vm1204_vm0, %v2036_v48  ;;  %v954_v52 = vpack.c.bf16 %v897_v49, %v896_v43  ;;  %v2037_v53 = vpack.c.bf16 %v897_v49, %v897_v49  ;;  %v2199_v54 = vpop.f32.mrb[16].mxu0 }
 0x122   : > { %1220 = vst.msk [vmem:[%s2644_s15 + $0x3c] sm:$0xf] %vm1204_vm0, %v2039_v51  ;;  %v702_v55 = vadd.f32 %v2199_v54, %v2634_v44  ;;  %v693_v56 = vpop.f32.mrb[17].mxu0 }
 0x123   : > { %1218 = vst.msk [vmem:[%s2644_s15 + $0x34] sm:$0xf] %vm1204_vm0, %v2037_v53  ;;  %v694_v57 = vadd.f32 %v2634_v44, %v693_v56  ;;  %v2200_v58 = vpop.f32.mrb[18].mxu0  ;;  %2265 = vmatprep.mubr.msk.bf16.mxu1 %vm1308_vm1, %v954_v52 }
 0x124   : > { %v902_v59 = vmax.f32 %v702_v55, 0.0  ;;  %v705_v60 = vadd.f32 %v2200_v58, %v2634_v44  ;;  %v696_v61 = vpop.f32.mrb[19].mxu0  ;;  %2266 = vmatmul.mubr.msk.bf16.gmra.mrb[12].mxu1 %vm1308_vm1, %v955_v50 }
 0x125   : > { %v900_v62 = vmax.f32 %v694_v57, 0.0  ;;  %v697_v63 = vadd.f32 %v2634_v44, %v696_v61 }
 0x126   : > { %v2042_v0 = vpack.c.bf16 %v902_v59, %v902_v59  ;;  %v903_v1 = vmax.f32 %v705_v60, 0.0 }
 0x127   : > { %v2040_v2 = vpack.c.bf16 %v900_v62, %v900_v62  ;;  %v901_v3 = vmax.f32 %v697_v63, 0.0 }
 0x128   : > { %1223 = vst.msk [vmem:[%s2644_s15 + $0x48] sm:$0xf] %vm1204_vm0, %v2042_v0  ;;  %v957_v4 = vpack.c.bf16 %v903_v1, %v902_v59  ;;  %v2043_v5 = vpack.c.bf16 %v903_v1, %v903_v1 }
 0x129   : > { %1221 = vst.msk [vmem:[%s2644_s15 + $0x40] sm:$0xf] %vm1204_vm0, %v2040_v2  ;;  %v956_v6 = vpack.c.bf16 %v901_v3, %v900_v62  ;;  %v2041_v7 = vpack.c.bf16 %v901_v3, %v901_v3  ;;  %v2203_v8 = vpop.f32.mrb[20].mxu0 }
 0x12a   : > { %1224 = vst.msk [vmem:[%s2644_s15 + $0x4c] sm:$0xf] %vm1204_vm0, %v2043_v5  ;;  %v718_v9 = vadd.f32 %v2203_v8, %v2634_v44  ;;  %v709_v10 = vpop.f32.mrb[21].mxu0 }
 0x12b   : > { %1222 = vst.msk [vmem:[%s2644_s15 + $0x44] sm:$0xf] %vm1204_vm0, %v2041_v7  ;;  %v710_v11 = vadd.f32 %v2634_v44, %v709_v10  ;;  %v2204_v12 = vpop.f32.mrb[22].mxu0  ;;  %2269 = vmatprep.mubr.msk.bf16.mxu1 %vm1308_vm1, %v956_v6 }
 0x12c   : > { %v906_v13 = vmax.f32 %v718_v9, 0.0  ;;  %v721_v14 = vadd.f32 %v2204_v12, %v2634_v44  ;;  %v712_v15 = vpop.f32.mrb[23].mxu0  ;;  %2270 = vmatmul.mubr.msk.bf16.gmra.mrb[16].mxu1 %vm1308_vm1, %v957_v4 }
 0x12d   : > { %v904_v16 = vmax.f32 %v710_v11, 0.0  ;;  %v713_v17 = vadd.f32 %v2634_v44, %v712_v15 }
 0x12e   : > { %v2046_v18 = vpack.c.bf16 %v906_v13, %v906_v13  ;;  %v907_v19 = vmax.f32 %v721_v14, 0.0 }
 0x12f   : > { %v2044_v20 = vpack.c.bf16 %v904_v16, %v904_v16  ;;  %v905_v21 = vmax.f32 %v713_v17, 0.0 }
 0x130   : > { %1227 = vst.msk [vmem:[%s2644_s15 + $0x58] sm:$0xf] %vm1204_vm0, %v2046_v18  ;;  %v959_v22 = vpack.c.bf16 %v907_v19, %v906_v13  ;;  %v2047_v23 = vpack.c.bf16 %v907_v19, %v907_v19 }
 0x131   : > { %1225 = vst.msk [vmem:[%s2644_s15 + $0x50] sm:$0xf] %vm1204_vm0, %v2044_v20  ;;  %v958_v24 = vpack.c.bf16 %v905_v21, %v904_v16  ;;  %v2045_v25 = vpack.c.bf16 %v905_v21, %v905_v21  ;;  %v2207_v26 = vpop.f32.mrb[24].mxu0 }
 0x132   : > { %1228 = vst.msk [vmem:[%s2644_s15 + $0x5c] sm:$0xf] %vm1204_vm0, %v2047_v23  ;;  %v734_v27 = vadd.f32 %v2207_v26, %v2634_v44  ;;  %v725_v28 = vpop.f32.mrb[25].mxu0 }
 0x133   : > { %1226 = vst.msk [vmem:[%s2644_s15 + $0x54] sm:$0xf] %vm1204_vm0, %v2045_v25  ;;  %v726_v29 = vadd.f32 %v2634_v44, %v725_v28  ;;  %v2208_v30 = vpop.f32.mrb[26].mxu0  ;;  %2273 = vmatprep.mubr.msk.bf16.mxu1 %vm1308_vm1, %v958_v24 }
 0x134   : > { %v910_v31 = vmax.f32 %v734_v27, 0.0  ;;  %v737_v32 = vadd.f32 %v2208_v30, %v2634_v44  ;;  %v728_v33 = vpop.f32.mrb[27].mxu0  ;;  %2274 = vmatmul.mubr.msk.bf16.gmra.mrb[20].mxu1 %vm1308_vm1, %v959_v22 }
 0x135   : > { %v908_v34 = vmax.f32 %v726_v29, 0.0  ;;  %v729_v35 = vadd.f32 %v2634_v44, %v728_v33 }
 0x136   : > { %v2050_v36 = vpack.c.bf16 %v910_v31, %v910_v31  ;;  %v911_v37 = vmax.f32 %v737_v32, 0.0 }
 0x137   : > { %v2048_v38 = vpack.c.bf16 %v908_v34, %v908_v34  ;;  %v909_v39 = vmax.f32 %v729_v35, 0.0 }
 0x138   : > { %1231 = vst.msk [vmem:[%s2644_s15 + $0x68] sm:$0xf] %vm1204_vm0, %v2050_v36  ;;  %v961_v40 = vpack.c.bf16 %v911_v37, %v910_v31  ;;  %v2051_v41 = vpack.c.bf16 %v911_v37, %v911_v37 }
 0x139   : > { %1229 = vst.msk [vmem:[%s2644_s15 + $0x60] sm:$0xf] %vm1204_vm0, %v2048_v38  ;;  %v960_v42 = vpack.c.bf16 %v909_v39, %v908_v34  ;;  %v2049_v43 = vpack.c.bf16 %v909_v39, %v909_v39  ;;  %v2211_v45 = vpop.f32.mrb[28].mxu0 }
 0x13a   : > { %1232 = vst.msk [vmem:[%s2644_s15 + $0x6c] sm:$0xf] %vm1204_vm0, %v2051_v41  ;;  %v750_v46 = vadd.f32 %v2211_v45, %v2634_v44  ;;  %v741_v47 = vpop.f32.mrb[29].mxu0 }
 0x13b   : > { %1230 = vst.msk [vmem:[%s2644_s15 + $0x64] sm:$0xf] %vm1204_vm0, %v2049_v43  ;;  %v742_v48 = vadd.f32 %v2634_v44, %v741_v47  ;;  %v2212_v49 = vpop.f32.mrb[30].mxu0  ;;  %2277 = vmatprep.mubr.msk.bf16.mxu1 %vm1308_vm1, %v960_v42 }
 0x13c   : > { %v914_v50 = vmax.f32 %v750_v46, 0.0  ;;  %v753_v51 = vadd.f32 %v2212_v49, %v2634_v44  ;;  %v744_v52 = vpop.f32.mrb[31].mxu0  ;;  %2278 = vmatmul.mubr.msk.bf16.gmra.mrb[24].mxu1 %vm1308_vm1, %v961_v40 }
 0x13d   : > { %v912_v53 = vmax.f32 %v742_v48, 0.0  ;;  %v745_v54 = vadd.f32 %v2634_v44, %v744_v52 }
 0x13e   : > { %v2054_v55 = vpack.c.bf16 %v914_v50, %v914_v50  ;;  %v915_v56 = vmax.f32 %v753_v51, 0.0 }
 0x13f   : > { %v2052_v57 = vpack.c.bf16 %v912_v53, %v912_v53  ;;  %v913_v58 = vmax.f32 %v745_v54, 0.0 }
 0x140   : > { %1235 = vst.msk [vmem:[%s2644_s15 + $0x78] sm:$0xf] %vm1204_vm0, %v2054_v55  ;;  %v963_v59 = vpack.c.bf16 %v915_v56, %v914_v50  ;;  %v2055_v60 = vpack.c.bf16 %v915_v56, %v915_v56 }
 0x141   : > { %1233 = vst.msk [vmem:[%s2644_s15 + $0x70] sm:$0xf] %vm1204_vm0, %v2052_v57  ;;  %v962_v61 = vpack.c.bf16 %v913_v58, %v912_v53  ;;  %v2053_v62 = vpack.c.bf16 %v913_v58, %v913_v58  ;;  %v2215_v63 = vpop.f32.mrb[32].mxu0 }
 0x142   : > { %1236 = vst.msk [vmem:[%s2644_s15 + $0x7c] sm:$0xf] %vm1204_vm0, %v2055_v60  ;;  %v766_v0 = vadd.f32 %v2215_v63, %v2634_v44  ;;  %v757_v1 = vpop.f32.mrb[33].mxu0 }
 0x143   : > { %1234 = vst.msk [vmem:[%s2644_s15 + $0x74] sm:$0xf] %vm1204_vm0, %v2053_v62  ;;  %v758_v2 = vadd.f32 %v2634_v44, %v757_v1  ;;  %v2216_v3 = vpop.f32.mrb[34].mxu0  ;;  %2281 = vmatprep.mubr.msk.bf16.mxu1 %vm1308_vm1, %v962_v61 }
 0x144   : > { %v918_v4 = vmax.f32 %v766_v0, 0.0  ;;  %v769_v5 = vadd.f32 %v2216_v3, %v2634_v44  ;;  %v760_v6 = vpop.f32.mrb[35].mxu0  ;;  %2282 = vmatmul.mubr.msk.bf16.gmra.mrb[28].mxu1 %vm1308_vm1, %v963_v59 }
 0x145   : > { %v916_v7 = vmax.f32 %v758_v2, 0.0  ;;  %v761_v8 = vadd.f32 %v2634_v44, %v760_v6 }
 0x146   : > { %v2058_v9 = vpack.c.bf16 %v918_v4, %v918_v4  ;;  %v919_v10 = vmax.f32 %v769_v5, 0.0 }
 0x147   : > { %v2056_v11 = vpack.c.bf16 %v916_v7, %v916_v7  ;;  %v917_v12 = vmax.f32 %v761_v8, 0.0 }
 0x148   : > { %1239 = vst.msk [vmem:[%s2644_s15 + $0x88] sm:$0xf] %vm1204_vm0, %v2058_v9  ;;  %v965_v13 = vpack.c.bf16 %v919_v10, %v918_v4  ;;  %v2059_v14 = vpack.c.bf16 %v919_v10, %v919_v10 }
 0x149   : > { %1237 = vst.msk [vmem:[%s2644_s15 + $0x80] sm:$0xf] %vm1204_vm0, %v2056_v11  ;;  %v964_v15 = vpack.c.bf16 %v917_v12, %v916_v7  ;;  %v2057_v16 = vpack.c.bf16 %v917_v12, %v917_v12  ;;  %v2219_v17 = vpop.f32.mrb[36].mxu0 }
 0x14a   : > { %1240 = vst.msk [vmem:[%s2644_s15 + $0x8c] sm:$0xf] %vm1204_vm0, %v2059_v14  ;;  %v782_v18 = vadd.f32 %v2219_v17, %v2634_v44  ;;  %v773_v19 = vpop.f32.mrb[37].mxu0 }
 0x14b   : > { %1238 = vst.msk [vmem:[%s2644_s15 + $0x84] sm:$0xf] %vm1204_vm0, %v2057_v16  ;;  %v774_v20 = vadd.f32 %v2634_v44, %v773_v19  ;;  %v2220_v21 = vpop.f32.mrb[38].mxu0  ;;  %2285 = vmatprep.mubr.msk.bf16.mxu1 %vm1308_vm1, %v964_v15 }
 0x14c   : > { %v922_v22 = vmax.f32 %v782_v18, 0.0  ;;  %v785_v23 = vadd.f32 %v2220_v21, %v2634_v44  ;;  %v776_v24 = vpop.f32.mrb[39].mxu0  ;;  %2286 = vmatmul.mubr.msk.bf16.gmra.mrb[32].mxu1 %vm1308_vm1, %v965_v13 }
 0x14d   : > { %v920_v25 = vmax.f32 %v774_v20, 0.0  ;;  %v777_v26 = vadd.f32 %v2634_v44, %v776_v24 }
 0x14e   : > { %v2062_v27 = vpack.c.bf16 %v922_v22, %v922_v22  ;;  %v923_v28 = vmax.f32 %v785_v23, 0.0 }
 0x14f   : > { %v2060_v29 = vpack.c.bf16 %v920_v25, %v920_v25  ;;  %v921_v30 = vmax.f32 %v777_v26, 0.0 }
 0x150   : > { %1243 = vst.msk [vmem:[%s2644_s15 + $0x98] sm:$0xf] %vm1204_vm0, %v2062_v27  ;;  %v967_v31 = vpack.c.bf16 %v923_v28, %v922_v22  ;;  %v2063_v32 = vpack.c.bf16 %v923_v28, %v923_v28 }
 0x151   : > { %1241 = vst.msk [vmem:[%s2644_s15 + $0x90] sm:$0xf] %vm1204_vm0, %v2060_v29  ;;  %v966_v33 = vpack.c.bf16 %v921_v30, %v920_v25  ;;  %v2061_v34 = vpack.c.bf16 %v921_v30, %v921_v30  ;;  %v2223_v35 = vpop.f32.mrb[40].mxu0 }
 0x152   : > { %1244 = vst.msk [vmem:[%s2644_s15 + $0x9c] sm:$0xf] %vm1204_vm0, %v2063_v32  ;;  %v798_v36 = vadd.f32 %v2223_v35, %v2634_v44  ;;  %v789_v37 = vpop.f32.mrb[41].mxu0 }
 0x153   : > { %1242 = vst.msk [vmem:[%s2644_s15 + $0x94] sm:$0xf] %vm1204_vm0, %v2061_v34  ;;  %v790_v38 = vadd.f32 %v2634_v44, %v789_v37  ;;  %v2224_v39 = vpop.f32.mrb[42].mxu0  ;;  %2289 = vmatprep.mubr.msk.bf16.mxu1 %vm1308_vm1, %v966_v33 }
 0x154   : > { %v926_v40 = vmax.f32 %v798_v36, 0.0  ;;  %v801_v41 = vadd.f32 %v2224_v39, %v2634_v44  ;;  %v792_v42 = vpop.f32.mrb[43].mxu0  ;;  %2290 = vmatmul.mubr.msk.bf16.gmra.mrb[36].mxu1 %vm1308_vm1, %v967_v31 }
 0x155   : > { %v924_v43 = vmax.f32 %v790_v38, 0.0  ;;  %v793_v45 = vadd.f32 %v2634_v44, %v792_v42 }
 0x156   : > { %v2066_v46 = vpack.c.bf16 %v926_v40, %v926_v40  ;;  %v927_v47 = vmax.f32 %v801_v41, 0.0 }
 0x157   : > { %v2064_v48 = vpack.c.bf16 %v924_v43, %v924_v43  ;;  %v925_v49 = vmax.f32 %v793_v45, 0.0 }
 0x158   : > { %1247 = vst.msk [vmem:[%s2644_s15 + $0xa8] sm:$0xf] %vm1204_vm0, %v2066_v46  ;;  %v969_v50 = vpack.c.bf16 %v927_v47, %v926_v40  ;;  %v2067_v51 = vpack.c.bf16 %v927_v47, %v927_v47 }
 0x159   : > { %1245 = vst.msk [vmem:[%s2644_s15 + $0xa0] sm:$0xf] %vm1204_vm0, %v2064_v48  ;;  %v968_v52 = vpack.c.bf16 %v925_v49, %v924_v43  ;;  %v2065_v53 = vpack.c.bf16 %v925_v49, %v925_v49  ;;  %v2227_v54 = vpop.f32.mrb[44].mxu0 }
 0x15a   : > { %1248 = vst.msk [vmem:[%s2644_s15 + $0xac] sm:$0xf] %vm1204_vm0, %v2067_v51  ;;  %v814_v55 = vadd.f32 %v2227_v54, %v2634_v44  ;;  %v805_v56 = vpop.f32.mrb[45].mxu0 }
 0x15b   : > { %1246 = vst.msk [vmem:[%s2644_s15 + $0xa4] sm:$0xf] %vm1204_vm0, %v2065_v53  ;;  %v806_v57 = vadd.f32 %v2634_v44, %v805_v56  ;;  %v2228_v58 = vpop.f32.mrb[46].mxu0  ;;  %2293 = vmatprep.mubr.msk.bf16.mxu1 %vm1308_vm1, %v968_v52 }
 0x15c   : > { %v930_v59 = vmax.f32 %v814_v55, 0.0  ;;  %v817_v60 = vadd.f32 %v2228_v58, %v2634_v44  ;;  %v808_v61 = vpop.f32.mrb[47].mxu0  ;;  %2294 = vmatmul.mubr.msk.bf16.gmra.mrb[40].mxu1 %vm1308_vm1, %v969_v50 }
 0x15d   : > { %v928_v62 = vmax.f32 %v806_v57, 0.0  ;;  %v809_v63 = vadd.f32 %v2634_v44, %v808_v61 }
 0x15e   : > { %v2070_v0 = vpack.c.bf16 %v930_v59, %v930_v59  ;;  %v931_v1 = vmax.f32 %v817_v60, 0.0 }
 0x15f   : > { %v2068_v2 = vpack.c.bf16 %v928_v62, %v928_v62  ;;  %v929_v3 = vmax.f32 %v809_v63, 0.0 }
 0x160   : > { %1251 = vst.msk [vmem:[%s2644_s15 + $0xb8] sm:$0xf] %vm1204_vm0, %v2070_v0  ;;  %v971_v4 = vpack.c.bf16 %v931_v1, %v930_v59  ;;  %v2071_v5 = vpack.c.bf16 %v931_v1, %v931_v1 }
 0x161   : > { %1249 = vst.msk [vmem:[%s2644_s15 + $0xb0] sm:$0xf] %vm1204_vm0, %v2068_v2  ;;  %v970_v6 = vpack.c.bf16 %v929_v3, %v928_v62  ;;  %v2069_v7 = vpack.c.bf16 %v929_v3, %v929_v3  ;;  %v2231_v8 = vpop.f32.mrb[48].mxu0 }
 0x162   : > { %1252 = vst.msk [vmem:[%s2644_s15 + $0xbc] sm:$0xf] %vm1204_vm0, %v2071_v5  ;;  %v830_v9 = vadd.f32 %v2231_v8, %v2634_v44  ;;  %v821_v10 = vpop.f32.mrb[49].mxu0 }
 0x163   : > { %1250 = vst.msk [vmem:[%s2644_s15 + $0xb4] sm:$0xf] %vm1204_vm0, %v2069_v7  ;;  %v822_v11 = vadd.f32 %v2634_v44, %v821_v10  ;;  %v2232_v12 = vpop.f32.mrb[50].mxu0  ;;  %2297 = vmatprep.mubr.msk.bf16.mxu1 %vm1308_vm1, %v970_v6 }
 0x164   : > { %v934_v13 = vmax.f32 %v830_v9, 0.0  ;;  %v833_v14 = vadd.f32 %v2232_v12, %v2634_v44  ;;  %v824_v15 = vpop.f32.mrb[51].mxu0  ;;  %2298 = vmatmul.mubr.msk.bf16.gmra.mrb[44].mxu1 %vm1308_vm1, %v971_v4 }
 0x165   : > { %v932_v16 = vmax.f32 %v822_v11, 0.0  ;;  %v825_v17 = vadd.f32 %v2634_v44, %v824_v15 }
 0x166   : > { %v2074_v18 = vpack.c.bf16 %v934_v13, %v934_v13  ;;  %v935_v19 = vmax.f32 %v833_v14, 0.0 }
 0x167   : > { %v2072_v20 = vpack.c.bf16 %v932_v16, %v932_v16  ;;  %v933_v21 = vmax.f32 %v825_v17, 0.0 }
 0x168   : > { %1255 = vst.msk [vmem:[%s2644_s15 + $0xc8] sm:$0xf] %vm1204_vm0, %v2074_v18  ;;  %v973_v22 = vpack.c.bf16 %v935_v19, %v934_v13  ;;  %v2075_v23 = vpack.c.bf16 %v935_v19, %v935_v19 }
 0x169   : > { %1253 = vst.msk [vmem:[%s2644_s15 + $0xc0] sm:$0xf] %vm1204_vm0, %v2072_v20  ;;  %v972_v24 = vpack.c.bf16 %v933_v21, %v932_v16  ;;  %v2073_v25 = vpack.c.bf16 %v933_v21, %v933_v21  ;;  %v2235_v26 = vpop.f32.mrb[52].mxu0 }
 0x16a   : > { %1256 = vst.msk [vmem:[%s2644_s15 + $0xcc] sm:$0xf] %vm1204_vm0, %v2075_v23  ;;  %v846_v27 = vadd.f32 %v2235_v26, %v2634_v44  ;;  %v837_v28 = vpop.f32.mrb[53].mxu0 }
 0x16b   : > { %1254 = vst.msk [vmem:[%s2644_s15 + $0xc4] sm:$0xf] %vm1204_vm0, %v2073_v25  ;;  %v838_v29 = vadd.f32 %v2634_v44, %v837_v28  ;;  %v2236_v30 = vpop.f32.mrb[54].mxu0  ;;  %2301 = vmatprep.mubr.msk.bf16.mxu1 %vm1308_vm1, %v972_v24 }
 0x16c   : > { %v938_v31 = vmax.f32 %v846_v27, 0.0  ;;  %v849_v32 = vadd.f32 %v2236_v30, %v2634_v44  ;;  %v840_v33 = vpop.f32.mrb[55].mxu0  ;;  %2302 = vmatmul.mubr.msk.bf16.gmra.mrb[48].mxu1 %vm1308_vm1, %v973_v22 }
 0x16d   : > { %v936_v34 = vmax.f32 %v838_v29, 0.0  ;;  %v841_v35 = vadd.f32 %v2634_v44, %v840_v33 }
 0x16e   : > { %v2078_v36 = vpack.c.bf16 %v938_v31, %v938_v31  ;;  %v939_v37 = vmax.f32 %v849_v32, 0.0 }
 0x16f   : > { %v2076_v38 = vpack.c.bf16 %v936_v34, %v936_v34  ;;  %v937_v39 = vmax.f32 %v841_v35, 0.0 }
 0x170   : > { %1259 = vst.msk [vmem:[%s2644_s15 + $0xd8] sm:$0xf] %vm1204_vm0, %v2078_v36  ;;  %v975_v40 = vpack.c.bf16 %v939_v37, %v938_v31  ;;  %v2079_v41 = vpack.c.bf16 %v939_v37, %v939_v37 }
 0x171   : > { %1257 = vst.msk [vmem:[%s2644_s15 + $0xd0] sm:$0xf] %vm1204_vm0, %v2076_v38  ;;  %v974_v42 = vpack.c.bf16 %v937_v39, %v936_v34  ;;  %v2077_v43 = vpack.c.bf16 %v937_v39, %v937_v39  ;;  %v2239_v45 = vpop.f32.mrb[56].mxu0 }
 0x172   : > { %1260 = vst.msk [vmem:[%s2644_s15 + $0xdc] sm:$0xf] %vm1204_vm0, %v2079_v41  ;;  %v862_v46 = vadd.f32 %v2239_v45, %v2634_v44  ;;  %v853_v47 = vpop.f32.mrb[57].mxu0 }
 0x173   : > { %1258 = vst.msk [vmem:[%s2644_s15 + $0xd4] sm:$0xf] %vm1204_vm0, %v2077_v43  ;;  %v854_v48 = vadd.f32 %v2634_v44, %v853_v47  ;;  %v2240_v49 = vpop.f32.mrb[58].mxu0  ;;  %2305 = vmatprep.mubr.msk.bf16.mxu1 %vm1308_vm1, %v974_v42 }
 0x174   : > { %v942_v50 = vmax.f32 %v862_v46, 0.0  ;;  %v865_v51 = vadd.f32 %v2240_v49, %v2634_v44  ;;  %v856_v52 = vpop.f32.mrb[59].mxu0  ;;  %2306 = vmatmul.mubr.msk.bf16.gmra.mrb[52].mxu1 %vm1308_vm1, %v975_v40 }
 0x175   : > { %v940_v53 = vmax.f32 %v854_v48, 0.0  ;;  %v857_v54 = vadd.f32 %v2634_v44, %v856_v52 }
 0x176   : > { %v2082_v55 = vpack.c.bf16 %v942_v50, %v942_v50  ;;  %v943_v56 = vmax.f32 %v865_v51, 0.0 }
 0x177   : > { %v2080_v57 = vpack.c.bf16 %v940_v53, %v940_v53  ;;  %v941_v58 = vmax.f32 %v857_v54, 0.0 }
 0x178   : > { %1263 = vst.msk [vmem:[%s2644_s15 + $0xe8] sm:$0xf] %vm1204_vm0, %v2082_v55  ;;  %v977_v59 = vpack.c.bf16 %v943_v56, %v942_v50  ;;  %v2083_v60 = vpack.c.bf16 %v943_v56, %v943_v56 }
 0x179   : > { %1261 = vst.msk [vmem:[%s2644_s15 + $0xe0] sm:$0xf] %vm1204_vm0, %v2080_v57  ;;  %v976_v61 = vpack.c.bf16 %v941_v58, %v940_v53  ;;  %v2081_v62 = vpack.c.bf16 %v941_v58, %v941_v58  ;;  %v2243_v63 = vpop.f32.mrb[60].mxu0 }
 0x17a   : > { %1264 = vst.msk [vmem:[%s2644_s15 + $0xec] sm:$0xf] %vm1204_vm0, %v2083_v60  ;;  %v878_v0 = vadd.f32 %v2243_v63, %v2634_v44  ;;  %v869_v1 = vpop.f32.mrb[61].mxu0 }
 0x17b   : > { %1262 = vst.msk [vmem:[%s2644_s15 + $0xe4] sm:$0xf] %vm1204_vm0, %v2081_v62  ;;  %v870_v2 = vadd.f32 %v2634_v44, %v869_v1  ;;  %v2244_v3 = vpop.f32.mrb[62].mxu0  ;;  %2309 = vmatprep.mubr.msk.bf16.mxu1 %vm1308_vm1, %v976_v61 }
 0x17c   : > { %v946_v4 = vmax.f32 %v878_v0, 0.0  ;;  %v881_v5 = vadd.f32 %v2244_v3, %v2634_v44  ;;  %v872_v6 = vpop.f32.mrb[63].mxu0  ;;  %2310 = vmatmul.mubr.msk.bf16.gmra.mrb[56].mxu1 %vm1308_vm1, %v977_v59 }
 0x17d   : > { %v944_v7 = vmax.f32 %v870_v2, 0.0  ;;  %v873_v8 = vadd.f32 %v2634_v44, %v872_v6  ;;  %v2873_v44 = vld [vmem:[%s3061_s4] ss:$0 sm:$0xff] }
 0x17e   : > { %v2086_v9 = vpack.c.bf16 %v946_v4, %v946_v4  ;;  %v947_v10 = vmax.f32 %v881_v5, 0.0 }
 0x17f   : > { %v2084_v11 = vpack.c.bf16 %v944_v7, %v944_v7  ;;  %v945_v12 = vmax.f32 %v873_v8, 0.0 }
 0x180   : > { %1267 = vst.msk [vmem:[%s2644_s15 + $0xf8] sm:$0xf] %vm1204_vm0, %v2086_v9  ;;  %v979_v13 = vpack.c.bf16 %v947_v10, %v946_v4  ;;  %v2087_v14 = vpack.c.bf16 %v947_v10, %v947_v10 }
 0x181   : > { %1265 = vst.msk [vmem:[%s2644_s15 + $0xf0] sm:$0xf] %vm1204_vm0, %v2084_v11  ;;  %v978_v15 = vpack.c.bf16 %v945_v12, %v944_v7  ;;  %v2085_v16 = vpack.c.bf16 %v945_v12, %v945_v12 }
 0x182   : > { %1268 = vst.msk [vmem:[%s2644_s15 + $0xfc] sm:$0xf] %vm1204_vm0, %v2087_v14 }
 0x183   : > { %1266 = vst.msk [vmem:[%s2644_s15 + $0xf4] sm:$0xf] %vm1204_vm0, %v2085_v16  ;;  %2313 = vmatprep.mubr.msk.bf16.mxu1 %vm1308_vm1, %v978_v15 }
 0x184   : > { %2314 = vmatmul.mubr.msk.bf16.gmra.mrb[60].mxu1 %vm1308_vm1, %v979_v13 }
 0x1df   : > { %v2255_v17 = vpop.f32.mrb[0].mxu1 }
 0x1e0   : > { %v1448_v18 = vadd.f32 %v2255_v17, %v2873_v44  ;;  %v1439_v19 = vpop.f32.mrb[1].mxu1 }
 0x1e1   : > { %v1440_v20 = vadd.f32 %v2873_v44, %v1439_v19  ;;  %v2256_v21 = vpop.f32.mrb[2].mxu1 }
 0x1e2   : > { %1696 = vst [vmem:[%s2877_s20 + $0x10] sm:$0xff] %v1448_v18  ;;  %v1451_v22 = vadd.f32 %v2256_v21, %v2873_v44  ;;  %v1442_v23 = vpop.f32.mrb[3].mxu1 }
 0x1e3   : > { %1694 = vst [vmem:[%s2877_s20] sm:$0xff] %v1440_v20  ;;  %v1443_v24 = vadd.f32 %v2873_v44, %v1442_v23 }
 0x1e4   : > { %1697 = vst [vmem:[%s2877_s20 + $0x18] sm:$0xff] %v1451_v22 }
 0x1e5   : > { %1695 = vst [vmem:[%s2877_s20 + $0x8] sm:$0xff] %v1443_v24 }
 0x1e7   : > { %v2259_v25 = vpop.f32.mrb[4].mxu1 }
 0x1e8   : > { %v1464_v26 = vadd.f32 %v2259_v25, %v2873_v44  ;;  %v1455_v27 = vpop.f32.mrb[5].mxu1 }
 0x1e9   : > { %v1456_v28 = vadd.f32 %v2873_v44, %v1455_v27  ;;  %v2260_v29 = vpop.f32.mrb[6].mxu1 }
 0x1ea   : > { %1700 = vst [vmem:[%s2877_s20 + $0x30] sm:$0xff] %v1464_v26  ;;  %v1467_v30 = vadd.f32 %v2260_v29, %v2873_v44  ;;  %v1458_v31 = vpop.f32.mrb[7].mxu1 }
 0x1eb   : > { %1698 = vst [vmem:[%s2877_s20 + $0x20] sm:$0xff] %v1456_v28  ;;  %v1459_v32 = vadd.f32 %v2873_v44, %v1458_v31 }
 0x1ec   : > { %1701 = vst [vmem:[%s2877_s20 + $0x38] sm:$0xff] %v1467_v30 }
 0x1ed   : > { %1699 = vst [vmem:[%s2877_s20 + $0x28] sm:$0xff] %v1459_v32 }
 0x1ef   : > { %v2263_v33 = vpop.f32.mrb[8].mxu1 }
 0x1f0   : > { %v1480_v34 = vadd.f32 %v2263_v33, %v2873_v44  ;;  %v1471_v35 = vpop.f32.mrb[9].mxu1 }
 0x1f1   : > { %v1472_v36 = vadd.f32 %v2873_v44, %v1471_v35  ;;  %v2264_v37 = vpop.f32.mrb[10].mxu1 }
 0x1f2   : > { %1704 = vst [vmem:[%s2877_s20 + $0x50] sm:$0xff] %v1480_v34  ;;  %v1483_v38 = vadd.f32 %v2264_v37, %v2873_v44  ;;  %v1474_v39 = vpop.f32.mrb[11].mxu1 }
 0x1f3   : > { %1702 = vst [vmem:[%s2877_s20 + $0x40] sm:$0xff] %v1472_v36  ;;  %v1475_v40 = vadd.f32 %v2873_v44, %v1474_v39 }
 0x1f4   : > { %1705 = vst [vmem:[%s2877_s20 + $0x58] sm:$0xff] %v1483_v38 }
 0x1f5   : > { %1703 = vst [vmem:[%s2877_s20 + $0x48] sm:$0xff] %v1475_v40 }
 0x1f7   : > { %v2267_v41 = vpop.f32.mrb[12].mxu1 }
 0x1f8   : > { %v1496_v42 = vadd.f32 %v2267_v41, %v2873_v44  ;;  %v1487_v43 = vpop.f32.mrb[13].mxu1 }
 0x1f9   : > { %v1488_v45 = vadd.f32 %v2873_v44, %v1487_v43  ;;  %v2268_v46 = vpop.f32.mrb[14].mxu1 }
 0x1fa   : > { %1708 = vst [vmem:[%s2877_s20 + $0x70] sm:$0xff] %v1496_v42  ;;  %v1499_v47 = vadd.f32 %v2268_v46, %v2873_v44  ;;  %v1490_v48 = vpop.f32.mrb[15].mxu1 }
 0x1fb   : > { %1706 = vst [vmem:[%s2877_s20 + $0x60] sm:$0xff] %v1488_v45  ;;  %v1491_v49 = vadd.f32 %v2873_v44, %v1490_v48 }
 0x1fc   : > { %1709 = vst [vmem:[%s2877_s20 + $0x78] sm:$0xff] %v1499_v47 }
 0x1fd   : > { %1707 = vst [vmem:[%s2877_s20 + $0x68] sm:$0xff] %v1491_v49 }
 0x1ff   : > { %v2271_v50 = vpop.f32.mrb[16].mxu1 }
 0x200   : > { %v1512_v51 = vadd.f32 %v2271_v50, %v2873_v44  ;;  %v1503_v52 = vpop.f32.mrb[17].mxu1 }
 0x201   : > { %v1504_v53 = vadd.f32 %v2873_v44, %v1503_v52  ;;  %v2272_v54 = vpop.f32.mrb[18].mxu1 }
 0x202   : > { %1712 = vst [vmem:[%s2877_s20 + $0x90] sm:$0xff] %v1512_v51  ;;  %v1515_v55 = vadd.f32 %v2272_v54, %v2873_v44  ;;  %v1506_v56 = vpop.f32.mrb[19].mxu1 }
 0x203   : > { %1710 = vst [vmem:[%s2877_s20 + $0x80] sm:$0xff] %v1504_v53  ;;  %v1507_v57 = vadd.f32 %v2873_v44, %v1506_v56 }
 0x204   : > { %1713 = vst [vmem:[%s2877_s20 + $0x98] sm:$0xff] %v1515_v55 }
 0x205   : > { %1711 = vst [vmem:[%s2877_s20 + $0x88] sm:$0xff] %v1507_v57 }
 0x207   : > { %v2275_v58 = vpop.f32.mrb[20].mxu1 }
 0x208   : > { %v1528_v59 = vadd.f32 %v2275_v58, %v2873_v44  ;;  %v1519_v60 = vpop.f32.mrb[21].mxu1 }
 0x209   : > { %v1520_v61 = vadd.f32 %v2873_v44, %v1519_v60  ;;  %v2276_v62 = vpop.f32.mrb[22].mxu1 }
 0x20a   : > { %1716 = vst [vmem:[%s2877_s20 + $0xb0] sm:$0xff] %v1528_v59  ;;  %v1531_v63 = vadd.f32 %v2276_v62, %v2873_v44  ;;  %v1522_v0 = vpop.f32.mrb[23].mxu1 }
 0x20b   : > { %1714 = vst [vmem:[%s2877_s20 + $0xa0] sm:$0xff] %v1520_v61  ;;  %v1523_v1 = vadd.f32 %v2873_v44, %v1522_v0 }
 0x20c   : > { %1717 = vst [vmem:[%s2877_s20 + $0xb8] sm:$0xff] %v1531_v63 }
 0x20d   : > { %1715 = vst [vmem:[%s2877_s20 + $0xa8] sm:$0xff] %v1523_v1 }
 0x20f   : > { %v2279_v2 = vpop.f32.mrb[24].mxu1 }
 0x210   : > { %v1544_v3 = vadd.f32 %v2279_v2, %v2873_v44  ;;  %v1535_v4 = vpop.f32.mrb[25].mxu1 }
 0x211   : > { %v1536_v5 = vadd.f32 %v2873_v44, %v1535_v4  ;;  %v2280_v6 = vpop.f32.mrb[26].mxu1 }
 0x212   : > { %1720 = vst [vmem:[%s2877_s20 + $0xd0] sm:$0xff] %v1544_v3  ;;  %v1547_v7 = vadd.f32 %v2280_v6, %v2873_v44  ;;  %v1538_v8 = vpop.f32.mrb[27].mxu1 }
 0x213   : > { %1718 = vst [vmem:[%s2877_s20 + $0xc0] sm:$0xff] %v1536_v5  ;;  %v1539_v9 = vadd.f32 %v2873_v44, %v1538_v8 }
 0x214   : > { %1721 = vst [vmem:[%s2877_s20 + $0xd8] sm:$0xff] %v1547_v7 }
 0x215   : > { %1719 = vst [vmem:[%s2877_s20 + $0xc8] sm:$0xff] %v1539_v9 }
 0x217   : > { %v2283_v10 = vpop.f32.mrb[28].mxu1 }
 0x218   : > { %v1560_v11 = vadd.f32 %v2283_v10, %v2873_v44  ;;  %v1551_v12 = vpop.f32.mrb[29].mxu1 }
 0x219   : > { %v1552_v13 = vadd.f32 %v2873_v44, %v1551_v12  ;;  %v2284_v14 = vpop.f32.mrb[30].mxu1 }
 0x21a   : > { %1724 = vst [vmem:[%s2877_s20 + $0xf0] sm:$0xff] %v1560_v11  ;;  %v1563_v15 = vadd.f32 %v2284_v14, %v2873_v44  ;;  %v1554_v16 = vpop.f32.mrb[31].mxu1 }
 0x21b   : > { %1722 = vst [vmem:[%s2877_s20 + $0xe0] sm:$0xff] %v1552_v13  ;;  %v1555_v17 = vadd.f32 %v2873_v44, %v1554_v16 }
 0x21c   : > { %1725 = vst [vmem:[%s2877_s20 + $0xf8] sm:$0xff] %v1563_v15 }
 0x21d   : > { %1723 = vst [vmem:[%s2877_s20 + $0xe8] sm:$0xff] %v1555_v17 }
 0x21f   : > { %v2287_v18 = vpop.f32.mrb[32].mxu1 }
 0x220   : > { %v1576_v19 = vadd.f32 %v2287_v18, %v2873_v44  ;;  %v1567_v20 = vpop.f32.mrb[33].mxu1 }
 0x221   : > { %v1568_v21 = vadd.f32 %v2873_v44, %v1567_v20  ;;  %v2288_v22 = vpop.f32.mrb[34].mxu1 }
 0x222   : > { %1728 = vst [vmem:[%s2877_s20 + $0x110] sm:$0xff] %v1576_v19  ;;  %v1579_v23 = vadd.f32 %v2288_v22, %v2873_v44  ;;  %v1570_v24 = vpop.f32.mrb[35].mxu1 }
 0x223   : > { %1726 = vst [vmem:[%s2877_s20 + $0x100] sm:$0xff] %v1568_v21  ;;  %v1571_v25 = vadd.f32 %v2873_v44, %v1570_v24 }
 0x224   : > { %1729 = vst [vmem:[%s2877_s20 + $0x118] sm:$0xff] %v1579_v23 }
 0x225   : > { %1727 = vst [vmem:[%s2877_s20 + $0x108] sm:$0xff] %v1571_v25 }
 0x227   : > { %v2291_v26 = vpop.f32.mrb[36].mxu1 }
 0x228   : > { %v1592_v27 = vadd.f32 %v2291_v26, %v2873_v44  ;;  %v1583_v28 = vpop.f32.mrb[37].mxu1 }
 0x229   : > { %v1584_v29 = vadd.f32 %v2873_v44, %v1583_v28  ;;  %v2292_v30 = vpop.f32.mrb[38].mxu1 }
 0x22a   : > { %1732 = vst [vmem:[%s2877_s20 + $0x130] sm:$0xff] %v1592_v27  ;;  %v1595_v31 = vadd.f32 %v2292_v30, %v2873_v44  ;;  %v1586_v32 = vpop.f32.mrb[39].mxu1 }
 0x22b   : > { %1730 = vst [vmem:[%s2877_s20 + $0x120] sm:$0xff] %v1584_v29  ;;  %v1587_v33 = vadd.f32 %v2873_v44, %v1586_v32 }
 0x22c   : > { %1733 = vst [vmem:[%s2877_s20 + $0x138] sm:$0xff] %v1595_v31 }
 0x22d   : > { %1731 = vst [vmem:[%s2877_s20 + $0x128] sm:$0xff] %v1587_v33 }
 0x22f   : > { %v2295_v34 = vpop.f32.mrb[40].mxu1 }
 0x230   : > { %v1608_v35 = vadd.f32 %v2295_v34, %v2873_v44  ;;  %v1599_v36 = vpop.f32.mrb[41].mxu1 }
 0x231   : > { %v1600_v37 = vadd.f32 %v2873_v44, %v1599_v36  ;;  %v2296_v38 = vpop.f32.mrb[42].mxu1 }
 0x232   : > { %1736 = vst [vmem:[%s2877_s20 + $0x150] sm:$0xff] %v1608_v35  ;;  %v1611_v39 = vadd.f32 %v2296_v38, %v2873_v44  ;;  %v1602_v40 = vpop.f32.mrb[43].mxu1 }
 0x233   : > { %1734 = vst [vmem:[%s2877_s20 + $0x140] sm:$0xff] %v1600_v37  ;;  %v1603_v41 = vadd.f32 %v2873_v44, %v1602_v40 }
 0x234   : > { %1737 = vst [vmem:[%s2877_s20 + $0x158] sm:$0xff] %v1611_v39 }
 0x235   : > { %1735 = vst [vmem:[%s2877_s20 + $0x148] sm:$0xff] %v1603_v41 }
 0x237   : > { %v2299_v42 = vpop.f32.mrb[44].mxu1 }
 0x238   : > { %v1624_v43 = vadd.f32 %v2299_v42, %v2873_v44  ;;  %v1615_v45 = vpop.f32.mrb[45].mxu1 }
 0x239   : > { %v1616_v46 = vadd.f32 %v2873_v44, %v1615_v45  ;;  %v2300_v47 = vpop.f32.mrb[46].mxu1 }
 0x23a   : > { %1740 = vst [vmem:[%s2877_s20 + $0x170] sm:$0xff] %v1624_v43  ;;  %v1627_v48 = vadd.f32 %v2300_v47, %v2873_v44  ;;  %v1618_v49 = vpop.f32.mrb[47].mxu1 }
 0x23b   : > { %1738 = vst [vmem:[%s2877_s20 + $0x160] sm:$0xff] %v1616_v46  ;;  %v1619_v50 = vadd.f32 %v2873_v44, %v1618_v49 }
 0x23c   : > { %1741 = vst [vmem:[%s2877_s20 + $0x178] sm:$0xff] %v1627_v48 }
 0x23d   : > { %1739 = vst [vmem:[%s2877_s20 + $0x168] sm:$0xff] %v1619_v50 }
 0x23f   : > { %v2303_v51 = vpop.f32.mrb[48].mxu1 }
 0x240   : > { %v1640_v52 = vadd.f32 %v2303_v51, %v2873_v44  ;;  %v1631_v53 = vpop.f32.mrb[49].mxu1 }
 0x241   : > { %v1632_v54 = vadd.f32 %v2873_v44, %v1631_v53  ;;  %v2304_v55 = vpop.f32.mrb[50].mxu1 }
 0x242   : > { %1744 = vst [vmem:[%s2877_s20 + $0x190] sm:$0xff] %v1640_v52  ;;  %v1643_v56 = vadd.f32 %v2304_v55, %v2873_v44  ;;  %v1634_v57 = vpop.f32.mrb[51].mxu1 }
 0x243   : > { %1742 = vst [vmem:[%s2877_s20 + $0x180] sm:$0xff] %v1632_v54  ;;  %v1635_v58 = vadd.f32 %v2873_v44, %v1634_v57 }
 0x244   : > { %1745 = vst [vmem:[%s2877_s20 + $0x198] sm:$0xff] %v1643_v56 }
 0x245   : > { %1743 = vst [vmem:[%s2877_s20 + $0x188] sm:$0xff] %v1635_v58 }
 0x247   : > { %v2307_v59 = vpop.f32.mrb[52].mxu1 }
 0x248   : > { %v1656_v60 = vadd.f32 %v2307_v59, %v2873_v44  ;;  %v1647_v61 = vpop.f32.mrb[53].mxu1 }
 0x249   : > { %v1648_v62 = vadd.f32 %v2873_v44, %v1647_v61  ;;  %v2308_v63 = vpop.f32.mrb[54].mxu1 }
 0x24a   : > { %1748 = vst [vmem:[%s2877_s20 + $0x1b0] sm:$0xff] %v1656_v60  ;;  %v1659_v0 = vadd.f32 %v2308_v63, %v2873_v44  ;;  %v1650_v1 = vpop.f32.mrb[55].mxu1 }
 0x24b   : > { %1746 = vst [vmem:[%s2877_s20 + $0x1a0] sm:$0xff] %v1648_v62  ;;  %v1651_v2 = vadd.f32 %v2873_v44, %v1650_v1 }
 0x24c   : > { %1749 = vst [vmem:[%s2877_s20 + $0x1b8] sm:$0xff] %v1659_v0 }
 0x24d   : > { %1747 = vst [vmem:[%s2877_s20 + $0x1a8] sm:$0xff] %v1651_v2 }
 0x24f   : > { %v2311_v3 = vpop.f32.mrb[56].mxu1 }
 0x250   : > { %v1672_v4 = vadd.f32 %v2311_v3, %v2873_v44  ;;  %v1663_v5 = vpop.f32.mrb[57].mxu1 }
 0x251   : > { %v1664_v6 = vadd.f32 %v2873_v44, %v1663_v5  ;;  %v2312_v7 = vpop.f32.mrb[58].mxu1 }
 0x252   : > { %1752 = vst [vmem:[%s2877_s20 + $0x1d0] sm:$0xff] %v1672_v4  ;;  %v1675_v8 = vadd.f32 %v2312_v7, %v2873_v44  ;;  %v1666_v9 = vpop.f32.mrb[59].mxu1 }
 0x253   : > { %1750 = vst [vmem:[%s2877_s20 + $0x1c0] sm:$0xff] %v1664_v6  ;;  %v1667_v10 = vadd.f32 %v2873_v44, %v1666_v9 }
 0x254   : > { %1753 = vst [vmem:[%s2877_s20 + $0x1d8] sm:$0xff] %v1675_v8 }
 0x255   : > { %1751 = vst [vmem:[%s2877_s20 + $0x1c8] sm:$0xff] %v1667_v10 }
 0x257   : > { %v2315_v11 = vpop.f32.mrb[60].mxu1 }
 0x258   : > { %v1688_v12 = vadd.f32 %v2315_v11, %v2873_v44  ;;  %v1679_v13 = vpop.f32.mrb[61].mxu1 }
 0x259   : > { %v1680_v14 = vadd.f32 %v2873_v44, %v1679_v13  ;;  %v2316_v15 = vpop.f32.mrb[62].mxu1 }
 0x25a   : > { %1756 = vst [vmem:[%s2877_s20 + $0x1f0] sm:$0xff] %v1688_v12  ;;  %v1691_v16 = vadd.f32 %v2316_v15, %v2873_v44  ;;  %v1682_v17 = vpop.f32.mrb[63].mxu1 }
 0x25b   : > { %1754 = vst [vmem:[%s2877_s20 + $0x1e0] sm:$0xff] %v1680_v14  ;;  %v1683_v18 = vadd.f32 %v2873_v44, %v1682_v17 }
 0x25c   : > { %1757 = vst [vmem:[%s2877_s20 + $0x1f8] sm:$0xff] %v1691_v16 }
 0x25d   : > { %1755 = vst [vmem:[%s2877_s20 + $0x1e8] sm:$0xff] %v1683_v18 }
 0x25e   : > { %2415 = shalt.err (!%p2412_p3)
}
 0x25f   : > { %s2416_s15 = scalar_lea.hbm %s3006_s10, 8192  ;;  %s2420_s17 = scalar_lea.hbm %s3063_s6, 32768 }
 0x260   : > { %p2417_p4 = scmp.ne.s32.totalorder %s3006_s10, %s2416_s15  ;;  %p2421_p9 = scmp.lt.u32.totalorder %s3006_s10, %s3063_s6 }
 0x261   : > { %p2422_p10 = scmp.lt.u32.totalorder %s2420_s17, %s2416_s15  ;;  %p2424_p12 = scmp.lt.u32.totalorder %s2416_s15, %s3006_s10 }
 0x262   : > { %p2418_p7 = pnand %p2417_p4, %p2542_p5 }
 0x263   : > { %p2423_p11 = por %p2422_p10, %p2421_p9 }
 0x264   : > { %p2419_p8 = pneg %p2418_p7 }
 0x265   : > { %p2425_p13 = por %p2424_p12, %p2423_p11 }
 0x267   : > { %p2426_p0 = pnand %p2425_p13, %p2419_p8 }
 0x269   : > { %2429 = shalt.err (!%p2426_p0)
}
 0x26a   : > { %s2467_s26 = smov 128   ;;  %s2468_s29 = smov 8  }
 0x26b   : > { %2317 = dma.vmem_to_hbm [thread:$0]  (%p2542_p5), %s3008_s28, 8192, %s3006_s10, %s3016_s25, %s2467_s26, %s2467_s26, %s2468_s29  }
 0x26c PF: > { %p2323_p1 = scmp.ge.s32.totalorder %s2464_s24, 2  ;;  %s1804_s9 = sand.u32 1, %s2452_s21  }
 0x26d   : > { %s1805_s12 = scalar_lea.sflag [#allocation3], %s1804_s9 }
 0x26e   : > { %p2320_p2 = pnand %p2323_p1, %p2546_p6 }
 0x270   : > { %2447 = dma.done.wait (!%p2320_p2), %s1805_s12, 8192  }
 0x271   : > { %2449 = vsyncadd (!%p2320_p2), %s1805_s12, 4294959104  ;;  %p17_p3 = scmp.ge.s32.totalorder %s2529_s27, 6   ;;  %s3066_s21 = smov %s2456_s22 }
 0x272   : > { %s3067_s22 = smov %s2460_s23  ;;  %s3068_s23 = smov %s2540_s30 }
 0x273   : > { %s3069_s24 = smov %s2529_s27  ;;  %19 = sbr.rel (!%p17_p3) target bundleno = 3 (0x3), region = 87 }
 0x27a   :  { %1810 = vsyncpa [#allocation3], 1 }
 0x27b   :  { %1812 = vsyncpa [#allocation3 + $0x1], 1 }

// kernel: _lambda_.6
= control target key start
LH: loop header
LB: loop body
LE: loop exit
PB: predicated region body
PF: predicated region fallthrough
CT: control target
= control target key end

     0   :  { %12 = vsyncpa [#allocation3], 0  ;;  %s2279_s0 = inlined_call_operand.vmem [shape: bf16[512,64], index: 0, kind: input, shape index: {}]   ;;  %s2280_s1 = inlined_call_operand.vmem [shape: bf16[64,256], index: 1, kind: input, shape index: {}]   ;;  %s2281_s2 = inlined_call_operand.vmem [shape: f32[1,256], index: 2, kind: input, shape index: {}]   ;;  %s2282_s3 = inlined_call_operand.vmem [shape: bf16[256,128], index: 3, kind: input, shape index: {}]   ;;  %s2283_s4 = inlined_call_operand.vmem [shape: f32[1,128], index: 4, kind: input, shape index: {}]   ;;  %s2284_s5 = inlined_call_operand.vmem [shape: bf16[512,256], index: 5, kind: output, shape index: {0}]   ;;  %s2285_s6 = inlined_call_operand.hbm [shape: f32[512,128], index: 6, kind: output, shape index: {1}]  }
   0x1   :  { %14 = vsyncpa [#allocation3 + $0x1], 0  ;;  %s1867_s21 = smov 0   ;;  %s1869_s22 = smov 0  }
   0x2   :  { %s1871_s23 = smov 0   ;;  %s1873_s24 = smov 0  }
   0x3 LB: > { %s1888_s25 = sadd.s32 4294967295, %s1826_s24   ;;  %s1412_s26 = sadd.s32 4294967294, %s1826_s24   ;;  %s1826_s24 = sphi %s1873_s24, %s2291_s24   ;;  %s1822_s23 = sphi %s1871_s23, %s2290_s23   ;;  %s1818_s22 = sphi %s1869_s22, %s2289_s22   ;;  %s1814_s21 = sphi %s1867_s21, %s2288_s21  }
   0x4   : > { %s1892_s27 = sadd.s32 1, %s1826_s24   ;;  %s163_s28 = sadd.s32 1, %s1822_s23 }
   0x5   : > { %s160_s29 = ssub.s32 %s1826_s24, %s1892_s27  ;;  %p173_p0 = scmp.ne.s32.totalorder %s1822_s23, %s1818_s22 }
   0x6   : > { %p161_p1 = scmp.eq.s32.totalorder %s160_s29, 0  ;;  %p174_p2 = scmp.eq.s32.totalorder %s1888_s25, 1 }
   0x7   : > { %p179_p3 = scmp.ne.s32.totalorder %s1818_s22, %s1814_s21  ;;  %p180_p4 = scmp.eq.s32.totalorder %s1412_s26, 1 }
   0x8   : > { %s1903_s30 = scalar_select %p161_p1, %s1822_s23, %s163_s28  }
   0x9   : > { %p1905_p5 = por %p174_p2, %p173_p0  ;;  %p1909_p6 = por %p180_p4, %p179_p3 }
   0xa   : > { %p1415_p7 = scmp.ge.s32.totalorder %s1826_s24, 1  ;;  %p219_p8 = scmp.lt.s32.totalorder %s1826_s24, 3 }
   0xc   : > { %p220_p9 = pnand %p1415_p7, %p219_p8 }
   0xd   : > { %v1720_v0 = vld [vmem:[%s2280_s1 + $0x4] ss:$8 sps:$4 sm:$0xff] (!%p220_p9)   ;;  %s1417_s11 = sshll.u32 (!%p220_p9), %s1888_s25, 5  ;;  %v1722_v1 = vld [vmem:[%s2280_s1] ss:$8 sps:$4 sm:$0xff] (!%p220_p9)   ;;  %v1828_v2 = vmov (!%p220_p9), 0   ;;  %v312_v41 = vlaneseq (!%p220_p9) }
   0xe   : > { %223 = sbr.rel (%p220_p9) target bundleno = 606 (0x25e), region = 40  ;;  %523 = vmatprep.mubr.bf16.mxu0 (!%p220_p9), %v1828_v2  ;;  %p256_p10 = scmp.lt.s32.totalorder (!%p220_p9), %s1417_s11, 63  ;;  %491 = vmatprep.subr.bf16.mxu0 (!%p220_p9), %v1720_v0  ;;  %v1723_v3 = vld [vmem:[%s2280_s1 + $0x14] ss:$8 sps:$4 sm:$0xff] (!%p220_p9)   ;;  %v1725_v4 = vld [vmem:[%s2280_s1 + $0x10] ss:$8 sps:$4 sm:$0xff] (!%p220_p9)  }
   0xf   : > { %492 = vmatpush1.bf16.msra.mxu0 (!%p220_p9), %v1722_v1  ;;  %v1726_v5 = vld [vmem:[%s2280_s1 + $0x24] ss:$8 sps:$4 sm:$0xff] (!%p220_p9)   ;;  %v1728_v6 = vld [vmem:[%s2280_s1 + $0x20] ss:$8 sps:$4 sm:$0xff] (!%p220_p9)   ;;  %v1729_v7 = vld [vmem:[%s2280_s1 + $0x34] ss:$8 sps:$4 sm:$0xff] (!%p220_p9)  }
  0x10   : > { %493 = vmatprep.subr.bf16.mxu0 (!%p220_p9), %v1723_v3  ;;  %v1731_v8 = vld [vmem:[%s2280_s1 + $0x30] ss:$8 sps:$4 sm:$0xff] (!%p220_p9)   ;;  %vm442_vm0 = vcmask (!%p220_p9), 523264   ;;  %v1748_v11 = vld [vmem:[%s2282_s3 + $0x40] sm:$0xff] (!%p220_p9)   ;;  %v1750_v13 = vld [vmem:[%s2282_s3 + $0x48] sm:$0xff] (!%p220_p9)   ;;  %v313_v42 = vshrl.u32 (!%p220_p9), %v312_v41, 7 }
  0x11   : > { %v1749_v12 = vld [vmem:[%s2282_s3] sm:$0xff] (!%p220_p9)   ;;  %1662 = vmatprep.subr.bf16.mxu1 (!%p220_p9), %v1748_v11  ;;  %v1751_v14 = vld [vmem:[%s2282_s3 + $0x8] sm:$0xff] (!%p220_p9)   ;;  %v1752_v15 = vld [vmem:[%s2282_s3 + $0x50] sm:$0xff] (!%p220_p9)   ;;  %s1549_s18 = sshll.u32 (!%p220_p9), %s1888_s25, 12 }
  0x12   : > { %1670 = vmatpush3.bf16.msra.mxu1 (!%p220_p9), %v1749_v12  ;;  %v1753_v17 = vld [vmem:[%s2282_s3 + $0x10] sm:$0xff] (!%p220_p9)   ;;  %v1754_v18 = vld [vmem:[%s2282_s3 + $0x58] sm:$0xff] (!%p220_p9)   ;;  %v1756_v20 = vld [vmem:[%s2282_s3 + $0x60] sm:$0xff] (!%p220_p9)   ;;  %v314_v43 = vsub.s32 (!%p220_p9), 0, %v313_v42  ;;  %v318_v45 = vsub.s32 (!%p220_p9), 1, %v313_v42  ;;  %s2229_s28 = scalar_lea.hbm (!%p220_p9), %s2285_s6, %s1549_s18 }
  0x13   : > { %494 = vmatpush1.bf16.msra.mxu0 (!%p220_p9), %v1725_v4  ;;  %1663 = vmatprep.subr.bf16.mxu1 (!%p220_p9), %v1750_v13  ;;  %v1755_v19 = vld [vmem:[%s2282_s3 + $0x18] sm:$0xff] (!%p220_p9)   ;;  %v1757_v22 = vld [vmem:[%s2282_s3 + $0x20] sm:$0xff] (!%p220_p9)   ;;  %v1758_v23 = vld [vmem:[%s2282_s3 + $0x68] sm:$0xff] (!%p220_p9)  }
  0x14   : > { %495 = vmatprep.subr.bf16.mxu0 (!%p220_p9), %v1726_v5  ;;  %v1759_v31 = vld [vmem:[%s2282_s3 + $0x28] sm:$0xff] (!%p220_p9)   ;;  %v1760_v33 = vld [vmem:[%s2282_s3 + $0x70] sm:$0xff] (!%p220_p9)   ;;  %v1762_v35 = vld [vmem:[%s2282_s3 + $0x78] sm:$0xff] (!%p220_p9)  }
  0x15   : > { %s2293_s11 = smov (!%p256_p10, %s1417_s11), 63  ;;  %v1761_v34 = vld [vmem:[%s2282_s3 + $0x30] sm:$0xff]   ;;  %v1763_v36 = vld [vmem:[%s2282_s3 + $0x38] sm:$0xff]   ;;  %v310_v44 = vld [vmem:[%s2281_s2] sm:$0x3] }
  0x16   : > { %s1418_s20 = sshll.u32 %s2293_s11, 2  ;;  %1671 = vmatpush3.bf16.msra.mxu1 %v1751_v14  ;;  %v2047_v46 = vrot.slane %v310_v44, %v314_v43  ;;  %v2049_v47 = vrot.slane %v310_v44, %v318_v45  ;;  %s1516_s10 = sshll.u32 %s2293_s11, 3 }
  0x17   : > { %s1938_s29 = scalar_lea.vmem %s2279_s0, %s1418_s20  ;;  %496 = vmatpush1.bf16.msra.mxu0 %v1728_v6  ;;  %1664 = vmatprep.subr.bf16.mxu1 %v1752_v15  ;;  %s2059_s13 = scalar_lea.vmem %s2284_s5, %s1516_s10 }
  0x18   : > { %497 = vmatprep.subr.bf16.mxu0 %v1729_v7  ;;  %v1732_v9 = vld [vmem:[%s1938_s29] sm:$0xff]   ;;  %v1733_v10 = vld [vmem:[%s1938_s29 + $0x8] sm:$0xff]   ;;  %v1734_v16 = vld [vmem:[%s1938_s29 + $0x10] sm:$0xff]   ;;  %s252_s11 = sand.u32 1, %s1818_s22   ;;  %s1829_s10 = smov [#allocation2]  }
  0x19   : > { %v1735_v21 = vld [vmem:[%s1938_s29 + $0x18] sm:$0xff]   ;;  %v1736_v24 = vld [vmem:[%s1938_s29 + $0x20] sm:$0xff]   ;;  %v1737_v25 = vld [vmem:[%s1938_s29 + $0x28] sm:$0xff]   ;;  %s1416_s14 = sshll.u32 %s252_s11, 8  ;;  %s2238_s25 = scalar_lea.sflag [#allocation3], %s252_s11 }
  0x1a   : > { %1672 = vmatpush3.bf16.msra.mxu1 %v1753_v17  ;;  %v1738_v26 = vld [vmem:[%s1938_s29 + $0x30] sm:$0xff]   ;;  %v1739_v27 = vld [vmem:[%s1938_s29 + $0x38] sm:$0xff]   ;;  %v1740_v28 = vld [vmem:[%s1938_s29 + $0x40] sm:$0xff]   ;;  %s2162_s17 = scalar_lea.vmem [#allocation2], %s1416_s14 }
  0x1b   : > { %498 = vmatpush1.bf16.msra.mxu0 %v1731_v8  ;;  %1665 = vmatprep.subr.bf16.mxu1 %v1754_v18  ;;  %v1741_v29 = vld [vmem:[%s1938_s29 + $0x48] sm:$0xff]   ;;  %v1742_v30 = vld [vmem:[%s1938_s29 + $0x50] sm:$0xff]   ;;  %v1743_v32 = vld [vmem:[%s1938_s29 + $0x58] sm:$0xff]   ;;  %s1324_s19 = sshll.u32 %s2162_s17, 4  ;;  %s2231_s19 = int_to_ptr.vmem [resolvable:$true] %s1324_s19 }
  0x1c   : > { %1550 = vmatprep.subr.bf16.mxu0 %v1748_v11  ;;  %v1744_v37 = vld [vmem:[%s1938_s29 + $0x60] sm:$0xff]   ;;  %v1745_v38 = vld [vmem:[%s1938_s29 + $0x68] sm:$0xff]   ;;  %v1746_v39 = vld [vmem:[%s1938_s29 + $0x70] sm:$0xff]   ;;  %s1764_s9 = scalar_lea.vmem %s2231_s19, 4096 }
  0x1d   : > { %v1747_v40 = vld [vmem:[%s1938_s29 + $0x78] sm:$0xff]   ;;  %p1765_p11 = scmp.ne.s32.totalorder %s2231_s19, %s1764_s9  ;;  %s1768_s29 = sshll.u32 %s1829_s10, 4  ;;  %s1769_s29 = int_to_ptr.vmem [resolvable:$false] %s1768_s29 }
  0x1e   : > { %1446 = vmatmul.mubr.msk.bf16.vlgmr.msra.gmra.mrb[0].mxu0 %vm442_vm0, %v1732_v9  ;;  %1673 = vmatpush3.bf16.msra.mxu1 %v1755_v19  ;;  %s1770_s12 = scalar_lea.vmem %s1769_s29, 8192  ;;  %p1771_p0 = scmp.lt.s32.totalorder %s2231_s19, %s1769_s29 }
  0x1f   : > { %533 = vmatprep.mubr.bf16.mxu0 %v1828_v2  ;;  %1551 = vmatpush3.bf16.msra.mxu0 %v1749_v12  ;;  %p1766_p12 = pnand %p1765_p11, %p1905_p5  ;;  %p1772_p1 = scmp.lt.s32.totalorder %s1770_s12, %s1764_s9 }
  0x20   : > { %1552 = vmatprep.subr.bf16.mxu0 %v1750_v13  ;;  %1666 = vmatprep.subr.bf16.mxu1 %v1756_v20 }
  0x21   : > { %p1767_p13 = pneg %p1766_p12  ;;  %p1773_p2 = por %p1772_p1, %p1771_p0 }
  0x22   : > { %1674 = vmatpush3.bf16.msra.mxu1 %v1757_v22 }
  0x23   : > { %1553 = vmatpush3.bf16.msra.mxu0 %v1751_v14  ;;  %1667 = vmatprep.subr.bf16.mxu1 %v1758_v23  ;;  %p1774_p3 = pnand %p1773_p2, %p1767_p13 }
  0x24   : > { %1554 = vmatprep.subr.bf16.mxu0 %v1752_v15 }
  0x26   : > { %1447 = vmatmul.mubr.msk.bf16.gmra.mrb[4].mxu0 %vm442_vm0, %v1733_v10  ;;  %1675 = vmatpush3.bf16.msra.mxu1 %v1759_v31 }
  0x27   : > { %543 = vmatprep.mubr.bf16.mxu0 %v1828_v2  ;;  %1555 = vmatpush3.bf16.msra.mxu0 %v1753_v17 }
  0x28   : > { %1556 = vmatprep.subr.bf16.mxu0 %v1754_v18  ;;  %1668 = vmatprep.subr.bf16.mxu1 %v1760_v33 }
  0x2a   : > { %1676 = vmatpush3.bf16.msra.mxu1 %v1761_v34 }
  0x2b   : > { %1557 = vmatpush3.bf16.msra.mxu0 %v1755_v19  ;;  %1669 = vmatprep.subr.bf16.mxu1 %v1762_v35 }
  0x2c   : > { %1558 = vmatprep.subr.bf16.mxu0 %v1756_v20 }
  0x2e   : > { %1448 = vmatmul.mubr.msk.bf16.gmra.mrb[8].mxu0 %vm442_vm0, %v1734_v16  ;;  %1677 = vmatpush3.bf16.msra.mxu1 %v1763_v36 }
  0x2f   : > { %553 = vmatprep.mubr.bf16.mxu0 %v1828_v2  ;;  %1559 = vmatpush3.bf16.msra.mxu0 %v1757_v22 }
  0x30   : > { %1560 = vmatprep.subr.bf16.mxu0 %v1758_v23 }
  0x33   : > { %1561 = vmatpush3.bf16.msra.mxu0 %v1759_v31 }
  0x34   : > { %1562 = vmatprep.subr.bf16.mxu0 %v1760_v33 }
  0x36   : > { %1449 = vmatmul.mubr.msk.bf16.gmra.mrb[12].mxu0 %vm442_vm0, %v1735_v21 }
  0x37   : > { %563 = vmatprep.mubr.bf16.mxu0 %v1828_v2  ;;  %1563 = vmatpush3.bf16.msra.mxu0 %v1761_v34 }
  0x38   : > { %1564 = vmatprep.subr.bf16.mxu0 %v1762_v35 }
  0x3b   : > { %1565 = vmatpush3.bf16.msra.mxu0 %v1763_v36 }
  0x3e   : > { %1450 = vmatmul.mubr.msk.bf16.gmra.mrb[16].mxu0 %vm442_vm0, %v1736_v24 }
  0x3f   : > { %573 = vmatprep.mubr.bf16.mxu0 %v1828_v2 }
  0x46   : > { %1451 = vmatmul.mubr.msk.bf16.gmra.mrb[20].mxu0 %vm442_vm0, %v1737_v25 }
  0x47   : > { %583 = vmatprep.mubr.bf16.mxu0 %v1828_v2 }
  0x4e   : > { %1452 = vmatmul.mubr.msk.bf16.gmra.mrb[24].mxu0 %vm442_vm0, %v1738_v26 }
  0x4f   : > { %593 = vmatprep.mubr.bf16.mxu0 %v1828_v2 }
  0x56   : > { %1453 = vmatmul.mubr.msk.bf16.gmra.mrb[28].mxu0 %vm442_vm0, %v1739_v27 }
  0x57   : > { %603 = vmatprep.mubr.bf16.mxu0 %v1828_v2 }
  0x5e   : > { %1454 = vmatmul.mubr.msk.bf16.gmra.mrb[32].mxu0 %vm442_vm0, %v1740_v28 }
  0x5f   : > { %613 = vmatprep.mubr.bf16.mxu0 %v1828_v2 }
  0x66   : > { %1455 = vmatmul.mubr.msk.bf16.gmra.mrb[36].mxu0 %vm442_vm0, %v1741_v29 }
  0x67   : > { %623 = vmatprep.mubr.bf16.mxu0 %v1828_v2 }
  0x6e   : > { %1456 = vmatmul.mubr.msk.bf16.gmra.mrb[40].mxu0 %vm442_vm0, %v1742_v30 }
  0x6f   : > { %633 = vmatprep.mubr.bf16.mxu0 %v1828_v2 }
  0x76   : > { %1457 = vmatmul.mubr.msk.bf16.gmra.mrb[44].mxu0 %vm442_vm0, %v1743_v32 }
  0x77   : > { %643 = vmatprep.mubr.bf16.mxu0 %v1828_v2 }
  0x7e   : > { %1458 = vmatmul.mubr.msk.bf16.gmra.mrb[48].mxu0 %vm442_vm0, %v1744_v37 }
  0x7f   : > { %653 = vmatprep.mubr.bf16.mxu0 %v1828_v2 }
  0x86   : > { %1459 = vmatmul.mubr.msk.bf16.gmra.mrb[52].mxu0 %vm442_vm0, %v1745_v38 }
  0x87   : > { %663 = vmatprep.mubr.bf16.mxu0 %v1828_v2 }
  0x8e   : > { %1460 = vmatmul.mubr.msk.bf16.gmra.mrb[56].mxu0 %vm442_vm0, %v1746_v39 }
  0x8f   : > { %673 = vmatprep.mubr.bf16.mxu0 %v1828_v2 }
  0x96   : > { %1461 = vmatmul.mubr.msk.bf16.gmra.mrb[60].mxu0 %vm442_vm0, %v1747_v40 }
  0xf1   : > { %v525_v48 = vpop.f32.mrb[0].mxu0 }
  0xf2   : > { %v526_v49 = vadd.f32 %v525_v48, %v2047_v46  ;;  %v527_v50 = vpop.f32.mrb[1].mxu0 }
  0xf3   : > { %v528_v51 = vadd.f32 %v527_v50, %v2049_v47  ;;  %v529_v52 = vpop.f32.mrb[2].mxu0 }
  0xf4   : > { %v684_v53 = vmax.f32 %v526_v49, 0.0  ;;  %v530_v54 = vadd.f32 %v529_v52, %v2047_v46  ;;  %v531_v55 = vpop.f32.mrb[3].mxu0 }
  0xf5   : > { %v685_v56 = vmax.f32 %v528_v51, 0.0  ;;  %v532_v57 = vadd.f32 %v531_v55, %v2049_v47 }
  0xf6   : > { %v686_v58 = vmax.f32 %v530_v54, 0.0 }
  0xf7   : > { %v1517_v59 = vpack.c.bf16 %v685_v56, %v684_v53  ;;  %v687_v60 = vmax.f32 %v532_v57, 0.0 }
  0xf8   : > { %v748_v61 = vpack.c.bf16 %v686_v58, %v684_v53 }
  0xf9   : > { %940 = vst [vmem:[%s2059_s13] sm:$0xff] %v1517_v59  ;;  %v749_v62 = vpack.c.bf16 %v687_v60, %v685_v56  ;;  %v1518_v63 = vpack.c.bf16 %v687_v60, %v686_v58  ;;  %v535_v0 = vpop.f32.mrb[4].mxu0 }
  0xfa   : > { %v536_v1 = vadd.f32 %v535_v0, %v2047_v46  ;;  %v537_v2 = vpop.f32.mrb[5].mxu0 }
  0xfb   : > { %941 = vst [vmem:[%s2059_s13 + $0x8] sm:$0xff] %v1518_v63  ;;  %v538_v3 = vadd.f32 %v537_v2, %v2049_v47  ;;  %v539_v4 = vpop.f32.mrb[6].mxu0  ;;  %1139 = vmatprep.mubr.bf16.mxu0 %v749_v62 }
  0xfc   : > { %v688_v5 = vmax.f32 %v536_v1, 0.0  ;;  %v540_v6 = vadd.f32 %v539_v4, %v2047_v46  ;;  %v541_v7 = vpop.f32.mrb[7].mxu0  ;;  %1140 = vmatmul.mubr.bf16.vlgmr.msra.gmra.mrb[64].mxu0 %v748_v61 }
  0xfd   : > { %v689_v8 = vmax.f32 %v538_v3, 0.0  ;;  %v542_v9 = vadd.f32 %v541_v7, %v2049_v47 }
  0xfe   : > { %v690_v10 = vmax.f32 %v540_v6, 0.0 }
  0xff   : > { %v1519_v11 = vpack.c.bf16 %v689_v8, %v688_v5  ;;  %v691_v12 = vmax.f32 %v542_v9, 0.0 }
 0x100   : > { %v750_v13 = vpack.c.bf16 %v690_v10, %v688_v5 }
 0x101   : > { %942 = vst [vmem:[%s2059_s13 + $0x10] sm:$0xff] %v1519_v11  ;;  %v1520_v14 = vpack.c.bf16 %v691_v12, %v690_v10  ;;  %v545_v15 = vpop.f32.mrb[8].mxu0  ;;  %v751_v16 = vpack.c.bf16 %v691_v12, %v689_v8 }
 0x102   : > { %v546_v17 = vadd.f32 %v545_v15, %v2047_v46  ;;  %v547_v18 = vpop.f32.mrb[9].mxu0 }
 0x103   : > { %943 = vst [vmem:[%s2059_s13 + $0x18] sm:$0xff] %v1520_v14  ;;  %v548_v19 = vadd.f32 %v547_v18, %v2049_v47  ;;  %v549_v20 = vpop.f32.mrb[10].mxu0  ;;  %1147 = vmatprep.mubr.bf16.mxu1 %v751_v16 }
 0x104   : > { %v692_v21 = vmax.f32 %v546_v17, 0.0  ;;  %v550_v22 = vadd.f32 %v549_v20, %v2047_v46  ;;  %v551_v23 = vpop.f32.mrb[11].mxu0  ;;  %1148 = vmatmul.mubr.bf16.vlgmr.msra.gmra.mrb[0].mxu1 %v750_v13 }
 0x105   : > { %v693_v24 = vmax.f32 %v548_v19, 0.0  ;;  %v552_v25 = vadd.f32 %v551_v23, %v2049_v47 }
 0x106   : > { %v694_v26 = vmax.f32 %v550_v22, 0.0 }
 0x107   : > { %v1521_v27 = vpack.c.bf16 %v693_v24, %v692_v21  ;;  %v695_v28 = vmax.f32 %v552_v25, 0.0 }
 0x108   : > { %v752_v29 = vpack.c.bf16 %v694_v26, %v692_v21 }
 0x109   : > { %944 = vst [vmem:[%s2059_s13 + $0x20] sm:$0xff] %v1521_v27  ;;  %v753_v30 = vpack.c.bf16 %v695_v28, %v693_v24  ;;  %v1522_v31 = vpack.c.bf16 %v695_v28, %v694_v26  ;;  %v555_v32 = vpop.f32.mrb[12].mxu0 }
 0x10a   : > { %v556_v33 = vadd.f32 %v555_v32, %v2047_v46  ;;  %v557_v34 = vpop.f32.mrb[13].mxu0 }
 0x10b   : > { %945 = vst [vmem:[%s2059_s13 + $0x28] sm:$0xff] %v1522_v31  ;;  %v558_v35 = vadd.f32 %v557_v34, %v2049_v47  ;;  %v559_v36 = vpop.f32.mrb[14].mxu0  ;;  %1155 = vmatprep.mubr.bf16.mxu1 %v753_v30 }
 0x10c   : > { %v696_v37 = vmax.f32 %v556_v33, 0.0  ;;  %v560_v38 = vadd.f32 %v559_v36, %v2047_v46  ;;  %v561_v39 = vpop.f32.mrb[15].mxu0  ;;  %1156 = vmatmul.mubr.bf16.gmra.mrb[4].mxu1 %v752_v29 }
 0x10d   : > { %v697_v40 = vmax.f32 %v558_v35, 0.0  ;;  %v562_v41 = vadd.f32 %v561_v39, %v2049_v47 }
 0x10e   : > { %v698_v42 = vmax.f32 %v560_v38, 0.0 }
 0x10f   : > { %v1523_v43 = vpack.c.bf16 %v697_v40, %v696_v37  ;;  %v699_v44 = vmax.f32 %v562_v41, 0.0 }
 0x110   : > { %v754_v45 = vpack.c.bf16 %v698_v42, %v696_v37 }
 0x111   : > { %946 = vst [vmem:[%s2059_s13 + $0x30] sm:$0xff] %v1523_v43  ;;  %v755_v48 = vpack.c.bf16 %v699_v44, %v697_v40  ;;  %v1524_v49 = vpack.c.bf16 %v699_v44, %v698_v42  ;;  %v565_v50 = vpop.f32.mrb[16].mxu0 }
 0x112   : > { %v566_v51 = vadd.f32 %v565_v50, %v2047_v46  ;;  %v567_v52 = vpop.f32.mrb[17].mxu0 }
 0x113   : > { %947 = vst [vmem:[%s2059_s13 + $0x38] sm:$0xff] %v1524_v49  ;;  %v568_v53 = vadd.f32 %v567_v52, %v2049_v47  ;;  %v569_v54 = vpop.f32.mrb[18].mxu0  ;;  %1163 = vmatprep.mubr.bf16.mxu1 %v755_v48 }
 0x114   : > { %v700_v55 = vmax.f32 %v566_v51, 0.0  ;;  %v570_v56 = vadd.f32 %v569_v54, %v2047_v46  ;;  %v571_v57 = vpop.f32.mrb[19].mxu0  ;;  %1164 = vmatmul.mubr.bf16.gmra.mrb[8].mxu1 %v754_v45 }
 0x115   : > { %v701_v58 = vmax.f32 %v568_v53, 0.0  ;;  %v572_v59 = vadd.f32 %v571_v57, %v2049_v47 }
 0x116   : > { %v702_v60 = vmax.f32 %v570_v56, 0.0 }
 0x117   : > { %v1525_v61 = vpack.c.bf16 %v701_v58, %v700_v55  ;;  %v703_v62 = vmax.f32 %v572_v59, 0.0 }
 0x118   : > { %v756_v63 = vpack.c.bf16 %v702_v60, %v700_v55 }
 0x119   : > { %948 = vst [vmem:[%s2059_s13 + $0x40] sm:$0xff] %v1525_v61  ;;  %v757_v0 = vpack.c.bf16 %v703_v62, %v701_v58  ;;  %v1526_v1 = vpack.c.bf16 %v703_v62, %v702_v60  ;;  %v575_v2 = vpop.f32.mrb[20].mxu0 }
 0x11a   : > { %v576_v3 = vadd.f32 %v575_v2, %v2047_v46  ;;  %v577_v4 = vpop.f32.mrb[21].mxu0 }
 0x11b   : > { %949 = vst [vmem:[%s2059_s13 + $0x48] sm:$0xff] %v1526_v1  ;;  %v578_v5 = vadd.f32 %v577_v4, %v2049_v47  ;;  %v579_v6 = vpop.f32.mrb[22].mxu0  ;;  %1171 = vmatprep.mubr.bf16.mxu1 %v757_v0 }
 0x11c   : > { %v704_v7 = vmax.f32 %v576_v3, 0.0  ;;  %v580_v8 = vadd.f32 %v579_v6, %v2047_v46  ;;  %v581_v9 = vpop.f32.mrb[23].mxu0  ;;  %1172 = vmatmul.mubr.bf16.gmra.mrb[12].mxu1 %v756_v63 }
 0x11d   : > { %v705_v10 = vmax.f32 %v578_v5, 0.0  ;;  %v582_v11 = vadd.f32 %v581_v9, %v2049_v47 }
 0x11e   : > { %v706_v12 = vmax.f32 %v580_v8, 0.0 }
 0x11f   : > { %v1527_v13 = vpack.c.bf16 %v705_v10, %v704_v7  ;;  %v707_v14 = vmax.f32 %v582_v11, 0.0 }
 0x120   : > { %v758_v15 = vpack.c.bf16 %v706_v12, %v704_v7 }
 0x121   : > { %950 = vst [vmem:[%s2059_s13 + $0x50] sm:$0xff] %v1527_v13  ;;  %v759_v16 = vpack.c.bf16 %v707_v14, %v705_v10  ;;  %v1528_v17 = vpack.c.bf16 %v707_v14, %v706_v12  ;;  %v585_v18 = vpop.f32.mrb[24].mxu0 }
 0x122   : > { %v586_v19 = vadd.f32 %v585_v18, %v2047_v46  ;;  %v587_v20 = vpop.f32.mrb[25].mxu0 }
 0x123   : > { %951 = vst [vmem:[%s2059_s13 + $0x58] sm:$0xff] %v1528_v17  ;;  %v588_v21 = vadd.f32 %v587_v20, %v2049_v47  ;;  %v589_v22 = vpop.f32.mrb[26].mxu0  ;;  %1179 = vmatprep.mubr.bf16.mxu1 %v759_v16 }
 0x124   : > { %v708_v23 = vmax.f32 %v586_v19, 0.0  ;;  %v590_v24 = vadd.f32 %v589_v22, %v2047_v46  ;;  %v591_v25 = vpop.f32.mrb[27].mxu0  ;;  %1180 = vmatmul.mubr.bf16.gmra.mrb[16].mxu1 %v758_v15 }
 0x125   : > { %v709_v26 = vmax.f32 %v588_v21, 0.0  ;;  %v592_v27 = vadd.f32 %v591_v25, %v2049_v47 }
 0x126   : > { %v710_v28 = vmax.f32 %v590_v24, 0.0 }
 0x127   : > { %v1529_v29 = vpack.c.bf16 %v709_v26, %v708_v23  ;;  %v711_v30 = vmax.f32 %v592_v27, 0.0 }
 0x128   : > { %v760_v31 = vpack.c.bf16 %v710_v28, %v708_v23 }
 0x129   : > { %952 = vst [vmem:[%s2059_s13 + $0x60] sm:$0xff] %v1529_v29  ;;  %v761_v32 = vpack.c.bf16 %v711_v30, %v709_v26  ;;  %v1530_v33 = vpack.c.bf16 %v711_v30, %v710_v28  ;;  %v595_v34 = vpop.f32.mrb[28].mxu0 }
 0x12a   : > { %v596_v35 = vadd.f32 %v595_v34, %v2047_v46  ;;  %v597_v36 = vpop.f32.mrb[29].mxu0 }
 0x12b   : > { %953 = vst [vmem:[%s2059_s13 + $0x68] sm:$0xff] %v1530_v33  ;;  %v598_v37 = vadd.f32 %v597_v36, %v2049_v47  ;;  %v599_v38 = vpop.f32.mrb[30].mxu0  ;;  %1187 = vmatprep.mubr.bf16.mxu1 %v761_v32 }
 0x12c   : > { %v712_v39 = vmax.f32 %v596_v35, 0.0  ;;  %v600_v40 = vadd.f32 %v599_v38, %v2047_v46  ;;  %v601_v41 = vpop.f32.mrb[31].mxu0  ;;  %1188 = vmatmul.mubr.bf16.gmra.mrb[20].mxu1 %v760_v31 }
 0x12d   : > { %v713_v42 = vmax.f32 %v598_v37, 0.0  ;;  %v602_v43 = vadd.f32 %v601_v41, %v2049_v47 }
 0x12e   : > { %v714_v44 = vmax.f32 %v600_v40, 0.0 }
 0x12f   : > { %v1531_v45 = vpack.c.bf16 %v713_v42, %v712_v39  ;;  %v715_v48 = vmax.f32 %v602_v43, 0.0 }
 0x130   : > { %v762_v49 = vpack.c.bf16 %v714_v44, %v712_v39 }
 0x131   : > { %954 = vst [vmem:[%s2059_s13 + $0x70] sm:$0xff] %v1531_v45  ;;  %v763_v50 = vpack.c.bf16 %v715_v48, %v713_v42  ;;  %v1532_v51 = vpack.c.bf16 %v715_v48, %v714_v44  ;;  %v605_v52 = vpop.f32.mrb[32].mxu0 }
 0x132   : > { %v606_v53 = vadd.f32 %v605_v52, %v2047_v46  ;;  %v607_v54 = vpop.f32.mrb[33].mxu0 }
 0x133   : > { %955 = vst [vmem:[%s2059_s13 + $0x78] sm:$0xff] %v1532_v51  ;;  %v608_v55 = vadd.f32 %v607_v54, %v2049_v47  ;;  %v609_v56 = vpop.f32.mrb[34].mxu0  ;;  %1195 = vmatprep.mubr.bf16.mxu1 %v763_v50 }
 0x134   : > { %v716_v57 = vmax.f32 %v606_v53, 0.0  ;;  %v610_v58 = vadd.f32 %v609_v56, %v2047_v46  ;;  %v611_v59 = vpop.f32.mrb[35].mxu0  ;;  %1196 = vmatmul.mubr.bf16.gmra.mrb[24].mxu1 %v762_v49 }
 0x135   : > { %v717_v60 = vmax.f32 %v608_v55, 0.0  ;;  %v612_v61 = vadd.f32 %v611_v59, %v2049_v47 }
 0x136   : > { %v718_v62 = vmax.f32 %v610_v58, 0.0 }
 0x137   : > { %v1533_v63 = vpack.c.bf16 %v717_v60, %v716_v57  ;;  %v719_v0 = vmax.f32 %v612_v61, 0.0 }
 0x138   : > { %v764_v1 = vpack.c.bf16 %v718_v62, %v716_v57 }
 0x139   : > { %956 = vst [vmem:[%s2059_s13 + $0x80] sm:$0xff] %v1533_v63  ;;  %v765_v2 = vpack.c.bf16 %v719_v0, %v717_v60  ;;  %v1534_v3 = vpack.c.bf16 %v719_v0, %v718_v62  ;;  %v615_v4 = vpop.f32.mrb[36].mxu0 }
 0x13a   : > { %v616_v5 = vadd.f32 %v615_v4, %v2047_v46  ;;  %v617_v6 = vpop.f32.mrb[37].mxu0 }
 0x13b   : > { %957 = vst [vmem:[%s2059_s13 + $0x88] sm:$0xff] %v1534_v3  ;;  %v618_v7 = vadd.f32 %v617_v6, %v2049_v47  ;;  %v619_v8 = vpop.f32.mrb[38].mxu0  ;;  %1203 = vmatprep.mubr.bf16.mxu1 %v765_v2 }
 0x13c   : > { %v720_v9 = vmax.f32 %v616_v5, 0.0  ;;  %v620_v10 = vadd.f32 %v619_v8, %v2047_v46  ;;  %v621_v11 = vpop.f32.mrb[39].mxu0  ;;  %1204 = vmatmul.mubr.bf16.gmra.mrb[28].mxu1 %v764_v1 }
 0x13d   : > { %v721_v12 = vmax.f32 %v618_v7, 0.0  ;;  %v622_v13 = vadd.f32 %v621_v11, %v2049_v47 }
 0x13e   : > { %v722_v14 = vmax.f32 %v620_v10, 0.0 }
 0x13f   : > { %v1535_v15 = vpack.c.bf16 %v721_v12, %v720_v9  ;;  %v723_v16 = vmax.f32 %v622_v13, 0.0 }
 0x140   : > { %v766_v17 = vpack.c.bf16 %v722_v14, %v720_v9 }
 0x141   : > { %958 = vst [vmem:[%s2059_s13 + $0x90] sm:$0xff] %v1535_v15  ;;  %v767_v18 = vpack.c.bf16 %v723_v16, %v721_v12  ;;  %v1536_v19 = vpack.c.bf16 %v723_v16, %v722_v14  ;;  %v625_v20 = vpop.f32.mrb[40].mxu0 }
 0x142   : > { %v626_v21 = vadd.f32 %v625_v20, %v2047_v46  ;;  %v627_v22 = vpop.f32.mrb[41].mxu0 }
 0x143   : > { %959 = vst [vmem:[%s2059_s13 + $0x98] sm:$0xff] %v1536_v19  ;;  %v628_v23 = vadd.f32 %v627_v22, %v2049_v47  ;;  %v629_v24 = vpop.f32.mrb[42].mxu0  ;;  %1211 = vmatprep.mubr.bf16.mxu1 %v767_v18 }
 0x144   : > { %v724_v25 = vmax.f32 %v626_v21, 0.0  ;;  %v630_v26 = vadd.f32 %v629_v24, %v2047_v46  ;;  %v631_v27 = vpop.f32.mrb[43].mxu0  ;;  %1212 = vmatmul.mubr.bf16.gmra.mrb[32].mxu1 %v766_v17 }
 0x145   : > { %v725_v28 = vmax.f32 %v628_v23, 0.0  ;;  %v632_v29 = vadd.f32 %v631_v27, %v2049_v47 }
 0x146   : > { %v726_v30 = vmax.f32 %v630_v26, 0.0 }
 0x147   : > { %v1537_v31 = vpack.c.bf16 %v725_v28, %v724_v25  ;;  %v727_v32 = vmax.f32 %v632_v29, 0.0 }
 0x148   : > { %v768_v33 = vpack.c.bf16 %v726_v30, %v724_v25 }
 0x149   : > { %960 = vst [vmem:[%s2059_s13 + $0xa0] sm:$0xff] %v1537_v31  ;;  %v769_v34 = vpack.c.bf16 %v727_v32, %v725_v28  ;;  %v1538_v35 = vpack.c.bf16 %v727_v32, %v726_v30  ;;  %v635_v36 = vpop.f32.mrb[44].mxu0 }
 0x14a   : > { %v636_v37 = vadd.f32 %v635_v36, %v2047_v46  ;;  %v637_v38 = vpop.f32.mrb[45].mxu0 }
 0x14b   : > { %961 = vst [vmem:[%s2059_s13 + $0xa8] sm:$0xff] %v1538_v35  ;;  %v638_v39 = vadd.f32 %v637_v38, %v2049_v47  ;;  %v639_v40 = vpop.f32.mrb[46].mxu0  ;;  %1219 = vmatprep.mubr.bf16.mxu1 %v769_v34 }
 0x14c   : > { %v728_v41 = vmax.f32 %v636_v37, 0.0  ;;  %v640_v42 = vadd.f32 %v639_v40, %v2047_v46  ;;  %v641_v43 = vpop.f32.mrb[47].mxu0  ;;  %1220 = vmatmul.mubr.bf16.gmra.mrb[36].mxu1 %v768_v33 }
 0x14d   : > { %v729_v44 = vmax.f32 %v638_v39, 0.0  ;;  %v642_v45 = vadd.f32 %v641_v43, %v2049_v47 }
 0x14e   : > { %v730_v48 = vmax.f32 %v640_v42, 0.0 }
 0x14f   : > { %v1539_v49 = vpack.c.bf16 %v729_v44, %v728_v41  ;;  %v731_v50 = vmax.f32 %v642_v45, 0.0 }
 0x150   : > { %v770_v51 = vpack.c.bf16 %v730_v48, %v728_v41 }
 0x151   : > { %962 = vst [vmem:[%s2059_s13 + $0xb0] sm:$0xff] %v1539_v49  ;;  %v771_v52 = vpack.c.bf16 %v731_v50, %v729_v44  ;;  %v1540_v53 = vpack.c.bf16 %v731_v50, %v730_v48  ;;  %v645_v54 = vpop.f32.mrb[48].mxu0 }
 0x152   : > { %v646_v55 = vadd.f32 %v645_v54, %v2047_v46  ;;  %v647_v56 = vpop.f32.mrb[49].mxu0 }
 0x153   : > { %963 = vst [vmem:[%s2059_s13 + $0xb8] sm:$0xff] %v1540_v53  ;;  %v648_v57 = vadd.f32 %v647_v56, %v2049_v47  ;;  %v649_v58 = vpop.f32.mrb[50].mxu0  ;;  %1227 = vmatprep.mubr.bf16.mxu1 %v771_v52 }
 0x154   : > { %v732_v59 = vmax.f32 %v646_v55, 0.0  ;;  %v650_v60 = vadd.f32 %v649_v58, %v2047_v46  ;;  %v651_v61 = vpop.f32.mrb[51].mxu0  ;;  %1228 = vmatmul.mubr.bf16.gmra.mrb[40].mxu1 %v770_v51 }
 0x155   : > { %v733_v62 = vmax.f32 %v648_v57, 0.0  ;;  %v652_v63 = vadd.f32 %v651_v61, %v2049_v47 }
 0x156   : > { %v734_v0 = vmax.f32 %v650_v60, 0.0 }
 0x157   : > { %v1541_v1 = vpack.c.bf16 %v733_v62, %v732_v59  ;;  %v735_v2 = vmax.f32 %v652_v63, 0.0 }
 0x158   : > { %v772_v3 = vpack.c.bf16 %v734_v0, %v732_v59 }
 0x159   : > { %964 = vst [vmem:[%s2059_s13 + $0xc0] sm:$0xff] %v1541_v1  ;;  %v773_v4 = vpack.c.bf16 %v735_v2, %v733_v62  ;;  %v1542_v5 = vpack.c.bf16 %v735_v2, %v734_v0  ;;  %v655_v6 = vpop.f32.mrb[52].mxu0 }
 0x15a   : > { %v656_v7 = vadd.f32 %v655_v6, %v2047_v46  ;;  %v657_v8 = vpop.f32.mrb[53].mxu0 }
 0x15b   : > { %965 = vst [vmem:[%s2059_s13 + $0xc8] sm:$0xff] %v1542_v5  ;;  %v658_v9 = vadd.f32 %v657_v8, %v2049_v47  ;;  %v659_v10 = vpop.f32.mrb[54].mxu0  ;;  %1235 = vmatprep.mubr.bf16.mxu1 %v773_v4 }
 0x15c   : > { %v736_v11 = vmax.f32 %v656_v7, 0.0  ;;  %v660_v12 = vadd.f32 %v659_v10, %v2047_v46  ;;  %v661_v13 = vpop.f32.mrb[55].mxu0  ;;  %1236 = vmatmul.mubr.bf16.gmra.mrb[44].mxu1 %v772_v3 }
 0x15d   : > { %v737_v14 = vmax.f32 %v658_v9, 0.0  ;;  %v662_v15 = vadd.f32 %v661_v13, %v2049_v47 }
 0x15e   : > { %v738_v16 = vmax.f32 %v660_v12, 0.0 }
 0x15f   : > { %v1543_v17 = vpack.c.bf16 %v737_v14, %v736_v11  ;;  %v739_v18 = vmax.f32 %v662_v15, 0.0 }
 0x160   : > { %v774_v19 = vpack.c.bf16 %v738_v16, %v736_v11 }
 0x161   : > { %966 = vst [vmem:[%s2059_s13 + $0xd0] sm:$0xff] %v1543_v17  ;;  %v775_v20 = vpack.c.bf16 %v739_v18, %v737_v14  ;;  %v1544_v21 = vpack.c.bf16 %v739_v18, %v738_v16  ;;  %v665_v22 = vpop.f32.mrb[56].mxu0 }
 0x162   : > { %v666_v23 = vadd.f32 %v665_v22, %v2047_v46  ;;  %v667_v24 = vpop.f32.mrb[57].mxu0 }
 0x163   : > { %967 = vst [vmem:[%s2059_s13 + $0xd8] sm:$0xff] %v1544_v21  ;;  %v668_v25 = vadd.f32 %v667_v24, %v2049_v47  ;;  %v669_v26 = vpop.f32.mrb[58].mxu0  ;;  %1243 = vmatprep.mubr.bf16.mxu1 %v775_v20 }
 0x164   : > { %v740_v27 = vmax.f32 %v666_v23, 0.0  ;;  %v670_v28 = vadd.f32 %v669_v26, %v2047_v46  ;;  %v671_v29 = vpop.f32.mrb[59].mxu0  ;;  %1244 = vmatmul.mubr.bf16.gmra.mrb[48].mxu1 %v774_v19 }
 0x165   : > { %v741_v30 = vmax.f32 %v668_v25, 0.0  ;;  %v672_v31 = vadd.f32 %v671_v29, %v2049_v47 }
 0x166   : > { %v742_v32 = vmax.f32 %v670_v28, 0.0 }
 0x167   : > { %v1545_v33 = vpack.c.bf16 %v741_v30, %v740_v27  ;;  %v743_v34 = vmax.f32 %v672_v31, 0.0 }
 0x168   : > { %v776_v35 = vpack.c.bf16 %v742_v32, %v740_v27 }
 0x169   : > { %968 = vst [vmem:[%s2059_s13 + $0xe0] sm:$0xff] %v1545_v33  ;;  %v777_v36 = vpack.c.bf16 %v743_v34, %v741_v30  ;;  %v1546_v37 = vpack.c.bf16 %v743_v34, %v742_v32  ;;  %v675_v38 = vpop.f32.mrb[60].mxu0 }
 0x16a   : > { %v676_v39 = vadd.f32 %v675_v38, %v2047_v46  ;;  %v677_v40 = vpop.f32.mrb[61].mxu0 }
 0x16b   : > { %969 = vst [vmem:[%s2059_s13 + $0xe8] sm:$0xff] %v1546_v37  ;;  %v678_v41 = vadd.f32 %v677_v40, %v2049_v47  ;;  %v679_v42 = vpop.f32.mrb[62].mxu0  ;;  %1251 = vmatprep.mubr.bf16.mxu1 %v777_v36 }
 0x16c   : > { %v744_v43 = vmax.f32 %v676_v39, 0.0  ;;  %v680_v44 = vadd.f32 %v679_v42, %v2047_v46  ;;  %v681_v45 = vpop.f32.mrb[63].mxu0  ;;  %1252 = vmatmul.mubr.bf16.gmra.mrb[52].mxu1 %v776_v35  ;;  %v2159_v46 = vld [vmem:[%s2283_s4] ss:$0 sm:$0xff] }
 0x16d   : > { %v745_v48 = vmax.f32 %v678_v41, 0.0  ;;  %v682_v49 = vadd.f32 %v681_v45, %v2049_v47 }
 0x16e   : > { %v746_v50 = vmax.f32 %v680_v44, 0.0 }
 0x16f   : > { %v1547_v51 = vpack.c.bf16 %v745_v48, %v744_v43  ;;  %v747_v52 = vmax.f32 %v682_v49, 0.0 }
 0x170   : > { %v778_v53 = vpack.c.bf16 %v746_v50, %v744_v43 }
 0x171   : > { %970 = vst [vmem:[%s2059_s13 + $0xf0] sm:$0xff] %v1547_v51  ;;  %v779_v54 = vpack.c.bf16 %v747_v52, %v745_v48  ;;  %v1548_v55 = vpack.c.bf16 %v747_v52, %v746_v50 }
 0x173   : > { %971 = vst [vmem:[%s2059_s13 + $0xf8] sm:$0xff] %v1548_v55  ;;  %1259 = vmatprep.mubr.bf16.mxu1 %v779_v54 }
 0x174   : > { %1260 = vmatmul.mubr.bf16.gmra.mrb[56].mxu1 %v778_v53 }
 0x1cf   : > { %v1566_v56 = vpop.f32.mrb[64].mxu0 }
 0x1d0   : > { %v1567_v47 = vpop.f32.mrb[65].mxu0 }
 0x1d1   : > { %v1568_v57 = vadd.f32 %v1567_v47, %v1566_v56  ;;  %v1569_v58 = vpop.f32.mrb[66].mxu0 }
 0x1d2   : > { %v1570_v59 = vpop.f32.mrb[67].mxu0 }
 0x1d3   : > { %v1142_v60 = vadd.f32 %v1568_v57, %v2159_v46  ;;  %v1571_v61 = vadd.f32 %v1570_v59, %v1569_v58 }
 0x1d5   : > { %1268 = vst [vmem:[%s2162_s17] sm:$0xff] %v1142_v60  ;;  %v1145_v62 = vadd.f32 %v1571_v61, %v2159_v46 }
 0x1d7   : > { %1269 = vst [vmem:[%s2162_s17 + $0x8] sm:$0xff] %v1145_v62  ;;  %v1572_v63 = vpop.f32.mrb[0].mxu1 }
 0x1d8   : > { %v1573_v0 = vpop.f32.mrb[1].mxu1 }
 0x1d9   : > { %v1574_v1 = vadd.f32 %v1573_v0, %v1572_v63  ;;  %v1575_v2 = vpop.f32.mrb[2].mxu1 }
 0x1da   : > { %v1576_v3 = vpop.f32.mrb[3].mxu1 }
 0x1db   : > { %v1150_v4 = vadd.f32 %v1574_v1, %v2159_v46  ;;  %v1577_v5 = vadd.f32 %v1576_v3, %v1575_v2 }
 0x1dd   : > { %1270 = vst [vmem:[%s2162_s17 + $0x10] sm:$0xff] %v1150_v4  ;;  %v1153_v6 = vadd.f32 %v1577_v5, %v2159_v46 }
 0x1df   : > { %1271 = vst [vmem:[%s2162_s17 + $0x18] sm:$0xff] %v1153_v6  ;;  %v1578_v7 = vpop.f32.mrb[4].mxu1 }
 0x1e0   : > { %v1579_v8 = vpop.f32.mrb[5].mxu1 }
 0x1e1   : > { %v1580_v9 = vadd.f32 %v1579_v8, %v1578_v7  ;;  %v1581_v10 = vpop.f32.mrb[6].mxu1 }
 0x1e2   : > { %v1582_v11 = vpop.f32.mrb[7].mxu1 }
 0x1e3   : > { %v1158_v12 = vadd.f32 %v1580_v9, %v2159_v46  ;;  %v1583_v13 = vadd.f32 %v1582_v11, %v1581_v10 }
 0x1e5   : > { %1272 = vst [vmem:[%s2162_s17 + $0x20] sm:$0xff] %v1158_v12  ;;  %v1161_v14 = vadd.f32 %v1583_v13, %v2159_v46 }
 0x1e7   : > { %1273 = vst [vmem:[%s2162_s17 + $0x28] sm:$0xff] %v1161_v14  ;;  %v1584_v15 = vpop.f32.mrb[8].mxu1 }
 0x1e8   : > { %v1585_v16 = vpop.f32.mrb[9].mxu1 }
 0x1e9   : > { %v1586_v17 = vadd.f32 %v1585_v16, %v1584_v15  ;;  %v1587_v18 = vpop.f32.mrb[10].mxu1 }
 0x1ea   : > { %v1588_v19 = vpop.f32.mrb[11].mxu1 }
 0x1eb   : > { %v1166_v20 = vadd.f32 %v1586_v17, %v2159_v46  ;;  %v1589_v21 = vadd.f32 %v1588_v19, %v1587_v18 }
 0x1ed   : > { %1274 = vst [vmem:[%s2162_s17 + $0x30] sm:$0xff] %v1166_v20  ;;  %v1169_v22 = vadd.f32 %v1589_v21, %v2159_v46 }
 0x1ef   : > { %1275 = vst [vmem:[%s2162_s17 + $0x38] sm:$0xff] %v1169_v22  ;;  %v1590_v23 = vpop.f32.mrb[12].mxu1 }
 0x1f0   : > { %v1591_v24 = vpop.f32.mrb[13].mxu1 }
 0x1f1   : > { %v1592_v25 = vadd.f32 %v1591_v24, %v1590_v23  ;;  %v1593_v26 = vpop.f32.mrb[14].mxu1 }
 0x1f2   : > { %v1594_v27 = vpop.f32.mrb[15].mxu1 }
 0x1f3   : > { %v1174_v28 = vadd.f32 %v1592_v25, %v2159_v46  ;;  %v1595_v29 = vadd.f32 %v1594_v27, %v1593_v26 }
 0x1f5   : > { %1276 = vst [vmem:[%s2162_s17 + $0x40] sm:$0xff] %v1174_v28  ;;  %v1177_v30 = vadd.f32 %v1595_v29, %v2159_v46 }
 0x1f7   : > { %1277 = vst [vmem:[%s2162_s17 + $0x48] sm:$0xff] %v1177_v30  ;;  %v1596_v31 = vpop.f32.mrb[16].mxu1 }
 0x1f8   : > { %v1597_v32 = vpop.f32.mrb[17].mxu1 }
 0x1f9   : > { %v1598_v33 = vadd.f32 %v1597_v32, %v1596_v31  ;;  %v1599_v34 = vpop.f32.mrb[18].mxu1 }
 0x1fa   : > { %v1600_v35 = vpop.f32.mrb[19].mxu1 }
 0x1fb   : > { %v1182_v36 = vadd.f32 %v1598_v33, %v2159_v46  ;;  %v1601_v37 = vadd.f32 %v1600_v35, %v1599_v34 }
 0x1fd   : > { %1278 = vst [vmem:[%s2162_s17 + $0x50] sm:$0xff] %v1182_v36  ;;  %v1185_v38 = vadd.f32 %v1601_v37, %v2159_v46 }
 0x1ff   : > { %1279 = vst [vmem:[%s2162_s17 + $0x58] sm:$0xff] %v1185_v38  ;;  %v1602_v39 = vpop.f32.mrb[20].mxu1 }
 0x200   : > { %v1603_v40 = vpop.f32.mrb[21].mxu1 }
 0x201   : > { %v1604_v41 = vadd.f32 %v1603_v40, %v1602_v39  ;;  %v1605_v42 = vpop.f32.mrb[22].mxu1 }
 0x202   : > { %v1606_v43 = vpop.f32.mrb[23].mxu1 }
 0x203   : > { %v1190_v44 = vadd.f32 %v1604_v41, %v2159_v46  ;;  %v1607_v45 = vadd.f32 %v1606_v43, %v1605_v42 }
 0x205   : > { %1280 = vst [vmem:[%s2162_s17 + $0x60] sm:$0xff] %v1190_v44  ;;  %v1193_v48 = vadd.f32 %v1607_v45, %v2159_v46 }
 0x207   : > { %1281 = vst [vmem:[%s2162_s17 + $0x68] sm:$0xff] %v1193_v48  ;;  %v1608_v49 = vpop.f32.mrb[24].mxu1 }
 0x208   : > { %v1609_v50 = vpop.f32.mrb[25].mxu1 }
 0x209   : > { %v1610_v51 = vadd.f32 %v1609_v50, %v1608_v49  ;;  %v1611_v52 = vpop.f32.mrb[26].mxu1 }
 0x20a   : > { %v1612_v53 = vpop.f32.mrb[27].mxu1 }
 0x20b   : > { %v1198_v54 = vadd.f32 %v1610_v51, %v2159_v46  ;;  %v1613_v55 = vadd.f32 %v1612_v53, %v1611_v52 }
 0x20d   : > { %1282 = vst [vmem:[%s2162_s17 + $0x70] sm:$0xff] %v1198_v54  ;;  %v1201_v56 = vadd.f32 %v1613_v55, %v2159_v46 }
 0x20f   : > { %1283 = vst [vmem:[%s2162_s17 + $0x78] sm:$0xff] %v1201_v56  ;;  %v1614_v47 = vpop.f32.mrb[28].mxu1 }
 0x210   : > { %v1615_v57 = vpop.f32.mrb[29].mxu1 }
 0x211   : > { %v1616_v58 = vadd.f32 %v1615_v57, %v1614_v47  ;;  %v1617_v59 = vpop.f32.mrb[30].mxu1 }
 0x212   : > { %v1618_v60 = vpop.f32.mrb[31].mxu1 }
 0x213   : > { %v1206_v61 = vadd.f32 %v1616_v58, %v2159_v46  ;;  %v1619_v62 = vadd.f32 %v1618_v60, %v1617_v59 }
 0x215   : > { %1284 = vst [vmem:[%s2162_s17 + $0x80] sm:$0xff] %v1206_v61  ;;  %v1209_v63 = vadd.f32 %v1619_v62, %v2159_v46 }
 0x217   : > { %1285 = vst [vmem:[%s2162_s17 + $0x88] sm:$0xff] %v1209_v63  ;;  %v1620_v0 = vpop.f32.mrb[32].mxu1 }
 0x218   : > { %v1621_v1 = vpop.f32.mrb[33].mxu1 }
 0x219   : > { %v1622_v2 = vadd.f32 %v1621_v1, %v1620_v0  ;;  %v1623_v3 = vpop.f32.mrb[34].mxu1 }
 0x21a   : > { %v1624_v4 = vpop.f32.mrb[35].mxu1 }
 0x21b   : > { %v1214_v5 = vadd.f32 %v1622_v2, %v2159_v46  ;;  %v1625_v6 = vadd.f32 %v1624_v4, %v1623_v3 }
 0x21d   : > { %1286 = vst [vmem:[%s2162_s17 + $0x90] sm:$0xff] %v1214_v5  ;;  %v1217_v7 = vadd.f32 %v1625_v6, %v2159_v46 }
 0x21f   : > { %1287 = vst [vmem:[%s2162_s17 + $0x98] sm:$0xff] %v1217_v7  ;;  %v1626_v8 = vpop.f32.mrb[36].mxu1 }
 0x220   : > { %v1627_v9 = vpop.f32.mrb[37].mxu1 }
 0x221   : > { %v1628_v10 = vadd.f32 %v1627_v9, %v1626_v8  ;;  %v1629_v11 = vpop.f32.mrb[38].mxu1 }
 0x222   : > { %v1630_v12 = vpop.f32.mrb[39].mxu1 }
 0x223   : > { %v1222_v13 = vadd.f32 %v1628_v10, %v2159_v46  ;;  %v1631_v14 = vadd.f32 %v1630_v12, %v1629_v11 }
 0x225   : > { %1288 = vst [vmem:[%s2162_s17 + $0xa0] sm:$0xff] %v1222_v13  ;;  %v1225_v15 = vadd.f32 %v1631_v14, %v2159_v46 }
 0x227   : > { %1289 = vst [vmem:[%s2162_s17 + $0xa8] sm:$0xff] %v1225_v15  ;;  %v1632_v16 = vpop.f32.mrb[40].mxu1 }
 0x228   : > { %v1633_v17 = vpop.f32.mrb[41].mxu1 }
 0x229   : > { %v1634_v18 = vadd.f32 %v1633_v17, %v1632_v16  ;;  %v1635_v19 = vpop.f32.mrb[42].mxu1 }
 0x22a   : > { %v1636_v20 = vpop.f32.mrb[43].mxu1 }
 0x22b   : > { %v1230_v21 = vadd.f32 %v1634_v18, %v2159_v46  ;;  %v1637_v22 = vadd.f32 %v1636_v20, %v1635_v19 }
 0x22d   : > { %1290 = vst [vmem:[%s2162_s17 + $0xb0] sm:$0xff] %v1230_v21  ;;  %v1233_v23 = vadd.f32 %v1637_v22, %v2159_v46 }
 0x22f   : > { %1291 = vst [vmem:[%s2162_s17 + $0xb8] sm:$0xff] %v1233_v23  ;;  %v1638_v24 = vpop.f32.mrb[44].mxu1 }
 0x230   : > { %v1639_v25 = vpop.f32.mrb[45].mxu1 }
 0x231   : > { %v1640_v26 = vadd.f32 %v1639_v25, %v1638_v24  ;;  %v1641_v27 = vpop.f32.mrb[46].mxu1 }
 0x232   : > { %v1642_v28 = vpop.f32.mrb[47].mxu1 }
 0x233   : > { %v1238_v29 = vadd.f32 %v1640_v26, %v2159_v46  ;;  %v1643_v30 = vadd.f32 %v1642_v28, %v1641_v27 }
 0x235   : > { %1292 = vst [vmem:[%s2162_s17 + $0xc0] sm:$0xff] %v1238_v29  ;;  %v1241_v31 = vadd.f32 %v1643_v30, %v2159_v46 }
 0x237   : > { %1293 = vst [vmem:[%s2162_s17 + $0xc8] sm:$0xff] %v1241_v31  ;;  %v1644_v32 = vpop.f32.mrb[48].mxu1 }
 0x238   : > { %v1645_v33 = vpop.f32.mrb[49].mxu1 }
 0x239   : > { %v1646_v34 = vadd.f32 %v1645_v33, %v1644_v32  ;;  %v1647_v35 = vpop.f32.mrb[50].mxu1 }
 0x23a   : > { %v1648_v36 = vpop.f32.mrb[51].mxu1 }
 0x23b   : > { %v1246_v37 = vadd.f32 %v1646_v34, %v2159_v46  ;;  %v1649_v38 = vadd.f32 %v1648_v36, %v1647_v35 }
 0x23d   : > { %1294 = vst [vmem:[%s2162_s17 + $0xd0] sm:$0xff] %v1246_v37  ;;  %v1249_v39 = vadd.f32 %v1649_v38, %v2159_v46 }
 0x23f   : > { %1295 = vst [vmem:[%s2162_s17 + $0xd8] sm:$0xff] %v1249_v39  ;;  %v1650_v40 = vpop.f32.mrb[52].mxu1 }
 0x240   : > { %v1651_v41 = vpop.f32.mrb[53].mxu1 }
 0x241   : > { %v1652_v42 = vadd.f32 %v1651_v41, %v1650_v40  ;;  %v1653_v43 = vpop.f32.mrb[54].mxu1 }
 0x242   : > { %v1654_v44 = vpop.f32.mrb[55].mxu1 }
 0x243   : > { %v1254_v45 = vadd.f32 %v1652_v42, %v2159_v46  ;;  %v1655_v48 = vadd.f32 %v1654_v44, %v1653_v43 }
 0x245   : > { %1296 = vst [vmem:[%s2162_s17 + $0xe0] sm:$0xff] %v1254_v45  ;;  %v1257_v49 = vadd.f32 %v1655_v48, %v2159_v46 }
 0x247   : > { %1297 = vst [vmem:[%s2162_s17 + $0xe8] sm:$0xff] %v1257_v49  ;;  %v1656_v50 = vpop.f32.mrb[56].mxu1 }
 0x248   : > { %v1657_v51 = vpop.f32.mrb[57].mxu1 }
 0x249   : > { %v1658_v52 = vadd.f32 %v1657_v51, %v1656_v50  ;;  %v1659_v53 = vpop.f32.mrb[58].mxu1 }
 0x24a   : > { %v1660_v54 = vpop.f32.mrb[59].mxu1 }
 0x24b   : > { %v1262_v55 = vadd.f32 %v1658_v52, %v2159_v46  ;;  %v1661_v56 = vadd.f32 %v1660_v54, %v1659_v53 }
 0x24d   : > { %1298 = vst [vmem:[%s2162_s17 + $0xf0] sm:$0xff] %v1262_v55  ;;  %v1265_v47 = vadd.f32 %v1661_v56, %v2159_v46 }
 0x24f   : > { %1299 = vst [vmem:[%s2162_s17 + $0xf8] sm:$0xff] %v1265_v47 }
 0x250   : > { %1777 = shalt.err (!%p1774_p3)
}
 0x251   : > { %s1778_s13 = scalar_lea.hbm %s2229_s28, 4096  ;;  %s1782_s15 = scalar_lea.hbm %s2285_s6, 8192 }
 0x252   : > { %p1779_p4 = scmp.ne.s32.totalorder %s2229_s28, %s1778_s13  ;;  %p1783_p9 = scmp.lt.u32.totalorder %s2229_s28, %s2285_s6 }
 0x253   : > { %p1784_p10 = scmp.lt.u32.totalorder %s1782_s15, %s1778_s13  ;;  %p1786_p12 = scmp.lt.u32.totalorder %s1778_s13, %s2229_s28 }
 0x254   : > { %p1780_p7 = pnand %p1779_p4, %p1905_p5 }
 0x255   : > { %p1785_p11 = por %p1784_p10, %p1783_p9 }
 0x256   : > { %p1781_p8 = pneg %p1780_p7 }
 0x257   : > { %p1787_p13 = por %p1786_p12, %p1785_p11 }
 0x259   : > { %p1788_p0 = pnand %p1787_p13, %p1781_p8 }
 0x25b   : > { %1791 = shalt.err (!%p1788_p0)
}
 0x25c   : > { %s1830_s18 = smov 128   ;;  %s1831_s20 = smov 8  }
 0x25d   : > { %1678 = dma.vmem_to_hbm [thread:$0]  (%p1905_p5), %s2231_s19, 4096, %s2229_s28, %s2238_s25, %s1830_s18, %s1830_s18, %s1831_s20  }
 0x25e PF: > { %p1684_p1 = scmp.ge.s32.totalorder %s1826_s24, 2  ;;  %s1348_s26 = sand.u32 1, %s1814_s21  }
 0x25f   : > { %s1349_s9 = scalar_lea.sflag [#allocation3], %s1348_s26 }
 0x260   : > { %p1681_p2 = pnand %p1684_p1, %p1909_p6 }
 0x262   : > { %1809 = dma.done.wait (!%p1681_p2), %s1349_s9, 4096  }
 0x263   : > { %1811 = vsyncadd (!%p1681_p2), %s1349_s9, 4294963200  ;;  %p17_p3 = scmp.ge.s32.totalorder %s1892_s27, 4   ;;  %s2288_s21 = smov %s1818_s22 }
 0x264   : > { %s2289_s22 = smov %s1822_s23  ;;  %s2290_s23 = smov %s1903_s30 }
 0x265   : > { %s2291_s24 = smov %s1892_s27  ;;  %19 = sbr.rel (!%p17_p3) target bundleno = 3 (0x3), region = 87 }
 0x26c   :  { %1354 = vsyncpa [#allocation3], 1 }
 0x26d   :  { %1356 = vsyncpa [#allocation3 + $0x1], 1 }

// kernel: _lambda_.7
= control target key start
LH: loop header
LB: loop body
LE: loop exit
PB: predicated region body
PF: predicated region fallthrough
CT: control target
= control target key end

     0   :  { %s2595_s0 = inlined_call_operand.vmem [shape: bf16[128,256], index: 0, kind: input, shape index: {}]   ;;  %s2596_s1 = inlined_call_operand.vmem [shape: bf16[256,512], index: 1, kind: input, shape index: {}]   ;;  %s2597_s2 = inlined_call_operand.vmem [shape: f32[1,512], index: 2, kind: input, shape index: {}]   ;;  %s2598_s3 = inlined_call_operand.vmem [shape: bf16[512,128], index: 3, kind: input, shape index: {}]   ;;  %s2599_s4 = inlined_call_operand.vmem [shape: f32[1,128], index: 4, kind: input, shape index: {}]   ;;  %s2600_s5 = inlined_call_operand.vmem [shape: bf16[128,512], index: 5, kind: output, shape index: {0}]   ;;  %s2601_s6 = inlined_call_operand.hbm [shape: f32[128,128], index: 6, kind: output, shape index: {1}]  }
   0x1   :  { %v1841_v0 = vld [vmem:[%s2596_s1 + $0x4] ss:$16 sps:$4 sm:$0xff]   ;;  %v1843_v1 = vld [vmem:[%s2596_s1 + $0xc] ss:$16 sps:$4 sm:$0xff]   ;;  %v1845_v2 = vld [vmem:[%s2596_s1] ss:$16 sps:$4 sm:$0xff]  }
   0x2   :  { %526 = vmatprep.subr.bf16.mxu0 %v1841_v0  ;;  %v1846_v3 = vld [vmem:[%s2596_s1 + $0x8] ss:$16 sps:$4 sm:$0xff]   ;;  %639 = vmatprep.subr.bf16.mxu1 %v1843_v1  ;;  %v1847_v4 = vld [vmem:[%s2596_s1 + $0x24] ss:$16 sps:$4 sm:$0xff]   ;;  %v1849_v5 = vld [vmem:[%s2596_s1 + $0x2c] ss:$16 sps:$4 sm:$0xff]  }
   0x3   :  { %527 = vmatpush1.bf16.msra.mxu0 %v1845_v2  ;;  %640 = vmatpush1.bf16.msra.mxu1 %v1846_v3  ;;  %v1851_v6 = vld [vmem:[%s2596_s1 + $0x20] ss:$16 sps:$4 sm:$0xff]   ;;  %v1852_v7 = vld [vmem:[%s2596_s1 + $0x28] ss:$16 sps:$4 sm:$0xff]   ;;  %v1853_v8 = vld [vmem:[%s2596_s1 + $0x44] ss:$16 sps:$4 sm:$0xff]  }
   0x4   :  { %528 = vmatprep.subr.bf16.mxu0 %v1847_v4  ;;  %641 = vmatprep.subr.bf16.mxu1 %v1849_v5  ;;  %v1855_v9 = vld [vmem:[%s2596_s1 + $0x4c] ss:$16 sps:$4 sm:$0xff]   ;;  %v1857_v10 = vld [vmem:[%s2596_s1 + $0x40] ss:$16 sps:$4 sm:$0xff]   ;;  %v1858_v11 = vld [vmem:[%s2596_s1 + $0x48] ss:$16 sps:$4 sm:$0xff]  }
   0x5   :  { %v1859_v12 = vld [vmem:[%s2596_s1 + $0x64] ss:$16 sps:$4 sm:$0xff]   ;;  %v1861_v13 = vld [vmem:[%s2596_s1 + $0x6c] ss:$16 sps:$4 sm:$0xff]   ;;  %v1863_v14 = vld [vmem:[%s2596_s1 + $0x60] ss:$16 sps:$4 sm:$0xff]  }
   0x6   :  { %v1864_v15 = vld [vmem:[%s2596_s1 + $0x68] ss:$16 sps:$4 sm:$0xff]   ;;  %v1865_v16 = vld [vmem:[%s2596_s1 + $0x84] ss:$16 sps:$4 sm:$0xff]   ;;  %v1867_v17 = vld [vmem:[%s2596_s1 + $0x8c] ss:$16 sps:$4 sm:$0xff]  }
   0x7   :  { %529 = vmatpush1.bf16.msra.mxu0 %v1851_v6  ;;  %642 = vmatpush1.bf16.msra.mxu1 %v1852_v7  ;;  %v1869_v18 = vld [vmem:[%s2596_s1 + $0x80] ss:$16 sps:$4 sm:$0xff]   ;;  %v1870_v19 = vld [vmem:[%s2596_s1 + $0x88] ss:$16 sps:$4 sm:$0xff]   ;;  %v1871_v20 = vld [vmem:[%s2596_s1 + $0xa4] ss:$16 sps:$4 sm:$0xff]  }
   0x8   :  { %530 = vmatprep.subr.bf16.mxu0 %v1853_v8  ;;  %643 = vmatprep.subr.bf16.mxu1 %v1855_v9  ;;  %v1873_v21 = vld [vmem:[%s2596_s1 + $0xac] ss:$16 sps:$4 sm:$0xff]   ;;  %v1875_v22 = vld [vmem:[%s2596_s1 + $0xa0] ss:$16 sps:$4 sm:$0xff]   ;;  %v1876_v23 = vld [vmem:[%s2596_s1 + $0xa8] ss:$16 sps:$4 sm:$0xff]  }
   0x9   :  { %v1877_v24 = vld [vmem:[%s2596_s1 + $0xc4] ss:$16 sps:$4 sm:$0xff]   ;;  %v1879_v25 = vld [vmem:[%s2596_s1 + $0xcc] ss:$16 sps:$4 sm:$0xff]   ;;  %v1881_v26 = vld [vmem:[%s2596_s1 + $0xc0] ss:$16 sps:$4 sm:$0xff]  }
   0xa   :  { %v1882_v27 = vld [vmem:[%s2596_s1 + $0xc8] ss:$16 sps:$4 sm:$0xff]   ;;  %v1883_v28 = vld [vmem:[%s2596_s1 + $0xe4] ss:$16 sps:$4 sm:$0xff]   ;;  %v1885_v29 = vld [vmem:[%s2596_s1 + $0xec] ss:$16 sps:$4 sm:$0xff]  }
   0xb   :  { %531 = vmatpush1.bf16.msra.mxu0 %v1857_v10  ;;  %644 = vmatpush1.bf16.msra.mxu1 %v1858_v11  ;;  %v1887_v30 = vld [vmem:[%s2596_s1 + $0xe0] ss:$16 sps:$4 sm:$0xff]   ;;  %v1888_v31 = vld [vmem:[%s2596_s1 + $0xe8] ss:$16 sps:$4 sm:$0xff]   ;;  %v1889_v32 = vld [vmem:[%s2596_s1 + $0x104] ss:$16 sps:$4 sm:$0xff]  }
   0xc   :  { %532 = vmatprep.subr.bf16.mxu0 %v1859_v12  ;;  %645 = vmatprep.subr.bf16.mxu1 %v1861_v13  ;;  %v1891_v33 = vld [vmem:[%s2596_s1 + $0x10c] ss:$16 sps:$4 sm:$0xff]   ;;  %v1893_v34 = vld [vmem:[%s2596_s1 + $0x100] ss:$16 sps:$4 sm:$0xff]   ;;  %v1894_v35 = vld [vmem:[%s2596_s1 + $0x108] ss:$16 sps:$4 sm:$0xff]  }
   0xd   :  { %v1895_v36 = vld [vmem:[%s2596_s1 + $0x124] ss:$16 sps:$4 sm:$0xff]   ;;  %v1897_v37 = vld [vmem:[%s2596_s1 + $0x12c] ss:$16 sps:$4 sm:$0xff]   ;;  %v1899_v38 = vld [vmem:[%s2596_s1 + $0x120] ss:$16 sps:$4 sm:$0xff]  }
   0xe   :  { %v1900_v39 = vld [vmem:[%s2596_s1 + $0x128] ss:$16 sps:$4 sm:$0xff]   ;;  %v1901_v40 = vld [vmem:[%s2596_s1 + $0x144] ss:$16 sps:$4 sm:$0xff]   ;;  %v1903_v41 = vld [vmem:[%s2596_s1 + $0x14c] ss:$16 sps:$4 sm:$0xff]  }
   0xf   :  { %533 = vmatpush1.bf16.msra.mxu0 %v1863_v14  ;;  %646 = vmatpush1.bf16.msra.mxu1 %v1864_v15  ;;  %v1905_v42 = vld [vmem:[%s2596_s1 + $0x140] ss:$16 sps:$4 sm:$0xff]   ;;  %v1906_v43 = vld [vmem:[%s2596_s1 + $0x148] ss:$16 sps:$4 sm:$0xff]   ;;  %v1907_v44 = vld [vmem:[%s2596_s1 + $0x164] ss:$16 sps:$4 sm:$0xff]  }
  0x10   :  { %534 = vmatprep.subr.bf16.mxu0 %v1865_v16  ;;  %647 = vmatprep.subr.bf16.mxu1 %v1867_v17  ;;  %v1909_v45 = vld [vmem:[%s2596_s1 + $0x16c] ss:$16 sps:$4 sm:$0xff]   ;;  %v1911_v46 = vld [vmem:[%s2596_s1 + $0x160] ss:$16 sps:$4 sm:$0xff]   ;;  %v1912_v47 = vld [vmem:[%s2596_s1 + $0x168] ss:$16 sps:$4 sm:$0xff]  }
  0x11   :  { %v1939_v48 = vld [vmem:[%s2595_s0 + $0x4] ss:$8 sps:$4 sm:$0xff]   ;;  %v1917_v51 = vld [vmem:[%s2596_s1 + $0x180] ss:$16 sps:$4 sm:$0xff]   ;;  %v1918_v52 = vld [vmem:[%s2596_s1 + $0x188] ss:$16 sps:$4 sm:$0xff]  }
  0x12   :  { %v1913_v49 = vld [vmem:[%s2596_s1 + $0x184] ss:$16 sps:$4 sm:$0xff]   ;;  %v1915_v50 = vld [vmem:[%s2596_s1 + $0x18c] ss:$16 sps:$4 sm:$0xff]   ;;  %558 = vmatprep.mubr.bf16.mxu0 %v1939_v48  ;;  %671 = vmatprep.mubr.bf16.mxu1 %v1939_v48  ;;  %v1923_v55 = vld [vmem:[%s2596_s1 + $0x1a0] ss:$16 sps:$4 sm:$0xff]  }
  0x13   :  { %535 = vmatpush1.bf16.msra.mxu0 %v1869_v18  ;;  %648 = vmatpush1.bf16.msra.mxu1 %v1870_v19  ;;  %v1919_v53 = vld [vmem:[%s2596_s1 + $0x1a4] ss:$16 sps:$4 sm:$0xff]   ;;  %v1921_v54 = vld [vmem:[%s2596_s1 + $0x1ac] ss:$16 sps:$4 sm:$0xff]   ;;  %v1924_v56 = vld [vmem:[%s2596_s1 + $0x1a8] ss:$16 sps:$4 sm:$0xff]  }
  0x14   :  { %536 = vmatprep.subr.bf16.mxu0 %v1871_v20  ;;  %649 = vmatprep.subr.bf16.mxu1 %v1873_v21  ;;  %v1925_v57 = vld [vmem:[%s2596_s1 + $0x1c4] ss:$16 sps:$4 sm:$0xff]   ;;  %v1927_v58 = vld [vmem:[%s2596_s1 + $0x1cc] ss:$16 sps:$4 sm:$0xff]   ;;  %v1929_v59 = vld [vmem:[%s2596_s1 + $0x1c0] ss:$16 sps:$4 sm:$0xff]  }
  0x15   :  { %v1930_v60 = vld [vmem:[%s2596_s1 + $0x1c8] ss:$16 sps:$4 sm:$0xff]   ;;  %v1931_v61 = vld [vmem:[%s2596_s1 + $0x1e4] ss:$16 sps:$4 sm:$0xff]   ;;  %v1933_v62 = vld [vmem:[%s2596_s1 + $0x1ec] ss:$16 sps:$4 sm:$0xff]  }
  0x16   :  { %v1935_v63 = vld [vmem:[%s2596_s1 + $0x1e0] ss:$16 sps:$4 sm:$0xff]   ;;  %v1936_v0 = vld [vmem:[%s2596_s1 + $0x1e8] ss:$16 sps:$4 sm:$0xff]   ;;  %v1940_v4 = vld [vmem:[%s2595_s0 + $0x14] ss:$8 sps:$4 sm:$0xff]  }
  0x17   :  { %537 = vmatpush1.bf16.msra.mxu0 %v1875_v22  ;;  %650 = vmatpush1.bf16.msra.mxu1 %v1876_v23  ;;  %v1961_v1 = vld [vmem:[%s2598_s3 + $0x40] sm:$0xff]   ;;  %v1965_v7 = vld [vmem:[%s2598_s3 + $0x48] sm:$0xff]   ;;  %v1942_v11 = vld [vmem:[%s2595_s0 + $0x10] ss:$8 sps:$4 sm:$0xff]  }
  0x18   :  { %538 = vmatprep.subr.bf16.mxu0 %v1877_v24  ;;  %651 = vmatprep.subr.bf16.mxu1 %v1879_v25  ;;  %v1937_v2 = vld [vmem:[%s2595_s0] ss:$8 sps:$4 sm:$0xff]   ;;  %v1969_v12 = vld [vmem:[%s2598_s3 + $0x50] sm:$0xff]   ;;  %v1943_v13 = vld [vmem:[%s2595_s0 + $0x24] ss:$8 sps:$4 sm:$0xff]  }
  0x19   :  { %v1963_v3 = vld [vmem:[%s2598_s3 + $0xc0] sm:$0xff]   ;;  %v1967_v8 = vld [vmem:[%s2598_s3 + $0xc8] sm:$0xff]   ;;  %v1971_v14 = vld [vmem:[%s2598_s3 + $0xd0] sm:$0xff]  }
  0x1a   :  { %v1962_v5 = vld [vmem:[%s2598_s3] sm:$0xff]   ;;  %v1966_v9 = vld [vmem:[%s2598_s3 + $0x8] sm:$0xff]   ;;  %v1970_v15 = vld [vmem:[%s2598_s3 + $0x10] sm:$0xff]  }
  0x1b   :  { %539 = vmatpush1.bf16.msra.mxu0 %v1881_v26  ;;  %652 = vmatpush1.bf16.msra.mxu1 %v1882_v27  ;;  %v1964_v6 = vld [vmem:[%s2598_s3 + $0x80] sm:$0xff]   ;;  %v1968_v10 = vld [vmem:[%s2598_s3 + $0x88] sm:$0xff]   ;;  %v1972_v16 = vld [vmem:[%s2598_s3 + $0x90] sm:$0xff]  }
  0x1c   :  { %540 = vmatprep.subr.bf16.mxu0 %v1883_v28  ;;  %653 = vmatprep.subr.bf16.mxu1 %v1885_v29  ;;  %v1973_v17 = vld [vmem:[%s2598_s3 + $0x58] sm:$0xff]   ;;  %v1945_v21 = vld [vmem:[%s2595_s0 + $0x20] ss:$8 sps:$4 sm:$0xff]  }
  0x1d   :  { %v1975_v18 = vld [vmem:[%s2598_s3 + $0xd8] sm:$0xff]   ;;  %v1977_v22 = vld [vmem:[%s2598_s3 + $0x60] sm:$0xff]   ;;  %v1981_v27 = vld [vmem:[%s2598_s3 + $0x68] sm:$0xff]  }
  0x1e   :  { %v1974_v19 = vld [vmem:[%s2598_s3 + $0x18] sm:$0xff]   ;;  %v1979_v24 = vld [vmem:[%s2598_s3 + $0xe0] sm:$0xff]   ;;  %v1983_v28 = vld [vmem:[%s2598_s3 + $0xe8] sm:$0xff]  }
  0x1f   :  { %541 = vmatpush1.bf16.msra.mxu0 %v1887_v30  ;;  %654 = vmatpush1.bf16.msra.mxu1 %v1888_v31  ;;  %v1976_v20 = vld [vmem:[%s2598_s3 + $0x98] sm:$0xff]   ;;  %v1978_v25 = vld [vmem:[%s2598_s3 + $0x20] sm:$0xff]  }
  0x20   :  { %542 = vmatprep.subr.bf16.mxu0 %v1889_v32  ;;  %655 = vmatprep.subr.bf16.mxu1 %v1891_v33  ;;  %v1946_v23 = vld [vmem:[%s2595_s0 + $0x34] ss:$8 sps:$4 sm:$0xff]   ;;  %v1980_v26 = vld [vmem:[%s2598_s3 + $0xa0] sm:$0xff]  }
  0x23   :  { %543 = vmatpush1.bf16.msra.mxu0 %v1893_v34  ;;  %656 = vmatpush1.bf16.msra.mxu1 %v1894_v35 }
  0x24   :  { %544 = vmatprep.subr.bf16.mxu0 %v1895_v36  ;;  %657 = vmatprep.subr.bf16.mxu1 %v1897_v37 }
  0x27   :  { %545 = vmatpush1.bf16.msra.mxu0 %v1899_v38  ;;  %658 = vmatpush1.bf16.msra.mxu1 %v1900_v39 }
  0x28   :  { %546 = vmatprep.subr.bf16.mxu0 %v1901_v40  ;;  %659 = vmatprep.subr.bf16.mxu1 %v1903_v41 }
  0x2b   :  { %547 = vmatpush1.bf16.msra.mxu0 %v1905_v42  ;;  %660 = vmatpush1.bf16.msra.mxu1 %v1906_v43 }
  0x2c   :  { %548 = vmatprep.subr.bf16.mxu0 %v1907_v44  ;;  %661 = vmatprep.subr.bf16.mxu1 %v1909_v45 }
  0x2f   :  { %549 = vmatpush1.bf16.msra.mxu0 %v1911_v46  ;;  %662 = vmatpush1.bf16.msra.mxu1 %v1912_v47 }
  0x30   :  { %550 = vmatprep.subr.bf16.mxu0 %v1913_v49  ;;  %663 = vmatprep.subr.bf16.mxu1 %v1915_v50 }
  0x33   :  { %551 = vmatpush1.bf16.msra.mxu0 %v1917_v51  ;;  %664 = vmatpush1.bf16.msra.mxu1 %v1918_v52 }
  0x34   :  { %552 = vmatprep.subr.bf16.mxu0 %v1919_v53  ;;  %665 = vmatprep.subr.bf16.mxu1 %v1921_v54 }
  0x37   :  { %553 = vmatpush1.bf16.msra.mxu0 %v1923_v55  ;;  %666 = vmatpush1.bf16.msra.mxu1 %v1924_v56 }
  0x38   :  { %554 = vmatprep.subr.bf16.mxu0 %v1925_v57  ;;  %667 = vmatprep.subr.bf16.mxu1 %v1927_v58 }
  0x3b   :  { %555 = vmatpush1.bf16.msra.mxu0 %v1929_v59  ;;  %668 = vmatpush1.bf16.msra.mxu1 %v1930_v60 }
  0x3c   :  { %556 = vmatprep.subr.bf16.mxu0 %v1931_v61  ;;  %669 = vmatprep.subr.bf16.mxu1 %v1933_v62 }
  0x3f   :  { %557 = vmatpush1.bf16.msra.mxu0 %v1935_v63  ;;  %670 = vmatpush1.bf16.msra.mxu1 %v1936_v0 }
  0x40   :  { %1710 = vmatprep.subr.bf16.mxu0 %v1961_v1  ;;  %1774 = vmatprep.subr.bf16.mxu1 %v1963_v3 }
  0x42   :  { %559 = vmatmul.mubr.bf16.vlgmr.msra.gmra.mrb[0].mxu0 %v1937_v2  ;;  %672 = vmatmul.mubr.bf16.vlgmr.msra.gmra.mrb[0].mxu1 %v1937_v2 }
  0x43   :  { %568 = vmatprep.mubr.bf16.mxu0 %v1940_v4  ;;  %681 = vmatprep.mubr.bf16.mxu1 %v1940_v4 }
  0x44   :  { %1711 = vmatpush3.bf16.msra.mxu0 %v1962_v5  ;;  %1775 = vmatpush3.bf16.msra.mxu1 %v1964_v6 }
  0x45   :  { %1712 = vmatprep.subr.bf16.mxu0 %v1965_v7  ;;  %1776 = vmatprep.subr.bf16.mxu1 %v1967_v8 }
  0x48   :  { %1713 = vmatpush3.bf16.msra.mxu0 %v1966_v9  ;;  %1777 = vmatpush3.bf16.msra.mxu1 %v1968_v10 }
  0x49   :  { %1714 = vmatprep.subr.bf16.mxu0 %v1969_v12  ;;  %1778 = vmatprep.subr.bf16.mxu1 %v1971_v14 }
  0x4a   :  { %569 = vmatmul.mubr.bf16.gmra.mrb[4].mxu0 %v1942_v11  ;;  %682 = vmatmul.mubr.bf16.gmra.mrb[4].mxu1 %v1942_v11 }
  0x4b   :  { %578 = vmatprep.mubr.bf16.mxu0 %v1943_v13  ;;  %691 = vmatprep.mubr.bf16.mxu1 %v1943_v13 }
  0x4c   :  { %1715 = vmatpush3.bf16.msra.mxu0 %v1970_v15  ;;  %1779 = vmatpush3.bf16.msra.mxu1 %v1972_v16 }
  0x4d   :  { %1716 = vmatprep.subr.bf16.mxu0 %v1973_v17  ;;  %1780 = vmatprep.subr.bf16.mxu1 %v1975_v18 }
  0x50   :  { %1717 = vmatpush3.bf16.msra.mxu0 %v1974_v19  ;;  %1781 = vmatpush3.bf16.msra.mxu1 %v1976_v20 }
  0x51   :  { %1718 = vmatprep.subr.bf16.mxu0 %v1977_v22  ;;  %1782 = vmatprep.subr.bf16.mxu1 %v1979_v24 }
  0x52   :  { %579 = vmatmul.mubr.bf16.gmra.mrb[8].mxu0 %v1945_v21  ;;  %692 = vmatmul.mubr.bf16.gmra.mrb[8].mxu1 %v1945_v21 }
  0x53   :  { %588 = vmatprep.mubr.bf16.mxu0 %v1946_v23  ;;  %701 = vmatprep.mubr.bf16.mxu1 %v1946_v23 }
  0x54   :  { %12 = vsyncpa [#allocation3], 0  ;;  %1719 = vmatpush3.bf16.msra.mxu0 %v1978_v25  ;;  %1783 = vmatpush3.bf16.msra.mxu1 %v1980_v26  ;;  %v1982_v29 = vld [vmem:[%s2598_s3 + $0x28] sm:$0xff]   ;;  %v1985_v31 = vld [vmem:[%s2598_s3 + $0x70] sm:$0xff]   ;;  %v106_v48 = vlaneseq }
  0x55   :  { %v1984_v30 = vld [vmem:[%s2598_s3 + $0xa8] sm:$0xff]   ;;  %1720 = vmatprep.subr.bf16.mxu0 %v1981_v27  ;;  %1784 = vmatprep.subr.bf16.mxu1 %v1983_v28  ;;  %v1987_v32 = vld [vmem:[%s2598_s3 + $0xf0] sm:$0xff]   ;;  %v1989_v44 = vld [vmem:[%s2598_s3 + $0x78] sm:$0xff]  }
  0x56   :  { %v1948_v33 = vld [vmem:[%s2595_s0 + $0x30] ss:$8 sps:$4 sm:$0xff]   ;;  %v1949_v34 = vld [vmem:[%s2595_s0 + $0x44] ss:$8 sps:$4 sm:$0xff]   ;;  %v1951_v37 = vld [vmem:[%s2595_s0 + $0x40] ss:$8 sps:$4 sm:$0xff]  }
  0x57   :  { %v1986_v35 = vld [vmem:[%s2598_s3 + $0x30] sm:$0xff]   ;;  %v1955_v40 = vld [vmem:[%s2595_s0 + $0x64] ss:$8 sps:$4 sm:$0xff]   ;;  %v1957_v41 = vld [vmem:[%s2595_s0 + $0x60] ss:$8 sps:$4 sm:$0xff]   ;;  %v107_v49 = vshrl.u32 %v106_v48, 7 }
  0x58   :  { %1721 = vmatpush3.bf16.msra.mxu0 %v1982_v29  ;;  %1785 = vmatpush3.bf16.msra.mxu1 %v1984_v30  ;;  %v1988_v36 = vld [vmem:[%s2598_s3 + $0xb0] sm:$0xff]   ;;  %v1991_v45 = vld [vmem:[%s2598_s3 + $0xf8] sm:$0xff]   ;;  %v104_v52 = vld [vmem:[%s2597_s2] sm:$0xf] }
  0x59   :  { %1722 = vmatprep.subr.bf16.mxu0 %v1985_v31  ;;  %1786 = vmatprep.subr.bf16.mxu1 %v1987_v32  ;;  %v1952_v38 = vld [vmem:[%s2595_s0 + $0x54] ss:$8 sps:$4 sm:$0xff]   ;;  %v1954_v39 = vld [vmem:[%s2595_s0 + $0x50] ss:$8 sps:$4 sm:$0xff]   ;;  %v108_v50 = vsub.s32 0, %v107_v49  ;;  %v116_v51 = vsub.s32 2, %v107_v49 }
  0x5a   :  { %589 = vmatmul.mubr.bf16.gmra.mrb[12].mxu0 %v1948_v33  ;;  %702 = vmatmul.mubr.bf16.gmra.mrb[12].mxu1 %v1948_v33  ;;  %v1958_v42 = vld [vmem:[%s2595_s0 + $0x74] ss:$8 sps:$4 sm:$0xff]   ;;  %v1960_v43 = vld [vmem:[%s2595_s0 + $0x70] ss:$8 sps:$4 sm:$0xff]   ;;  %v112_v53 = vsub.s32 1, %v107_v49  ;;  %v120_v54 = vsub.s32 3, %v107_v49 }
  0x5b   :  { %598 = vmatprep.mubr.bf16.mxu0 %v1949_v34  ;;  %711 = vmatprep.mubr.bf16.mxu1 %v1949_v34  ;;  %v1990_v46 = vld [vmem:[%s2598_s3 + $0x38] sm:$0xff]   ;;  %v2394_v55 = vrot.slane %v104_v52, %v108_v50  ;;  %v2396_v56 = vrot.slane %v104_v52, %v116_v51 }
  0x5c   :  { %1723 = vmatpush3.bf16.msra.mxu0 %v1986_v35  ;;  %1787 = vmatpush3.bf16.msra.mxu1 %v1988_v36  ;;  %v1992_v47 = vld [vmem:[%s2598_s3 + $0xb8] sm:$0xff]   ;;  %v2398_v57 = vrot.slane %v104_v52, %v112_v53  ;;  %v2400_v58 = vrot.slane %v104_v52, %v120_v54 }
  0x5d   :  { %1724 = vmatprep.subr.bf16.mxu0 %v1989_v44  ;;  %1788 = vmatprep.subr.bf16.mxu1 %v1991_v45 }
  0x60   :  { %1725 = vmatpush3.bf16.msra.mxu0 %v1990_v46  ;;  %1789 = vmatpush3.bf16.msra.mxu1 %v1992_v47 }
  0x62   :  { %599 = vmatmul.mubr.bf16.gmra.mrb[16].mxu0 %v1951_v37  ;;  %712 = vmatmul.mubr.bf16.gmra.mrb[16].mxu1 %v1951_v37 }
  0x63   :  { %608 = vmatprep.mubr.bf16.mxu0 %v1952_v38  ;;  %721 = vmatprep.mubr.bf16.mxu1 %v1952_v38 }
  0x6a   :  { %609 = vmatmul.mubr.bf16.gmra.mrb[20].mxu0 %v1954_v39  ;;  %722 = vmatmul.mubr.bf16.gmra.mrb[20].mxu1 %v1954_v39 }
  0x6b   :  { %618 = vmatprep.mubr.bf16.mxu0 %v1955_v40  ;;  %731 = vmatprep.mubr.bf16.mxu1 %v1955_v40 }
  0x72   :  { %619 = vmatmul.mubr.bf16.gmra.mrb[24].mxu0 %v1957_v41  ;;  %732 = vmatmul.mubr.bf16.gmra.mrb[24].mxu1 %v1957_v41 }
  0x73   :  { %628 = vmatprep.mubr.bf16.mxu0 %v1958_v42  ;;  %741 = vmatprep.mubr.bf16.mxu1 %v1958_v42 }
  0x7a   :  { %629 = vmatmul.mubr.bf16.gmra.mrb[28].mxu0 %v1960_v43  ;;  %742 = vmatmul.mubr.bf16.gmra.mrb[28].mxu1 %v1960_v43 }
 0x115   :  { %v560_v59 = vpop.f32.mrb[0].mxu0  ;;  %v673_v60 = vpop.f32.mrb[0].mxu1 }
 0x116   :  { %v561_v61 = vadd.f32 %v560_v59, %v2394_v55  ;;  %v674_v62 = vadd.f32 %v673_v60, %v2396_v56  ;;  %v562_v63 = vpop.f32.mrb[1].mxu0  ;;  %v675_v0 = vpop.f32.mrb[1].mxu1 }
 0x117   :  { %v563_v1 = vadd.f32 %v562_v63, %v2398_v57  ;;  %v676_v2 = vadd.f32 %v675_v0, %v2400_v58  ;;  %v564_v3 = vpop.f32.mrb[2].mxu0  ;;  %v677_v4 = vpop.f32.mrb[2].mxu1 }
 0x118   :  { %v752_v5 = vmax.f32 %v561_v61, 0.0  ;;  %v754_v6 = vmax.f32 %v674_v62, 0.0  ;;  %v565_v7 = vadd.f32 %v564_v3, %v2394_v55  ;;  %v678_v8 = vadd.f32 %v677_v4, %v2396_v56  ;;  %v566_v9 = vpop.f32.mrb[3].mxu0  ;;  %v679_v10 = vpop.f32.mrb[3].mxu1 }
 0x119   :  { %v753_v11 = vmax.f32 %v563_v1, 0.0  ;;  %v755_v12 = vmax.f32 %v676_v2, 0.0  ;;  %v567_v13 = vadd.f32 %v566_v9, %v2398_v57  ;;  %v680_v14 = vadd.f32 %v679_v10, %v2400_v58 }
 0x11a   :  { %v756_v15 = vmax.f32 %v565_v7, 0.0  ;;  %v758_v16 = vmax.f32 %v678_v8, 0.0 }
 0x11b   :  { %v1678_v17 = vpack.c.bf16 %v753_v11, %v752_v5  ;;  %v1679_v18 = vpack.c.bf16 %v755_v12, %v754_v6  ;;  %v757_v19 = vmax.f32 %v567_v13, 0.0  ;;  %v759_v20 = vmax.f32 %v680_v14, 0.0 }
 0x11c   :  { %v816_v21 = vpack.c.bf16 %v756_v15, %v752_v5  ;;  %v818_v22 = vpack.c.bf16 %v758_v16, %v754_v6 }
 0x11d   :  { %1008 = vst [vmem:[%s2600_s5] sm:$0xff] %v1678_v17  ;;  %1009 = vst [vmem:[%s2600_s5 + $0x8] sm:$0xff] %v1679_v18  ;;  %v817_v23 = vpack.c.bf16 %v757_v19, %v753_v11  ;;  %v1680_v24 = vpack.c.bf16 %v757_v19, %v756_v15  ;;  %v819_v25 = vpack.c.bf16 %v759_v20, %v755_v12  ;;  %v570_v27 = vpop.f32.mrb[4].mxu0  ;;  %v683_v28 = vpop.f32.mrb[4].mxu1 }
 0x11e   :  { %v1681_v26 = vpack.c.bf16 %v759_v20, %v758_v16  ;;  %v571_v29 = vadd.f32 %v570_v27, %v2394_v55  ;;  %v684_v30 = vadd.f32 %v683_v28, %v2396_v56  ;;  %v572_v31 = vpop.f32.mrb[5].mxu0  ;;  %v685_v32 = vpop.f32.mrb[5].mxu1 }
 0x11f   :  { %1010 = vst [vmem:[%s2600_s5 + $0x10] sm:$0xff] %v1680_v24  ;;  %v573_v33 = vadd.f32 %v572_v31, %v2398_v57  ;;  %v686_v34 = vadd.f32 %v685_v32, %v2400_v58  ;;  %v574_v35 = vpop.f32.mrb[6].mxu0  ;;  %v687_v36 = vpop.f32.mrb[6].mxu1  ;;  %1335 = vmatprep.mubr.bf16.mxu0 %v817_v23  ;;  %1432 = vmatprep.mubr.bf16.mxu1 %v819_v25 }
 0x120   :  { %1011 = vst [vmem:[%s2600_s5 + $0x18] sm:$0xff] %v1681_v26  ;;  %v760_v37 = vmax.f32 %v571_v29, 0.0  ;;  %v762_v38 = vmax.f32 %v684_v30, 0.0  ;;  %v575_v39 = vadd.f32 %v574_v35, %v2394_v55  ;;  %v688_v40 = vadd.f32 %v687_v36, %v2396_v56  ;;  %v576_v41 = vpop.f32.mrb[7].mxu0  ;;  %v689_v42 = vpop.f32.mrb[7].mxu1  ;;  %1336 = vmatmul.mubr.bf16.vlgmr.msra.gmra.mrb[32].mxu0 %v816_v21  ;;  %1433 = vmatmul.mubr.bf16.vlgmr.msra.gmra.mrb[32].mxu1 %v818_v22 }
 0x121   :  { %v761_v43 = vmax.f32 %v573_v33, 0.0  ;;  %v763_v44 = vmax.f32 %v686_v34, 0.0  ;;  %v577_v45 = vadd.f32 %v576_v41, %v2398_v57  ;;  %v690_v46 = vadd.f32 %v689_v42, %v2400_v58 }
 0x122   :  { %v764_v47 = vmax.f32 %v575_v39, 0.0  ;;  %v766_v48 = vmax.f32 %v688_v40, 0.0 }
 0x123   :  { %v1682_v49 = vpack.c.bf16 %v761_v43, %v760_v37  ;;  %v1683_v50 = vpack.c.bf16 %v763_v44, %v762_v38  ;;  %v765_v51 = vmax.f32 %v577_v45, 0.0  ;;  %v767_v52 = vmax.f32 %v690_v46, 0.0 }
 0x124   :  { %v820_v53 = vpack.c.bf16 %v764_v47, %v760_v37  ;;  %v822_v54 = vpack.c.bf16 %v766_v48, %v762_v38 }
 0x125   :  { %1012 = vst [vmem:[%s2600_s5 + $0x20] sm:$0xff] %v1682_v49  ;;  %1013 = vst [vmem:[%s2600_s5 + $0x28] sm:$0xff] %v1683_v50  ;;  %v821_v59 = vpack.c.bf16 %v765_v51, %v761_v43  ;;  %v1684_v60 = vpack.c.bf16 %v765_v51, %v764_v47  ;;  %v823_v61 = vpack.c.bf16 %v767_v52, %v763_v44  ;;  %v580_v63 = vpop.f32.mrb[8].mxu0  ;;  %v693_v0 = vpop.f32.mrb[8].mxu1 }
 0x126   :  { %v1685_v62 = vpack.c.bf16 %v767_v52, %v766_v48  ;;  %v581_v1 = vadd.f32 %v580_v63, %v2394_v55  ;;  %v694_v2 = vadd.f32 %v693_v0, %v2396_v56  ;;  %v582_v3 = vpop.f32.mrb[9].mxu0  ;;  %v695_v4 = vpop.f32.mrb[9].mxu1 }
 0x127   :  { %1014 = vst [vmem:[%s2600_s5 + $0x30] sm:$0xff] %v1684_v60  ;;  %v583_v5 = vadd.f32 %v582_v3, %v2398_v57  ;;  %v696_v6 = vadd.f32 %v695_v4, %v2400_v58  ;;  %v584_v7 = vpop.f32.mrb[10].mxu0  ;;  %v697_v8 = vpop.f32.mrb[10].mxu1  ;;  %1343 = vmatprep.mubr.bf16.mxu0 %v821_v59  ;;  %1440 = vmatprep.mubr.bf16.mxu1 %v823_v61 }
 0x128   :  { %1015 = vst [vmem:[%s2600_s5 + $0x38] sm:$0xff] %v1685_v62  ;;  %v768_v9 = vmax.f32 %v581_v1, 0.0  ;;  %v770_v10 = vmax.f32 %v694_v2, 0.0  ;;  %v585_v11 = vadd.f32 %v584_v7, %v2394_v55  ;;  %v698_v12 = vadd.f32 %v697_v8, %v2396_v56  ;;  %v586_v13 = vpop.f32.mrb[11].mxu0  ;;  %v699_v14 = vpop.f32.mrb[11].mxu1  ;;  %1344 = vmatmul.mubr.bf16.gmra.mrb[36].mxu0 %v820_v53  ;;  %1441 = vmatmul.mubr.bf16.gmra.mrb[36].mxu1 %v822_v54 }
 0x129   :  { %v769_v15 = vmax.f32 %v583_v5, 0.0  ;;  %v771_v16 = vmax.f32 %v696_v6, 0.0  ;;  %v587_v17 = vadd.f32 %v586_v13, %v2398_v57  ;;  %v700_v18 = vadd.f32 %v699_v14, %v2400_v58 }
 0x12a   :  { %v772_v19 = vmax.f32 %v585_v11, 0.0  ;;  %v774_v20 = vmax.f32 %v698_v12, 0.0 }
 0x12b   :  { %v1686_v21 = vpack.c.bf16 %v769_v15, %v768_v9  ;;  %v1687_v22 = vpack.c.bf16 %v771_v16, %v770_v10  ;;  %v773_v23 = vmax.f32 %v587_v17, 0.0  ;;  %v775_v24 = vmax.f32 %v700_v18, 0.0 }
 0x12c   :  { %v824_v25 = vpack.c.bf16 %v772_v19, %v768_v9  ;;  %v826_v26 = vpack.c.bf16 %v774_v20, %v770_v10 }
 0x12d   :  { %1016 = vst [vmem:[%s2600_s5 + $0x40] sm:$0xff] %v1686_v21  ;;  %1017 = vst [vmem:[%s2600_s5 + $0x48] sm:$0xff] %v1687_v22  ;;  %v825_v27 = vpack.c.bf16 %v773_v23, %v769_v15  ;;  %v1688_v28 = vpack.c.bf16 %v773_v23, %v772_v19  ;;  %v827_v29 = vpack.c.bf16 %v775_v24, %v771_v16  ;;  %v590_v31 = vpop.f32.mrb[12].mxu0  ;;  %v703_v32 = vpop.f32.mrb[12].mxu1 }
 0x12e   :  { %v1689_v30 = vpack.c.bf16 %v775_v24, %v774_v20  ;;  %v591_v33 = vadd.f32 %v590_v31, %v2394_v55  ;;  %v704_v34 = vadd.f32 %v703_v32, %v2396_v56  ;;  %v592_v35 = vpop.f32.mrb[13].mxu0  ;;  %v705_v36 = vpop.f32.mrb[13].mxu1 }
 0x12f   :  { %1018 = vst [vmem:[%s2600_s5 + $0x50] sm:$0xff] %v1688_v28  ;;  %v593_v37 = vadd.f32 %v592_v35, %v2398_v57  ;;  %v706_v38 = vadd.f32 %v705_v36, %v2400_v58  ;;  %v594_v39 = vpop.f32.mrb[14].mxu0  ;;  %v707_v40 = vpop.f32.mrb[14].mxu1  ;;  %1351 = vmatprep.mubr.bf16.mxu0 %v825_v27  ;;  %1448 = vmatprep.mubr.bf16.mxu1 %v827_v29 }
 0x130   :  { %1019 = vst [vmem:[%s2600_s5 + $0x58] sm:$0xff] %v1689_v30  ;;  %v776_v41 = vmax.f32 %v591_v33, 0.0  ;;  %v778_v42 = vmax.f32 %v704_v34, 0.0  ;;  %v595_v43 = vadd.f32 %v594_v39, %v2394_v55  ;;  %v708_v44 = vadd.f32 %v707_v40, %v2396_v56  ;;  %v596_v45 = vpop.f32.mrb[15].mxu0  ;;  %v709_v46 = vpop.f32.mrb[15].mxu1  ;;  %1352 = vmatmul.mubr.bf16.gmra.mrb[40].mxu0 %v824_v25  ;;  %1449 = vmatmul.mubr.bf16.gmra.mrb[40].mxu1 %v826_v26 }
 0x131   :  { %v777_v47 = vmax.f32 %v593_v37, 0.0  ;;  %v779_v48 = vmax.f32 %v706_v38, 0.0  ;;  %v597_v49 = vadd.f32 %v596_v45, %v2398_v57  ;;  %v710_v50 = vadd.f32 %v709_v46, %v2400_v58 }
 0x132   :  { %v780_v51 = vmax.f32 %v595_v43, 0.0  ;;  %v782_v52 = vmax.f32 %v708_v44, 0.0 }
 0x133   :  { %v1690_v53 = vpack.c.bf16 %v777_v47, %v776_v41  ;;  %v1691_v54 = vpack.c.bf16 %v779_v48, %v778_v42  ;;  %v781_v59 = vmax.f32 %v597_v49, 0.0  ;;  %v783_v60 = vmax.f32 %v710_v50, 0.0 }
 0x134   :  { %v828_v61 = vpack.c.bf16 %v780_v51, %v776_v41  ;;  %v830_v62 = vpack.c.bf16 %v782_v52, %v778_v42 }
 0x135   :  { %1020 = vst [vmem:[%s2600_s5 + $0x60] sm:$0xff] %v1690_v53  ;;  %1021 = vst [vmem:[%s2600_s5 + $0x68] sm:$0xff] %v1691_v54  ;;  %v829_v63 = vpack.c.bf16 %v781_v59, %v777_v47  ;;  %v1692_v0 = vpack.c.bf16 %v781_v59, %v780_v51  ;;  %v831_v1 = vpack.c.bf16 %v783_v60, %v779_v48  ;;  %v600_v3 = vpop.f32.mrb[16].mxu0  ;;  %v713_v4 = vpop.f32.mrb[16].mxu1 }
 0x136   :  { %v1693_v2 = vpack.c.bf16 %v783_v60, %v782_v52  ;;  %v601_v5 = vadd.f32 %v600_v3, %v2394_v55  ;;  %v714_v6 = vadd.f32 %v713_v4, %v2396_v56  ;;  %v602_v7 = vpop.f32.mrb[17].mxu0  ;;  %v715_v8 = vpop.f32.mrb[17].mxu1 }
 0x137   :  { %1022 = vst [vmem:[%s2600_s5 + $0x70] sm:$0xff] %v1692_v0  ;;  %v603_v9 = vadd.f32 %v602_v7, %v2398_v57  ;;  %v716_v10 = vadd.f32 %v715_v8, %v2400_v58  ;;  %v604_v11 = vpop.f32.mrb[18].mxu0  ;;  %v717_v12 = vpop.f32.mrb[18].mxu1  ;;  %1359 = vmatprep.mubr.bf16.mxu0 %v829_v63  ;;  %1456 = vmatprep.mubr.bf16.mxu1 %v831_v1 }
 0x138   :  { %1023 = vst [vmem:[%s2600_s5 + $0x78] sm:$0xff] %v1693_v2  ;;  %v784_v13 = vmax.f32 %v601_v5, 0.0  ;;  %v786_v14 = vmax.f32 %v714_v6, 0.0  ;;  %v605_v15 = vadd.f32 %v604_v11, %v2394_v55  ;;  %v718_v16 = vadd.f32 %v717_v12, %v2396_v56  ;;  %v606_v17 = vpop.f32.mrb[19].mxu0  ;;  %v719_v18 = vpop.f32.mrb[19].mxu1  ;;  %1360 = vmatmul.mubr.bf16.gmra.mrb[44].mxu0 %v828_v61  ;;  %1457 = vmatmul.mubr.bf16.gmra.mrb[44].mxu1 %v830_v62 }
 0x139   :  { %v785_v19 = vmax.f32 %v603_v9, 0.0  ;;  %v787_v20 = vmax.f32 %v716_v10, 0.0  ;;  %v607_v21 = vadd.f32 %v606_v17, %v2398_v57  ;;  %v720_v22 = vadd.f32 %v719_v18, %v2400_v58 }
 0x13a   :  { %v788_v23 = vmax.f32 %v605_v15, 0.0  ;;  %v790_v24 = vmax.f32 %v718_v16, 0.0 }
 0x13b   :  { %v1694_v25 = vpack.c.bf16 %v785_v19, %v784_v13  ;;  %v1695_v26 = vpack.c.bf16 %v787_v20, %v786_v14  ;;  %v789_v27 = vmax.f32 %v607_v21, 0.0  ;;  %v791_v28 = vmax.f32 %v720_v22, 0.0 }
 0x13c   :  { %v832_v29 = vpack.c.bf16 %v788_v23, %v784_v13  ;;  %v834_v30 = vpack.c.bf16 %v790_v24, %v786_v14 }
 0x13d   :  { %1024 = vst [vmem:[%s2600_s5 + $0x80] sm:$0xff] %v1694_v25  ;;  %1025 = vst [vmem:[%s2600_s5 + $0x88] sm:$0xff] %v1695_v26  ;;  %v833_v31 = vpack.c.bf16 %v789_v27, %v785_v19  ;;  %v1696_v32 = vpack.c.bf16 %v789_v27, %v788_v23  ;;  %v835_v33 = vpack.c.bf16 %v791_v28, %v787_v20  ;;  %v610_v35 = vpop.f32.mrb[20].mxu0  ;;  %v723_v36 = vpop.f32.mrb[20].mxu1 }
 0x13e   :  { %v1697_v34 = vpack.c.bf16 %v791_v28, %v790_v24  ;;  %v611_v37 = vadd.f32 %v610_v35, %v2394_v55  ;;  %v724_v38 = vadd.f32 %v723_v36, %v2396_v56  ;;  %v612_v39 = vpop.f32.mrb[21].mxu0  ;;  %v725_v40 = vpop.f32.mrb[21].mxu1 }
 0x13f   :  { %1026 = vst [vmem:[%s2600_s5 + $0x90] sm:$0xff] %v1696_v32  ;;  %v613_v41 = vadd.f32 %v612_v39, %v2398_v57  ;;  %v726_v42 = vadd.f32 %v725_v40, %v2400_v58  ;;  %v614_v43 = vpop.f32.mrb[22].mxu0  ;;  %v727_v44 = vpop.f32.mrb[22].mxu1  ;;  %1367 = vmatprep.mubr.bf16.mxu0 %v833_v31  ;;  %1464 = vmatprep.mubr.bf16.mxu1 %v835_v33 }
 0x140   :  { %1027 = vst [vmem:[%s2600_s5 + $0x98] sm:$0xff] %v1697_v34  ;;  %v792_v45 = vmax.f32 %v611_v37, 0.0  ;;  %v794_v46 = vmax.f32 %v724_v38, 0.0  ;;  %v615_v47 = vadd.f32 %v614_v43, %v2394_v55  ;;  %v728_v48 = vadd.f32 %v727_v44, %v2396_v56  ;;  %v616_v49 = vpop.f32.mrb[23].mxu0  ;;  %v729_v50 = vpop.f32.mrb[23].mxu1  ;;  %1368 = vmatmul.mubr.bf16.gmra.mrb[48].mxu0 %v832_v29  ;;  %1465 = vmatmul.mubr.bf16.gmra.mrb[48].mxu1 %v834_v30 }
 0x141   :  { %v793_v51 = vmax.f32 %v613_v41, 0.0  ;;  %v795_v52 = vmax.f32 %v726_v42, 0.0  ;;  %v617_v53 = vadd.f32 %v616_v49, %v2398_v57  ;;  %v730_v54 = vadd.f32 %v729_v50, %v2400_v58 }
 0x142   :  { %v796_v59 = vmax.f32 %v615_v47, 0.0  ;;  %v798_v60 = vmax.f32 %v728_v48, 0.0 }
 0x143   :  { %v1698_v61 = vpack.c.bf16 %v793_v51, %v792_v45  ;;  %v1699_v62 = vpack.c.bf16 %v795_v52, %v794_v46  ;;  %v797_v63 = vmax.f32 %v617_v53, 0.0  ;;  %v799_v0 = vmax.f32 %v730_v54, 0.0 }
 0x144   :  { %v836_v1 = vpack.c.bf16 %v796_v59, %v792_v45  ;;  %v838_v2 = vpack.c.bf16 %v798_v60, %v794_v46 }
 0x145   :  { %1028 = vst [vmem:[%s2600_s5 + $0xa0] sm:$0xff] %v1698_v61  ;;  %1029 = vst [vmem:[%s2600_s5 + $0xa8] sm:$0xff] %v1699_v62  ;;  %v837_v3 = vpack.c.bf16 %v797_v63, %v793_v51  ;;  %v1700_v4 = vpack.c.bf16 %v797_v63, %v796_v59  ;;  %v839_v5 = vpack.c.bf16 %v799_v0, %v795_v52  ;;  %v620_v7 = vpop.f32.mrb[24].mxu0  ;;  %v733_v8 = vpop.f32.mrb[24].mxu1 }
 0x146   :  { %v1701_v6 = vpack.c.bf16 %v799_v0, %v798_v60  ;;  %v621_v9 = vadd.f32 %v620_v7, %v2394_v55  ;;  %v734_v10 = vadd.f32 %v733_v8, %v2396_v56  ;;  %v622_v11 = vpop.f32.mrb[25].mxu0  ;;  %v735_v12 = vpop.f32.mrb[25].mxu1 }
 0x147   :  { %1030 = vst [vmem:[%s2600_s5 + $0xb0] sm:$0xff] %v1700_v4  ;;  %v623_v13 = vadd.f32 %v622_v11, %v2398_v57  ;;  %v736_v14 = vadd.f32 %v735_v12, %v2400_v58  ;;  %v624_v15 = vpop.f32.mrb[26].mxu0  ;;  %v737_v16 = vpop.f32.mrb[26].mxu1  ;;  %1375 = vmatprep.mubr.bf16.mxu0 %v837_v3  ;;  %1472 = vmatprep.mubr.bf16.mxu1 %v839_v5 }
 0x148   :  { %1031 = vst [vmem:[%s2600_s5 + $0xb8] sm:$0xff] %v1701_v6  ;;  %v800_v17 = vmax.f32 %v621_v9, 0.0  ;;  %v802_v18 = vmax.f32 %v734_v10, 0.0  ;;  %v625_v19 = vadd.f32 %v624_v15, %v2394_v55  ;;  %v738_v20 = vadd.f32 %v737_v16, %v2396_v56  ;;  %v626_v21 = vpop.f32.mrb[27].mxu0  ;;  %v739_v22 = vpop.f32.mrb[27].mxu1  ;;  %1376 = vmatmul.mubr.bf16.gmra.mrb[52].mxu0 %v836_v1  ;;  %1473 = vmatmul.mubr.bf16.gmra.mrb[52].mxu1 %v838_v2 }
 0x149   :  { %v801_v23 = vmax.f32 %v623_v13, 0.0  ;;  %v803_v24 = vmax.f32 %v736_v14, 0.0  ;;  %v627_v25 = vadd.f32 %v626_v21, %v2398_v57  ;;  %v740_v26 = vadd.f32 %v739_v22, %v2400_v58  ;;  %v2565_v9 = vld [vmem:[%s2599_s4] ss:$0 sm:$0xff]  ;;  %s2017_s4 = smov [#allocation2]  }
 0x14a   :  { %v804_v27 = vmax.f32 %v625_v19, 0.0  ;;  %v806_v28 = vmax.f32 %v738_v20, 0.0 }
 0x14b   :  { %v1702_v29 = vpack.c.bf16 %v801_v23, %v800_v17  ;;  %v1703_v30 = vpack.c.bf16 %v803_v24, %v802_v18  ;;  %v805_v31 = vmax.f32 %v627_v25, 0.0  ;;  %v807_v32 = vmax.f32 %v740_v26, 0.0 }
 0x14c   :  { %v840_v33 = vpack.c.bf16 %v804_v27, %v800_v17  ;;  %v842_v34 = vpack.c.bf16 %v806_v28, %v802_v18 }
 0x14d   :  { %1032 = vst [vmem:[%s2600_s5 + $0xc0] sm:$0xff] %v1702_v29  ;;  %1033 = vst [vmem:[%s2600_s5 + $0xc8] sm:$0xff] %v1703_v30  ;;  %v841_v35 = vpack.c.bf16 %v805_v31, %v801_v23  ;;  %v1704_v36 = vpack.c.bf16 %v805_v31, %v804_v27  ;;  %v843_v37 = vpack.c.bf16 %v807_v32, %v803_v24  ;;  %v630_v39 = vpop.f32.mrb[28].mxu0  ;;  %v743_v40 = vpop.f32.mrb[28].mxu1 }
 0x14e   :  { %v1705_v38 = vpack.c.bf16 %v807_v32, %v806_v28  ;;  %v631_v41 = vadd.f32 %v630_v39, %v2394_v55  ;;  %v744_v42 = vadd.f32 %v743_v40, %v2396_v56  ;;  %v632_v43 = vpop.f32.mrb[29].mxu0  ;;  %v745_v44 = vpop.f32.mrb[29].mxu1 }
 0x14f   :  { %1034 = vst [vmem:[%s2600_s5 + $0xd0] sm:$0xff] %v1704_v36  ;;  %v633_v45 = vadd.f32 %v632_v43, %v2398_v57  ;;  %v746_v46 = vadd.f32 %v745_v44, %v2400_v58  ;;  %v634_v47 = vpop.f32.mrb[30].mxu0  ;;  %v747_v48 = vpop.f32.mrb[30].mxu1  ;;  %1383 = vmatprep.mubr.bf16.mxu0 %v841_v35  ;;  %1480 = vmatprep.mubr.bf16.mxu1 %v843_v37 }
 0x150   :  { %1035 = vst [vmem:[%s2600_s5 + $0xd8] sm:$0xff] %v1705_v38  ;;  %v808_v49 = vmax.f32 %v631_v41, 0.0  ;;  %v810_v50 = vmax.f32 %v744_v42, 0.0  ;;  %v635_v51 = vadd.f32 %v634_v47, %v2394_v55  ;;  %v748_v52 = vadd.f32 %v747_v48, %v2396_v56  ;;  %v636_v53 = vpop.f32.mrb[31].mxu0  ;;  %v749_v54 = vpop.f32.mrb[31].mxu1  ;;  %1384 = vmatmul.mubr.bf16.gmra.mrb[56].mxu0 %v840_v33  ;;  %1481 = vmatmul.mubr.bf16.gmra.mrb[56].mxu1 %v842_v34 }
 0x151   :  { %v809_v59 = vmax.f32 %v633_v45, 0.0  ;;  %v811_v60 = vmax.f32 %v746_v46, 0.0  ;;  %v637_v61 = vadd.f32 %v636_v53, %v2398_v57  ;;  %v750_v62 = vadd.f32 %v749_v54, %v2400_v58 }
 0x152   :  { %v812_v63 = vmax.f32 %v635_v51, 0.0  ;;  %v814_v0 = vmax.f32 %v748_v52, 0.0 }
 0x153   :  { %v1706_v1 = vpack.c.bf16 %v809_v59, %v808_v49  ;;  %v1707_v2 = vpack.c.bf16 %v811_v60, %v810_v50  ;;  %v813_v3 = vmax.f32 %v637_v61, 0.0  ;;  %v815_v4 = vmax.f32 %v750_v62, 0.0 }
 0x154   :  { %v844_v5 = vpack.c.bf16 %v812_v63, %v808_v49  ;;  %v846_v55 = vpack.c.bf16 %v814_v0, %v810_v50 }
 0x155   :  { %1036 = vst [vmem:[%s2600_s5 + $0xe0] sm:$0xff] %v1706_v1  ;;  %1037 = vst [vmem:[%s2600_s5 + $0xe8] sm:$0xff] %v1707_v2  ;;  %v845_v56 = vpack.c.bf16 %v813_v3, %v809_v59  ;;  %v1708_v57 = vpack.c.bf16 %v813_v3, %v812_v63  ;;  %v847_v6 = vpack.c.bf16 %v815_v4, %v811_v60 }
 0x156   :  { %v1709_v58 = vpack.c.bf16 %v815_v4, %v814_v0 }
 0x157   :  { %1038 = vst [vmem:[%s2600_s5 + $0xf0] sm:$0xff] %v1708_v57  ;;  %1391 = vmatprep.mubr.bf16.mxu0 %v845_v56  ;;  %1488 = vmatprep.mubr.bf16.mxu1 %v847_v6 }
 0x158   :  { %1039 = vst [vmem:[%s2600_s5 + $0xf8] sm:$0xff] %v1709_v58  ;;  %1392 = vmatmul.mubr.bf16.gmra.mrb[60].mxu0 %v844_v5  ;;  %1489 = vmatmul.mubr.bf16.gmra.mrb[60].mxu1 %v846_v55  ;;  %s1520_s5 = sshll.u32 %s2017_s4, 4  ;;  %s1521_s5 = int_to_ptr.vmem [resolvable:$true] %s1520_s5 }
 0x159   :  { %s1993_s10 = scalar_lea.vmem %s1521_s5, 2048  ;;  %p1998_p1 = scmp.lt.s32.totalorder %s1521_s5, %s1521_s5 }
 0x15a   :  { %p1994_p0 = scmp.ne.s32.totalorder %s1521_s5, %s1993_s10  ;;  %p1999_p2 = scmp.lt.s32.totalorder %s1993_s10, %s1993_s10 }
 0x15c   :  { %p2000_p3 = por %p1999_p2, %p1998_p1 }
 0x15e   :  { %p2001_p4 = pnand %p2000_p3, %p1994_p0 }
 0x1f3   :  { %v1726_v7 = vpop.f32.mrb[32].mxu0  ;;  %v1790_v8 = vpop.f32.mrb[32].mxu1 }
 0x1f4   :  { %v1727_v10 = vpop.f32.mrb[33].mxu0  ;;  %v1791_v11 = vpop.f32.mrb[33].mxu1 }
 0x1f5   :  { %v1728_v12 = vadd.f32 %v1727_v10, %v1726_v7  ;;  %v1792_v13 = vadd.f32 %v1791_v11, %v1790_v8  ;;  %v1729_v14 = vpop.f32.mrb[34].mxu0  ;;  %v1793_v15 = vpop.f32.mrb[34].mxu1 }
 0x1f6   :  { %v1730_v16 = vpop.f32.mrb[35].mxu0  ;;  %v1794_v17 = vpop.f32.mrb[35].mxu1 }
 0x1f7   :  { %v1338_v18 = vadd.f32 %v1728_v12, %v2565_v9  ;;  %v1731_v19 = vadd.f32 %v1730_v16, %v1729_v14  ;;  %v1795_v20 = vadd.f32 %v1794_v17, %v1793_v15 }
 0x1f9   :  { %v1435_v21 = vadd.f32 %v1792_v13, %v1338_v18  ;;  %v1341_v22 = vadd.f32 %v1731_v19, %v2565_v9 }
 0x1fb   :  { %1497 = vst [vmem:[#allocation2] sm:$0xff] %v1435_v21  ;;  %v1438_v23 = vadd.f32 %v1795_v20, %v1341_v22  ;;  %v1732_v24 = vpop.f32.mrb[36].mxu0  ;;  %v1796_v25 = vpop.f32.mrb[36].mxu1 }
 0x1fc   :  { %v1733_v26 = vpop.f32.mrb[37].mxu0  ;;  %v1797_v27 = vpop.f32.mrb[37].mxu1 }
 0x1fd   :  { %1498 = vst [vmem:[#allocation2 + $0x8] sm:$0xff] %v1438_v23  ;;  %v1734_v28 = vadd.f32 %v1733_v26, %v1732_v24  ;;  %v1798_v29 = vadd.f32 %v1797_v27, %v1796_v25  ;;  %v1735_v30 = vpop.f32.mrb[38].mxu0  ;;  %v1799_v31 = vpop.f32.mrb[38].mxu1 }
 0x1fe   :  { %v1736_v32 = vpop.f32.mrb[39].mxu0  ;;  %v1800_v33 = vpop.f32.mrb[39].mxu1 }
 0x1ff   :  { %v1346_v34 = vadd.f32 %v1734_v28, %v2565_v9  ;;  %v1737_v35 = vadd.f32 %v1736_v32, %v1735_v30  ;;  %v1801_v36 = vadd.f32 %v1800_v33, %v1799_v31 }
 0x201   :  { %v1443_v37 = vadd.f32 %v1798_v29, %v1346_v34  ;;  %v1349_v38 = vadd.f32 %v1737_v35, %v2565_v9 }
 0x203   :  { %1499 = vst [vmem:[#allocation2 + $0x10] sm:$0xff] %v1443_v37  ;;  %v1446_v39 = vadd.f32 %v1801_v36, %v1349_v38  ;;  %v1738_v40 = vpop.f32.mrb[40].mxu0  ;;  %v1802_v41 = vpop.f32.mrb[40].mxu1 }
 0x204   :  { %v1739_v42 = vpop.f32.mrb[41].mxu0  ;;  %v1803_v43 = vpop.f32.mrb[41].mxu1 }
 0x205   :  { %1500 = vst [vmem:[#allocation2 + $0x18] sm:$0xff] %v1446_v39  ;;  %v1740_v44 = vadd.f32 %v1739_v42, %v1738_v40  ;;  %v1804_v45 = vadd.f32 %v1803_v43, %v1802_v41  ;;  %v1741_v46 = vpop.f32.mrb[42].mxu0  ;;  %v1805_v47 = vpop.f32.mrb[42].mxu1 }
 0x206   :  { %v1742_v48 = vpop.f32.mrb[43].mxu0  ;;  %v1806_v49 = vpop.f32.mrb[43].mxu1 }
 0x207   :  { %v1354_v50 = vadd.f32 %v1740_v44, %v2565_v9  ;;  %v1743_v51 = vadd.f32 %v1742_v48, %v1741_v46  ;;  %v1807_v52 = vadd.f32 %v1806_v49, %v1805_v47 }
 0x209   :  { %v1451_v53 = vadd.f32 %v1804_v45, %v1354_v50  ;;  %v1357_v54 = vadd.f32 %v1743_v51, %v2565_v9 }
 0x20b   :  { %1501 = vst [vmem:[#allocation2 + $0x20] sm:$0xff] %v1451_v53  ;;  %v1454_v59 = vadd.f32 %v1807_v52, %v1357_v54  ;;  %v1744_v60 = vpop.f32.mrb[44].mxu0  ;;  %v1808_v61 = vpop.f32.mrb[44].mxu1 }
 0x20c   :  { %v1745_v62 = vpop.f32.mrb[45].mxu0  ;;  %v1809_v63 = vpop.f32.mrb[45].mxu1 }
 0x20d   :  { %1502 = vst [vmem:[#allocation2 + $0x28] sm:$0xff] %v1454_v59  ;;  %v1746_v0 = vadd.f32 %v1745_v62, %v1744_v60  ;;  %v1810_v1 = vadd.f32 %v1809_v63, %v1808_v61  ;;  %v1747_v2 = vpop.f32.mrb[46].mxu0  ;;  %v1811_v3 = vpop.f32.mrb[46].mxu1 }
 0x20e   :  { %v1748_v4 = vpop.f32.mrb[47].mxu0  ;;  %v1812_v5 = vpop.f32.mrb[47].mxu1 }
 0x20f   :  { %v1362_v55 = vadd.f32 %v1746_v0, %v2565_v9  ;;  %v1749_v56 = vadd.f32 %v1748_v4, %v1747_v2  ;;  %v1813_v57 = vadd.f32 %v1812_v5, %v1811_v3 }
 0x211   :  { %v1459_v6 = vadd.f32 %v1810_v1, %v1362_v55  ;;  %v1365_v58 = vadd.f32 %v1749_v56, %v2565_v9 }
 0x213   :  { %1503 = vst [vmem:[#allocation2 + $0x30] sm:$0xff] %v1459_v6  ;;  %v1462_v7 = vadd.f32 %v1813_v57, %v1365_v58  ;;  %v1750_v8 = vpop.f32.mrb[48].mxu0  ;;  %v1814_v10 = vpop.f32.mrb[48].mxu1 }
 0x214   :  { %v1751_v11 = vpop.f32.mrb[49].mxu0  ;;  %v1815_v12 = vpop.f32.mrb[49].mxu1 }
 0x215   :  { %1504 = vst [vmem:[#allocation2 + $0x38] sm:$0xff] %v1462_v7  ;;  %v1752_v13 = vadd.f32 %v1751_v11, %v1750_v8  ;;  %v1816_v14 = vadd.f32 %v1815_v12, %v1814_v10  ;;  %v1753_v15 = vpop.f32.mrb[50].mxu0  ;;  %v1817_v16 = vpop.f32.mrb[50].mxu1 }
 0x216   :  { %v1754_v17 = vpop.f32.mrb[51].mxu0  ;;  %v1818_v18 = vpop.f32.mrb[51].mxu1 }
 0x217   :  { %v1370_v19 = vadd.f32 %v1752_v13, %v2565_v9  ;;  %v1755_v20 = vadd.f32 %v1754_v17, %v1753_v15  ;;  %v1819_v21 = vadd.f32 %v1818_v18, %v1817_v16 }
 0x219   :  { %v1467_v22 = vadd.f32 %v1816_v14, %v1370_v19  ;;  %v1373_v23 = vadd.f32 %v1755_v20, %v2565_v9 }
 0x21b   :  { %1505 = vst [vmem:[#allocation2 + $0x40] sm:$0xff] %v1467_v22  ;;  %v1470_v24 = vadd.f32 %v1819_v21, %v1373_v23  ;;  %v1756_v25 = vpop.f32.mrb[52].mxu0  ;;  %v1820_v26 = vpop.f32.mrb[52].mxu1 }
 0x21c   :  { %v1757_v27 = vpop.f32.mrb[53].mxu0  ;;  %v1821_v28 = vpop.f32.mrb[53].mxu1 }
 0x21d   :  { %1506 = vst [vmem:[#allocation2 + $0x48] sm:$0xff] %v1470_v24  ;;  %v1758_v29 = vadd.f32 %v1757_v27, %v1756_v25  ;;  %v1822_v30 = vadd.f32 %v1821_v28, %v1820_v26  ;;  %v1759_v31 = vpop.f32.mrb[54].mxu0  ;;  %v1823_v32 = vpop.f32.mrb[54].mxu1 }
 0x21e   :  { %v1760_v33 = vpop.f32.mrb[55].mxu0  ;;  %v1824_v34 = vpop.f32.mrb[55].mxu1 }
 0x21f   :  { %v1378_v35 = vadd.f32 %v1758_v29, %v2565_v9  ;;  %v1761_v36 = vadd.f32 %v1760_v33, %v1759_v31  ;;  %v1825_v37 = vadd.f32 %v1824_v34, %v1823_v32 }
 0x221   :  { %v1475_v38 = vadd.f32 %v1822_v30, %v1378_v35  ;;  %v1381_v39 = vadd.f32 %v1761_v36, %v2565_v9 }
 0x223   :  { %1507 = vst [vmem:[#allocation2 + $0x50] sm:$0xff] %v1475_v38  ;;  %v1478_v40 = vadd.f32 %v1825_v37, %v1381_v39  ;;  %v1762_v41 = vpop.f32.mrb[56].mxu0  ;;  %v1826_v42 = vpop.f32.mrb[56].mxu1 }
 0x224   :  { %v1763_v43 = vpop.f32.mrb[57].mxu0  ;;  %v1827_v44 = vpop.f32.mrb[57].mxu1 }
 0x225   :  { %1508 = vst [vmem:[#allocation2 + $0x58] sm:$0xff] %v1478_v40  ;;  %v1764_v45 = vadd.f32 %v1763_v43, %v1762_v41  ;;  %v1828_v46 = vadd.f32 %v1827_v44, %v1826_v42  ;;  %v1765_v47 = vpop.f32.mrb[58].mxu0  ;;  %v1829_v48 = vpop.f32.mrb[58].mxu1 }
 0x226   :  { %v1766_v49 = vpop.f32.mrb[59].mxu0  ;;  %v1830_v50 = vpop.f32.mrb[59].mxu1 }
 0x227   :  { %v1386_v51 = vadd.f32 %v1764_v45, %v2565_v9  ;;  %v1767_v52 = vadd.f32 %v1766_v49, %v1765_v47  ;;  %v1831_v53 = vadd.f32 %v1830_v50, %v1829_v48 }
 0x229   :  { %v1483_v54 = vadd.f32 %v1828_v46, %v1386_v51  ;;  %v1389_v59 = vadd.f32 %v1767_v52, %v2565_v9 }
 0x22b   :  { %1509 = vst [vmem:[#allocation2 + $0x60] sm:$0xff] %v1483_v54  ;;  %v1486_v60 = vadd.f32 %v1831_v53, %v1389_v59  ;;  %v1768_v61 = vpop.f32.mrb[60].mxu0  ;;  %v1832_v62 = vpop.f32.mrb[60].mxu1 }
 0x22c   :  { %v1769_v63 = vpop.f32.mrb[61].mxu0  ;;  %v1833_v0 = vpop.f32.mrb[61].mxu1 }
 0x22d   :  { %1510 = vst [vmem:[#allocation2 + $0x68] sm:$0xff] %v1486_v60  ;;  %v1770_v1 = vadd.f32 %v1769_v63, %v1768_v61  ;;  %v1834_v2 = vadd.f32 %v1833_v0, %v1832_v62  ;;  %v1771_v3 = vpop.f32.mrb[62].mxu0  ;;  %v1835_v4 = vpop.f32.mrb[62].mxu1 }
 0x22e   :  { %v1772_v5 = vpop.f32.mrb[63].mxu0  ;;  %v1836_v55 = vpop.f32.mrb[63].mxu1 }
 0x22f   :  { %v1394_v56 = vadd.f32 %v1770_v1, %v2565_v9  ;;  %v1773_v57 = vadd.f32 %v1772_v5, %v1771_v3  ;;  %v1837_v6 = vadd.f32 %v1836_v55, %v1835_v4 }
 0x231   :  { %v1491_v58 = vadd.f32 %v1834_v2, %v1394_v56  ;;  %v1397_v7 = vadd.f32 %v1773_v57, %v2565_v9 }
 0x233   :  { %1511 = vst [vmem:[#allocation2 + $0x70] sm:$0xff] %v1491_v58  ;;  %v1494_v8 = vadd.f32 %v1837_v6, %v1397_v7 }
 0x235   :  { %1512 = vst [vmem:[#allocation2 + $0x78] sm:$0xff] %v1494_v8 }
 0x236   :  { %2004 = shalt.err (!%p2001_p4)
}
 0x237   :  { %s2005_s13 = scalar_lea.hbm %s2601_s6, 2048 }
 0x238   :  { %p2006_p5 = scmp.ne.s32.totalorder %s2601_s6, %s2005_s13  ;;  %p2009_p6 = scmp.lt.u32.totalorder %s2005_s13, %s2601_s6 }
 0x23a   :  { %p2011_p7 = pnand %p2009_p6, %p2006_p5 }
 0x23c   :  { %2014 = shalt.err (!%p2011_p7)
}
 0x23d   :  { %s2018_s17 = smov 128   ;;  %s2019_s18 = smov 8  }
 0x23e   :  { %1526 = dma.vmem_to_hbm [thread:$0]  %s1521_s5, 2048, %s2601_s6, [#allocation3], %s2018_s17, %s2018_s17, %s2019_s18  }
 0x23f   :  { %2015 = dma.done.wait [#allocation3], 2048  }
 0x240   :  { %2016 = vsyncadd [#allocation3], 4294965248 }
 0x241   :  { %1532 = vsyncpa [#allocation3], 1 }

// kernel: _lambda_.8
= control target key start
LH: loop header
LB: loop body
LE: loop exit
PB: predicated region body
PF: predicated region fallthrough
CT: control target
= control target key end

     0   :  { %s4749_s0 = inlined_call_operand.vmem [shape: bf16[32,512], index: 0, kind: input, shape index: {}]   ;;  %s4750_s1 = inlined_call_operand.vmem [shape: bf16[512,1024], index: 1, kind: input, shape index: {}]   ;;  %s4751_s2 = inlined_call_operand.vmem [shape: f32[1,1024], index: 2, kind: input, shape index: {}]   ;;  %s4752_s3 = inlined_call_operand.vmem [shape: bf16[1024,128], index: 3, kind: input, shape index: {}]   ;;  %s4753_s4 = inlined_call_operand.vmem [shape: f32[1,128], index: 4, kind: input, shape index: {}]   ;;  %s4754_s5 = inlined_call_operand.vmem [shape: bf16[32,1024], index: 5, kind: output, shape index: {0}]   ;;  %s4755_s6 = inlined_call_operand.hbm [shape: f32[32,128], index: 6, kind: output, shape index: {1}]  }
   0x1   :  { %v32_v0 = vld [vmem:[%s4750_s1] sm:$0xff]  ;;  %v33_v2 = vld [vmem:[%s4750_s1 + $0x8] sm:$0xff] }
   0x2   :  { %v36_v1 = vld [vmem:[%s4750_s1 + $0x20] sm:$0xff]  ;;  %v37_v4 = vld [vmem:[%s4750_s1 + $0x28] sm:$0xff] }
   0x3   :  { %v2966_v3 = vcombine.high %v32_v0, %v36_v1  ;;  %v2965_v5 = vcombine.low %v32_v0, %v36_v1  ;;  %v40_v6 = vld [vmem:[%s4750_s1 + $0x40] sm:$0xff]  ;;  %v2968_v8 = vcombine.high %v33_v2, %v37_v4  ;;  %v2967_v9 = vcombine.low %v33_v2, %v37_v4  ;;  %v41_v11 = vld [vmem:[%s4750_s1 + $0x48] sm:$0xff] }
   0x4   :  { %v44_v7 = vld [vmem:[%s4750_s1 + $0x60] sm:$0xff]  ;;  %v45_v12 = vld [vmem:[%s4750_s1 + $0x68] sm:$0xff] }
   0x5   :  { %v2974_v10 = vcombine.high %v40_v6, %v44_v7  ;;  %v48_v13 = vld [vmem:[%s4750_s1 + $0x80] sm:$0xff]  ;;  %1650 = vmatprep.subr.bf16.mxu0 %v2966_v3  ;;  %v2976_v14 = vcombine.high %v41_v11, %v45_v12  ;;  %v49_v16 = vld [vmem:[%s4750_s1 + $0x88] sm:$0xff]  ;;  %1756 = vmatprep.subr.bf16.mxu1 %v2968_v8  ;;  %v2973_v18 = vcombine.low %v40_v6, %v44_v7 }
   0x6   :  { %v52_v15 = vld [vmem:[%s4750_s1 + $0xa0] sm:$0xff]  ;;  %v53_v17 = vld [vmem:[%s4750_s1 + $0xa8] sm:$0xff]  ;;  %1651 = vmatpush1.bf16.msra.mxu0 %v2965_v5  ;;  %1757 = vmatpush1.bf16.msra.mxu1 %v2967_v9  ;;  %v2975_v19 = vcombine.low %v41_v11, %v45_v12 }
   0x7   :  { %1652 = vmatprep.subr.bf16.mxu0 %v2974_v10  ;;  %v2982_v20 = vcombine.high %v48_v13, %v52_v15  ;;  %1758 = vmatprep.subr.bf16.mxu1 %v2976_v14  ;;  %v2984_v21 = vcombine.high %v49_v16, %v53_v17  ;;  %v56_v22 = vld [vmem:[%s4750_s1 + $0xc0] sm:$0xff]  ;;  %v57_v24 = vld [vmem:[%s4750_s1 + $0xc8] sm:$0xff]  ;;  %v2981_v26 = vcombine.low %v48_v13, %v52_v15 }
   0x8   :  { %v60_v23 = vld [vmem:[%s4750_s1 + $0xe0] sm:$0xff]  ;;  %v61_v25 = vld [vmem:[%s4750_s1 + $0xe8] sm:$0xff]  ;;  %v2983_v27 = vcombine.low %v49_v16, %v53_v17 }
   0x9   :  { %v2990_v28 = vcombine.high %v56_v22, %v60_v23  ;;  %v2992_v29 = vcombine.high %v57_v24, %v61_v25  ;;  %v64_v30 = vld [vmem:[%s4750_s1 + $0x100] sm:$0xff]  ;;  %v65_v32 = vld [vmem:[%s4750_s1 + $0x108] sm:$0xff]  ;;  %v2989_v34 = vcombine.low %v56_v22, %v60_v23  ;;  %v2991_v35 = vcombine.low %v57_v24, %v61_v25 }
   0xa   :  { %1653 = vmatpush1.bf16.msra.mxu0 %v2973_v18  ;;  %1759 = vmatpush1.bf16.msra.mxu1 %v2975_v19  ;;  %v68_v31 = vld [vmem:[%s4750_s1 + $0x120] sm:$0xff]  ;;  %v69_v33 = vld [vmem:[%s4750_s1 + $0x128] sm:$0xff] }
   0xb   :  { %1654 = vmatprep.subr.bf16.mxu0 %v2982_v20  ;;  %1760 = vmatprep.subr.bf16.mxu1 %v2984_v21  ;;  %v2998_v36 = vcombine.high %v64_v30, %v68_v31  ;;  %v3000_v37 = vcombine.high %v65_v32, %v69_v33  ;;  %v72_v38 = vld [vmem:[%s4750_s1 + $0x140] sm:$0xff]  ;;  %v73_v40 = vld [vmem:[%s4750_s1 + $0x148] sm:$0xff]  ;;  %v2997_v42 = vcombine.low %v64_v30, %v68_v31 }
   0xc   :  { %v76_v39 = vld [vmem:[%s4750_s1 + $0x160] sm:$0xff]  ;;  %v77_v41 = vld [vmem:[%s4750_s1 + $0x168] sm:$0xff]  ;;  %v2999_v43 = vcombine.low %v65_v32, %v69_v33 }
   0xd   :  { %v3006_v44 = vcombine.high %v72_v38, %v76_v39  ;;  %v3008_v45 = vcombine.high %v73_v40, %v77_v41  ;;  %v80_v46 = vld [vmem:[%s4750_s1 + $0x180] sm:$0xff]  ;;  %v81_v48 = vld [vmem:[%s4750_s1 + $0x188] sm:$0xff]  ;;  %v3005_v50 = vcombine.low %v72_v38, %v76_v39  ;;  %v3007_v51 = vcombine.low %v73_v40, %v77_v41 }
   0xe   :  { %1655 = vmatpush1.bf16.msra.mxu0 %v2981_v26  ;;  %1761 = vmatpush1.bf16.msra.mxu1 %v2983_v27  ;;  %v84_v47 = vld [vmem:[%s4750_s1 + $0x1a0] sm:$0xff]  ;;  %v85_v49 = vld [vmem:[%s4750_s1 + $0x1a8] sm:$0xff] }
   0xf   :  { %1656 = vmatprep.subr.bf16.mxu0 %v2990_v28  ;;  %1762 = vmatprep.subr.bf16.mxu1 %v2992_v29  ;;  %v3014_v52 = vcombine.high %v80_v46, %v84_v47  ;;  %v3016_v53 = vcombine.high %v81_v48, %v85_v49  ;;  %v88_v54 = vld [vmem:[%s4750_s1 + $0x1c0] sm:$0xff]  ;;  %v89_v57 = vld [vmem:[%s4750_s1 + $0x1c8] sm:$0xff]  ;;  %v3013_v59 = vcombine.low %v80_v46, %v84_v47 }
  0x10   :  { %v92_v55 = vld [vmem:[%s4750_s1 + $0x1e0] sm:$0xff]  ;;  %v93_v58 = vld [vmem:[%s4750_s1 + $0x1e8] sm:$0xff]  ;;  %v3015_v60 = vcombine.low %v81_v48, %v85_v49 }
  0x11   :  { %v3497_v56 = vld [vmem:[%s4749_s0 + $0x4] ss:$16 sps:$4 sm:$0xff]   ;;  %v3022_v61 = vcombine.high %v88_v54, %v92_v55  ;;  %v3024_v62 = vcombine.high %v89_v57, %v93_v58  ;;  %v97_v1 = vld [vmem:[%s4750_s1 + $0x208] sm:$0xff]  ;;  %v3021_v3 = vcombine.low %v88_v54, %v92_v55  ;;  %v3023_v4 = vcombine.low %v89_v57, %v93_v58 }
  0x12   :  { %1657 = vmatpush1.bf16.msra.mxu0 %v2989_v34  ;;  %1763 = vmatpush1.bf16.msra.mxu1 %v2991_v35  ;;  %v96_v63 = vld [vmem:[%s4750_s1 + $0x200] sm:$0xff]  ;;  %v101_v2 = vld [vmem:[%s4750_s1 + $0x228] sm:$0xff] }
  0x13   :  { %1658 = vmatprep.subr.bf16.mxu0 %v2998_v36  ;;  %1764 = vmatprep.subr.bf16.mxu1 %v3000_v37  ;;  %v100_v0 = vld [vmem:[%s4750_s1 + $0x220] sm:$0xff]  ;;  %v3032_v6 = vcombine.high %v97_v1, %v101_v2  ;;  %v105_v9 = vld [vmem:[%s4750_s1 + $0x248] sm:$0xff]  ;;  %v3031_v12 = vcombine.low %v97_v1, %v101_v2 }
  0x14   :  { %1682 = vmatprep.mubr.bf16.mxu0 %v3497_v56  ;;  %1788 = vmatprep.mubr.bf16.mxu1 %v3497_v56  ;;  %v3030_v5 = vcombine.high %v96_v63, %v100_v0  ;;  %v104_v7 = vld [vmem:[%s4750_s1 + $0x240] sm:$0xff]  ;;  %v109_v10 = vld [vmem:[%s4750_s1 + $0x268] sm:$0xff]  ;;  %v3029_v11 = vcombine.low %v96_v63, %v100_v0 }
  0x15   :  { %v108_v8 = vld [vmem:[%s4750_s1 + $0x260] sm:$0xff]  ;;  %v3040_v14 = vcombine.high %v105_v9, %v109_v10  ;;  %v113_v17 = vld [vmem:[%s4750_s1 + $0x288] sm:$0xff]  ;;  %v3039_v20 = vcombine.low %v105_v9, %v109_v10 }
  0x16   :  { %1659 = vmatpush1.bf16.msra.mxu0 %v2997_v42  ;;  %1765 = vmatpush1.bf16.msra.mxu1 %v2999_v43  ;;  %v3038_v13 = vcombine.high %v104_v7, %v108_v8  ;;  %v112_v15 = vld [vmem:[%s4750_s1 + $0x280] sm:$0xff]  ;;  %v117_v18 = vld [vmem:[%s4750_s1 + $0x2a8] sm:$0xff]  ;;  %v3037_v19 = vcombine.low %v104_v7, %v108_v8 }
  0x17   :  { %1660 = vmatprep.subr.bf16.mxu0 %v3006_v44  ;;  %1766 = vmatprep.subr.bf16.mxu1 %v3008_v45  ;;  %v116_v16 = vld [vmem:[%s4750_s1 + $0x2a0] sm:$0xff]  ;;  %v3048_v22 = vcombine.high %v113_v17, %v117_v18  ;;  %v121_v25 = vld [vmem:[%s4750_s1 + $0x2c8] sm:$0xff]  ;;  %v3047_v28 = vcombine.low %v113_v17, %v117_v18 }
  0x18   :  { %v3046_v21 = vcombine.high %v112_v15, %v116_v16  ;;  %v120_v23 = vld [vmem:[%s4750_s1 + $0x2c0] sm:$0xff]  ;;  %v125_v26 = vld [vmem:[%s4750_s1 + $0x2e8] sm:$0xff]  ;;  %v3045_v27 = vcombine.low %v112_v15, %v116_v16 }
  0x19   :  { %v124_v24 = vld [vmem:[%s4750_s1 + $0x2e0] sm:$0xff]  ;;  %v3056_v30 = vcombine.high %v121_v25, %v125_v26  ;;  %v129_v33 = vld [vmem:[%s4750_s1 + $0x308] sm:$0xff]  ;;  %v3055_v36 = vcombine.low %v121_v25, %v125_v26 }
  0x1a   :  { %1661 = vmatpush1.bf16.msra.mxu0 %v3005_v50  ;;  %1767 = vmatpush1.bf16.msra.mxu1 %v3007_v51  ;;  %v3054_v29 = vcombine.high %v120_v23, %v124_v24  ;;  %v128_v31 = vld [vmem:[%s4750_s1 + $0x300] sm:$0xff]  ;;  %v133_v34 = vld [vmem:[%s4750_s1 + $0x328] sm:$0xff]  ;;  %v3053_v35 = vcombine.low %v120_v23, %v124_v24 }
  0x1b   :  { %1662 = vmatprep.subr.bf16.mxu0 %v3014_v52  ;;  %1768 = vmatprep.subr.bf16.mxu1 %v3016_v53  ;;  %v132_v32 = vld [vmem:[%s4750_s1 + $0x320] sm:$0xff]  ;;  %v3064_v38 = vcombine.high %v129_v33, %v133_v34  ;;  %v137_v41 = vld [vmem:[%s4750_s1 + $0x348] sm:$0xff]  ;;  %v3063_v44 = vcombine.low %v129_v33, %v133_v34 }
  0x1c   :  { %v3062_v37 = vcombine.high %v128_v31, %v132_v32  ;;  %v136_v39 = vld [vmem:[%s4750_s1 + $0x340] sm:$0xff]  ;;  %v141_v42 = vld [vmem:[%s4750_s1 + $0x368] sm:$0xff]  ;;  %v3061_v43 = vcombine.low %v128_v31, %v132_v32 }
  0x1d   :  { %v140_v40 = vld [vmem:[%s4750_s1 + $0x360] sm:$0xff]  ;;  %v3072_v46 = vcombine.high %v137_v41, %v141_v42  ;;  %v145_v49 = vld [vmem:[%s4750_s1 + $0x388] sm:$0xff]  ;;  %v3071_v52 = vcombine.low %v137_v41, %v141_v42 }
  0x1e   :  { %1663 = vmatpush1.bf16.msra.mxu0 %v3013_v59  ;;  %1769 = vmatpush1.bf16.msra.mxu1 %v3015_v60  ;;  %v3070_v45 = vcombine.high %v136_v39, %v140_v40  ;;  %v144_v47 = vld [vmem:[%s4750_s1 + $0x380] sm:$0xff]  ;;  %v149_v50 = vld [vmem:[%s4750_s1 + $0x3a8] sm:$0xff]  ;;  %v3069_v51 = vcombine.low %v136_v39, %v140_v40 }
  0x1f   :  { %1664 = vmatprep.subr.bf16.mxu0 %v3022_v61  ;;  %1770 = vmatprep.subr.bf16.mxu1 %v3024_v62  ;;  %v148_v48 = vld [vmem:[%s4750_s1 + $0x3a0] sm:$0xff]  ;;  %v3080_v54 = vcombine.high %v145_v49, %v149_v50  ;;  %v153_v57 = vld [vmem:[%s4750_s1 + $0x3c8] sm:$0xff]  ;;  %v3079_v60 = vcombine.low %v145_v49, %v149_v50 }
  0x20   :  { %v3078_v53 = vcombine.high %v144_v47, %v148_v48  ;;  %v152_v55 = vld [vmem:[%s4750_s1 + $0x3c0] sm:$0xff]  ;;  %v157_v58 = vld [vmem:[%s4750_s1 + $0x3e8] sm:$0xff]  ;;  %v3077_v59 = vcombine.low %v144_v47, %v148_v48 }
  0x21   :  { %v156_v56 = vld [vmem:[%s4750_s1 + $0x3e0] sm:$0xff]  ;;  %v3088_v62 = vcombine.high %v153_v57, %v157_v58  ;;  %v161_v1 = vld [vmem:[%s4750_s1 + $0x408] sm:$0xff] }
  0x22   :  { %1665 = vmatpush1.bf16.msra.mxu0 %v3021_v3  ;;  %1771 = vmatpush1.bf16.msra.mxu1 %v3023_v4  ;;  %v3086_v61 = vcombine.high %v152_v55, %v156_v56  ;;  %v160_v63 = vld [vmem:[%s4750_s1 + $0x400] sm:$0xff]  ;;  %v165_v2 = vld [vmem:[%s4750_s1 + $0x428] sm:$0xff]  ;;  %v3085_v3 = vcombine.low %v152_v55, %v156_v56  ;;  %v3087_v4 = vcombine.low %v153_v57, %v157_v58 }
  0x23   :  { %1666 = vmatprep.subr.bf16.mxu0 %v3030_v5  ;;  %1772 = vmatprep.subr.bf16.mxu1 %v3032_v6  ;;  %v164_v0 = vld [vmem:[%s4750_s1 + $0x420] sm:$0xff]  ;;  %v3096_v6 = vcombine.high %v161_v1, %v165_v2  ;;  %v169_v10 = vld [vmem:[%s4750_s1 + $0x448] sm:$0xff] }
  0x24   :  { %v3094_v5 = vcombine.high %v160_v63, %v164_v0  ;;  %v168_v7 = vld [vmem:[%s4750_s1 + $0x440] sm:$0xff] }
  0x25   :  { %v172_v8 = vld [vmem:[%s4750_s1 + $0x460] sm:$0xff] }
  0x26   :  { %1667 = vmatpush1.bf16.msra.mxu0 %v3029_v11  ;;  %1773 = vmatpush1.bf16.msra.mxu1 %v3031_v12  ;;  %v3499_v9 = vld [vmem:[%s4749_s0] ss:$16 sps:$4 sm:$0xff]   ;;  %v173_v11 = vld [vmem:[%s4750_s1 + $0x468] sm:$0xff]  ;;  %v3093_v12 = vcombine.low %v160_v63, %v164_v0  ;;  %v3500_v18 = vld [vmem:[%s4749_s0 + $0x24] ss:$16 sps:$4 sm:$0xff]  }
  0x27   :  { %1668 = vmatprep.subr.bf16.mxu0 %v3038_v13  ;;  %1774 = vmatprep.subr.bf16.mxu1 %v3040_v14  ;;  %v3095_v13 = vcombine.low %v161_v1, %v165_v2  ;;  %v3102_v14 = vcombine.high %v168_v7, %v172_v8  ;;  %v3104_v15 = vcombine.high %v169_v10, %v173_v11  ;;  %v176_v16 = vld [vmem:[%s4750_s1 + $0x480] sm:$0xff] }
  0x28   :  { %v180_v17 = vld [vmem:[%s4750_s1 + $0x4a0] sm:$0xff] }
  0x29   :  { %v3110_v23 = vcombine.high %v176_v16, %v180_v17  ;;  %v184_v25 = vld [vmem:[%s4750_s1 + $0x4c0] sm:$0xff] }
  0x2a   :  { %1669 = vmatpush1.bf16.msra.mxu0 %v3037_v19  ;;  %1775 = vmatpush1.bf16.msra.mxu1 %v3039_v20  ;;  %v177_v19 = vld [vmem:[%s4750_s1 + $0x488] sm:$0xff]  ;;  %v188_v26 = vld [vmem:[%s4750_s1 + $0x4e0] sm:$0xff] }
  0x2b   :  { %1670 = vmatprep.subr.bf16.mxu0 %v3046_v21  ;;  %1776 = vmatprep.subr.bf16.mxu1 %v3048_v22  ;;  %v181_v20 = vld [vmem:[%s4750_s1 + $0x4a8] sm:$0xff]  ;;  %v3101_v21 = vcombine.low %v168_v7, %v172_v8  ;;  %v3103_v22 = vcombine.low %v169_v10, %v173_v11  ;;  %v192_v31 = vld [vmem:[%s4750_s1 + $0x500] sm:$0xff]  ;;  %v3118_v33 = vcombine.high %v184_v25, %v188_v26 }
  0x2c   :  { %v3112_v24 = vcombine.high %v177_v19, %v181_v20  ;;  %v3111_v32 = vcombine.low %v177_v19, %v181_v20  ;;  %v196_v34 = vld [vmem:[%s4750_s1 + $0x520] sm:$0xff]  ;;  %v3117_v39 = vcombine.low %v184_v25, %v188_v26  ;;  %v241_v20 = vld [vmem:[%s4750_s1 + $0x688] sm:$0xff] }
  0x2d   :  { %v3126_v41 = vcombine.high %v192_v31, %v196_v34  ;;  %v200_v42 = vld [vmem:[%s4750_s1 + $0x540] sm:$0xff]  ;;  %v3125_v47 = vcombine.low %v192_v31, %v196_v34 }
  0x2e   :  { %1671 = vmatpush1.bf16.msra.mxu0 %v3045_v27  ;;  %1777 = vmatpush1.bf16.msra.mxu1 %v3047_v28  ;;  %v185_v27 = vld [vmem:[%s4750_s1 + $0x4c8] sm:$0xff]  ;;  %v208_v50 = vld [vmem:[%s4750_s1 + $0x580] sm:$0xff] }
  0x2f   :  { %1672 = vmatprep.subr.bf16.mxu0 %v3054_v29  ;;  %1778 = vmatprep.subr.bf16.mxu1 %v3056_v30  ;;  %v189_v28 = vld [vmem:[%s4750_s1 + $0x4e8] sm:$0xff]  ;;  %v3502_v29 = vld [vmem:[%s4749_s0 + $0x20] ss:$16 sps:$4 sm:$0xff]   ;;  %v3109_v30 = vcombine.low %v176_v16, %v180_v17 }
  0x30   :  { %v3119_v40 = vcombine.low %v185_v27, %v189_v28  ;;  %v216_v58 = vld [vmem:[%s4750_s1 + $0x5c0] sm:$0xff] }
  0x31   :  { %v224_v2 = vld [vmem:[%s4750_s1 + $0x600] sm:$0xff] }
  0x32   :  { %1673 = vmatpush1.bf16.msra.mxu0 %v3053_v35  ;;  %1779 = vmatpush1.bf16.msra.mxu1 %v3055_v36  ;;  %v193_v35 = vld [vmem:[%s4750_s1 + $0x508] sm:$0xff]  ;;  %v232_v10 = vld [vmem:[%s4750_s1 + $0x640] sm:$0xff] }
  0x33   :  { %1674 = vmatprep.subr.bf16.mxu0 %v3062_v37  ;;  %1780 = vmatprep.subr.bf16.mxu1 %v3064_v38  ;;  %v197_v36 = vld [vmem:[%s4750_s1 + $0x528] sm:$0xff]  ;;  %v3120_v37 = vcombine.high %v185_v27, %v189_v28  ;;  %v236_v11 = vld [vmem:[%s4750_s1 + $0x660] sm:$0xff] }
  0x34   :  { %v3505_v38 = vld [vmem:[%s4749_s0 + $0xc] ss:$16 sps:$4 sm:$0xff]   ;;  %v3127_v48 = vcombine.low %v193_v35, %v197_v36  ;;  %v3166_v17 = vcombine.high %v232_v10, %v236_v11  ;;  %v244_v19 = vld [vmem:[%s4750_s1 + $0x6a0] sm:$0xff] }
  0x35   :  { %v248_v26 = vld [vmem:[%s4750_s1 + $0x6c0] sm:$0xff]  ;;  %v249_v28 = vld [vmem:[%s4750_s1 + $0x6c8] sm:$0xff] }
  0x36   :  { %1675 = vmatpush1.bf16.msra.mxu0 %v3061_v43  ;;  %1781 = vmatpush1.bf16.msra.mxu1 %v3063_v44  ;;  %v204_v43 = vld [vmem:[%s4750_s1 + $0x560] sm:$0xff]  ;;  %v201_v44 = vld [vmem:[%s4750_s1 + $0x548] sm:$0xff] }
  0x37   :  { %1676 = vmatprep.subr.bf16.mxu0 %v3070_v45  ;;  %1782 = vmatprep.subr.bf16.mxu1 %v3072_v46  ;;  %v3128_v45 = vcombine.high %v193_v35, %v197_v36  ;;  %v205_v46 = vld [vmem:[%s4750_s1 + $0x568] sm:$0xff]  ;;  %v3134_v49 = vcombine.high %v200_v42, %v204_v43  ;;  %v3133_v55 = vcombine.low %v200_v42, %v204_v43  ;;  %v252_v27 = vld [vmem:[%s4750_s1 + $0x6e0] sm:$0xff] }
  0x38   :  { %v3135_v56 = vcombine.low %v201_v44, %v205_v46  ;;  %v256_v34 = vld [vmem:[%s4750_s1 + $0x700] sm:$0xff]  ;;  %v257_v36 = vld [vmem:[%s4750_s1 + $0x708] sm:$0xff] }
  0x39   :  { %v260_v35 = vld [vmem:[%s4750_s1 + $0x720] sm:$0xff] }
  0x3a   :  { %1677 = vmatpush1.bf16.msra.mxu0 %v3069_v51  ;;  %1783 = vmatpush1.bf16.msra.mxu1 %v3071_v52  ;;  %v212_v51 = vld [vmem:[%s4750_s1 + $0x5a0] sm:$0xff]  ;;  %v209_v52 = vld [vmem:[%s4750_s1 + $0x588] sm:$0xff] }
  0x3b   :  { %1678 = vmatprep.subr.bf16.mxu0 %v3078_v53  ;;  %1784 = vmatprep.subr.bf16.mxu1 %v3080_v54  ;;  %v3136_v53 = vcombine.high %v201_v44, %v205_v46  ;;  %v213_v54 = vld [vmem:[%s4750_s1 + $0x5a8] sm:$0xff]  ;;  %v3142_v57 = vcombine.high %v208_v50, %v212_v51  ;;  %v3141_v63 = vcombine.low %v208_v50, %v212_v51  ;;  %v264_v42 = vld [vmem:[%s4750_s1 + $0x740] sm:$0xff] }
  0x3c   :  { %v3143_v0 = vcombine.low %v209_v52, %v213_v54  ;;  %v268_v43 = vld [vmem:[%s4750_s1 + $0x760] sm:$0xff]  ;;  %v265_v44 = vld [vmem:[%s4750_s1 + $0x748] sm:$0xff] }
  0x3d   :  { %v269_v46 = vld [vmem:[%s4750_s1 + $0x768] sm:$0xff]  ;;  %v272_v50 = vld [vmem:[%s4750_s1 + $0x780] sm:$0xff] }
  0x3e   :  { %1679 = vmatpush1.bf16.msra.mxu0 %v3077_v59  ;;  %1785 = vmatpush1.bf16.msra.mxu1 %v3079_v60  ;;  %v220_v59 = vld [vmem:[%s4750_s1 + $0x5e0] sm:$0xff]  ;;  %v217_v60 = vld [vmem:[%s4750_s1 + $0x5c8] sm:$0xff] }
  0x3f   :  { %1680 = vmatprep.subr.bf16.mxu0 %v3086_v61  ;;  %1786 = vmatprep.subr.bf16.mxu1 %v3088_v62  ;;  %v3144_v61 = vcombine.high %v209_v52, %v213_v54  ;;  %v221_v62 = vld [vmem:[%s4750_s1 + $0x5e8] sm:$0xff]  ;;  %v3150_v1 = vcombine.high %v216_v58, %v220_v59  ;;  %v3149_v7 = vcombine.low %v216_v58, %v220_v59  ;;  %v276_v51 = vld [vmem:[%s4750_s1 + $0x7a0] sm:$0xff] }
  0x40   :  { %v3151_v8 = vcombine.low %v217_v60, %v221_v62  ;;  %v273_v52 = vld [vmem:[%s4750_s1 + $0x788] sm:$0xff]  ;;  %v280_v58 = vld [vmem:[%s4750_s1 + $0x7c0] sm:$0xff] }
  0x41   :  { %v277_v54 = vld [vmem:[%s4750_s1 + $0x7a8] sm:$0xff]  ;;  %v284_v59 = vld [vmem:[%s4750_s1 + $0x7e0] sm:$0xff] }
  0x42   :  { %1681 = vmatpush1.bf16.msra.mxu0 %v3085_v3  ;;  %1787 = vmatpush1.bf16.msra.mxu1 %v3087_v4  ;;  %v228_v3 = vld [vmem:[%s4750_s1 + $0x620] sm:$0xff]  ;;  %v225_v4 = vld [vmem:[%s4750_s1 + $0x608] sm:$0xff] }
  0x43   :  { %1703 = vmatprep.subr.bf16.mxu0 %v3094_v5  ;;  %1809 = vmatprep.subr.bf16.mxu1 %v3096_v6  ;;  %v3152_v5 = vcombine.high %v217_v60, %v221_v62  ;;  %v229_v6 = vld [vmem:[%s4750_s1 + $0x628] sm:$0xff] }
  0x44   :  { %v3159_v16 = vcombine.low %v225_v4, %v229_v6  ;;  %v281_v60 = vld [vmem:[%s4750_s1 + $0x7c8] sm:$0xff] }
  0x45   :  { %1683 = vmatmul.mubr.bf16.vlgmr.msra.gmra.mrb[0].mxu0 %v3499_v9  ;;  %1789 = vmatmul.mubr.bf16.vlgmr.msra.gmra.mrb[0].mxu1 %v3499_v9  ;;  %v3158_v9 = vcombine.high %v224_v2, %v228_v3  ;;  %v285_v62 = vld [vmem:[%s4750_s1 + $0x7e8] sm:$0xff] }
  0x46   :  { %1704 = vmatpush1.bf16.msra.mxu0 %v3093_v12  ;;  %1810 = vmatpush1.bf16.msra.mxu1 %v3095_v13  ;;  %v233_v12 = vld [vmem:[%s4750_s1 + $0x648] sm:$0xff]  ;;  %v3160_v13 = vcombine.high %v225_v4, %v229_v6  ;;  %v35_v4 = vld [vmem:[%s4750_s1 + $0x18] sm:$0xff] }
  0x47   :  { %1705 = vmatprep.subr.bf16.mxu0 %v3102_v14  ;;  %1811 = vmatprep.subr.bf16.mxu1 %v3104_v15  ;;  %v237_v14 = vld [vmem:[%s4750_s1 + $0x668] sm:$0xff]  ;;  %v3157_v15 = vcombine.low %v224_v2, %v228_v3  ;;  %v34_v2 = vld [vmem:[%s4750_s1 + $0x10] sm:$0xff]  ;;  %v39_v6 = vld [vmem:[%s4750_s1 + $0x38] sm:$0xff] }
  0x48   :  { %1692 = vmatprep.mubr.bf16.mxu0 %v3500_v18  ;;  %1798 = vmatprep.mubr.bf16.mxu1 %v3500_v18  ;;  %v240_v18 = vld [vmem:[%s4750_s1 + $0x680] sm:$0xff]  ;;  %v38_v3 = vld [vmem:[%s4750_s1 + $0x30] sm:$0xff] }
  0x49   :  { %v3174_v25 = vcombine.high %v240_v18, %v244_v19  ;;  %v3173_v31 = vcombine.low %v240_v18, %v244_v19  ;;  %v50_v18 = vld [vmem:[%s4750_s1 + $0x90] sm:$0xff] }
  0x4a   :  { %1706 = vmatpush1.bf16.msra.mxu0 %v3101_v21  ;;  %1812 = vmatpush1.bf16.msra.mxu1 %v3103_v22  ;;  %v3168_v21 = vcombine.high %v233_v12, %v237_v14  ;;  %v245_v22 = vld [vmem:[%s4750_s1 + $0x6a8] sm:$0xff]  ;;  %v54_v19 = vld [vmem:[%s4750_s1 + $0xb0] sm:$0xff] }
  0x4b   :  { %1707 = vmatprep.subr.bf16.mxu0 %v3110_v23  ;;  %1813 = vmatprep.subr.bf16.mxu1 %v3112_v24  ;;  %v3165_v23 = vcombine.low %v232_v10, %v236_v11  ;;  %v3167_v24 = vcombine.low %v233_v12, %v237_v14  ;;  %v2970_v10 = vcombine.high %v34_v2, %v38_v3  ;;  %v42_v11 = vld [vmem:[%s4750_s1 + $0x50] sm:$0xff] }
  0x4c   :  { %v46_v12 = vld [vmem:[%s4750_s1 + $0x70] sm:$0xff]  ;;  %v2972_v14 = vcombine.high %v35_v4, %v39_v6 }
  0x4d   :  { %1693 = vmatmul.mubr.bf16.gmra.mrb[4].mxu0 %v3502_v29  ;;  %1799 = vmatmul.mubr.bf16.gmra.mrb[4].mxu1 %v3502_v29  ;;  %v3176_v29 = vcombine.high %v241_v20, %v245_v22 }
  0x4e   :  { %1708 = vmatpush1.bf16.msra.mxu0 %v3109_v30  ;;  %1814 = vmatpush1.bf16.msra.mxu1 %v3111_v32  ;;  %v253_v30 = vld [vmem:[%s4750_s1 + $0x6e8] sm:$0xff]  ;;  %v3175_v32 = vcombine.low %v241_v20, %v245_v22  ;;  %v2971_v20 = vcombine.low %v35_v4, %v39_v6  ;;  %v51_v22 = vld [vmem:[%s4750_s1 + $0x98] sm:$0xff] }
  0x4f   :  { %1709 = vmatprep.subr.bf16.mxu0 %v3118_v33  ;;  %1815 = vmatprep.subr.bf16.mxu1 %v3120_v37  ;;  %v3182_v33 = vcombine.high %v248_v26, %v252_v27  ;;  %v3184_v37 = vcombine.high %v249_v28, %v253_v30 }
  0x50   :  { %1735 = vmatprep.mubr.bf16.mxu0 %v3505_v38  ;;  %1841 = vmatprep.mubr.bf16.mxu1 %v3505_v38  ;;  %v261_v38 = vld [vmem:[%s4750_s1 + $0x728] sm:$0xff] }
  0x52   :  { %1710 = vmatpush1.bf16.msra.mxu0 %v3117_v39  ;;  %1816 = vmatpush1.bf16.msra.mxu1 %v3119_v40  ;;  %v3181_v39 = vcombine.low %v248_v26, %v252_v27  ;;  %v3183_v40 = vcombine.low %v249_v28, %v253_v30  ;;  %v2986_v27 = vcombine.high %v50_v18, %v54_v19 }
  0x53   :  { %1711 = vmatprep.subr.bf16.mxu0 %v3126_v41  ;;  %1817 = vmatprep.subr.bf16.mxu1 %v3128_v45  ;;  %v3190_v41 = vcombine.high %v256_v34, %v260_v35  ;;  %v3192_v45 = vcombine.high %v257_v36, %v261_v38 }
  0x56   :  { %1712 = vmatpush1.bf16.msra.mxu0 %v3125_v47  ;;  %1818 = vmatpush1.bf16.msra.mxu1 %v3127_v48  ;;  %v3189_v47 = vcombine.low %v256_v34, %v260_v35  ;;  %v3191_v48 = vcombine.low %v257_v36, %v261_v38 }
  0x57   :  { %1713 = vmatprep.subr.bf16.mxu0 %v3134_v49  ;;  %1819 = vmatprep.subr.bf16.mxu1 %v3136_v53  ;;  %v3198_v49 = vcombine.high %v264_v42, %v268_v43  ;;  %v3200_v53 = vcombine.high %v265_v44, %v269_v46 }
  0x5a   :  { %1714 = vmatpush1.bf16.msra.mxu0 %v3133_v55  ;;  %1820 = vmatpush1.bf16.msra.mxu1 %v3135_v56  ;;  %v3197_v55 = vcombine.low %v264_v42, %v268_v43  ;;  %v3199_v56 = vcombine.low %v265_v44, %v269_v46 }
  0x5b   :  { %1715 = vmatprep.subr.bf16.mxu0 %v3142_v57  ;;  %1821 = vmatprep.subr.bf16.mxu1 %v3144_v61  ;;  %v3206_v57 = vcombine.high %v272_v50, %v276_v51  ;;  %v3208_v61 = vcombine.high %v273_v52, %v277_v54 }
  0x5e   :  { %1716 = vmatpush1.bf16.msra.mxu0 %v3141_v63  ;;  %1822 = vmatpush1.bf16.msra.mxu1 %v3143_v0  ;;  %v3205_v63 = vcombine.low %v272_v50, %v276_v51  ;;  %v3207_v0 = vcombine.low %v273_v52, %v277_v54 }
  0x5f   :  { %1717 = vmatprep.subr.bf16.mxu0 %v3150_v1  ;;  %1823 = vmatprep.subr.bf16.mxu1 %v3152_v5  ;;  %v3214_v1 = vcombine.high %v280_v58, %v284_v59  ;;  %v3216_v5 = vcombine.high %v281_v60, %v285_v62 }
  0x62   :  { %1718 = vmatpush1.bf16.msra.mxu0 %v3149_v7  ;;  %1824 = vmatpush1.bf16.msra.mxu1 %v3151_v8  ;;  %v3213_v7 = vcombine.low %v280_v58, %v284_v59  ;;  %v3215_v8 = vcombine.low %v281_v60, %v285_v62 }
  0x63   :  { %1719 = vmatprep.subr.bf16.mxu0 %v3158_v9  ;;  %1825 = vmatprep.subr.bf16.mxu1 %v3160_v13  ;;  %v4054_v9 = vld [vmem:[%s4749_s0 + $0x8] ss:$16 sps:$4 sm:$0xff]  }
  0x64   :  { %v43_v13 = vld [vmem:[%s4750_s1 + $0x58] sm:$0xff] }
  0x66   :  { %1720 = vmatpush1.bf16.msra.mxu0 %v3157_v15  ;;  %1826 = vmatpush1.bf16.msra.mxu1 %v3159_v16  ;;  %v47_v15 = vld [vmem:[%s4750_s1 + $0x78] sm:$0xff]  ;;  %v2969_v16 = vcombine.low %v34_v2, %v38_v3 }
  0x67   :  { %1721 = vmatprep.subr.bf16.mxu0 %v3166_v17  ;;  %1827 = vmatprep.subr.bf16.mxu1 %v3168_v21  ;;  %v4071_v17 = vld [vmem:[%s4749_s0 + $0x2c] ss:$16 sps:$4 sm:$0xff]   ;;  %v2978_v21 = vcombine.high %v42_v11, %v46_v12  ;;  %v2979_v26 = vcombine.low %v43_v13, %v47_v15 }
  0x6a   :  { %1722 = vmatpush1.bf16.msra.mxu0 %v3165_v23  ;;  %1828 = vmatpush1.bf16.msra.mxu1 %v3167_v24  ;;  %v55_v23 = vld [vmem:[%s4750_s1 + $0xb8] sm:$0xff]  ;;  %v2980_v24 = vcombine.high %v43_v13, %v47_v15 }
  0x6b   :  { %1723 = vmatprep.subr.bf16.mxu0 %v3174_v25  ;;  %1829 = vmatprep.subr.bf16.mxu1 %v3176_v29  ;;  %v2977_v25 = vcombine.low %v42_v11, %v46_v12 }
  0x6e   :  { %1724 = vmatpush1.bf16.msra.mxu0 %v3173_v31  ;;  %1830 = vmatpush1.bf16.msra.mxu1 %v3175_v32 }
  0x6f   :  { %1725 = vmatprep.subr.bf16.mxu0 %v3182_v33  ;;  %1831 = vmatprep.subr.bf16.mxu1 %v3184_v37 }
  0x72   :  { %1726 = vmatpush1.bf16.msra.mxu0 %v3181_v39  ;;  %1832 = vmatpush1.bf16.msra.mxu1 %v3183_v40 }
  0x73   :  { %1727 = vmatprep.subr.bf16.mxu0 %v3190_v41  ;;  %1833 = vmatprep.subr.bf16.mxu1 %v3192_v45 }
  0x76   :  { %1728 = vmatpush1.bf16.msra.mxu0 %v3189_v47  ;;  %1834 = vmatpush1.bf16.msra.mxu1 %v3191_v48 }
  0x77   :  { %1729 = vmatprep.subr.bf16.mxu0 %v3198_v49  ;;  %1835 = vmatprep.subr.bf16.mxu1 %v3200_v53 }
  0x7a   :  { %1730 = vmatpush1.bf16.msra.mxu0 %v3197_v55  ;;  %1836 = vmatpush1.bf16.msra.mxu1 %v3199_v56 }
  0x7b   :  { %1731 = vmatprep.subr.bf16.mxu0 %v3206_v57  ;;  %1837 = vmatprep.subr.bf16.mxu1 %v3208_v61 }
  0x7e   :  { %1732 = vmatpush1.bf16.msra.mxu0 %v3205_v63  ;;  %1838 = vmatpush1.bf16.msra.mxu1 %v3207_v0 }
  0x7f   :  { %1733 = vmatprep.subr.bf16.mxu0 %v3214_v1  ;;  %1839 = vmatprep.subr.bf16.mxu1 %v3216_v5 }
  0x82   :  { %1734 = vmatpush1.bf16.msra.mxu0 %v3213_v7  ;;  %1840 = vmatpush1.bf16.msra.mxu1 %v3215_v8 }
  0x83   :  { %1862 = vmatprep.subr.bf16.mxu0 %v2970_v10  ;;  %1968 = vmatprep.subr.bf16.mxu1 %v2972_v14 }
  0x85   :  { %1736 = vmatmul.mubr.bf16.vlgmr.msra.gmra.mrb[0].mxu0 %v4054_v9  ;;  %1842 = vmatmul.mubr.bf16.vlgmr.msra.gmra.mrb[0].mxu1 %v4054_v9 }
  0x86   :  { %1863 = vmatpush1.bf16.msra.mxu0 %v2969_v16  ;;  %1969 = vmatpush1.bf16.msra.mxu1 %v2971_v20 }
  0x87   :  { %1864 = vmatprep.subr.bf16.mxu0 %v2978_v21 }
  0x88   :  { %12 = vsyncpa [#allocation3], 0  ;;  %1970 = vmatprep.subr.bf16.mxu1 %v2980_v24  ;;  %1745 = vmatprep.mubr.bf16.mxu0 %v4071_v17  ;;  %v2988_v28 = vcombine.high %v51_v22, %v55_v23  ;;  %v58_v29 = vld [vmem:[%s4750_s1 + $0xd0] sm:$0xff]  ;;  %v4098_v31 = vld [vmem:[%s4749_s0 + $0x28] ss:$16 sps:$4 sm:$0xff]   ;;  %v2985_v34 = vcombine.low %v50_v18, %v54_v19  ;;  %v2987_v35 = vcombine.low %v51_v22, %v55_v23 }
  0x89   :  { %v62_v30 = vld [vmem:[%s4750_s1 + $0xf0] sm:$0xff]  ;;  %1851 = vmatprep.mubr.bf16.mxu1 %v4071_v17  ;;  %v59_v32 = vld [vmem:[%s4750_s1 + $0xd8] sm:$0xff] }
  0x8a   :  { %v63_v33 = vld [vmem:[%s4750_s1 + $0xf8] sm:$0xff]  ;;  %1865 = vmatpush1.bf16.msra.mxu0 %v2977_v25  ;;  %1971 = vmatpush1.bf16.msra.mxu1 %v2979_v26  ;;  %v2994_v36 = vcombine.high %v58_v29, %v62_v30  ;;  %v66_v38 = vld [vmem:[%s4750_s1 + $0x110] sm:$0xff]  ;;  %v2993_v42 = vcombine.low %v58_v29, %v62_v30 }
  0x8b   :  { %1866 = vmatprep.subr.bf16.mxu0 %v2986_v27  ;;  %1972 = vmatprep.subr.bf16.mxu1 %v2988_v28  ;;  %v2996_v37 = vcombine.high %v59_v32, %v63_v33  ;;  %v70_v39 = vld [vmem:[%s4750_s1 + $0x130] sm:$0xff]  ;;  %v67_v40 = vld [vmem:[%s4750_s1 + $0x118] sm:$0xff]  ;;  %v2995_v43 = vcombine.low %v59_v32, %v63_v33 }
  0x8c   :  { %v71_v41 = vld [vmem:[%s4750_s1 + $0x138] sm:$0xff]  ;;  %v3002_v44 = vcombine.high %v66_v38, %v70_v39  ;;  %v74_v46 = vld [vmem:[%s4750_s1 + $0x150] sm:$0xff]  ;;  %v3001_v51 = vcombine.low %v66_v38, %v70_v39 }
  0x8d   :  { %1746 = vmatmul.mubr.bf16.gmra.mrb[4].mxu0 %v4098_v31  ;;  %1852 = vmatmul.mubr.bf16.gmra.mrb[4].mxu1 %v4098_v31  ;;  %v3004_v45 = vcombine.high %v67_v40, %v71_v41  ;;  %v78_v47 = vld [vmem:[%s4750_s1 + $0x170] sm:$0xff]  ;;  %v75_v49 = vld [vmem:[%s4750_s1 + $0x158] sm:$0xff]  ;;  %v3003_v52 = vcombine.low %v67_v40, %v71_v41 }
  0x8e   :  { %1867 = vmatpush1.bf16.msra.mxu0 %v2985_v34  ;;  %1973 = vmatpush1.bf16.msra.mxu1 %v2987_v35  ;;  %v3573_v48 = vld [vmem:[%s4749_s0 + $0x4] ss:$16 sps:$4 sm:$0xff]   ;;  %v79_v50 = vld [vmem:[%s4750_s1 + $0x178] sm:$0xff]  ;;  %v3010_v53 = vcombine.high %v74_v46, %v78_v47  ;;  %v3009_v59 = vcombine.low %v74_v46, %v78_v47 }
  0x8f   :  { %1868 = vmatprep.subr.bf16.mxu0 %v2994_v36  ;;  %1974 = vmatprep.subr.bf16.mxu1 %v2996_v37  ;;  %v3012_v54 = vcombine.high %v75_v49, %v79_v50  ;;  %v82_v55 = vld [vmem:[%s4750_s1 + $0x190] sm:$0xff]  ;;  %v83_v57 = vld [vmem:[%s4750_s1 + $0x198] sm:$0xff]  ;;  %v3011_v60 = vcombine.low %v75_v49, %v79_v50 }
  0x90   :  { %1894 = vmatprep.mubr.bf16.mxu0 %v3573_v48  ;;  %2000 = vmatprep.mubr.bf16.mxu1 %v3573_v48  ;;  %v86_v56 = vld [vmem:[%s4750_s1 + $0x1b0] sm:$0xff]  ;;  %v87_v58 = vld [vmem:[%s4750_s1 + $0x1b8] sm:$0xff] }
  0x91   :  { %v3018_v61 = vcombine.high %v82_v55, %v86_v56  ;;  %v3020_v62 = vcombine.high %v83_v57, %v87_v58  ;;  %v90_v63 = vld [vmem:[%s4750_s1 + $0x1d0] sm:$0xff]  ;;  %v91_v1 = vld [vmem:[%s4750_s1 + $0x1d8] sm:$0xff]  ;;  %v3017_v3 = vcombine.low %v82_v55, %v86_v56  ;;  %v3019_v4 = vcombine.low %v83_v57, %v87_v58 }
  0x92   :  { %1869 = vmatpush1.bf16.msra.mxu0 %v2993_v42  ;;  %1975 = vmatpush1.bf16.msra.mxu1 %v2995_v43  ;;  %v94_v0 = vld [vmem:[%s4750_s1 + $0x1f0] sm:$0xff]  ;;  %v95_v2 = vld [vmem:[%s4750_s1 + $0x1f8] sm:$0xff] }
  0x93   :  { %1870 = vmatprep.subr.bf16.mxu0 %v3002_v44  ;;  %1976 = vmatprep.subr.bf16.mxu1 %v3004_v45  ;;  %v3026_v5 = vcombine.high %v90_v63, %v94_v0  ;;  %v3028_v6 = vcombine.high %v91_v1, %v95_v2  ;;  %v98_v7 = vld [vmem:[%s4750_s1 + $0x210] sm:$0xff]  ;;  %v99_v10 = vld [vmem:[%s4750_s1 + $0x218] sm:$0xff]  ;;  %v3025_v12 = vcombine.low %v90_v63, %v94_v0 }
  0x94   :  { %v102_v8 = vld [vmem:[%s4750_s1 + $0x230] sm:$0xff]  ;;  %v103_v11 = vld [vmem:[%s4750_s1 + $0x238] sm:$0xff]  ;;  %v3027_v13 = vcombine.low %v91_v1, %v95_v2 }
  0x95   :  { %v3034_v14 = vcombine.high %v98_v7, %v102_v8  ;;  %v3036_v15 = vcombine.high %v99_v10, %v103_v11  ;;  %v106_v16 = vld [vmem:[%s4750_s1 + $0x250] sm:$0xff]  ;;  %v107_v19 = vld [vmem:[%s4750_s1 + $0x258] sm:$0xff]  ;;  %v3033_v21 = vcombine.low %v98_v7, %v102_v8  ;;  %v3035_v22 = vcombine.low %v99_v10, %v103_v11 }
  0x96   :  { %1871 = vmatpush1.bf16.msra.mxu0 %v3001_v51  ;;  %1977 = vmatpush1.bf16.msra.mxu1 %v3003_v52  ;;  %v110_v18 = vld [vmem:[%s4750_s1 + $0x270] sm:$0xff]  ;;  %v111_v20 = vld [vmem:[%s4750_s1 + $0x278] sm:$0xff] }
  0x97   :  { %1872 = vmatprep.subr.bf16.mxu0 %v3010_v53  ;;  %1978 = vmatprep.subr.bf16.mxu1 %v3012_v54  ;;  %v3042_v23 = vcombine.high %v106_v16, %v110_v18  ;;  %v3044_v24 = vcombine.high %v107_v19, %v111_v20  ;;  %v114_v25 = vld [vmem:[%s4750_s1 + $0x290] sm:$0xff]  ;;  %v115_v27 = vld [vmem:[%s4750_s1 + $0x298] sm:$0xff]  ;;  %v3041_v29 = vcombine.low %v106_v16, %v110_v18 }
  0x98   :  { %v118_v26 = vld [vmem:[%s4750_s1 + $0x2b0] sm:$0xff]  ;;  %v119_v28 = vld [vmem:[%s4750_s1 + $0x2b8] sm:$0xff]  ;;  %v3043_v30 = vcombine.low %v107_v19, %v111_v20 }
  0x99   :  { %v3050_v32 = vcombine.high %v114_v25, %v118_v26  ;;  %v3052_v33 = vcombine.high %v115_v27, %v119_v28  ;;  %v122_v34 = vld [vmem:[%s4750_s1 + $0x2d0] sm:$0xff]  ;;  %v123_v36 = vld [vmem:[%s4750_s1 + $0x2d8] sm:$0xff]  ;;  %v3049_v38 = vcombine.low %v114_v25, %v118_v26  ;;  %v3051_v39 = vcombine.low %v115_v27, %v119_v28 }
  0x9a   :  { %1873 = vmatpush1.bf16.msra.mxu0 %v3009_v59  ;;  %1979 = vmatpush1.bf16.msra.mxu1 %v3011_v60  ;;  %v126_v35 = vld [vmem:[%s4750_s1 + $0x2f0] sm:$0xff]  ;;  %v127_v37 = vld [vmem:[%s4750_s1 + $0x2f8] sm:$0xff] }
  0x9b   :  { %1874 = vmatprep.subr.bf16.mxu0 %v3018_v61  ;;  %1980 = vmatprep.subr.bf16.mxu1 %v3020_v62  ;;  %v3058_v40 = vcombine.high %v122_v34, %v126_v35  ;;  %v3060_v41 = vcombine.high %v123_v36, %v127_v37  ;;  %v130_v42 = vld [vmem:[%s4750_s1 + $0x310] sm:$0xff]  ;;  %v131_v44 = vld [vmem:[%s4750_s1 + $0x318] sm:$0xff]  ;;  %v3057_v46 = vcombine.low %v122_v34, %v126_v35 }
  0x9c   :  { %v134_v43 = vld [vmem:[%s4750_s1 + $0x330] sm:$0xff]  ;;  %v135_v45 = vld [vmem:[%s4750_s1 + $0x338] sm:$0xff]  ;;  %v3059_v47 = vcombine.low %v123_v36, %v127_v37 }
  0x9d   :  { %v3066_v48 = vcombine.high %v130_v42, %v134_v43  ;;  %v3068_v49 = vcombine.high %v131_v44, %v135_v45  ;;  %v138_v50 = vld [vmem:[%s4750_s1 + $0x350] sm:$0xff]  ;;  %v139_v52 = vld [vmem:[%s4750_s1 + $0x358] sm:$0xff]  ;;  %v3065_v54 = vcombine.low %v130_v42, %v134_v43  ;;  %v3067_v55 = vcombine.low %v131_v44, %v135_v45 }
  0x9e   :  { %1875 = vmatpush1.bf16.msra.mxu0 %v3017_v3  ;;  %1981 = vmatpush1.bf16.msra.mxu1 %v3019_v4  ;;  %v142_v51 = vld [vmem:[%s4750_s1 + $0x370] sm:$0xff]  ;;  %v143_v53 = vld [vmem:[%s4750_s1 + $0x378] sm:$0xff] }
  0x9f   :  { %1876 = vmatprep.subr.bf16.mxu0 %v3026_v5  ;;  %1982 = vmatprep.subr.bf16.mxu1 %v3028_v6  ;;  %v3074_v56 = vcombine.high %v138_v50, %v142_v51  ;;  %v3076_v57 = vcombine.high %v139_v52, %v143_v53  ;;  %v146_v58 = vld [vmem:[%s4750_s1 + $0x390] sm:$0xff]  ;;  %v147_v60 = vld [vmem:[%s4750_s1 + $0x398] sm:$0xff]  ;;  %v3073_v62 = vcombine.low %v138_v50, %v142_v51 }
  0xa0   :  { %v150_v59 = vld [vmem:[%s4750_s1 + $0x3b0] sm:$0xff]  ;;  %v151_v61 = vld [vmem:[%s4750_s1 + $0x3b8] sm:$0xff]  ;;  %v3075_v63 = vcombine.low %v139_v52, %v143_v53 }
  0xa1   :  { %v3082_v0 = vcombine.high %v146_v58, %v150_v59  ;;  %v3084_v1 = vcombine.high %v147_v60, %v151_v61  ;;  %v154_v2 = vld [vmem:[%s4750_s1 + $0x3d0] sm:$0xff]  ;;  %v155_v4 = vld [vmem:[%s4750_s1 + $0x3d8] sm:$0xff]  ;;  %v3081_v6 = vcombine.low %v146_v58, %v150_v59  ;;  %v3083_v7 = vcombine.low %v147_v60, %v151_v61 }
  0xa2   :  { %1877 = vmatpush1.bf16.msra.mxu0 %v3025_v12  ;;  %1983 = vmatpush1.bf16.msra.mxu1 %v3027_v13  ;;  %v158_v3 = vld [vmem:[%s4750_s1 + $0x3f0] sm:$0xff]  ;;  %v159_v5 = vld [vmem:[%s4750_s1 + $0x3f8] sm:$0xff] }
  0xa3   :  { %1878 = vmatprep.subr.bf16.mxu0 %v3034_v14  ;;  %1984 = vmatprep.subr.bf16.mxu1 %v3036_v15  ;;  %v3090_v8 = vcombine.high %v154_v2, %v158_v3  ;;  %v3092_v10 = vcombine.high %v155_v4, %v159_v5  ;;  %v162_v11 = vld [vmem:[%s4750_s1 + $0x410] sm:$0xff]  ;;  %v163_v13 = vld [vmem:[%s4750_s1 + $0x418] sm:$0xff]  ;;  %v3089_v15 = vcombine.low %v154_v2, %v158_v3 }
  0xa4   :  { %v166_v12 = vld [vmem:[%s4750_s1 + $0x430] sm:$0xff]  ;;  %v167_v14 = vld [vmem:[%s4750_s1 + $0x438] sm:$0xff]  ;;  %v3091_v16 = vcombine.low %v155_v4, %v159_v5 }
  0xa5   :  { %v3098_v18 = vcombine.high %v162_v11, %v166_v12  ;;  %v3100_v19 = vcombine.high %v163_v13, %v167_v14  ;;  %v170_v20 = vld [vmem:[%s4750_s1 + $0x450] sm:$0xff]  ;;  %v3099_v25 = vcombine.low %v163_v13, %v167_v14  ;;  %v191_v42 = vld [vmem:[%s4750_s1 + $0x4f8] sm:$0xff] }
  0xa6   :  { %1879 = vmatpush1.bf16.msra.mxu0 %v3033_v21  ;;  %1985 = vmatpush1.bf16.msra.mxu1 %v3035_v22  ;;  %v174_v21 = vld [vmem:[%s4750_s1 + $0x470] sm:$0xff]  ;;  %v171_v22 = vld [vmem:[%s4750_s1 + $0x458] sm:$0xff] }
  0xa7   :  { %1880 = vmatprep.subr.bf16.mxu0 %v3042_v23  ;;  %1986 = vmatprep.subr.bf16.mxu1 %v3044_v24  ;;  %v175_v23 = vld [vmem:[%s4750_s1 + $0x478] sm:$0xff]  ;;  %v3097_v24 = vcombine.low %v162_v11, %v166_v12  ;;  %v3106_v26 = vcombine.high %v170_v20, %v174_v21  ;;  %v178_v28 = vld [vmem:[%s4750_s1 + $0x490] sm:$0xff]  ;;  %v3105_v34 = vcombine.low %v170_v20, %v174_v21 }
  0xa8   :  { %v3108_v27 = vcombine.high %v171_v22, %v175_v23  ;;  %v3107_v35 = vcombine.low %v171_v22, %v175_v23  ;;  %v199_v50 = vld [vmem:[%s4750_s1 + $0x538] sm:$0xff]  ;;  %v3576_v51 = vld [vmem:[%s4749_s0 + $0x20] ss:$16 sps:$4 sm:$0xff]  }
  0xa9   :  { %v3577_v58 = vld [vmem:[%s4749_s0 + $0xc] ss:$16 sps:$4 sm:$0xff]   ;;  %v214_v2 = vld [vmem:[%s4750_s1 + $0x5b0] sm:$0xff] }
  0xaa   :  { %1881 = vmatpush1.bf16.msra.mxu0 %v3041_v29  ;;  %1987 = vmatpush1.bf16.msra.mxu1 %v3043_v30  ;;  %v182_v29 = vld [vmem:[%s4750_s1 + $0x4b0] sm:$0xff]  ;;  %v203_v59 = vld [vmem:[%s4750_s1 + $0x558] sm:$0xff] }
  0xab   :  { %1882 = vmatprep.subr.bf16.mxu0 %v3050_v32  ;;  %1988 = vmatprep.subr.bf16.mxu1 %v3052_v33  ;;  %v3574_v30 = vld [vmem:[%s4749_s0] ss:$16 sps:$4 sm:$0xff]   ;;  %v179_v32 = vld [vmem:[%s4750_s1 + $0x498] sm:$0xff]  ;;  %v3114_v36 = vcombine.high %v178_v28, %v182_v29  ;;  %v3113_v43 = vcombine.low %v178_v28, %v182_v29 }
  0xac   :  { %v183_v33 = vld [vmem:[%s4750_s1 + $0x4b8] sm:$0xff]  ;;  %v222_v11 = vld [vmem:[%s4750_s1 + $0x5f0] sm:$0xff] }
  0xad   :  { %v3116_v37 = vcombine.high %v179_v32, %v183_v33  ;;  %v3115_v44 = vcombine.low %v179_v32, %v183_v33  ;;  %v207_v60 = vld [vmem:[%s4750_s1 + $0x578] sm:$0xff]  ;;  %v230_v20 = vld [vmem:[%s4750_s1 + $0x630] sm:$0xff] }
  0xae   :  { %1883 = vmatpush1.bf16.msra.mxu0 %v3049_v38  ;;  %1989 = vmatpush1.bf16.msra.mxu1 %v3051_v39  ;;  %v186_v38 = vld [vmem:[%s4750_s1 + $0x4d0] sm:$0xff]  ;;  %v211_v3 = vld [vmem:[%s4750_s1 + $0x598] sm:$0xff] }
  0xaf   :  { %1884 = vmatprep.subr.bf16.mxu0 %v3058_v40  ;;  %1990 = vmatprep.subr.bf16.mxu1 %v3060_v41  ;;  %v190_v39 = vld [vmem:[%s4750_s1 + $0x4f0] sm:$0xff]  ;;  %v187_v41 = vld [vmem:[%s4750_s1 + $0x4d8] sm:$0xff] }
  0xb0   :  { %v3575_v40 = vld [vmem:[%s4749_s0 + $0x24] ss:$16 sps:$4 sm:$0xff]   ;;  %v3122_v45 = vcombine.high %v186_v38, %v190_v39  ;;  %v3121_v52 = vcombine.low %v186_v38, %v190_v39  ;;  %v3123_v53 = vcombine.low %v187_v41, %v191_v42  ;;  %v215_v4 = vld [vmem:[%s4750_s1 + $0x5b8] sm:$0xff] }
  0xb1   :  { %v219_v12 = vld [vmem:[%s4750_s1 + $0x5d8] sm:$0xff]  ;;  %v238_v28 = vld [vmem:[%s4750_s1 + $0x670] sm:$0xff] }
  0xb2   :  { %1885 = vmatpush1.bf16.msra.mxu0 %v3057_v46  ;;  %1991 = vmatpush1.bf16.msra.mxu1 %v3059_v47  ;;  %v3124_v46 = vcombine.high %v187_v41, %v191_v42  ;;  %v194_v47 = vld [vmem:[%s4750_s1 + $0x510] sm:$0xff]  ;;  %v223_v13 = vld [vmem:[%s4750_s1 + $0x5f8] sm:$0xff] }
  0xb3   :  { %1886 = vmatprep.subr.bf16.mxu0 %v3066_v48  ;;  %1992 = vmatprep.subr.bf16.mxu1 %v3068_v49  ;;  %v198_v48 = vld [vmem:[%s4750_s1 + $0x530] sm:$0xff]  ;;  %v195_v49 = vld [vmem:[%s4750_s1 + $0x518] sm:$0xff] }
  0xb4   :  { %v3129_v61 = vcombine.low %v194_v47, %v198_v48  ;;  %v227_v21 = vld [vmem:[%s4750_s1 + $0x618] sm:$0xff] }
  0xb5   :  { %v231_v22 = vld [vmem:[%s4750_s1 + $0x638] sm:$0xff] }
  0xb6   :  { %1887 = vmatpush1.bf16.msra.mxu0 %v3065_v54  ;;  %1993 = vmatpush1.bf16.msra.mxu1 %v3067_v55  ;;  %v3130_v54 = vcombine.high %v194_v47, %v198_v48  ;;  %v3132_v55 = vcombine.high %v195_v49, %v199_v50  ;;  %v235_v29 = vld [vmem:[%s4750_s1 + $0x658] sm:$0xff]  ;;  %v3163_v33 = vcombine.low %v227_v21, %v231_v22 }
  0xb7   :  { %1888 = vmatprep.subr.bf16.mxu0 %v3074_v56  ;;  %1994 = vmatprep.subr.bf16.mxu1 %v3076_v57  ;;  %v202_v56 = vld [vmem:[%s4750_s1 + $0x550] sm:$0xff]  ;;  %v243_v38 = vld [vmem:[%s4750_s1 + $0x698] sm:$0xff] }
  0xb8   :  { %v206_v57 = vld [vmem:[%s4750_s1 + $0x570] sm:$0xff]  ;;  %v247_v39 = vld [vmem:[%s4750_s1 + $0x6b8] sm:$0xff] }
  0xb9   :  { %v3137_v5 = vcombine.low %v202_v56, %v206_v57  ;;  %v255_v47 = vld [vmem:[%s4750_s1 + $0x6f8] sm:$0xff] }
  0xba   :  { %1889 = vmatpush1.bf16.msra.mxu0 %v3073_v62  ;;  %1995 = vmatpush1.bf16.msra.mxu1 %v3075_v63  ;;  %v3131_v62 = vcombine.low %v195_v49, %v199_v50  ;;  %v3138_v63 = vcombine.high %v202_v56, %v206_v57  ;;  %v3179_v49 = vcombine.low %v243_v38, %v247_v39 }
  0xbb   :  { %1890 = vmatprep.subr.bf16.mxu0 %v3082_v0  ;;  %1996 = vmatprep.subr.bf16.mxu1 %v3084_v1  ;;  %v3140_v0 = vcombine.high %v203_v59, %v207_v60  ;;  %v210_v1 = vld [vmem:[%s4750_s1 + $0x590] sm:$0xff] }
  0xbc   :  { %v3145_v14 = vcombine.low %v210_v1, %v214_v2 }
  0xbe   :  { %1891 = vmatpush1.bf16.msra.mxu0 %v3081_v6  ;;  %1997 = vmatpush1.bf16.msra.mxu1 %v3083_v7  ;;  %v3139_v6 = vcombine.low %v203_v59, %v207_v60  ;;  %v3146_v7 = vcombine.high %v210_v1, %v214_v2  ;;  %v266_v60 = vld [vmem:[%s4750_s1 + $0x750] sm:$0xff] }
  0xbf   :  { %1892 = vmatprep.subr.bf16.mxu0 %v3090_v8  ;;  %1998 = vmatprep.subr.bf16.mxu1 %v3092_v10  ;;  %v3148_v8 = vcombine.high %v211_v3, %v215_v4  ;;  %v218_v10 = vld [vmem:[%s4750_s1 + $0x5d0] sm:$0xff] }
  0xc0   :  { %v3153_v23 = vcombine.low %v218_v10, %v222_v11 }
  0xc2   :  { %1893 = vmatpush1.bf16.msra.mxu0 %v3089_v15  ;;  %1999 = vmatpush1.bf16.msra.mxu1 %v3091_v16  ;;  %v3147_v15 = vcombine.low %v211_v3, %v215_v4  ;;  %v3154_v16 = vcombine.high %v218_v10, %v222_v11  ;;  %v274_v4 = vld [vmem:[%s4750_s1 + $0x790] sm:$0xff] }
  0xc3   :  { %1915 = vmatprep.subr.bf16.mxu0 %v3098_v18  ;;  %2021 = vmatprep.subr.bf16.mxu1 %v3100_v19  ;;  %v3156_v18 = vcombine.high %v219_v12, %v223_v13  ;;  %v226_v19 = vld [vmem:[%s4750_s1 + $0x610] sm:$0xff] }
  0xc4   :  { %v3161_v32 = vcombine.low %v226_v19, %v230_v20 }
  0xc5   :  { %1895 = vmatmul.mubr.bf16.vlgmr.msra.gmra.mrb[8].mxu0 %v3574_v30  ;;  %2001 = vmatmul.mubr.bf16.vlgmr.msra.gmra.mrb[8].mxu1 %v3574_v30  ;;  %v239_v30 = vld [vmem:[%s4750_s1 + $0x678] sm:$0xff] }
  0xc6   :  { %1916 = vmatpush1.bf16.msra.mxu0 %v3097_v24  ;;  %2022 = vmatpush1.bf16.msra.mxu1 %v3099_v25  ;;  %v3155_v24 = vcombine.low %v219_v12, %v223_v13  ;;  %v3162_v25 = vcombine.high %v226_v19, %v230_v20  ;;  %v3171_v41 = vcombine.low %v235_v29, %v239_v30  ;;  %v282_v13 = vld [vmem:[%s4750_s1 + $0x7d0] sm:$0xff] }
  0xc7   :  { %1917 = vmatprep.subr.bf16.mxu0 %v3106_v26  ;;  %2023 = vmatprep.subr.bf16.mxu1 %v3108_v27  ;;  %v3164_v26 = vcombine.high %v227_v21, %v231_v22  ;;  %v234_v27 = vld [vmem:[%s4750_s1 + $0x650] sm:$0xff] }
  0xc8   :  { %1904 = vmatprep.mubr.bf16.mxu0 %v3575_v40  ;;  %2010 = vmatprep.mubr.bf16.mxu1 %v3575_v40  ;;  %v3169_v40 = vcombine.low %v234_v27, %v238_v28 }
  0xca   :  { %1918 = vmatpush1.bf16.msra.mxu0 %v3105_v34  ;;  %2024 = vmatpush1.bf16.msra.mxu1 %v3107_v35  ;;  %v3170_v34 = vcombine.high %v234_v27, %v238_v28  ;;  %v3172_v35 = vcombine.high %v235_v29, %v239_v30  ;;  %v3512_v27 = vld [vmem:[%s4752_s3 + $0x80] sm:$0xff]   ;;  %v3513_v28 = vld [vmem:[%s4752_s3 + $0x48] sm:$0xff]  }
  0xcb   :  { %1919 = vmatprep.subr.bf16.mxu0 %v3114_v36  ;;  %2025 = vmatprep.subr.bf16.mxu1 %v3116_v37  ;;  %v242_v36 = vld [vmem:[%s4750_s1 + $0x690] sm:$0xff]  ;;  %v3514_v29 = vld [vmem:[%s4752_s3 + $0xc8] sm:$0xff]  }
  0xcc   :  { %v246_v37 = vld [vmem:[%s4750_s1 + $0x6b0] sm:$0xff]  ;;  %v3515_v30 = vld [vmem:[%s4752_s3 + $0x8] sm:$0xff]  }
  0xcd   :  { %1905 = vmatmul.mubr.bf16.gmra.mrb[12].mxu0 %v3576_v51  ;;  %2011 = vmatmul.mubr.bf16.gmra.mrb[12].mxu1 %v3576_v51  ;;  %v3178_v42 = vcombine.high %v242_v36, %v246_v37  ;;  %v3177_v48 = vcombine.low %v242_v36, %v246_v37  ;;  %v3522_v36 = vld [vmem:[%s4752_s3 + $0xd8] sm:$0xff]  }
  0xce   :  { %1920 = vmatpush1.bf16.msra.mxu0 %v3113_v43  ;;  %2026 = vmatpush1.bf16.msra.mxu1 %v3115_v44  ;;  %v3180_v43 = vcombine.high %v243_v38, %v247_v39  ;;  %v250_v44 = vld [vmem:[%s4750_s1 + $0x6d0] sm:$0xff]  ;;  %v3523_v37 = vld [vmem:[%s4752_s3 + $0x18] sm:$0xff]   ;;  %v3525_v39 = vld [vmem:[%s4752_s3 + $0x60] sm:$0xff]  }
  0xcf   :  { %1921 = vmatprep.subr.bf16.mxu0 %v3122_v45  ;;  %2027 = vmatprep.subr.bf16.mxu1 %v3124_v46  ;;  %v254_v45 = vld [vmem:[%s4750_s1 + $0x6f0] sm:$0xff]  ;;  %v251_v46 = vld [vmem:[%s4750_s1 + $0x6d8] sm:$0xff] }
  0xd0   :  { %1947 = vmatprep.mubr.bf16.mxu0 %v3577_v58  ;;  %2053 = vmatprep.mubr.bf16.mxu1 %v3577_v58  ;;  %v3186_v50 = vcombine.high %v250_v44, %v254_v45  ;;  %v3188_v51 = vcombine.high %v251_v46, %v255_v47  ;;  %v3185_v56 = vcombine.low %v250_v44, %v254_v45  ;;  %v3524_v38 = vld [vmem:[%s4752_s3 + $0x98] sm:$0xff]   ;;  %v3531_v44 = vld [vmem:[%s4752_s3 + $0x28] sm:$0xff]  }
  0xd1   :  { %v3187_v57 = vcombine.low %v251_v46, %v255_v47  ;;  %v3532_v45 = vld [vmem:[%s4752_s3 + $0xa8] sm:$0xff]   ;;  %v3533_v46 = vld [vmem:[%s4752_s3 + $0x70] sm:$0xff]  }
  0xd2   :  { %1922 = vmatpush1.bf16.msra.mxu0 %v3121_v52  ;;  %2028 = vmatpush1.bf16.msra.mxu1 %v3123_v53  ;;  %v258_v52 = vld [vmem:[%s4750_s1 + $0x710] sm:$0xff] }
  0xd3   :  { %1923 = vmatprep.subr.bf16.mxu0 %v3130_v54  ;;  %2029 = vmatprep.subr.bf16.mxu1 %v3132_v55  ;;  %v262_v53 = vld [vmem:[%s4750_s1 + $0x730] sm:$0xff]  ;;  %v259_v54 = vld [vmem:[%s4750_s1 + $0x718] sm:$0xff] }
  0xd4   :  { %v263_v55 = vld [vmem:[%s4750_s1 + $0x738] sm:$0xff]  ;;  %v3194_v58 = vcombine.high %v258_v52, %v262_v53  ;;  %v3534_v47 = vld [vmem:[%s4752_s3 + $0xf0] sm:$0xff]  }
  0xd5   :  { %v3196_v59 = vcombine.high %v259_v54, %v263_v55  ;;  %v3195_v1 = vcombine.low %v259_v54, %v263_v55  ;;  %v3541_v54 = vld [vmem:[%s4752_s3 + $0x140] sm:$0xff]  }
  0xd6   :  { %1924 = vmatpush1.bf16.msra.mxu0 %v3129_v61  ;;  %2030 = vmatpush1.bf16.msra.mxu1 %v3131_v62  ;;  %v270_v61 = vld [vmem:[%s4750_s1 + $0x770] sm:$0xff]  ;;  %v267_v62 = vld [vmem:[%s4750_s1 + $0x758] sm:$0xff]  ;;  %v3542_v55 = vld [vmem:[%s4752_s3 + $0x1c0] sm:$0xff]  }
  0xd7   :  { %1925 = vmatprep.subr.bf16.mxu0 %v3138_v63  ;;  %2031 = vmatprep.subr.bf16.mxu1 %v3140_v0  ;;  %v271_v63 = vld [vmem:[%s4750_s1 + $0x778] sm:$0xff]  ;;  %v3193_v0 = vcombine.low %v258_v52, %v262_v53  ;;  %v3202_v2 = vcombine.high %v266_v60, %v270_v61 }
  0xd8   :  { %v3204_v3 = vcombine.high %v267_v62, %v271_v63  ;;  %v3203_v10 = vcombine.low %v267_v62, %v271_v63  ;;  %v3539_v52 = vld [vmem:[%s4752_s3 + $0x38] sm:$0xff]  }
  0xd9   :  { %v3540_v53 = vld [vmem:[%s4752_s3 + $0xb8] sm:$0xff]  }
  0xda   :  { %1926 = vmatpush1.bf16.msra.mxu0 %v3137_v5  ;;  %2032 = vmatpush1.bf16.msra.mxu1 %v3139_v6  ;;  %v278_v5 = vld [vmem:[%s4750_s1 + $0x7b0] sm:$0xff]  ;;  %v275_v6 = vld [vmem:[%s4750_s1 + $0x798] sm:$0xff] }
  0xdb   :  { %1927 = vmatprep.subr.bf16.mxu0 %v3146_v7  ;;  %2033 = vmatprep.subr.bf16.mxu1 %v3148_v8  ;;  %v279_v7 = vld [vmem:[%s4750_s1 + $0x7b8] sm:$0xff]  ;;  %v3201_v8 = vcombine.low %v266_v60, %v270_v61  ;;  %v3210_v11 = vcombine.high %v274_v4, %v278_v5 }
  0xdc   :  { %v3212_v12 = vcombine.high %v275_v6, %v279_v7  ;;  %v3211_v19 = vcombine.low %v275_v6, %v279_v7 }
  0xde   :  { %1928 = vmatpush1.bf16.msra.mxu0 %v3145_v14  ;;  %2034 = vmatpush1.bf16.msra.mxu1 %v3147_v15  ;;  %v286_v14 = vld [vmem:[%s4750_s1 + $0x7f0] sm:$0xff]  ;;  %v283_v15 = vld [vmem:[%s4750_s1 + $0x7d8] sm:$0xff] }
  0xdf   :  { %1929 = vmatprep.subr.bf16.mxu0 %v3154_v16  ;;  %2035 = vmatprep.subr.bf16.mxu1 %v3156_v18  ;;  %v287_v16 = vld [vmem:[%s4750_s1 + $0x7f8] sm:$0xff]  ;;  %v3209_v18 = vcombine.low %v274_v4, %v278_v5  ;;  %v3218_v20 = vcombine.high %v282_v13, %v286_v14  ;;  %v3217_v22 = vcombine.low %v282_v13, %v286_v14 }
  0xe0   :  { %v3220_v21 = vcombine.high %v283_v15, %v287_v16 }
  0xe2   :  { %1930 = vmatpush1.bf16.msra.mxu0 %v3153_v23  ;;  %2036 = vmatpush1.bf16.msra.mxu1 %v3155_v24  ;;  %v3219_v23 = vcombine.low %v283_v15, %v287_v16  ;;  %v3509_v24 = vld [vmem:[%s4752_s3 + $0x40] sm:$0xff]  }
  0xe3   :  { %1931 = vmatprep.subr.bf16.mxu0 %v3162_v25  ;;  %2037 = vmatprep.subr.bf16.mxu1 %v3164_v26  ;;  %v3510_v25 = vld [vmem:[%s4752_s3 + $0xc0] sm:$0xff]  }
  0xe4   :  { %v3511_v26 = vld [vmem:[%s4752_s3] sm:$0xff]  }
  0xe6   :  { %1932 = vmatpush1.bf16.msra.mxu0 %v3161_v32  ;;  %2038 = vmatpush1.bf16.msra.mxu1 %v3163_v33  ;;  %v3516_v32 = vld [vmem:[%s4752_s3 + $0x88] sm:$0xff]   ;;  %v3517_v33 = vld [vmem:[%s4752_s3 + $0x50] sm:$0xff]  }
  0xe7   :  { %1933 = vmatprep.subr.bf16.mxu0 %v3170_v34  ;;  %2039 = vmatprep.subr.bf16.mxu1 %v3172_v35  ;;  %v3520_v34 = vld [vmem:[%s4752_s3 + $0x90] sm:$0xff]   ;;  %v3521_v35 = vld [vmem:[%s4752_s3 + $0x58] sm:$0xff]  }
  0xea   :  { %1934 = vmatpush1.bf16.msra.mxu0 %v3169_v40  ;;  %2040 = vmatpush1.bf16.msra.mxu1 %v3171_v41  ;;  %v3527_v40 = vld [vmem:[%s4752_s3 + $0x20] sm:$0xff]  }
  0xeb   :  { %1935 = vmatprep.subr.bf16.mxu0 %v3178_v42  ;;  %2041 = vmatprep.subr.bf16.mxu1 %v3180_v43  ;;  %v3528_v41 = vld [vmem:[%s4752_s3 + $0xa0] sm:$0xff]   ;;  %v3529_v42 = vld [vmem:[%s4752_s3 + $0x68] sm:$0xff]  }
  0xec   :  { %v3530_v43 = vld [vmem:[%s4752_s3 + $0xe8] sm:$0xff]  }
  0xee   :  { %1936 = vmatpush1.bf16.msra.mxu0 %v3177_v48  ;;  %2042 = vmatpush1.bf16.msra.mxu1 %v3179_v49  ;;  %v3535_v48 = vld [vmem:[%s4752_s3 + $0x30] sm:$0xff]  }
  0xef   :  { %1937 = vmatprep.subr.bf16.mxu0 %v3186_v50  ;;  %2043 = vmatprep.subr.bf16.mxu1 %v3188_v51  ;;  %v3536_v49 = vld [vmem:[%s4752_s3 + $0xb0] sm:$0xff]   ;;  %v3537_v50 = vld [vmem:[%s4752_s3 + $0x78] sm:$0xff]  }
  0xf0   :  { %v3538_v51 = vld [vmem:[%s4752_s3 + $0xf8] sm:$0xff]  }
  0xf2   :  { %1938 = vmatpush1.bf16.msra.mxu0 %v3185_v56  ;;  %2044 = vmatpush1.bf16.msra.mxu1 %v3187_v57  ;;  %v290_v56 = vlaneseq }
  0xf3   :  { %1939 = vmatprep.subr.bf16.mxu0 %v3194_v58  ;;  %2045 = vmatprep.subr.bf16.mxu1 %v3196_v59  ;;  %v4573_v59 = vld [vmem:[%s4751_s2] sm:$0xff] }
  0xf4   :  { %v4567_v57 = vshrl.u32 %v290_v56, 7 }
  0xf6   :  { %1940 = vmatpush1.bf16.msra.mxu0 %v3193_v0  ;;  %2046 = vmatpush1.bf16.msra.mxu1 %v3195_v1  ;;  %v292_v58 = vsub.s32 0, %v4567_v57  ;;  %v300_v60 = vsub.s32 2, %v4567_v57  ;;  %v296_v61 = vsub.s32 1, %v4567_v57  ;;  %v304_v62 = vsub.s32 3, %v4567_v57 }
  0xf7   :  { %1941 = vmatprep.subr.bf16.mxu0 %v3202_v2  ;;  %2047 = vmatprep.subr.bf16.mxu1 %v3204_v3 }
  0xf8   :  { %v293_v63 = vrot.slane %v4573_v59, %v292_v58  ;;  %v301_v0 = vrot.slane %v4573_v59, %v300_v60  ;;  %v297_v1 = vrot.slane %v4573_v59, %v296_v61  ;;  %v4582_v2 = vrot.slane %v4573_v59, %v304_v62  ;;  %v3547_v58 = vld [vmem:[%s4752_s3 + $0x108] sm:$0xff]  }
  0xfa   :  { %1942 = vmatpush1.bf16.msra.mxu0 %v3201_v8  ;;  %2048 = vmatpush1.bf16.msra.mxu1 %v3203_v10 }
  0xfb   :  { %1943 = vmatprep.subr.bf16.mxu0 %v3210_v11  ;;  %2049 = vmatprep.subr.bf16.mxu1 %v3212_v12 }
  0xfe   :  { %1944 = vmatpush1.bf16.msra.mxu0 %v3209_v18  ;;  %2050 = vmatpush1.bf16.msra.mxu1 %v3211_v19 }
  0xff   :  { %1945 = vmatprep.subr.bf16.mxu0 %v3218_v20  ;;  %2051 = vmatprep.subr.bf16.mxu1 %v3220_v21 }
 0x102   :  { %1946 = vmatpush1.bf16.msra.mxu0 %v3217_v22  ;;  %2052 = vmatpush1.bf16.msra.mxu1 %v3219_v23 }
 0x103   :  { %3318 = vmatprep.subr.bf16.mxu0 %v3509_v24  ;;  %3346 = vmatprep.subr.bf16.mxu1 %v3510_v25 }
 0x105   :  { %1948 = vmatmul.mubr.bf16.vlgmr.msra.gmra.mrb[8].mxu0 %v4054_v9  ;;  %2054 = vmatmul.mubr.bf16.vlgmr.msra.gmra.mrb[8].mxu1 %v4054_v9  ;;  %v3518_v9 = vld [vmem:[%s4752_s3 + $0xd0] sm:$0xff]  }
 0x106   :  { %1957 = vmatprep.mubr.bf16.mxu0 %v4071_v17  ;;  %2063 = vmatprep.mubr.bf16.mxu1 %v4071_v17  ;;  %v3519_v17 = vld [vmem:[%s4752_s3 + $0x10] sm:$0xff]  }
 0x107   :  { %3319 = vmatpush3.bf16.msra.mxu0 %v3511_v26  ;;  %3347 = vmatpush3.bf16.msra.mxu1 %v3512_v27 }
 0x108   :  { %3320 = vmatprep.subr.bf16.mxu0 %v3513_v28  ;;  %3348 = vmatprep.subr.bf16.mxu1 %v3514_v29 }
 0x10b   :  { %3321 = vmatpush3.bf16.msra.mxu0 %v3515_v30  ;;  %3349 = vmatpush3.bf16.msra.mxu1 %v3516_v32 }
 0x10c   :  { %3322 = vmatprep.subr.bf16.mxu0 %v3517_v33  ;;  %3350 = vmatprep.subr.bf16.mxu1 %v3518_v9 }
 0x10d   :  { %1958 = vmatmul.mubr.bf16.gmra.mrb[12].mxu0 %v4098_v31  ;;  %2064 = vmatmul.mubr.bf16.gmra.mrb[12].mxu1 %v4098_v31  ;;  %v3526_v31 = vld [vmem:[%s4752_s3 + $0xe0] sm:$0xff]  }
 0x10f   :  { %3323 = vmatpush3.bf16.msra.mxu0 %v3519_v17  ;;  %3351 = vmatpush3.bf16.msra.mxu1 %v3520_v34 }
 0x110   :  { %3324 = vmatprep.subr.bf16.mxu0 %v3521_v35  ;;  %3352 = vmatprep.subr.bf16.mxu1 %v3522_v36  ;;  %v3543_v35 = vld [vmem:[%s4752_s3 + $0x100] sm:$0xff]  }
 0x113   :  { %3325 = vmatpush3.bf16.msra.mxu0 %v3523_v37  ;;  %3353 = vmatpush3.bf16.msra.mxu1 %v3524_v38 }
 0x114   :  { %3326 = vmatprep.subr.bf16.mxu0 %v3525_v39  ;;  %3354 = vmatprep.subr.bf16.mxu1 %v3526_v31 }
 0x117   :  { %3327 = vmatpush3.bf16.msra.mxu0 %v3527_v40  ;;  %3355 = vmatpush3.bf16.msra.mxu1 %v3528_v41  ;;  %v3544_v40 = vld [vmem:[%s4752_s3 + $0x180] sm:$0xff]   ;;  %v3545_v41 = vld [vmem:[%s4752_s3 + $0x148] sm:$0xff]  }
 0x118   :  { %3328 = vmatprep.subr.bf16.mxu0 %v3529_v42  ;;  %3356 = vmatprep.subr.bf16.mxu1 %v3530_v43 }
 0x11b   :  { %3329 = vmatpush3.bf16.msra.mxu0 %v3531_v44  ;;  %3357 = vmatpush3.bf16.msra.mxu1 %v3532_v45 }
 0x11c   :  { %3330 = vmatprep.subr.bf16.mxu0 %v3533_v46  ;;  %3358 = vmatprep.subr.bf16.mxu1 %v3534_v47  ;;  %v3546_v46 = vld [vmem:[%s4752_s3 + $0x1c8] sm:$0xff]  }
 0x11f   :  { %3331 = vmatpush3.bf16.msra.mxu0 %v3535_v48  ;;  %3359 = vmatpush3.bf16.msra.mxu1 %v3536_v49 }
 0x120   :  { %3332 = vmatprep.subr.bf16.mxu0 %v3537_v50  ;;  %3360 = vmatprep.subr.bf16.mxu1 %v3538_v51 }
 0x123   :  { %3333 = vmatpush3.bf16.msra.mxu0 %v3539_v52  ;;  %3361 = vmatpush3.bf16.msra.mxu1 %v3540_v53 }
 0x124   :  { %3374 = vmatprep.subr.bf16.mxu0 %v3541_v54  ;;  %3402 = vmatprep.subr.bf16.mxu1 %v3542_v55 }
 0x158   :  { %v1737_v3 = vpop.f32.mrb[0].mxu0  ;;  %v1843_v5 = vpop.f32.mrb[0].mxu1 }
 0x159   :  { %v3430_v4 = vadd.f32 %v1737_v3, %v293_v63  ;;  %v1739_v6 = vpop.f32.mrb[1].mxu0  ;;  %v3438_v7 = vadd.f32 %v1843_v5, %v301_v0  ;;  %v1845_v10 = vpop.f32.mrb[1].mxu1  ;;  %v3550_v5 = vld [vmem:[%s4752_s3 + $0x1d0] sm:$0xff]  }
 0x15a   :  { %v3431_v8 = vadd.f32 %v1739_v6, %v297_v1  ;;  %v1741_v11 = vpop.f32.mrb[2].mxu0  ;;  %v3439_v13 = vadd.f32 %v1845_v10, %v4582_v2  ;;  %v1847_v15 = vpop.f32.mrb[2].mxu1 }
 0x15b   :  { %v2074_v12 = vmax.f32 %v3430_v4, 0.0  ;;  %v3432_v14 = vadd.f32 %v1741_v11, %v293_v63  ;;  %v1743_v16 = vpop.f32.mrb[3].mxu0  ;;  %v2076_v18 = vmax.f32 %v3438_v7, 0.0  ;;  %v3440_v20 = vadd.f32 %v1847_v15, %v301_v0  ;;  %v1849_v22 = vpop.f32.mrb[3].mxu1  ;;  %v3552_v15 = vld [vmem:[%s4752_s3 + $0x190] sm:$0xff]  }
 0x15c   :  { %v2075_v19 = vmax.f32 %v3431_v8, 0.0  ;;  %v3433_v21 = vadd.f32 %v1743_v16, %v297_v1  ;;  %v2077_v23 = vmax.f32 %v3439_v13, 0.0  ;;  %v3441_v25 = vadd.f32 %v1849_v22, %v4582_v2  ;;  %v3553_v16 = vld [vmem:[%s4752_s3 + $0x158] sm:$0xff]   ;;  %v3558_v22 = vld [vmem:[%s4752_s3 + $0x1e0] sm:$0xff]  }
 0x15d   :  { %v2082_v24 = vmax.f32 %v3432_v14, 0.0  ;;  %v2084_v27 = vmax.f32 %v3440_v20, 0.0  ;;  %v3556_v20 = vld [vmem:[%s4752_s3 + $0x198] sm:$0xff]  }
 0x15e   :  { %v3302_v26 = vpack.c.bf16 %v2075_v19, %v2074_v12  ;;  %v2083_v28 = vmax.f32 %v3433_v21, 0.0  ;;  %v3303_v29 = vpack.c.bf16 %v2077_v23, %v2076_v18  ;;  %v2085_v32 = vmax.f32 %v3441_v25, 0.0  ;;  %v3557_v21 = vld [vmem:[%s4752_s3 + $0x160] sm:$0xff]   ;;  %v3561_v25 = vld [vmem:[%s4752_s3 + $0x168] sm:$0xff]  }
 0x15f   :  { %v2106_v30 = vpack.c.bf16 %v2082_v24, %v2074_v12  ;;  %v2108_v33 = vpack.c.bf16 %v2084_v27, %v2076_v18  ;;  %v3551_v12 = vld [vmem:[%s4752_s3 + $0x110] sm:$0xff]   ;;  %v3554_v18 = vld [vmem:[%s4752_s3 + $0x1d8] sm:$0xff]  }
 0x160   :  { %2202 = vst [vmem:[%s4754_s5] sm:$0xff] %v3302_v26  ;;  %v2107_v9 = vpack.c.bf16 %v2083_v28, %v2075_v19  ;;  %v3306_v17 = vpack.c.bf16 %v2083_v28, %v2082_v24  ;;  %v1747_v34 = vpop.f32.mrb[4].mxu0  ;;  %2203 = vst [vmem:[%s4754_s5 + $0x8] sm:$0xff] %v3303_v29  ;;  %v2109_v36 = vpack.c.bf16 %v2085_v32, %v2077_v23  ;;  %v1853_v39 = vpop.f32.mrb[4].mxu1  ;;  %v3555_v19 = vld [vmem:[%s4752_s3 + $0x118] sm:$0xff]   ;;  %v3559_v23 = vld [vmem:[%s4752_s3 + $0x120] sm:$0xff]  }
 0x161   :  { %v3307_v37 = vpack.c.bf16 %v2085_v32, %v2084_v27  ;;  %v3434_v38 = vadd.f32 %v1747_v34, %v293_v63  ;;  %v1749_v31 = vpop.f32.mrb[5].mxu0  ;;  %v3442_v42 = vadd.f32 %v1853_v39, %v301_v0  ;;  %v1855_v44 = vpop.f32.mrb[5].mxu1  ;;  %v3560_v24 = vld [vmem:[%s4752_s3 + $0x1a0] sm:$0xff]   ;;  %v3562_v26 = vld [vmem:[%s4752_s3 + $0x1e8] sm:$0xff]   ;;  %v3565_v29 = vld [vmem:[%s4752_s3 + $0x170] sm:$0xff]   ;;  %v320_v39 = vsub.s32 7, %v4567_v57 }
 0x162   :  { %2206 = vst [vmem:[%s4754_s5 + $0x20] sm:$0xff] %v3306_v17  ;;  %v3435_v43 = vadd.f32 %v1749_v31, %v297_v1  ;;  %v1751_v45 = vpop.f32.mrb[6].mxu0  ;;  %2769 = vmatprep.mubr.bf16.mxu0 %v2107_v9  ;;  %v3443_v48 = vadd.f32 %v1855_v44, %v4582_v2  ;;  %v1857_v50 = vpop.f32.mrb[6].mxu1  ;;  %2818 = vmatprep.mubr.bf16.mxu1 %v2109_v36  ;;  %v3563_v27 = vld [vmem:[%s4752_s3 + $0x128] sm:$0xff]   ;;  %v3567_v32 = vld [vmem:[%s4752_s3 + $0x130] sm:$0xff]   ;;  %v3569_v9 = vld [vmem:[%s4752_s3 + $0x178] sm:$0xff]  }
 0x163   :  { %2207 = vst [vmem:[%s4754_s5 + $0x28] sm:$0xff] %v3307_v37  ;;  %v2090_v47 = vmax.f32 %v3434_v38, 0.0  ;;  %v3436_v49 = vadd.f32 %v1751_v45, %v293_v63  ;;  %v1753_v51 = vpop.f32.mrb[7].mxu0  ;;  %2770 = vmatmul.mubr.bf16.vlgmr.msra.gmra.mrb[16].mxu0 %v2106_v30  ;;  %v2092_v52 = vmax.f32 %v3442_v42, 0.0  ;;  %v3444_v54 = vadd.f32 %v1857_v50, %v301_v0  ;;  %v1859_v56 = vpop.f32.mrb[7].mxu1  ;;  %2819 = vmatmul.mubr.bf16.vlgmr.msra.gmra.mrb[16].mxu1 %v2108_v33  ;;  %v3548_v63 = vld [vmem:[%s4752_s3 + $0x188] sm:$0xff]  }
 0x164   :  { %v2091_v53 = vmax.f32 %v3435_v43, 0.0  ;;  %v3437_v55 = vadd.f32 %v1753_v51, %v297_v1  ;;  %3375 = vmatpush3.bf16.msra.mxu0 %v3543_v35  ;;  %v2093_v60 = vmax.f32 %v3443_v48, 0.0  ;;  %v3445_v62 = vadd.f32 %v1859_v56, %v4582_v2  ;;  %3403 = vmatpush3.bf16.msra.mxu1 %v3544_v40  ;;  %v3549_v0 = vld [vmem:[%s4752_s3 + $0x150] sm:$0xff]   ;;  %v3564_v28 = vld [vmem:[%s4752_s3 + $0x1a8] sm:$0xff]   ;;  %v3570_v17 = vld [vmem:[%s4752_s3 + $0x1f8] sm:$0xff]  }
 0x165   :  { %v2098_v61 = vmax.f32 %v3436_v49, 0.0  ;;  %3376 = vmatprep.subr.bf16.mxu0 %v3545_v41  ;;  %v2100_v3 = vmax.f32 %v3444_v54, 0.0  ;;  %3404 = vmatprep.subr.bf16.mxu1 %v3546_v46  ;;  %v3566_v30 = vld [vmem:[%s4752_s3 + $0x1f0] sm:$0xff]   ;;  %v3571_v34 = vld [vmem:[%s4752_s3 + $0x138] sm:$0xff]   ;;  %v308_v36 = vsub.s32 4, %v4567_v57  ;;  %v316_v37 = vsub.s32 6, %v4567_v57 }
 0x166   :  { %v3310_v1 = vpack.c.bf16 %v2091_v53, %v2090_v47  ;;  %v2099_v4 = vmax.f32 %v3437_v55, 0.0  ;;  %v3311_v6 = vpack.c.bf16 %v2093_v60, %v2092_v52  ;;  %v2101_v7 = vmax.f32 %v3445_v62, 0.0  ;;  %v3568_v33 = vld [vmem:[%s4752_s3 + $0x1b0] sm:$0xff]   ;;  %v3572_v35 = vld [vmem:[%s4752_s3 + $0x1b8] sm:$0xff]  }
 0x167   :  { %v2114_v2 = vpack.c.bf16 %v2098_v61, %v2090_v47  ;;  %v2116_v8 = vpack.c.bf16 %v2100_v3, %v2092_v52  ;;  %v312_v38 = vsub.s32 5, %v4567_v57  ;;  %v309_v31 = vrot.slane %v4573_v59, %v308_v36 }
 0x168   :  { %2210 = vst [vmem:[%s4754_s5 + $0x40] sm:$0xff] %v3310_v1  ;;  %v2115_v10 = vpack.c.bf16 %v2099_v4, %v2091_v53  ;;  %v3314_v11 = vpack.c.bf16 %v2099_v4, %v2098_v61  ;;  %3377 = vmatpush3.bf16.msra.mxu0 %v3547_v58  ;;  %2211 = vst [vmem:[%s4754_s5 + $0x48] sm:$0xff] %v3311_v6  ;;  %v2117_v13 = vpack.c.bf16 %v2101_v7, %v2093_v60 }
 0x169   :  { %v3315_v14 = vpack.c.bf16 %v2101_v7, %v2100_v3  ;;  %3405 = vmatpush3.bf16.msra.mxu1 %v3548_v63  ;;  %3378 = vmatprep.subr.bf16.mxu0 %v3549_v0  ;;  %v317_v40 = vrot.slane %v4573_v59, %v316_v37  ;;  %v313_v41 = vrot.slane %v4573_v59, %v312_v38 }
 0x16a   :  { %2214 = vst [vmem:[%s4754_s5 + $0x60] sm:$0xff] %v3314_v11  ;;  %2777 = vmatprep.mubr.bf16.mxu0 %v2115_v10  ;;  %3406 = vmatprep.subr.bf16.mxu1 %v3550_v5  ;;  %v321_v42 = vrot.slane %v4573_v59, %v320_v39 }
 0x16b   :  { %2215 = vst [vmem:[%s4754_s5 + $0x68] sm:$0xff] %v3315_v14  ;;  %2826 = vmatprep.mubr.bf16.mxu1 %v2117_v13  ;;  %2778 = vmatmul.mubr.bf16.gmra.mrb[20].mxu0 %v2114_v2 }
 0x16c   :  { %2827 = vmatmul.mubr.bf16.gmra.mrb[20].mxu1 %v2116_v8  ;;  %3379 = vmatpush3.bf16.msra.mxu0 %v3551_v12 }
 0x16d   :  { %3407 = vmatpush3.bf16.msra.mxu1 %v3552_v15  ;;  %3380 = vmatprep.subr.bf16.mxu0 %v3553_v16 }
 0x16e   :  { %3408 = vmatprep.subr.bf16.mxu1 %v3554_v18 }
 0x170   :  { %3381 = vmatpush3.bf16.msra.mxu0 %v3555_v19 }
 0x171   :  { %3409 = vmatpush3.bf16.msra.mxu1 %v3556_v20  ;;  %3382 = vmatprep.subr.bf16.mxu0 %v3557_v21 }
 0x172   :  { %3410 = vmatprep.subr.bf16.mxu1 %v3558_v22 }
 0x174   :  { %3383 = vmatpush3.bf16.msra.mxu0 %v3559_v23 }
 0x175   :  { %3411 = vmatpush3.bf16.msra.mxu1 %v3560_v24  ;;  %3384 = vmatprep.subr.bf16.mxu0 %v3561_v25 }
 0x176   :  { %3412 = vmatprep.subr.bf16.mxu1 %v3562_v26 }
 0x178   :  { %3385 = vmatpush3.bf16.msra.mxu0 %v3563_v27 }
 0x179   :  { %3413 = vmatpush3.bf16.msra.mxu1 %v3564_v28  ;;  %3386 = vmatprep.subr.bf16.mxu0 %v3565_v29 }
 0x17a   :  { %3414 = vmatprep.subr.bf16.mxu1 %v3566_v30 }
 0x17c   :  { %3387 = vmatpush3.bf16.msra.mxu0 %v3567_v32 }
 0x17d   :  { %3415 = vmatpush3.bf16.msra.mxu1 %v3568_v33  ;;  %3388 = vmatprep.subr.bf16.mxu0 %v3569_v9 }
 0x17e   :  { %3416 = vmatprep.subr.bf16.mxu1 %v3570_v17 }
 0x180   :  { %3389 = vmatpush3.bf16.msra.mxu0 %v3571_v34 }
 0x181   :  { %3417 = vmatpush3.bf16.msra.mxu1 %v3572_v35 }
 0x1d8   :  { %v1949_v43 = vpop.f32.mrb[8].mxu0  ;;  %v2055_v45 = vpop.f32.mrb[8].mxu1 }
 0x1d9   :  { %v3446_v44 = vadd.f32 %v1949_v43, %v309_v31  ;;  %v1951_v46 = vpop.f32.mrb[9].mxu0  ;;  %v3454_v47 = vadd.f32 %v2055_v45, %v317_v40  ;;  %v2057_v49 = vpop.f32.mrb[9].mxu1  ;;  %v3237_v45 = vld [vmem:[%s4753_s4] ss:$0 sm:$0xff]  ;;  %s3602_s4 = smov [#allocation2]  }
 0x1da   :  { %v3447_v48 = vadd.f32 %v1951_v46, %v313_v41  ;;  %v1953_v50 = vpop.f32.mrb[10].mxu0  ;;  %v3455_v52 = vadd.f32 %v2057_v49, %v321_v42  ;;  %v2059_v57 = vpop.f32.mrb[10].mxu1 }
 0x1db   :  { %v2078_v51 = vmax.f32 %v3446_v44, 0.0  ;;  %v3448_v53 = vadd.f32 %v1953_v50, %v309_v31  ;;  %v1955_v54 = vpop.f32.mrb[11].mxu0  ;;  %v2080_v55 = vmax.f32 %v3454_v47, 0.0  ;;  %v3456_v58 = vadd.f32 %v2059_v57, %v317_v40  ;;  %v2061_v61 = vpop.f32.mrb[11].mxu1 }
 0x1dc   :  { %v2079_v56 = vmax.f32 %v3447_v48, 0.0  ;;  %v3449_v60 = vadd.f32 %v1955_v54, %v313_v41  ;;  %v2081_v62 = vmax.f32 %v3455_v52, 0.0  ;;  %v3457_v63 = vadd.f32 %v2061_v61, %v321_v42 }
 0x1dd   :  { %v2086_v59 = vmax.f32 %v3448_v53, 0.0  ;;  %v2088_v1 = vmax.f32 %v3456_v58, 0.0 }
 0x1de   :  { %v3304_v0 = vpack.c.bf16 %v2079_v56, %v2078_v51  ;;  %v2087_v3 = vmax.f32 %v3449_v60, 0.0  ;;  %v3305_v4 = vpack.c.bf16 %v2081_v62, %v2080_v55  ;;  %v2089_v6 = vmax.f32 %v3457_v63, 0.0 }
 0x1df   :  { %v2110_v5 = vpack.c.bf16 %v2086_v59, %v2078_v51  ;;  %v2112_v2 = vpack.c.bf16 %v2088_v1, %v2080_v55 }
 0x1e0   :  { %2204 = vst [vmem:[%s4754_s5 + $0x10] sm:$0xff] %v3304_v0  ;;  %v2111_v7 = vpack.c.bf16 %v2087_v3, %v2079_v56  ;;  %v3308_v8 = vpack.c.bf16 %v2087_v3, %v2086_v59  ;;  %v1959_v10 = vpop.f32.mrb[12].mxu0  ;;  %2205 = vst [vmem:[%s4754_s5 + $0x18] sm:$0xff] %v3305_v4  ;;  %v2113_v11 = vpack.c.bf16 %v2089_v6, %v2081_v62  ;;  %v2065_v14 = vpop.f32.mrb[12].mxu1 }
 0x1e1   :  { %v3309_v12 = vpack.c.bf16 %v2089_v6, %v2088_v1  ;;  %v3450_v13 = vadd.f32 %v1959_v10, %v309_v31  ;;  %v1961_v15 = vpop.f32.mrb[13].mxu0  ;;  %v3458_v16 = vadd.f32 %v2065_v14, %v317_v40  ;;  %v2067_v19 = vpop.f32.mrb[13].mxu1 }
 0x1e2   :  { %2208 = vst [vmem:[%s4754_s5 + $0x30] sm:$0xff] %v3308_v8  ;;  %v3451_v18 = vadd.f32 %v1961_v15, %v313_v41  ;;  %v1963_v20 = vpop.f32.mrb[14].mxu0  ;;  %2867 = vmatprep.mubr.bf16.mxu0 %v2111_v7  ;;  %v3459_v22 = vadd.f32 %v2067_v19, %v321_v42  ;;  %v2069_v24 = vpop.f32.mrb[14].mxu1  ;;  %2916 = vmatprep.mubr.bf16.mxu1 %v2113_v11 }
 0x1e3   :  { %2209 = vst [vmem:[%s4754_s5 + $0x38] sm:$0xff] %v3309_v12  ;;  %v2094_v21 = vmax.f32 %v3450_v13, 0.0  ;;  %v3452_v23 = vadd.f32 %v1963_v20, %v309_v31  ;;  %v1965_v25 = vpop.f32.mrb[15].mxu0  ;;  %2868 = vmatmul.mubr.bf16.vlgmr.msra.gmra.mrb[24].mxu0 %v2110_v5  ;;  %v2096_v26 = vmax.f32 %v3458_v16, 0.0  ;;  %v3460_v28 = vadd.f32 %v2069_v24, %v317_v40  ;;  %v2071_v30 = vpop.f32.mrb[15].mxu1  ;;  %2917 = vmatmul.mubr.bf16.vlgmr.msra.gmra.mrb[24].mxu1 %v2112_v2 }
 0x1e4   :  { %v2095_v27 = vmax.f32 %v3451_v18, 0.0  ;;  %v3453_v29 = vadd.f32 %v1965_v25, %v313_v41  ;;  %v2097_v32 = vmax.f32 %v3459_v22, 0.0  ;;  %v3461_v9 = vadd.f32 %v2071_v30, %v321_v42 }
 0x1e5   :  { %v2102_v33 = vmax.f32 %v3452_v23, 0.0  ;;  %v2104_v34 = vmax.f32 %v3460_v28, 0.0 }
 0x1e6   :  { %v3312_v17 = vpack.c.bf16 %v2095_v27, %v2094_v21  ;;  %v2103_v35 = vmax.f32 %v3453_v29, 0.0  ;;  %v3313_v36 = vpack.c.bf16 %v2097_v32, %v2096_v26  ;;  %v2105_v38 = vmax.f32 %v3461_v9, 0.0 }
 0x1e7   :  { %v2118_v37 = vpack.c.bf16 %v2102_v33, %v2094_v21  ;;  %v2120_v39 = vpack.c.bf16 %v2104_v34, %v2096_v26 }
 0x1e8   :  { %2212 = vst [vmem:[%s4754_s5 + $0x50] sm:$0xff] %v3312_v17  ;;  %v2119_v31 = vpack.c.bf16 %v2103_v35, %v2095_v27  ;;  %v3316_v43 = vpack.c.bf16 %v2103_v35, %v2102_v33  ;;  %2213 = vst [vmem:[%s4754_s5 + $0x58] sm:$0xff] %v3313_v36  ;;  %v2121_v40 = vpack.c.bf16 %v2105_v38, %v2097_v32 }
 0x1e9   :  { %v3317_v41 = vpack.c.bf16 %v2105_v38, %v2104_v34 }
 0x1ea   :  { %2216 = vst [vmem:[%s4754_s5 + $0x70] sm:$0xff] %v3316_v43  ;;  %2875 = vmatprep.mubr.bf16.mxu0 %v2119_v31  ;;  %2924 = vmatprep.mubr.bf16.mxu1 %v2121_v40 }
 0x1eb   :  { %2217 = vst [vmem:[%s4754_s5 + $0x78] sm:$0xff] %v3317_v41  ;;  %2876 = vmatmul.mubr.bf16.gmra.mrb[28].mxu0 %v2118_v37  ;;  %2925 = vmatmul.mubr.bf16.gmra.mrb[28].mxu1 %v2120_v39  ;;  %s2944_s5 = sshll.u32 %s3602_s4, 4  ;;  %s2945_s5 = int_to_ptr.vmem [resolvable:$true] %s2944_s5 }
 0x1ec   :  { %s3578_s1 = scalar_lea.vmem %s2945_s5, 512  ;;  %p3583_p1 = scmp.lt.s32.totalorder %s2945_s5, %s2945_s5 }
 0x1ed   :  { %p3579_p0 = scmp.ne.s32.totalorder %s2945_s5, %s3578_s1  ;;  %p3584_p2 = scmp.lt.s32.totalorder %s3578_s1, %s3578_s1 }
 0x1ef   :  { %p3585_p3 = por %p3584_p2, %p3583_p1 }
 0x1f1   :  { %p3586_p4 = pnand %p3585_p3, %p3579_p0 }
 0x236   :  { %v3334_v42 = vpop.f32.mrb[16].mxu0  ;;  %v3362_v44 = vpop.f32.mrb[16].mxu1 }
 0x237   :  { %v3335_v46 = vpop.f32.mrb[17].mxu0  ;;  %v3363_v48 = vpop.f32.mrb[17].mxu1 }
 0x238   :  { %v3336_v47 = vadd.f32 %v3335_v46, %v3334_v42  ;;  %v3337_v49 = vpop.f32.mrb[18].mxu0  ;;  %v3364_v50 = vadd.f32 %v3363_v48, %v3362_v44  ;;  %v3365_v51 = vpop.f32.mrb[18].mxu1 }
 0x239   :  { %v3338_v52 = vpop.f32.mrb[19].mxu0  ;;  %v3366_v54 = vpop.f32.mrb[19].mxu1 }
 0x23a   :  { %v2772_v53 = vadd.f32 %v3336_v47, %v3237_v45  ;;  %v3339_v57 = vadd.f32 %v3338_v52, %v3337_v49  ;;  %v3367_v55 = vadd.f32 %v3366_v54, %v3365_v51 }
 0x23c   :  { %v2821_v56 = vadd.f32 %v3364_v50, %v2772_v53  ;;  %v2775_v58 = vadd.f32 %v3339_v57, %v3237_v45 }
 0x23e   :  { %v2824_v60 = vadd.f32 %v3367_v55, %v2775_v58  ;;  %v3340_v61 = vpop.f32.mrb[20].mxu0 }
 0x23f   :  { %v3368_v62 = vpop.f32.mrb[20].mxu1  ;;  %v3341_v59 = vpop.f32.mrb[21].mxu0 }
 0x240   :  { %v3342_v63 = vadd.f32 %v3341_v59, %v3340_v61  ;;  %v3369_v0 = vpop.f32.mrb[21].mxu1  ;;  %v3343_v1 = vpop.f32.mrb[22].mxu0 }
 0x241   :  { %v3370_v3 = vadd.f32 %v3369_v0, %v3368_v62  ;;  %v3371_v4 = vpop.f32.mrb[22].mxu1  ;;  %v3344_v5 = vpop.f32.mrb[23].mxu0 }
 0x242   :  { %v2780_v6 = vadd.f32 %v3342_v63, %v3237_v45  ;;  %v3345_v2 = vadd.f32 %v3344_v5, %v3343_v1  ;;  %v3372_v7 = vpop.f32.mrb[23].mxu1 }
 0x243   :  { %v3373_v8 = vadd.f32 %v3372_v7, %v3371_v4 }
 0x244   :  { %v2829_v10 = vadd.f32 %v3370_v3, %v2780_v6  ;;  %v2783_v11 = vadd.f32 %v3345_v2, %v3237_v45 }
 0x246   :  { %v2832_v12 = vadd.f32 %v3373_v8, %v2783_v11 }
 0x2b6   :  { %v3390_v13 = vpop.f32.mrb[24].mxu0  ;;  %v3418_v14 = vpop.f32.mrb[24].mxu1 }
 0x2b7   :  { %v3391_v15 = vpop.f32.mrb[25].mxu0  ;;  %v3419_v18 = vpop.f32.mrb[25].mxu1 }
 0x2b8   :  { %v3392_v16 = vadd.f32 %v3391_v15, %v3390_v13  ;;  %v3393_v19 = vpop.f32.mrb[26].mxu0  ;;  %v3420_v20 = vadd.f32 %v3419_v18, %v3418_v14  ;;  %v3421_v21 = vpop.f32.mrb[26].mxu1 }
 0x2b9   :  { %v3394_v22 = vpop.f32.mrb[27].mxu0  ;;  %v3422_v25 = vpop.f32.mrb[27].mxu1 }
 0x2ba   :  { %v2870_v23 = vadd.f32 %v3392_v16, %v2821_v56  ;;  %v3395_v24 = vadd.f32 %v3394_v22, %v3393_v19  ;;  %v3423_v26 = vadd.f32 %v3422_v25, %v3421_v21 }
 0x2bc   :  { %v2919_v27 = vadd.f32 %v3420_v20, %v2870_v23  ;;  %v2873_v28 = vadd.f32 %v3395_v24, %v2824_v60 }
 0x2be   :  { %2933 = vst [vmem:[#allocation2] sm:$0xff] %v2919_v27  ;;  %v2922_v29 = vadd.f32 %v3423_v26, %v2873_v28  ;;  %v3396_v30 = vpop.f32.mrb[28].mxu0  ;;  %v3424_v32 = vpop.f32.mrb[28].mxu1 }
 0x2bf   :  { %v3397_v33 = vpop.f32.mrb[29].mxu0  ;;  %v3425_v17 = vpop.f32.mrb[29].mxu1 }
 0x2c0   :  { %2934 = vst [vmem:[#allocation2 + $0x8] sm:$0xff] %v2922_v29  ;;  %v3398_v9 = vadd.f32 %v3397_v33, %v3396_v30  ;;  %v3399_v34 = vpop.f32.mrb[30].mxu0  ;;  %v3426_v35 = vadd.f32 %v3425_v17, %v3424_v32  ;;  %v3427_v36 = vpop.f32.mrb[30].mxu1 }
 0x2c1   :  { %v3400_v37 = vpop.f32.mrb[31].mxu0  ;;  %v3428_v31 = vpop.f32.mrb[31].mxu1 }
 0x2c2   :  { %v2878_v38 = vadd.f32 %v3398_v9, %v2829_v10  ;;  %v3401_v39 = vadd.f32 %v3400_v37, %v3399_v34  ;;  %v3429_v43 = vadd.f32 %v3428_v31, %v3427_v36 }
 0x2c4   :  { %v2927_v40 = vadd.f32 %v3426_v35, %v2878_v38  ;;  %v2881_v41 = vadd.f32 %v3401_v39, %v2832_v12 }
 0x2c6   :  { %2935 = vst [vmem:[#allocation2 + $0x10] sm:$0xff] %v2927_v40  ;;  %v2930_v42 = vadd.f32 %v3429_v43, %v2881_v41 }
 0x2c8   :  { %2936 = vst [vmem:[#allocation2 + $0x18] sm:$0xff] %v2930_v42 }
 0x2c9   :  { %3589 = shalt.err (!%p3586_p4)
}
 0x2ca   :  { %s3590_s8 = scalar_lea.hbm %s4755_s6, 512 }
 0x2cb   :  { %p3591_p5 = scmp.ne.s32.totalorder %s4755_s6, %s3590_s8  ;;  %p3594_p6 = scmp.lt.u32.totalorder %s3590_s8, %s4755_s6 }
 0x2cd   :  { %p3596_p7 = pnand %p3594_p6, %p3591_p5 }
 0x2cf   :  { %3599 = shalt.err (!%p3596_p7)
}
 0x2d0   :  { %s3603_s13 = smov 128   ;;  %s3604_s14 = smov 8  }
 0x2d1   :  { %2950 = dma.vmem_to_hbm [thread:$0]  %s2945_s5, 512, %s4755_s6, [#allocation3], %s3603_s13, %s3603_s13, %s3604_s14  }
 0x2d2   :  { %3600 = dma.done.wait [#allocation3], 512  }
 0x2d3   :  { %3601 = vsyncadd [#allocation3], 4294966784 }
 0x2d4   :  { %2956 = vsyncpa [#allocation3], 1 }

// kernel: _lambda_.9
= control target key start
LH: loop header
LB: loop body
LE: loop exit
PB: predicated region body
PF: predicated region fallthrough
CT: control target
= control target key end

     0   :  { %12 = vsyncpa [#allocation3], 0  ;;  %s14474_s0 = inlined_call_operand.vmem [shape: bf16[8,1024], index: 0, kind: input, shape index: {}]   ;;  %s14475_s1 = inlined_call_operand.vmem [shape: bf16[1024,2048], index: 1, kind: input, shape index: {}]   ;;  %s14476_s2 = inlined_call_operand.vmem [shape: f32[1,2048], index: 2, kind: input, shape index: {}]   ;;  %s14477_s3 = inlined_call_operand.vmem [shape: bf16[2048,128], index: 3, kind: input, shape index: {}]   ;;  %s14478_s4 = inlined_call_operand.vmem [shape: f32[1,128], index: 4, kind: input, shape index: {}]   ;;  %s14479_s5 = inlined_call_operand.hbm [shape: bf16[8,2048], index: 5, kind: output, shape index: {0}]   ;;  %s14480_s6 = inlined_call_operand.hbm [shape: f32[8,128], index: 6, kind: output, shape index: {1}]  }
   0x1   :  { %v29_v0 = vld [vmem:[%s14475_s1] sm:$0xff]  ;;  %v30_v2 = vld [vmem:[%s14475_s1 + $0x8] sm:$0xff] }
   0x2   :  { %v37_v1 = vld [vmem:[%s14475_s1 + $0x40] sm:$0xff]  ;;  %v38_v4 = vld [vmem:[%s14475_s1 + $0x48] sm:$0xff] }
   0x3   :  { %v9074_v3 = vcombine.high %v29_v0, %v37_v1  ;;  %v9073_v5 = vcombine.low %v29_v0, %v37_v1  ;;  %v45_v6 = vld [vmem:[%s14475_s1 + $0x80] sm:$0xff]  ;;  %v9076_v8 = vcombine.high %v30_v2, %v38_v4  ;;  %v9075_v9 = vcombine.low %v30_v2, %v38_v4  ;;  %v46_v11 = vld [vmem:[%s14475_s1 + $0x88] sm:$0xff] }
   0x4   :  { %v53_v7 = vld [vmem:[%s14475_s1 + $0xc0] sm:$0xff]  ;;  %v54_v12 = vld [vmem:[%s14475_s1 + $0xc8] sm:$0xff] }
   0x5   :  { %v9090_v10 = vcombine.high %v45_v6, %v53_v7  ;;  %v61_v13 = vld [vmem:[%s14475_s1 + $0x100] sm:$0xff]  ;;  %6285 = vmatprep.subr.bf16.mxu0 %v9074_v3  ;;  %v9092_v14 = vcombine.high %v46_v11, %v54_v12  ;;  %v62_v16 = vld [vmem:[%s14475_s1 + $0x108] sm:$0xff]  ;;  %6449 = vmatprep.subr.bf16.mxu1 %v9076_v8  ;;  %v9089_v18 = vcombine.low %v45_v6, %v53_v7 }
   0x6   :  { %v69_v15 = vld [vmem:[%s14475_s1 + $0x140] sm:$0xff]  ;;  %v70_v17 = vld [vmem:[%s14475_s1 + $0x148] sm:$0xff]  ;;  %6286 = vmatpush1.bf16.msra.mxu0 %v9073_v5  ;;  %6450 = vmatpush1.bf16.msra.mxu1 %v9075_v9  ;;  %v9091_v19 = vcombine.low %v46_v11, %v54_v12 }
   0x7   :  { %6287 = vmatprep.subr.bf16.mxu0 %v9090_v10  ;;  %v9106_v20 = vcombine.high %v61_v13, %v69_v15  ;;  %6451 = vmatprep.subr.bf16.mxu1 %v9092_v14  ;;  %v9108_v21 = vcombine.high %v62_v16, %v70_v17  ;;  %v77_v22 = vld [vmem:[%s14475_s1 + $0x180] sm:$0xff]  ;;  %v78_v24 = vld [vmem:[%s14475_s1 + $0x188] sm:$0xff]  ;;  %v9105_v26 = vcombine.low %v61_v13, %v69_v15 }
   0x8   :  { %v85_v23 = vld [vmem:[%s14475_s1 + $0x1c0] sm:$0xff]  ;;  %v86_v25 = vld [vmem:[%s14475_s1 + $0x1c8] sm:$0xff]  ;;  %v9107_v27 = vcombine.low %v62_v16, %v70_v17 }
   0x9   :  { %v9122_v28 = vcombine.high %v77_v22, %v85_v23  ;;  %v9124_v29 = vcombine.high %v78_v24, %v86_v25  ;;  %v93_v30 = vld [vmem:[%s14475_s1 + $0x200] sm:$0xff]  ;;  %v94_v32 = vld [vmem:[%s14475_s1 + $0x208] sm:$0xff]  ;;  %v9121_v34 = vcombine.low %v77_v22, %v85_v23  ;;  %v9123_v35 = vcombine.low %v78_v24, %v86_v25 }
   0xa   :  { %6288 = vmatpush1.bf16.msra.mxu0 %v9089_v18  ;;  %6452 = vmatpush1.bf16.msra.mxu1 %v9091_v19  ;;  %v101_v31 = vld [vmem:[%s14475_s1 + $0x240] sm:$0xff]  ;;  %v102_v33 = vld [vmem:[%s14475_s1 + $0x248] sm:$0xff] }
   0xb   :  { %6289 = vmatprep.subr.bf16.mxu0 %v9106_v20  ;;  %6453 = vmatprep.subr.bf16.mxu1 %v9108_v21  ;;  %v9138_v36 = vcombine.high %v93_v30, %v101_v31  ;;  %v9140_v37 = vcombine.high %v94_v32, %v102_v33  ;;  %v109_v38 = vld [vmem:[%s14475_s1 + $0x280] sm:$0xff]  ;;  %v110_v40 = vld [vmem:[%s14475_s1 + $0x288] sm:$0xff]  ;;  %v9137_v42 = vcombine.low %v93_v30, %v101_v31 }
   0xc   :  { %v117_v39 = vld [vmem:[%s14475_s1 + $0x2c0] sm:$0xff]  ;;  %v118_v41 = vld [vmem:[%s14475_s1 + $0x2c8] sm:$0xff]  ;;  %v9139_v43 = vcombine.low %v94_v32, %v102_v33 }
   0xd   :  { %v9154_v44 = vcombine.high %v109_v38, %v117_v39  ;;  %v9156_v45 = vcombine.high %v110_v40, %v118_v41  ;;  %v125_v46 = vld [vmem:[%s14475_s1 + $0x300] sm:$0xff]  ;;  %v126_v48 = vld [vmem:[%s14475_s1 + $0x308] sm:$0xff]  ;;  %v9153_v50 = vcombine.low %v109_v38, %v117_v39  ;;  %v9155_v51 = vcombine.low %v110_v40, %v118_v41 }
   0xe   :  { %6290 = vmatpush1.bf16.msra.mxu0 %v9105_v26  ;;  %6454 = vmatpush1.bf16.msra.mxu1 %v9107_v27  ;;  %v133_v47 = vld [vmem:[%s14475_s1 + $0x340] sm:$0xff]  ;;  %v134_v49 = vld [vmem:[%s14475_s1 + $0x348] sm:$0xff] }
   0xf   :  { %6291 = vmatprep.subr.bf16.mxu0 %v9122_v28  ;;  %6455 = vmatprep.subr.bf16.mxu1 %v9124_v29  ;;  %v9170_v52 = vcombine.high %v125_v46, %v133_v47  ;;  %v10841_v53 = vld [vmem:[%s14474_s0] sm:$0xff]  ;;  %v9172_v54 = vcombine.high %v126_v48, %v134_v49  ;;  %v142_v58 = vld [vmem:[%s14475_s1 + $0x388] sm:$0xff]  ;;  %v9169_v60 = vcombine.low %v125_v46, %v133_v47 }
  0x10   :  { %v141_v55 = vld [vmem:[%s14475_s1 + $0x380] sm:$0xff]  ;;  %v10851_v57 = vcombine.high %v10841_v53, %v10841_v53  ;;  %v150_v59 = vld [vmem:[%s14475_s1 + $0x3c8] sm:$0xff]  ;;  %v9171_v61 = vcombine.low %v126_v48, %v134_v49 }
  0x11   :  { %v149_v56 = vld [vmem:[%s14475_s1 + $0x3c0] sm:$0xff]  ;;  %v9188_v63 = vcombine.high %v142_v58, %v150_v59  ;;  %v158_v2 = vld [vmem:[%s14475_s1 + $0x408] sm:$0xff]  ;;  %v9187_v5 = vcombine.low %v142_v58, %v150_v59 }
  0x12   :  { %6292 = vmatpush1.bf16.msra.mxu0 %v9121_v34  ;;  %6456 = vmatpush1.bf16.msra.mxu1 %v9123_v35  ;;  %v9186_v62 = vcombine.high %v141_v55, %v149_v56  ;;  %v157_v0 = vld [vmem:[%s14475_s1 + $0x400] sm:$0xff]  ;;  %v166_v3 = vld [vmem:[%s14475_s1 + $0x448] sm:$0xff]  ;;  %v9185_v4 = vcombine.low %v141_v55, %v149_v56 }
  0x13   :  { %6293 = vmatprep.subr.bf16.mxu0 %v9138_v36  ;;  %6457 = vmatprep.subr.bf16.mxu1 %v9140_v37  ;;  %v165_v1 = vld [vmem:[%s14475_s1 + $0x440] sm:$0xff]  ;;  %v9204_v7 = vcombine.high %v158_v2, %v166_v3  ;;  %v174_v10 = vld [vmem:[%s14475_s1 + $0x488] sm:$0xff]  ;;  %v9203_v13 = vcombine.low %v158_v2, %v166_v3 }
  0x14   :  { %6317 = vmatprep.mubr.bf16.mxu0 %v10851_v57  ;;  %6481 = vmatprep.mubr.bf16.mxu1 %v10851_v57  ;;  %v9202_v6 = vcombine.high %v157_v0, %v165_v1  ;;  %v173_v8 = vld [vmem:[%s14475_s1 + $0x480] sm:$0xff]  ;;  %v182_v11 = vld [vmem:[%s14475_s1 + $0x4c8] sm:$0xff]  ;;  %v9201_v12 = vcombine.low %v157_v0, %v165_v1 }
  0x15   :  { %v181_v9 = vld [vmem:[%s14475_s1 + $0x4c0] sm:$0xff]  ;;  %v9220_v15 = vcombine.high %v174_v10, %v182_v11  ;;  %v190_v18 = vld [vmem:[%s14475_s1 + $0x508] sm:$0xff]  ;;  %v9219_v21 = vcombine.low %v174_v10, %v182_v11 }
  0x16   :  { %6294 = vmatpush1.bf16.msra.mxu0 %v9137_v42  ;;  %6458 = vmatpush1.bf16.msra.mxu1 %v9139_v43  ;;  %v9218_v14 = vcombine.high %v173_v8, %v181_v9  ;;  %v189_v16 = vld [vmem:[%s14475_s1 + $0x500] sm:$0xff]  ;;  %v198_v19 = vld [vmem:[%s14475_s1 + $0x548] sm:$0xff]  ;;  %v9217_v20 = vcombine.low %v173_v8, %v181_v9 }
  0x17   :  { %6295 = vmatprep.subr.bf16.mxu0 %v9154_v44  ;;  %6459 = vmatprep.subr.bf16.mxu1 %v9156_v45  ;;  %v197_v17 = vld [vmem:[%s14475_s1 + $0x540] sm:$0xff]  ;;  %v9236_v23 = vcombine.high %v190_v18, %v198_v19  ;;  %v206_v26 = vld [vmem:[%s14475_s1 + $0x588] sm:$0xff]  ;;  %v9235_v29 = vcombine.low %v190_v18, %v198_v19 }
  0x18   :  { %v9234_v22 = vcombine.high %v189_v16, %v197_v17  ;;  %v205_v24 = vld [vmem:[%s14475_s1 + $0x580] sm:$0xff]  ;;  %v214_v27 = vld [vmem:[%s14475_s1 + $0x5c8] sm:$0xff]  ;;  %v9233_v28 = vcombine.low %v189_v16, %v197_v17 }
  0x19   :  { %v213_v25 = vld [vmem:[%s14475_s1 + $0x5c0] sm:$0xff]  ;;  %v9252_v31 = vcombine.high %v206_v26, %v214_v27  ;;  %v222_v34 = vld [vmem:[%s14475_s1 + $0x608] sm:$0xff]  ;;  %v9251_v37 = vcombine.low %v206_v26, %v214_v27 }
  0x1a   :  { %6296 = vmatpush1.bf16.msra.mxu0 %v9153_v50  ;;  %6460 = vmatpush1.bf16.msra.mxu1 %v9155_v51  ;;  %v9250_v30 = vcombine.high %v205_v24, %v213_v25  ;;  %v221_v32 = vld [vmem:[%s14475_s1 + $0x600] sm:$0xff]  ;;  %v230_v35 = vld [vmem:[%s14475_s1 + $0x648] sm:$0xff]  ;;  %v9249_v36 = vcombine.low %v205_v24, %v213_v25 }
  0x1b   :  { %6297 = vmatprep.subr.bf16.mxu0 %v9170_v52  ;;  %6461 = vmatprep.subr.bf16.mxu1 %v9172_v54  ;;  %v229_v33 = vld [vmem:[%s14475_s1 + $0x640] sm:$0xff]  ;;  %v9268_v39 = vcombine.high %v222_v34, %v230_v35  ;;  %v238_v42 = vld [vmem:[%s14475_s1 + $0x688] sm:$0xff]  ;;  %v9267_v45 = vcombine.low %v222_v34, %v230_v35 }
  0x1c   :  { %v9266_v38 = vcombine.high %v221_v32, %v229_v33  ;;  %v237_v40 = vld [vmem:[%s14475_s1 + $0x680] sm:$0xff]  ;;  %v246_v43 = vld [vmem:[%s14475_s1 + $0x6c8] sm:$0xff]  ;;  %v9265_v44 = vcombine.low %v221_v32, %v229_v33 }
  0x1d   :  { %v245_v41 = vld [vmem:[%s14475_s1 + $0x6c0] sm:$0xff]  ;;  %v9284_v47 = vcombine.high %v238_v42, %v246_v43  ;;  %v254_v50 = vld [vmem:[%s14475_s1 + $0x708] sm:$0xff]  ;;  %v9283_v54 = vcombine.low %v238_v42, %v246_v43 }
  0x1e   :  { %6298 = vmatpush1.bf16.msra.mxu0 %v9169_v60  ;;  %6462 = vmatpush1.bf16.msra.mxu1 %v9171_v61  ;;  %v9282_v46 = vcombine.high %v237_v40, %v245_v41  ;;  %v253_v48 = vld [vmem:[%s14475_s1 + $0x700] sm:$0xff]  ;;  %v262_v51 = vld [vmem:[%s14475_s1 + $0x748] sm:$0xff]  ;;  %v9281_v52 = vcombine.low %v237_v40, %v245_v41 }
  0x1f   :  { %6299 = vmatprep.subr.bf16.mxu0 %v9186_v62  ;;  %6463 = vmatprep.subr.bf16.mxu1 %v9188_v63  ;;  %v261_v49 = vld [vmem:[%s14475_s1 + $0x740] sm:$0xff]  ;;  %v9300_v56 = vcombine.high %v254_v50, %v262_v51  ;;  %v270_v60 = vld [vmem:[%s14475_s1 + $0x788] sm:$0xff]  ;;  %v9299_v63 = vcombine.low %v254_v50, %v262_v51 }
  0x20   :  { %v9298_v55 = vcombine.high %v253_v48, %v261_v49  ;;  %v269_v58 = vld [vmem:[%s14475_s1 + $0x780] sm:$0xff]  ;;  %v278_v61 = vld [vmem:[%s14475_s1 + $0x7c8] sm:$0xff]  ;;  %v9297_v62 = vcombine.low %v253_v48, %v261_v49 }
  0x21   :  { %v277_v59 = vld [vmem:[%s14475_s1 + $0x7c0] sm:$0xff]  ;;  %v9316_v1 = vcombine.high %v270_v60, %v278_v61 }
  0x22   :  { %6300 = vmatpush1.bf16.msra.mxu0 %v9185_v4  ;;  %6464 = vmatpush1.bf16.msra.mxu1 %v9187_v5  ;;  %v9314_v0 = vcombine.high %v269_v58, %v277_v59  ;;  %v285_v2 = vld [vmem:[%s14475_s1 + $0x800] sm:$0xff]  ;;  %v286_v4 = vld [vmem:[%s14475_s1 + $0x808] sm:$0xff] }
  0x23   :  { %6301 = vmatprep.subr.bf16.mxu0 %v9202_v6  ;;  %6465 = vmatprep.subr.bf16.mxu1 %v9204_v7  ;;  %v293_v3 = vld [vmem:[%s14475_s1 + $0x840] sm:$0xff]  ;;  %v294_v5 = vld [vmem:[%s14475_s1 + $0x848] sm:$0xff]  ;;  %v9313_v6 = vcombine.low %v269_v58, %v277_v59  ;;  %v9315_v7 = vcombine.low %v270_v60, %v278_v61 }
  0x24   :  { %v9330_v8 = vcombine.high %v285_v2, %v293_v3  ;;  %v9332_v9 = vcombine.high %v286_v4, %v294_v5  ;;  %v301_v10 = vld [vmem:[%s14475_s1 + $0x880] sm:$0xff]  ;;  %v9329_v16 = vcombine.low %v285_v2, %v293_v3  ;;  %v9331_v17 = vcombine.low %v286_v4, %v294_v5 }
  0x25   :  { %v309_v11 = vld [vmem:[%s14475_s1 + $0x8c0] sm:$0xff] }
  0x26   :  { %6302 = vmatpush1.bf16.msra.mxu0 %v9201_v12  ;;  %6466 = vmatpush1.bf16.msra.mxu1 %v9203_v13  ;;  %v10977_v12 = vcombine.low %v10841_v53, %v10841_v53  ;;  %v302_v13 = vld [vmem:[%s14475_s1 + $0x888] sm:$0xff]  ;;  %v9346_v53 = vcombine.high %v301_v10, %v309_v11  ;;  %v317_v18 = vld [vmem:[%s14475_s1 + $0x900] sm:$0xff]  ;;  %v9345_v24 = vcombine.low %v301_v10, %v309_v11 }
  0x27   :  { %6303 = vmatprep.subr.bf16.mxu0 %v9218_v14  ;;  %6467 = vmatprep.subr.bf16.mxu1 %v9220_v15  ;;  %v310_v14 = vld [vmem:[%s14475_s1 + $0x8c8] sm:$0xff]  ;;  %v325_v19 = vld [vmem:[%s14475_s1 + $0x940] sm:$0xff] }
  0x28   :  { %v10988_v15 = vld [vmem:[%s14474_s0 + $0x8] sm:$0xff]  ;;  %v9347_v25 = vcombine.low %v302_v13, %v310_v14  ;;  %v9362_v26 = vcombine.high %v317_v18, %v325_v19  ;;  %v333_v27 = vld [vmem:[%s14475_s1 + $0x980] sm:$0xff]  ;;  %v9361_v32 = vcombine.low %v317_v18, %v325_v19 }
  0x29   :  { %v349_v35 = vld [vmem:[%s14475_s1 + $0xa00] sm:$0xff]  ;;  %v438_v18 = vld [vmem:[%s14475_s1 + $0xcc8] sm:$0xff] }
  0x2a   :  { %6304 = vmatpush1.bf16.msra.mxu0 %v9217_v20  ;;  %6468 = vmatpush1.bf16.msra.mxu1 %v9219_v21  ;;  %v9348_v20 = vcombine.high %v302_v13, %v310_v14  ;;  %v318_v21 = vld [vmem:[%s14475_s1 + $0x908] sm:$0xff]  ;;  %v365_v43 = vld [vmem:[%s14475_s1 + $0xa80] sm:$0xff] }
  0x2b   :  { %6305 = vmatprep.subr.bf16.mxu0 %v9234_v22  ;;  %6469 = vmatprep.subr.bf16.mxu1 %v9236_v23  ;;  %v326_v22 = vld [vmem:[%s14475_s1 + $0x948] sm:$0xff]  ;;  %v11004_v23 = vcombine.high %v10988_v15, %v10988_v15  ;;  %v381_v51 = vld [vmem:[%s14475_s1 + $0xb00] sm:$0xff] }
  0x2c   :  { %v9363_v33 = vcombine.low %v318_v21, %v326_v22  ;;  %v397_v61 = vld [vmem:[%s14475_s1 + $0xb80] sm:$0xff] }
  0x2d   :  { %v413_v5 = vld [vmem:[%s14475_s1 + $0xc00] sm:$0xff] }
  0x2e   :  { %6306 = vmatpush1.bf16.msra.mxu0 %v9233_v28  ;;  %6470 = vmatpush1.bf16.msra.mxu1 %v9235_v29  ;;  %v341_v28 = vld [vmem:[%s14475_s1 + $0x9c0] sm:$0xff]  ;;  %v334_v29 = vld [vmem:[%s14475_s1 + $0x988] sm:$0xff] }
  0x2f   :  { %6307 = vmatprep.subr.bf16.mxu0 %v9250_v30  ;;  %6471 = vmatprep.subr.bf16.mxu1 %v9252_v31  ;;  %v9364_v30 = vcombine.high %v318_v21, %v326_v22  ;;  %v342_v31 = vld [vmem:[%s14475_s1 + $0x9c8] sm:$0xff]  ;;  %v9378_v34 = vcombine.high %v333_v27, %v341_v28  ;;  %v9377_v40 = vcombine.low %v333_v27, %v341_v28  ;;  %v429_v14 = vld [vmem:[%s14475_s1 + $0xc80] sm:$0xff] }
  0x30   :  { %v9379_v41 = vcombine.low %v334_v29, %v342_v31  ;;  %v445_v22 = vld [vmem:[%s14475_s1 + $0xd00] sm:$0xff]  ;;  %v454_v27 = vld [vmem:[%s14475_s1 + $0xd48] sm:$0xff] }
  0x32   :  { %6308 = vmatpush1.bf16.msra.mxu0 %v9249_v36  ;;  %6472 = vmatpush1.bf16.msra.mxu1 %v9251_v37  ;;  %v357_v36 = vld [vmem:[%s14475_s1 + $0xa40] sm:$0xff]  ;;  %v350_v37 = vld [vmem:[%s14475_s1 + $0xa08] sm:$0xff] }
  0x33   :  { %6309 = vmatprep.subr.bf16.mxu0 %v9266_v38  ;;  %6473 = vmatprep.subr.bf16.mxu1 %v9268_v39  ;;  %v9380_v38 = vcombine.high %v334_v29, %v342_v31  ;;  %v358_v39 = vld [vmem:[%s14475_s1 + $0xa48] sm:$0xff]  ;;  %v9394_v42 = vcombine.high %v349_v35, %v357_v36  ;;  %v9393_v48 = vcombine.low %v349_v35, %v357_v36  ;;  %v461_v31 = vld [vmem:[%s14475_s1 + $0xd80] sm:$0xff] }
  0x34   :  { %v9395_v49 = vcombine.low %v350_v37, %v358_v39  ;;  %v470_v35 = vld [vmem:[%s14475_s1 + $0xdc8] sm:$0xff] }
  0x36   :  { %6310 = vmatpush1.bf16.msra.mxu0 %v9265_v44  ;;  %6474 = vmatpush1.bf16.msra.mxu1 %v9267_v45  ;;  %v373_v44 = vld [vmem:[%s14475_s1 + $0xac0] sm:$0xff]  ;;  %v366_v45 = vld [vmem:[%s14475_s1 + $0xa88] sm:$0xff] }
  0x37   :  { %6311 = vmatprep.subr.bf16.mxu0 %v9282_v46  ;;  %6475 = vmatprep.subr.bf16.mxu1 %v9284_v47  ;;  %v9396_v46 = vcombine.high %v350_v37, %v358_v39  ;;  %v374_v47 = vld [vmem:[%s14475_s1 + $0xac8] sm:$0xff]  ;;  %v9410_v50 = vcombine.high %v365_v43, %v373_v44  ;;  %v9409_v58 = vcombine.low %v365_v43, %v373_v44  ;;  %v477_v39 = vld [vmem:[%s14475_s1 + $0xe00] sm:$0xff] }
  0x38   :  { %v9411_v59 = vcombine.low %v366_v45, %v374_v47  ;;  %v486_v43 = vld [vmem:[%s14475_s1 + $0xe48] sm:$0xff] }
  0x3a   :  { %6312 = vmatpush1.bf16.msra.mxu0 %v9281_v52  ;;  %6476 = vmatpush1.bf16.msra.mxu1 %v9283_v54  ;;  %v389_v52 = vld [vmem:[%s14475_s1 + $0xb40] sm:$0xff]  ;;  %v382_v54 = vld [vmem:[%s14475_s1 + $0xb08] sm:$0xff] }
  0x3b   :  { %6313 = vmatprep.subr.bf16.mxu0 %v9298_v55  ;;  %6477 = vmatprep.subr.bf16.mxu1 %v9300_v56  ;;  %v9412_v55 = vcombine.high %v366_v45, %v374_v47  ;;  %v390_v56 = vld [vmem:[%s14475_s1 + $0xb48] sm:$0xff]  ;;  %v9426_v60 = vcombine.high %v381_v51, %v389_v52  ;;  %v9425_v2 = vcombine.low %v381_v51, %v389_v52  ;;  %v493_v47 = vld [vmem:[%s14475_s1 + $0xe80] sm:$0xff] }
  0x3c   :  { %v9427_v3 = vcombine.low %v382_v54, %v390_v56  ;;  %v502_v51 = vld [vmem:[%s14475_s1 + $0xec8] sm:$0xff] }
  0x3e   :  { %6314 = vmatpush1.bf16.msra.mxu0 %v9297_v62  ;;  %6478 = vmatpush1.bf16.msra.mxu1 %v9299_v63  ;;  %v405_v62 = vld [vmem:[%s14475_s1 + $0xbc0] sm:$0xff]  ;;  %v398_v63 = vld [vmem:[%s14475_s1 + $0xb88] sm:$0xff] }
  0x3f   :  { %6315 = vmatprep.subr.bf16.mxu0 %v9314_v0  ;;  %6479 = vmatprep.subr.bf16.mxu1 %v9316_v1  ;;  %v9428_v0 = vcombine.high %v382_v54, %v390_v56  ;;  %v406_v1 = vld [vmem:[%s14475_s1 + $0xbc8] sm:$0xff]  ;;  %v9442_v4 = vcombine.high %v397_v61, %v405_v62  ;;  %v9441_v10 = vcombine.low %v397_v61, %v405_v62  ;;  %v509_v56 = vld [vmem:[%s14475_s1 + $0xf00] sm:$0xff] }
  0x40   :  { %v9443_v11 = vcombine.low %v398_v63, %v406_v1  ;;  %v518_v61 = vld [vmem:[%s14475_s1 + $0xf48] sm:$0xff] }
  0x42   :  { %6316 = vmatpush1.bf16.msra.mxu0 %v9313_v6  ;;  %6480 = vmatpush1.bf16.msra.mxu1 %v9315_v7  ;;  %v421_v6 = vld [vmem:[%s14475_s1 + $0xc40] sm:$0xff]  ;;  %v414_v7 = vld [vmem:[%s14475_s1 + $0xc08] sm:$0xff] }
  0x43   :  { %6326 = vmatprep.subr.bf16.mxu0 %v9330_v8  ;;  %6490 = vmatprep.subr.bf16.mxu1 %v9332_v9  ;;  %v9444_v8 = vcombine.high %v398_v63, %v406_v1  ;;  %v422_v9 = vld [vmem:[%s14475_s1 + $0xc48] sm:$0xff]  ;;  %v9458_v13 = vcombine.high %v413_v5, %v421_v6  ;;  %v9457_v19 = vcombine.low %v413_v5, %v421_v6  ;;  %v525_v1 = vld [vmem:[%s14475_s1 + $0xf80] sm:$0xff] }
  0x44   :  { %v534_v5 = vld [vmem:[%s14475_s1 + $0xfc8] sm:$0xff] }
  0x45   :  { %6318 = vmatmul.mubr.bf16.vlgmr.msra.gmra.mrb[0].mxu0 %v10977_v12  ;;  %6482 = vmatmul.mubr.bf16.vlgmr.msra.gmra.mrb[0].mxu1 %v10977_v12 }
  0x46   :  { %6327 = vmatpush1.bf16.msra.mxu0 %v9329_v16  ;;  %6491 = vmatpush1.bf16.msra.mxu1 %v9331_v17  ;;  %v437_v16 = vld [vmem:[%s14475_s1 + $0xcc0] sm:$0xff]  ;;  %v430_v17 = vld [vmem:[%s14475_s1 + $0xc88] sm:$0xff] }
  0x47   :  { %6328 = vmatprep.subr.bf16.mxu0 %v9346_v53  ;;  %6492 = vmatprep.subr.bf16.mxu1 %v9348_v20  ;;  %v9460_v53 = vcombine.high %v414_v7, %v422_v9  ;;  %v9459_v20 = vcombine.low %v414_v7, %v422_v9  ;;  %v9474_v21 = vcombine.high %v429_v14, %v437_v16  ;;  %v541_v9 = vld [vmem:[%s14475_s1 + $0x1000] sm:$0xff] }
  0x48   :  { %6358 = vmatprep.mubr.bf16.mxu0 %v11004_v23  ;;  %6522 = vmatprep.mubr.bf16.mxu1 %v11004_v23  ;;  %v9473_v28 = vcombine.low %v429_v14, %v437_v16  ;;  %v9475_v29 = vcombine.low %v430_v17, %v438_v18  ;;  %v550_v14 = vld [vmem:[%s14475_s1 + $0x1048] sm:$0xff] }
  0x4a   :  { %6329 = vmatpush1.bf16.msra.mxu0 %v9345_v24  ;;  %6493 = vmatpush1.bf16.msra.mxu1 %v9347_v25  ;;  %v453_v24 = vld [vmem:[%s14475_s1 + $0xd40] sm:$0xff]  ;;  %v446_v25 = vld [vmem:[%s14475_s1 + $0xd08] sm:$0xff] }
  0x4b   :  { %6330 = vmatprep.subr.bf16.mxu0 %v9362_v26  ;;  %6494 = vmatprep.subr.bf16.mxu1 %v9364_v30  ;;  %v9476_v26 = vcombine.high %v430_v17, %v438_v18  ;;  %v9490_v30 = vcombine.high %v445_v22, %v453_v24  ;;  %v9489_v36 = vcombine.low %v445_v22, %v453_v24  ;;  %v557_v17 = vld [vmem:[%s14475_s1 + $0x1080] sm:$0xff]  ;;  %v11193_v24 = vld [vmem:[%s14474_s0 + $0x10] sm:$0xff] }
  0x4c   :  { %v9491_v37 = vcombine.low %v446_v25, %v454_v27 }
  0x4e   :  { %6331 = vmatpush1.bf16.msra.mxu0 %v9361_v32  ;;  %6495 = vmatpush1.bf16.msra.mxu1 %v9363_v33  ;;  %v469_v32 = vld [vmem:[%s14475_s1 + $0xdc0] sm:$0xff]  ;;  %v462_v33 = vld [vmem:[%s14475_s1 + $0xd88] sm:$0xff] }
  0x4f   :  { %6332 = vmatprep.subr.bf16.mxu0 %v9378_v34  ;;  %6496 = vmatprep.subr.bf16.mxu1 %v9380_v38  ;;  %v9492_v34 = vcombine.high %v446_v25, %v454_v27  ;;  %v9506_v38 = vcombine.high %v461_v31, %v469_v32  ;;  %v9505_v44 = vcombine.low %v461_v31, %v469_v32  ;;  %v574_v31 = vld [vmem:[%s14475_s1 + $0x1108] sm:$0xff] }
  0x50   :  { %v9507_v45 = vcombine.low %v462_v33, %v470_v35  ;;  %v11197_v25 = vcombine.low %v10988_v15, %v10988_v15  ;;  %v582_v32 = vld [vmem:[%s14475_s1 + $0x1148] sm:$0xff] }
  0x52   :  { %6333 = vmatpush1.bf16.msra.mxu0 %v9377_v40  ;;  %6497 = vmatpush1.bf16.msra.mxu1 %v9379_v41  ;;  %v485_v40 = vld [vmem:[%s14475_s1 + $0xe40] sm:$0xff]  ;;  %v478_v41 = vld [vmem:[%s14475_s1 + $0xe08] sm:$0xff] }
  0x53   :  { %6334 = vmatprep.subr.bf16.mxu0 %v9394_v42  ;;  %6498 = vmatprep.subr.bf16.mxu1 %v9396_v46  ;;  %v9508_v42 = vcombine.high %v462_v33, %v470_v35  ;;  %v9522_v46 = vcombine.high %v477_v39, %v485_v40  ;;  %v9521_v52 = vcombine.low %v477_v39, %v485_v40  ;;  %v590_v39 = vld [vmem:[%s14475_s1 + $0x1188] sm:$0xff] }
  0x54   :  { %v9523_v54 = vcombine.low %v478_v41, %v486_v43  ;;  %v11213_v33 = vcombine.high %v11193_v24, %v11193_v24  ;;  %v9620_v40 = vcombine.high %v574_v31, %v582_v32 }
  0x56   :  { %6335 = vmatpush1.bf16.msra.mxu0 %v9393_v48  ;;  %6499 = vmatpush1.bf16.msra.mxu1 %v9395_v49  ;;  %v501_v48 = vld [vmem:[%s14475_s1 + $0xec0] sm:$0xff]  ;;  %v494_v49 = vld [vmem:[%s14475_s1 + $0xe88] sm:$0xff] }
  0x57   :  { %6336 = vmatprep.subr.bf16.mxu0 %v9410_v50  ;;  %6500 = vmatprep.subr.bf16.mxu1 %v9412_v55  ;;  %v9524_v50 = vcombine.high %v478_v41, %v486_v43  ;;  %v9538_v55 = vcombine.high %v493_v47, %v501_v48  ;;  %v9537_v62 = vcombine.low %v493_v47, %v501_v48  ;;  %v598_v41 = vld [vmem:[%s14475_s1 + $0x11c8] sm:$0xff] }
  0x58   :  { %v9539_v63 = vcombine.low %v494_v49, %v502_v51  ;;  %v9619_v43 = vcombine.low %v574_v31, %v582_v32  ;;  %v606_v47 = vld [vmem:[%s14475_s1 + $0x1208] sm:$0xff]  ;;  %v9636_v48 = vcombine.high %v590_v39, %v598_v41 }
  0x59   :  { %v694_v31 = vld [vmem:[%s14475_s1 + $0x14c8] sm:$0xff] }
  0x5a   :  { %6337 = vmatpush1.bf16.msra.mxu0 %v9409_v58  ;;  %6501 = vmatpush1.bf16.msra.mxu1 %v9411_v59  ;;  %v517_v58 = vld [vmem:[%s14475_s1 + $0xf40] sm:$0xff]  ;;  %v510_v59 = vld [vmem:[%s14475_s1 + $0xf08] sm:$0xff] }
  0x5b   :  { %6338 = vmatprep.subr.bf16.mxu0 %v9426_v60  ;;  %6502 = vmatprep.subr.bf16.mxu1 %v9428_v0  ;;  %v9540_v60 = vcombine.high %v494_v49, %v502_v51  ;;  %v9554_v0 = vcombine.high %v509_v56, %v517_v58  ;;  %v9553_v6 = vcombine.low %v509_v56, %v517_v58  ;;  %v614_v49 = vld [vmem:[%s14475_s1 + $0x1248] sm:$0xff] }
  0x5c   :  { %v9555_v7 = vcombine.low %v510_v59, %v518_v61  ;;  %v9635_v51 = vcombine.low %v590_v39, %v598_v41  ;;  %v622_v56 = vld [vmem:[%s14475_s1 + $0x1288] sm:$0xff]  ;;  %v9652_v58 = vcombine.high %v606_v47, %v614_v49 }
  0x5d   :  { %v710_v39 = vld [vmem:[%s14475_s1 + $0x1548] sm:$0xff] }
  0x5e   :  { %6339 = vmatpush1.bf16.msra.mxu0 %v9425_v2  ;;  %6503 = vmatpush1.bf16.msra.mxu1 %v9427_v3  ;;  %v533_v2 = vld [vmem:[%s14475_s1 + $0xfc0] sm:$0xff]  ;;  %v526_v3 = vld [vmem:[%s14475_s1 + $0xf88] sm:$0xff] }
  0x5f   :  { %6340 = vmatprep.subr.bf16.mxu0 %v9442_v4  ;;  %6504 = vmatprep.subr.bf16.mxu1 %v9444_v8  ;;  %v9556_v4 = vcombine.high %v510_v59, %v518_v61  ;;  %v9570_v8 = vcombine.high %v525_v1, %v533_v2  ;;  %v9569_v16 = vcombine.low %v525_v1, %v533_v2  ;;  %v630_v59 = vld [vmem:[%s14475_s1 + $0x12c8] sm:$0xff] }
  0x60   :  { %v9651_v61 = vcombine.low %v606_v47, %v614_v49  ;;  %v638_v1 = vld [vmem:[%s14475_s1 + $0x1308] sm:$0xff]  ;;  %v9668_v2 = vcombine.high %v622_v56, %v630_v59 }
  0x61   :  { %v726_v47 = vld [vmem:[%s14475_s1 + $0x15c8] sm:$0xff] }
  0x62   :  { %6341 = vmatpush1.bf16.msra.mxu0 %v9441_v10  ;;  %6505 = vmatpush1.bf16.msra.mxu1 %v9443_v11  ;;  %v549_v10 = vld [vmem:[%s14475_s1 + $0x1040] sm:$0xff]  ;;  %v542_v11 = vld [vmem:[%s14475_s1 + $0x1008] sm:$0xff] }
  0x63   :  { %6342 = vmatprep.subr.bf16.mxu0 %v9458_v13  ;;  %6506 = vmatprep.subr.bf16.mxu1 %v9460_v53  ;;  %v9572_v13 = vcombine.high %v526_v3, %v534_v5  ;;  %v9571_v53 = vcombine.low %v526_v3, %v534_v5  ;;  %v9586_v18 = vcombine.high %v541_v9, %v549_v10  ;;  %v646_v3 = vld [vmem:[%s14475_s1 + $0x1348] sm:$0xff] }
  0x64   :  { %v9588_v22 = vcombine.high %v542_v11, %v550_v14  ;;  %v9587_v27 = vcombine.low %v542_v11, %v550_v14  ;;  %v9667_v5 = vcombine.low %v622_v56, %v630_v59  ;;  %v662_v11 = vld [vmem:[%s14475_s1 + $0x13c8] sm:$0xff]  ;;  %v9683_v14 = vcombine.low %v638_v1, %v646_v3 }
  0x65   :  { %v742_v56 = vld [vmem:[%s14475_s1 + $0x1648] sm:$0xff] }
  0x66   :  { %6343 = vmatpush1.bf16.msra.mxu0 %v9457_v19  ;;  %6507 = vmatpush1.bf16.msra.mxu1 %v9459_v20  ;;  %v565_v19 = vld [vmem:[%s14475_s1 + $0x10c0] sm:$0xff]  ;;  %v558_v20 = vld [vmem:[%s14475_s1 + $0x1088] sm:$0xff] }
  0x67   :  { %6344 = vmatprep.subr.bf16.mxu0 %v9474_v21  ;;  %6508 = vmatprep.subr.bf16.mxu1 %v9476_v26  ;;  %v566_v21 = vld [vmem:[%s14475_s1 + $0x10c8] sm:$0xff]  ;;  %v9585_v26 = vcombine.low %v541_v9, %v549_v10  ;;  %v9684_v10 = vcombine.high %v638_v1, %v646_v3 }
  0x68   :  { %v9604_v15 = vcombine.high %v558_v20, %v566_v21  ;;  %v9603_v35 = vcombine.low %v558_v20, %v566_v21  ;;  %v654_v9 = vld [vmem:[%s14475_s1 + $0x1388] sm:$0xff] }
  0x69   :  { %v678_v20 = vld [vmem:[%s14475_s1 + $0x1448] sm:$0xff] }
  0x6a   :  { %6345 = vmatpush1.bf16.msra.mxu0 %v9473_v28  ;;  %6509 = vmatpush1.bf16.msra.mxu1 %v9475_v29  ;;  %v9602_v28 = vcombine.high %v557_v17, %v565_v19  ;;  %v573_v29 = vld [vmem:[%s14475_s1 + $0x1100] sm:$0xff]  ;;  %v758_v1 = vld [vmem:[%s14475_s1 + $0x16c8] sm:$0xff] }
  0x6b   :  { %6346 = vmatprep.subr.bf16.mxu0 %v9490_v30  ;;  %6510 = vmatprep.subr.bf16.mxu1 %v9492_v34  ;;  %v581_v30 = vld [vmem:[%s14475_s1 + $0x1140] sm:$0xff]  ;;  %v9601_v34 = vcombine.low %v557_v17, %v565_v19  ;;  %v9700_v19 = vcombine.high %v654_v9, %v662_v11 }
  0x6c   :  { %v669_v17 = vld [vmem:[%s14475_s1 + $0x1400] sm:$0xff] }
  0x6e   :  { %6347 = vmatpush1.bf16.msra.mxu0 %v9489_v36  ;;  %6511 = vmatpush1.bf16.msra.mxu1 %v9491_v37  ;;  %v9618_v36 = vcombine.high %v573_v29, %v581_v30  ;;  %v589_v37 = vld [vmem:[%s14475_s1 + $0x1180] sm:$0xff] }
  0x6f   :  { %6348 = vmatprep.subr.bf16.mxu0 %v9506_v38  ;;  %6512 = vmatprep.subr.bf16.mxu1 %v9508_v42  ;;  %v597_v38 = vld [vmem:[%s14475_s1 + $0x11c0] sm:$0xff]  ;;  %v9617_v42 = vcombine.low %v573_v29, %v581_v30  ;;  %v686_v29 = vld [vmem:[%s14475_s1 + $0x1488] sm:$0xff] }
  0x70   :  { %v9731_v41 = vcombine.low %v686_v29, %v694_v31 }
  0x72   :  { %6349 = vmatpush1.bf16.msra.mxu0 %v9505_v44  ;;  %6513 = vmatpush1.bf16.msra.mxu1 %v9507_v45  ;;  %v9634_v44 = vcombine.high %v589_v37, %v597_v38  ;;  %v605_v45 = vld [vmem:[%s14475_s1 + $0x1200] sm:$0xff] }
  0x73   :  { %6350 = vmatprep.subr.bf16.mxu0 %v9522_v46  ;;  %6514 = vmatprep.subr.bf16.mxu1 %v9524_v50  ;;  %v613_v46 = vld [vmem:[%s14475_s1 + $0x1240] sm:$0xff]  ;;  %v9633_v50 = vcombine.low %v589_v37, %v597_v38  ;;  %v702_v37 = vld [vmem:[%s14475_s1 + $0x1508] sm:$0xff]  ;;  %v9732_v38 = vcombine.high %v686_v29, %v694_v31 }
  0x74   :  { %v9747_v49 = vcombine.low %v702_v37, %v710_v39  ;;  %v806_v29 = vld [vmem:[%s14475_s1 + $0x1848] sm:$0xff]  ;;  %v813_v31 = vld [vmem:[%s14475_s1 + $0x1880] sm:$0xff] }
  0x76   :  { %6351 = vmatpush1.bf16.msra.mxu0 %v9521_v52  ;;  %6515 = vmatpush1.bf16.msra.mxu1 %v9523_v54  ;;  %v9650_v52 = vcombine.high %v605_v45, %v613_v46  ;;  %v621_v54 = vld [vmem:[%s14475_s1 + $0x1280] sm:$0xff] }
  0x77   :  { %6352 = vmatprep.subr.bf16.mxu0 %v9538_v55  ;;  %6516 = vmatprep.subr.bf16.mxu1 %v9540_v60  ;;  %v629_v55 = vld [vmem:[%s14475_s1 + $0x12c0] sm:$0xff]  ;;  %v9649_v60 = vcombine.low %v605_v45, %v613_v46  ;;  %v718_v45 = vld [vmem:[%s14475_s1 + $0x1588] sm:$0xff]  ;;  %v9748_v46 = vcombine.high %v702_v37, %v710_v39  ;;  %v11406_v39 = vcombine.low %v11193_v24, %v11193_v24 }
  0x78   :  { %v9763_v59 = vcombine.low %v718_v45, %v726_v47 }
  0x7a   :  { %6353 = vmatpush1.bf16.msra.mxu0 %v9537_v62  ;;  %6517 = vmatpush1.bf16.msra.mxu1 %v9539_v63  ;;  %v9666_v62 = vcombine.high %v621_v54, %v629_v55  ;;  %v637_v63 = vld [vmem:[%s14475_s1 + $0x1300] sm:$0xff] }
  0x7b   :  { %6354 = vmatprep.subr.bf16.mxu0 %v9554_v0  ;;  %6518 = vmatprep.subr.bf16.mxu1 %v9556_v4  ;;  %v645_v0 = vld [vmem:[%s14475_s1 + $0x1340] sm:$0xff]  ;;  %v9665_v4 = vcombine.low %v621_v54, %v629_v55  ;;  %v734_v54 = vld [vmem:[%s14475_s1 + $0x1608] sm:$0xff]  ;;  %v9764_v55 = vcombine.high %v718_v45, %v726_v47 }
  0x7c   :  { %v9779_v3 = vcombine.low %v734_v54, %v742_v56  ;;  %v837_v45 = vld [vmem:[%s14475_s1 + $0x1940] sm:$0xff] }
  0x7e   :  { %6355 = vmatpush1.bf16.msra.mxu0 %v9553_v6  ;;  %6519 = vmatpush1.bf16.msra.mxu1 %v9555_v7  ;;  %v9682_v6 = vcombine.high %v637_v63, %v645_v0  ;;  %v653_v7 = vld [vmem:[%s14475_s1 + $0x1380] sm:$0xff] }
  0x7f   :  { %6356 = vmatprep.subr.bf16.mxu0 %v9570_v8  ;;  %6520 = vmatprep.subr.bf16.mxu1 %v9572_v13  ;;  %v661_v8 = vld [vmem:[%s14475_s1 + $0x13c0] sm:$0xff]  ;;  %v9681_v13 = vcombine.low %v637_v63, %v645_v0  ;;  %v750_v63 = vld [vmem:[%s14475_s1 + $0x1688] sm:$0xff]  ;;  %v9780_v0 = vcombine.high %v734_v54, %v742_v56 }
  0x80   :  { %v9697_v21 = vcombine.low %v653_v7, %v661_v8 }
  0x82   :  { %6357 = vmatpush1.bf16.msra.mxu0 %v9569_v16  ;;  %6521 = vmatpush1.bf16.msra.mxu1 %v9571_v53  ;;  %v9698_v16 = vcombine.high %v653_v7, %v661_v8  ;;  %v677_v53 = vld [vmem:[%s14475_s1 + $0x1440] sm:$0xff]  ;;  %v766_v7 = vld [vmem:[%s14475_s1 + $0x1708] sm:$0xff]  ;;  %v9796_v8 = vcombine.high %v750_v63, %v758_v1 }
  0x83   :  { %6367 = vmatprep.subr.bf16.mxu0 %v9586_v18  ;;  %6531 = vmatprep.subr.bf16.mxu1 %v9588_v22  ;;  %v670_v18 = vld [vmem:[%s14475_s1 + $0x1408] sm:$0xff]  ;;  %v9699_v22 = vcombine.low %v654_v9, %v662_v11  ;;  %v9795_v11 = vcombine.low %v750_v63, %v758_v1 }
  0x84   :  { %v9716_v30 = vcombine.high %v670_v18, %v678_v20  ;;  %v9715_v32 = vcombine.low %v670_v18, %v678_v20  ;;  %v774_v9 = vld [vmem:[%s14475_s1 + $0x1748] sm:$0xff] }
  0x85   :  { %6359 = vmatmul.mubr.bf16.vlgmr.msra.gmra.mrb[0].mxu0 %v11197_v25  ;;  %6523 = vmatmul.mubr.bf16.vlgmr.msra.gmra.mrb[0].mxu1 %v11197_v25  ;;  %v790_v18 = vld [vmem:[%s14475_s1 + $0x17c8] sm:$0xff]  ;;  %v9811_v20 = vcombine.low %v766_v7, %v774_v9 }
  0x86   :  { %6368 = vmatpush1.bf16.msra.mxu0 %v9585_v26  ;;  %6532 = vmatpush1.bf16.msra.mxu1 %v9587_v27  ;;  %v9714_v26 = vcombine.high %v669_v17, %v677_v53  ;;  %v685_v27 = vld [vmem:[%s14475_s1 + $0x1480] sm:$0xff] }
  0x87   :  { %6369 = vmatprep.subr.bf16.mxu0 %v9602_v28  ;;  %6533 = vmatprep.subr.bf16.mxu1 %v9604_v15  ;;  %v693_v28 = vld [vmem:[%s14475_s1 + $0x14c0] sm:$0xff]  ;;  %v9713_v15 = vcombine.low %v669_v17, %v677_v53  ;;  %v782_v17 = vld [vmem:[%s14475_s1 + $0x1788] sm:$0xff]  ;;  %v9812_v53 = vcombine.high %v766_v7, %v774_v9 }
  0x88   :  { %6399 = vmatprep.mubr.bf16.mxu0 %v11213_v33  ;;  %6563 = vmatprep.mubr.bf16.mxu1 %v11213_v33 }
  0x8a   :  { %6370 = vmatpush1.bf16.msra.mxu0 %v9601_v34  ;;  %6534 = vmatpush1.bf16.msra.mxu1 %v9603_v35  ;;  %v9730_v34 = vcombine.high %v685_v27, %v693_v28  ;;  %v701_v35 = vld [vmem:[%s14475_s1 + $0x1500] sm:$0xff] }
  0x8b   :  { %6371 = vmatprep.subr.bf16.mxu0 %v9618_v36  ;;  %6535 = vmatprep.subr.bf16.mxu1 %v9620_v40  ;;  %v709_v36 = vld [vmem:[%s14475_s1 + $0x1540] sm:$0xff]  ;;  %v9729_v40 = vcombine.low %v685_v27, %v693_v28  ;;  %v798_v27 = vld [vmem:[%s14475_s1 + $0x1808] sm:$0xff]  ;;  %v9828_v28 = vcombine.high %v782_v17, %v790_v18 }
  0x8c   :  { %v9844_v37 = vcombine.high %v798_v27, %v806_v29 }
  0x8e   :  { %6372 = vmatpush1.bf16.msra.mxu0 %v9617_v42  ;;  %6536 = vmatpush1.bf16.msra.mxu1 %v9619_v43  ;;  %v9746_v42 = vcombine.high %v701_v35, %v709_v36  ;;  %v717_v43 = vld [vmem:[%s14475_s1 + $0x1580] sm:$0xff] }
  0x8f   :  { %6373 = vmatprep.subr.bf16.mxu0 %v9634_v44  ;;  %6537 = vmatprep.subr.bf16.mxu1 %v9636_v48  ;;  %v725_v44 = vld [vmem:[%s14475_s1 + $0x15c0] sm:$0xff]  ;;  %v9745_v48 = vcombine.low %v701_v35, %v709_v36  ;;  %v814_v35 = vld [vmem:[%s14475_s1 + $0x1888] sm:$0xff] }
  0x90   :  { %v822_v36 = vld [vmem:[%s14475_s1 + $0x18c8] sm:$0xff] }
  0x92   :  { %6374 = vmatpush1.bf16.msra.mxu0 %v9633_v50  ;;  %6538 = vmatpush1.bf16.msra.mxu1 %v9635_v51  ;;  %v9762_v50 = vcombine.high %v717_v43, %v725_v44  ;;  %v733_v51 = vld [vmem:[%s14475_s1 + $0x1600] sm:$0xff] }
  0x93   :  { %6375 = vmatprep.subr.bf16.mxu0 %v9650_v52  ;;  %6539 = vmatprep.subr.bf16.mxu1 %v9652_v58  ;;  %v741_v52 = vld [vmem:[%s14475_s1 + $0x1640] sm:$0xff]  ;;  %v9761_v58 = vcombine.low %v717_v43, %v725_v44  ;;  %v9860_v44 = vcombine.high %v814_v35, %v822_v36 }
  0x94   :  { %v829_v43 = vld [vmem:[%s14475_s1 + $0x1900] sm:$0xff] }
  0x96   :  { %6376 = vmatpush1.bf16.msra.mxu0 %v9649_v60  ;;  %6540 = vmatpush1.bf16.msra.mxu1 %v9651_v61  ;;  %v9778_v60 = vcombine.high %v733_v51, %v741_v52  ;;  %v749_v61 = vld [vmem:[%s14475_s1 + $0x1680] sm:$0xff] }
  0x97   :  { %6377 = vmatprep.subr.bf16.mxu0 %v9666_v62  ;;  %6541 = vmatprep.subr.bf16.mxu1 %v9668_v2  ;;  %v757_v62 = vld [vmem:[%s14475_s1 + $0x16c0] sm:$0xff]  ;;  %v9777_v2 = vcombine.low %v733_v51, %v741_v52 }
  0x9a   :  { %6378 = vmatpush1.bf16.msra.mxu0 %v9665_v4  ;;  %6542 = vmatpush1.bf16.msra.mxu1 %v9667_v5  ;;  %v9794_v4 = vcombine.high %v749_v61, %v757_v62  ;;  %v765_v5 = vld [vmem:[%s14475_s1 + $0x1700] sm:$0xff] }
  0x9b   :  { %6379 = vmatprep.subr.bf16.mxu0 %v9682_v6  ;;  %6543 = vmatprep.subr.bf16.mxu1 %v9684_v10  ;;  %v773_v6 = vld [vmem:[%s14475_s1 + $0x1740] sm:$0xff]  ;;  %v9793_v10 = vcombine.low %v749_v61, %v757_v62 }
  0x9e   :  { %6380 = vmatpush1.bf16.msra.mxu0 %v9681_v13  ;;  %6544 = vmatpush1.bf16.msra.mxu1 %v9683_v14  ;;  %v9810_v13 = vcombine.high %v765_v5, %v773_v6  ;;  %v781_v14 = vld [vmem:[%s14475_s1 + $0x1780] sm:$0xff] }
  0x9f   :  { %6381 = vmatprep.subr.bf16.mxu0 %v9698_v16  ;;  %6545 = vmatprep.subr.bf16.mxu1 %v9700_v19  ;;  %v789_v16 = vld [vmem:[%s14475_s1 + $0x17c0] sm:$0xff]  ;;  %v9809_v19 = vcombine.low %v765_v5, %v773_v6 }
  0xa2   :  { %6382 = vmatpush1.bf16.msra.mxu0 %v9697_v21  ;;  %6546 = vmatpush1.bf16.msra.mxu1 %v9699_v22  ;;  %v9826_v21 = vcombine.high %v781_v14, %v789_v16  ;;  %v797_v22 = vld [vmem:[%s14475_s1 + $0x1800] sm:$0xff] }
  0xa3   :  { %6383 = vmatprep.subr.bf16.mxu0 %v9714_v26  ;;  %6547 = vmatprep.subr.bf16.mxu1 %v9716_v30  ;;  %v805_v26 = vld [vmem:[%s14475_s1 + $0x1840] sm:$0xff]  ;;  %v9825_v30 = vcombine.low %v781_v14, %v789_v16 }
  0xa6   :  { %6384 = vmatpush1.bf16.msra.mxu0 %v9713_v15  ;;  %6548 = vmatpush1.bf16.msra.mxu1 %v9715_v32  ;;  %v9827_v15 = vcombine.low %v782_v17, %v790_v18  ;;  %v9842_v32 = vcombine.high %v797_v22, %v805_v26 }
  0xa7   :  { %6385 = vmatprep.subr.bf16.mxu0 %v9730_v34  ;;  %6549 = vmatprep.subr.bf16.mxu1 %v9732_v38  ;;  %v821_v34 = vld [vmem:[%s14475_s1 + $0x18c0] sm:$0xff]  ;;  %v11402_v38 = vld [vmem:[%s14474_s0 + $0x18] sm:$0xff] }
  0xa8   :  { %v11416_v24 = vcombine.high %v11402_v38, %v11402_v38 }
  0xaa   :  { %6386 = vmatpush1.bf16.msra.mxu0 %v9729_v40  ;;  %6550 = vmatpush1.bf16.msra.mxu1 %v9731_v41  ;;  %v9841_v40 = vcombine.low %v797_v22, %v805_v26  ;;  %v9843_v41 = vcombine.low %v798_v27, %v806_v29 }
  0xab   :  { %6387 = vmatprep.subr.bf16.mxu0 %v9746_v42  ;;  %6551 = vmatprep.subr.bf16.mxu1 %v9748_v46  ;;  %v9858_v42 = vcombine.high %v813_v31, %v821_v34 }
  0xae   :  { %6388 = vmatpush1.bf16.msra.mxu0 %v9745_v48  ;;  %6552 = vmatpush1.bf16.msra.mxu1 %v9747_v49 }
  0xaf   :  { %6389 = vmatprep.subr.bf16.mxu0 %v9762_v50  ;;  %6553 = vmatprep.subr.bf16.mxu1 %v9764_v55 }
  0xb2   :  { %6390 = vmatpush1.bf16.msra.mxu0 %v9761_v58  ;;  %6554 = vmatpush1.bf16.msra.mxu1 %v9763_v59 }
  0xb3   :  { %6391 = vmatprep.subr.bf16.mxu0 %v9778_v60  ;;  %6555 = vmatprep.subr.bf16.mxu1 %v9780_v0 }
  0xb6   :  { %6392 = vmatpush1.bf16.msra.mxu0 %v9777_v2  ;;  %6556 = vmatpush1.bf16.msra.mxu1 %v9779_v3 }
  0xb7   :  { %6393 = vmatprep.subr.bf16.mxu0 %v9794_v4  ;;  %6557 = vmatprep.subr.bf16.mxu1 %v9796_v8 }
  0xba   :  { %6394 = vmatpush1.bf16.msra.mxu0 %v9793_v10  ;;  %6558 = vmatpush1.bf16.msra.mxu1 %v9795_v11 }
  0xbb   :  { %6395 = vmatprep.subr.bf16.mxu0 %v9810_v13  ;;  %6559 = vmatprep.subr.bf16.mxu1 %v9812_v53 }
  0xbe   :  { %6396 = vmatpush1.bf16.msra.mxu0 %v9809_v19  ;;  %6560 = vmatpush1.bf16.msra.mxu1 %v9811_v20 }
  0xbf   :  { %6397 = vmatprep.subr.bf16.mxu0 %v9826_v21  ;;  %6561 = vmatprep.subr.bf16.mxu1 %v9828_v28 }
  0xc2   :  { %6398 = vmatpush1.bf16.msra.mxu0 %v9825_v30  ;;  %6562 = vmatpush1.bf16.msra.mxu1 %v9827_v15 }
  0xc3   :  { %6408 = vmatprep.subr.bf16.mxu0 %v9842_v32  ;;  %6572 = vmatprep.subr.bf16.mxu1 %v9844_v37 }
  0xc4   :  { %13 = vsyncpa [#allocation5], 0  ;;  %v830_v46 = vld [vmem:[%s14475_s1 + $0x1908] sm:$0xff]  ;;  %v9857_v48 = vcombine.low %v813_v31, %v821_v34  ;;  %v9859_v49 = vcombine.low %v814_v35, %v822_v36  ;;  %v9874_v50 = vcombine.high %v829_v43, %v837_v45  ;;  %v845_v52 = vld [vmem:[%s14475_s1 + $0x1980] sm:$0xff]  ;;  %v9873_v58 = vcombine.low %v829_v43, %v837_v45 }
  0xc5   :  { %6400 = vmatmul.mubr.bf16.vlgmr.msra.gmra.mrb[0].mxu0 %v11406_v39  ;;  %v838_v47 = vld [vmem:[%s14475_s1 + $0x1948] sm:$0xff]  ;;  %6564 = vmatmul.mubr.bf16.vlgmr.msra.gmra.mrb[0].mxu1 %v11406_v39  ;;  %v853_v54 = vld [vmem:[%s14475_s1 + $0x19c0] sm:$0xff] }
  0xc6   :  { %6409 = vmatpush1.bf16.msra.mxu0 %v9841_v40  ;;  %6573 = vmatpush1.bf16.msra.mxu1 %v9843_v41  ;;  %v9876_v51 = vcombine.high %v830_v46, %v838_v47  ;;  %v846_v55 = vld [vmem:[%s14475_s1 + $0x1988] sm:$0xff]  ;;  %v9875_v59 = vcombine.low %v830_v46, %v838_v47  ;;  %v9890_v60 = vcombine.high %v845_v52, %v853_v54  ;;  %v861_v62 = vld [vmem:[%s14475_s1 + $0x1a00] sm:$0xff] }
  0xc7   :  { %6410 = vmatprep.subr.bf16.mxu0 %v9858_v42  ;;  %6574 = vmatprep.subr.bf16.mxu1 %v9860_v44  ;;  %v854_v56 = vld [vmem:[%s14475_s1 + $0x19c8] sm:$0xff]  ;;  %v869_v63 = vld [vmem:[%s14475_s1 + $0x1a40] sm:$0xff]  ;;  %v9889_v2 = vcombine.low %v845_v52, %v853_v54 }
  0xc8   :  { %6440 = vmatprep.mubr.bf16.mxu0 %v11416_v24  ;;  %6604 = vmatprep.mubr.bf16.mxu1 %v11416_v24  ;;  %v9892_v61 = vcombine.high %v846_v55, %v854_v56  ;;  %v862_v0 = vld [vmem:[%s14475_s1 + $0x1a08] sm:$0xff]  ;;  %v9891_v3 = vcombine.low %v846_v55, %v854_v56  ;;  %v9906_v4 = vcombine.high %v861_v62, %v869_v63  ;;  %v877_v6 = vld [vmem:[%s14475_s1 + $0x1a80] sm:$0xff] }
  0xc9   :  { %v870_v1 = vld [vmem:[%s14475_s1 + $0x1a48] sm:$0xff]  ;;  %v885_v7 = vld [vmem:[%s14475_s1 + $0x1ac0] sm:$0xff]  ;;  %v9905_v10 = vcombine.low %v861_v62, %v869_v63 }
  0xca   :  { %6411 = vmatpush1.bf16.msra.mxu0 %v9857_v48  ;;  %6575 = vmatpush1.bf16.msra.mxu1 %v9859_v49  ;;  %v9908_v5 = vcombine.high %v862_v0, %v870_v1  ;;  %v878_v8 = vld [vmem:[%s14475_s1 + $0x1a88] sm:$0xff]  ;;  %v9907_v11 = vcombine.low %v862_v0, %v870_v1  ;;  %v9922_v13 = vcombine.high %v877_v6, %v885_v7  ;;  %v893_v16 = vld [vmem:[%s14475_s1 + $0x1b00] sm:$0xff] }
  0xcb   :  { %6412 = vmatprep.subr.bf16.mxu0 %v9874_v50  ;;  %6576 = vmatprep.subr.bf16.mxu1 %v9876_v51  ;;  %v886_v9 = vld [vmem:[%s14475_s1 + $0x1ac8] sm:$0xff]  ;;  %v901_v17 = vld [vmem:[%s14475_s1 + $0x1b40] sm:$0xff]  ;;  %v9921_v19 = vcombine.low %v877_v6, %v885_v7 }
  0xcc   :  { %v9924_v14 = vcombine.high %v878_v8, %v886_v9  ;;  %v894_v53 = vld [vmem:[%s14475_s1 + $0x1b08] sm:$0xff]  ;;  %v9923_v20 = vcombine.low %v878_v8, %v886_v9  ;;  %v9938_v21 = vcombine.high %v893_v16, %v901_v17  ;;  %v909_v26 = vld [vmem:[%s14475_s1 + $0x1b80] sm:$0xff]  ;;  %v9937_v30 = vcombine.low %v893_v16, %v901_v17 }
  0xcd   :  { %v902_v18 = vld [vmem:[%s14475_s1 + $0x1b48] sm:$0xff]  ;;  %v917_v27 = vld [vmem:[%s14475_s1 + $0x1bc0] sm:$0xff] }
  0xce   :  { %6413 = vmatpush1.bf16.msra.mxu0 %v9873_v58  ;;  %6577 = vmatpush1.bf16.msra.mxu1 %v9875_v59  ;;  %v9940_v22 = vcombine.high %v894_v53, %v902_v18  ;;  %v910_v28 = vld [vmem:[%s14475_s1 + $0x1b88] sm:$0xff]  ;;  %v9939_v31 = vcombine.low %v894_v53, %v902_v18  ;;  %v9954_v15 = vcombine.high %v909_v26, %v917_v27  ;;  %v925_v34 = vld [vmem:[%s14475_s1 + $0x1c00] sm:$0xff] }
  0xcf   :  { %6414 = vmatprep.subr.bf16.mxu0 %v9890_v60  ;;  %6578 = vmatprep.subr.bf16.mxu1 %v9892_v61  ;;  %v918_v29 = vld [vmem:[%s14475_s1 + $0x1bc8] sm:$0xff]  ;;  %v933_v35 = vld [vmem:[%s14475_s1 + $0x1c40] sm:$0xff]  ;;  %v9953_v40 = vcombine.low %v909_v26, %v917_v27 }
  0xd0   :  { %v9956_v32 = vcombine.high %v910_v28, %v918_v29  ;;  %v926_v36 = vld [vmem:[%s14475_s1 + $0x1c08] sm:$0xff]  ;;  %v9955_v41 = vcombine.low %v910_v28, %v918_v29  ;;  %v9970_v42 = vcombine.high %v925_v34, %v933_v35  ;;  %v941_v44 = vld [vmem:[%s14475_s1 + $0x1c80] sm:$0xff]  ;;  %v9969_v48 = vcombine.low %v925_v34, %v933_v35 }
  0xd1   :  { %v934_v37 = vld [vmem:[%s14475_s1 + $0x1c48] sm:$0xff]  ;;  %v949_v45 = vld [vmem:[%s14475_s1 + $0x1cc0] sm:$0xff] }
  0xd2   :  { %6415 = vmatpush1.bf16.msra.mxu0 %v9889_v2  ;;  %6579 = vmatpush1.bf16.msra.mxu1 %v9891_v3  ;;  %v9972_v43 = vcombine.high %v926_v36, %v934_v37  ;;  %v942_v46 = vld [vmem:[%s14475_s1 + $0x1c88] sm:$0xff]  ;;  %v9971_v49 = vcombine.low %v926_v36, %v934_v37  ;;  %v9986_v50 = vcombine.high %v941_v44, %v949_v45  ;;  %v957_v52 = vld [vmem:[%s14475_s1 + $0x1d00] sm:$0xff] }
  0xd3   :  { %6416 = vmatprep.subr.bf16.mxu0 %v9906_v4  ;;  %6580 = vmatprep.subr.bf16.mxu1 %v9908_v5  ;;  %v950_v47 = vld [vmem:[%s14475_s1 + $0x1cc8] sm:$0xff]  ;;  %v965_v54 = vld [vmem:[%s14475_s1 + $0x1d40] sm:$0xff]  ;;  %v9985_v58 = vcombine.low %v941_v44, %v949_v45  ;;  %v31_v44 = vld [vmem:[%s14475_s1 + $0x10] sm:$0xff] }
  0xd4   :  { %v9988_v51 = vcombine.high %v942_v46, %v950_v47  ;;  %v958_v55 = vld [vmem:[%s14475_s1 + $0x1d08] sm:$0xff]  ;;  %v9987_v59 = vcombine.low %v942_v46, %v950_v47  ;;  %v10002_v60 = vcombine.high %v957_v52, %v965_v54  ;;  %v973_v62 = vld [vmem:[%s14475_s1 + $0x1d80] sm:$0xff]  ;;  %v10001_v2 = vcombine.low %v957_v52, %v965_v54  ;;  %v39_v45 = vld [vmem:[%s14475_s1 + $0x50] sm:$0xff] }
  0xd5   :  { %v966_v56 = vld [vmem:[%s14475_s1 + $0x1d48] sm:$0xff]  ;;  %v981_v63 = vld [vmem:[%s14475_s1 + $0x1dc0] sm:$0xff]  ;;  %v32_v46 = vld [vmem:[%s14475_s1 + $0x18] sm:$0xff] }
  0xd6   :  { %6417 = vmatpush1.bf16.msra.mxu0 %v9905_v10  ;;  %6581 = vmatpush1.bf16.msra.mxu1 %v9907_v11  ;;  %v10004_v61 = vcombine.high %v958_v55, %v966_v56  ;;  %v974_v0 = vld [vmem:[%s14475_s1 + $0x1d88] sm:$0xff]  ;;  %v10003_v3 = vcombine.low %v958_v55, %v966_v56  ;;  %v10018_v4 = vcombine.high %v973_v62, %v981_v63  ;;  %v989_v6 = vld [vmem:[%s14475_s1 + $0x1e00] sm:$0xff]  ;;  %v40_v47 = vld [vmem:[%s14475_s1 + $0x58] sm:$0xff] }
  0xd7   :  { %6418 = vmatprep.subr.bf16.mxu0 %v9922_v13  ;;  %6582 = vmatprep.subr.bf16.mxu1 %v9924_v14  ;;  %v982_v1 = vld [vmem:[%s14475_s1 + $0x1dc8] sm:$0xff]  ;;  %v997_v7 = vld [vmem:[%s14475_s1 + $0x1e40] sm:$0xff]  ;;  %v10017_v10 = vcombine.low %v973_v62, %v981_v63  ;;  %v47_v52 = vld [vmem:[%s14475_s1 + $0x90] sm:$0xff]  ;;  %v11604_v55 = vcombine.low %v11402_v38, %v11402_v38 }
  0xd8   :  { %v10020_v5 = vcombine.high %v974_v0, %v982_v1  ;;  %v990_v8 = vld [vmem:[%s14475_s1 + $0x1e08] sm:$0xff]  ;;  %v10019_v11 = vcombine.low %v974_v0, %v982_v1  ;;  %v10034_v13 = vcombine.high %v989_v6, %v997_v7  ;;  %v1005_v16 = vld [vmem:[%s14475_s1 + $0x1e80] sm:$0xff]  ;;  %v55_v54 = vld [vmem:[%s14475_s1 + $0xd0] sm:$0xff] }
  0xd9   :  { %v998_v9 = vld [vmem:[%s14475_s1 + $0x1e48] sm:$0xff]  ;;  %v1013_v17 = vld [vmem:[%s14475_s1 + $0x1ec0] sm:$0xff]  ;;  %v48_v56 = vld [vmem:[%s14475_s1 + $0x98] sm:$0xff] }
  0xda   :  { %6419 = vmatpush1.bf16.msra.mxu0 %v9921_v19  ;;  %6583 = vmatpush1.bf16.msra.mxu1 %v9923_v20  ;;  %v10036_v14 = vcombine.high %v990_v8, %v998_v9  ;;  %v1006_v53 = vld [vmem:[%s14475_s1 + $0x1e88] sm:$0xff]  ;;  %v10033_v19 = vcombine.low %v989_v6, %v997_v7  ;;  %v10035_v20 = vcombine.low %v990_v8, %v998_v9  ;;  %v1021_v26 = vld [vmem:[%s14475_s1 + $0x1f00] sm:$0xff]  ;;  %v63_v38 = vld [vmem:[%s14475_s1 + $0x110] sm:$0xff] }
  0xdb   :  { %6420 = vmatprep.subr.bf16.mxu0 %v9938_v21  ;;  %6584 = vmatprep.subr.bf16.mxu1 %v9940_v22  ;;  %v1014_v18 = vld [vmem:[%s14475_s1 + $0x1ec8] sm:$0xff]  ;;  %v10050_v21 = vcombine.high %v1005_v16, %v1013_v17  ;;  %v1029_v27 = vld [vmem:[%s14475_s1 + $0x1f40] sm:$0xff]  ;;  %v71_v63 = vld [vmem:[%s14475_s1 + $0x150] sm:$0xff] }
  0xdc   :  { %v10052_v22 = vcombine.high %v1006_v53, %v1014_v18  ;;  %v1022_v28 = vld [vmem:[%s14475_s1 + $0x1f08] sm:$0xff]  ;;  %v1037_v34 = vld [vmem:[%s14475_s1 + $0x1f80] sm:$0xff]  ;;  %v64_v0 = vld [vmem:[%s14475_s1 + $0x118] sm:$0xff] }
  0xdd   :  { %v1030_v29 = vld [vmem:[%s14475_s1 + $0x1f48] sm:$0xff]  ;;  %v1045_v35 = vld [vmem:[%s14475_s1 + $0x1fc0] sm:$0xff]  ;;  %v72_v1 = vld [vmem:[%s14475_s1 + $0x158] sm:$0xff] }
  0xde   :  { %6421 = vmatpush1.bf16.msra.mxu0 %v9937_v30  ;;  %6585 = vmatpush1.bf16.msra.mxu1 %v9939_v31  ;;  %v10049_v30 = vcombine.low %v1005_v16, %v1013_v17  ;;  %v10051_v31 = vcombine.low %v1006_v53, %v1014_v18  ;;  %v1038_v36 = vld [vmem:[%s14475_s1 + $0x1f88] sm:$0xff]  ;;  %v79_v6 = vld [vmem:[%s14475_s1 + $0x190] sm:$0xff]  ;;  %v80_v8 = vld [vmem:[%s14475_s1 + $0x198] sm:$0xff] }
  0xdf   :  { %6422 = vmatprep.subr.bf16.mxu0 %v9954_v15  ;;  %6586 = vmatprep.subr.bf16.mxu1 %v9956_v32  ;;  %v10066_v15 = vcombine.high %v1021_v26, %v1029_v27  ;;  %v10068_v32 = vcombine.high %v1022_v28, %v1030_v29  ;;  %v1046_v37 = vld [vmem:[%s14475_s1 + $0x1fc8] sm:$0xff]  ;;  %v87_v7 = vld [vmem:[%s14475_s1 + $0x1d0] sm:$0xff]  ;;  %v88_v9 = vld [vmem:[%s14475_s1 + $0x1d8] sm:$0xff] }
  0xe0   :  { %v95_v16 = vld [vmem:[%s14475_s1 + $0x210] sm:$0xff]  ;;  %v96_v53 = vld [vmem:[%s14475_s1 + $0x218] sm:$0xff] }
  0xe1   :  { %v103_v17 = vld [vmem:[%s14475_s1 + $0x250] sm:$0xff]  ;;  %v104_v18 = vld [vmem:[%s14475_s1 + $0x258] sm:$0xff] }
  0xe2   :  { %6423 = vmatpush1.bf16.msra.mxu0 %v9953_v40  ;;  %6587 = vmatpush1.bf16.msra.mxu1 %v9955_v41  ;;  %v10065_v40 = vcombine.low %v1021_v26, %v1029_v27  ;;  %v10067_v41 = vcombine.low %v1022_v28, %v1030_v29  ;;  %v111_v26 = vld [vmem:[%s14475_s1 + $0x290] sm:$0xff]  ;;  %v112_v28 = vld [vmem:[%s14475_s1 + $0x298] sm:$0xff] }
  0xe3   :  { %6424 = vmatprep.subr.bf16.mxu0 %v9970_v42  ;;  %6588 = vmatprep.subr.bf16.mxu1 %v9972_v43  ;;  %v10082_v42 = vcombine.high %v1037_v34, %v1045_v35  ;;  %v10084_v43 = vcombine.high %v1038_v36, %v1046_v37  ;;  %v119_v27 = vld [vmem:[%s14475_s1 + $0x2d0] sm:$0xff]  ;;  %v120_v29 = vld [vmem:[%s14475_s1 + $0x2d8] sm:$0xff] }
  0xe6   :  { %6425 = vmatpush1.bf16.msra.mxu0 %v9969_v48  ;;  %6589 = vmatpush1.bf16.msra.mxu1 %v9971_v49  ;;  %v10081_v48 = vcombine.low %v1037_v34, %v1045_v35  ;;  %v10083_v49 = vcombine.low %v1038_v36, %v1046_v37  ;;  %v127_v34 = vld [vmem:[%s14475_s1 + $0x310] sm:$0xff]  ;;  %v128_v36 = vld [vmem:[%s14475_s1 + $0x318] sm:$0xff] }
  0xe7   :  { %6426 = vmatprep.subr.bf16.mxu0 %v9986_v50  ;;  %6590 = vmatprep.subr.bf16.mxu1 %v9988_v51  ;;  %v9078_v50 = vcombine.high %v31_v44, %v39_v45  ;;  %v9080_v51 = vcombine.high %v32_v46, %v40_v47  ;;  %v135_v35 = vld [vmem:[%s14475_s1 + $0x350] sm:$0xff]  ;;  %v136_v37 = vld [vmem:[%s14475_s1 + $0x358] sm:$0xff] }
  0xea   :  { %6427 = vmatpush1.bf16.msra.mxu0 %v9985_v58  ;;  %6591 = vmatpush1.bf16.msra.mxu1 %v9987_v59  ;;  %v56_v58 = vld [vmem:[%s14475_s1 + $0xd8] sm:$0xff]  ;;  %v9077_v59 = vcombine.low %v31_v44, %v39_v45  ;;  %v143_v44 = vld [vmem:[%s14475_s1 + $0x390] sm:$0xff] }
  0xeb   :  { %6428 = vmatprep.subr.bf16.mxu0 %v10002_v60  ;;  %6592 = vmatprep.subr.bf16.mxu1 %v10004_v61  ;;  %v9079_v60 = vcombine.low %v32_v46, %v40_v47  ;;  %v9094_v61 = vcombine.high %v47_v52, %v55_v54  ;;  %v9096_v62 = vcombine.high %v48_v56, %v56_v58  ;;  %v151_v45 = vld [vmem:[%s14475_s1 + $0x3d0] sm:$0xff]  ;;  %v144_v46 = vld [vmem:[%s14475_s1 + $0x398] sm:$0xff] }
  0xec   :  { %v152_v47 = vld [vmem:[%s14475_s1 + $0x3d8] sm:$0xff] }
  0xee   :  { %6429 = vmatpush1.bf16.msra.mxu0 %v10001_v2  ;;  %6593 = vmatpush1.bf16.msra.mxu1 %v10003_v3  ;;  %v9093_v2 = vcombine.low %v47_v52, %v55_v54  ;;  %v9095_v3 = vcombine.low %v48_v56, %v56_v58  ;;  %v159_v52 = vld [vmem:[%s14475_s1 + $0x410] sm:$0xff]  ;;  %v160_v56 = vld [vmem:[%s14475_s1 + $0x418] sm:$0xff] }
  0xef   :  { %6430 = vmatprep.subr.bf16.mxu0 %v10018_v4  ;;  %6594 = vmatprep.subr.bf16.mxu1 %v10020_v5  ;;  %v9110_v4 = vcombine.high %v63_v38, %v71_v63  ;;  %v9112_v5 = vcombine.high %v64_v0, %v72_v1  ;;  %v167_v54 = vld [vmem:[%s14475_s1 + $0x450] sm:$0xff]  ;;  %v168_v58 = vld [vmem:[%s14475_s1 + $0x458] sm:$0xff] }
  0xf2   :  { %6431 = vmatpush1.bf16.msra.mxu0 %v10017_v10  ;;  %6595 = vmatpush1.bf16.msra.mxu1 %v10019_v11  ;;  %v9109_v10 = vcombine.low %v63_v38, %v71_v63  ;;  %v9111_v11 = vcombine.low %v64_v0, %v72_v1  ;;  %v175_v38 = vld [vmem:[%s14475_s1 + $0x490] sm:$0xff]  ;;  %v176_v0 = vld [vmem:[%s14475_s1 + $0x498] sm:$0xff] }
  0xf3   :  { %6432 = vmatprep.subr.bf16.mxu0 %v10034_v13  ;;  %6596 = vmatprep.subr.bf16.mxu1 %v10036_v14  ;;  %v9126_v13 = vcombine.high %v79_v6, %v87_v7  ;;  %v9128_v14 = vcombine.high %v80_v8, %v88_v9  ;;  %v183_v63 = vld [vmem:[%s14475_s1 + $0x4d0] sm:$0xff]  ;;  %v184_v1 = vld [vmem:[%s14475_s1 + $0x4d8] sm:$0xff] }
  0xf6   :  { %6433 = vmatpush1.bf16.msra.mxu0 %v10033_v19  ;;  %6597 = vmatpush1.bf16.msra.mxu1 %v10035_v20  ;;  %v9125_v19 = vcombine.low %v79_v6, %v87_v7  ;;  %v9127_v20 = vcombine.low %v80_v8, %v88_v9  ;;  %v191_v6 = vld [vmem:[%s14475_s1 + $0x510] sm:$0xff]  ;;  %v192_v8 = vld [vmem:[%s14475_s1 + $0x518] sm:$0xff] }
  0xf7   :  { %6434 = vmatprep.subr.bf16.mxu0 %v10050_v21  ;;  %6598 = vmatprep.subr.bf16.mxu1 %v10052_v22  ;;  %v9142_v21 = vcombine.high %v95_v16, %v103_v17  ;;  %v9144_v22 = vcombine.high %v96_v53, %v104_v18  ;;  %v199_v7 = vld [vmem:[%s14475_s1 + $0x550] sm:$0xff]  ;;  %v200_v9 = vld [vmem:[%s14475_s1 + $0x558] sm:$0xff] }
  0xfa   :  { %6435 = vmatpush1.bf16.msra.mxu0 %v10049_v30  ;;  %6599 = vmatpush1.bf16.msra.mxu1 %v10051_v31  ;;  %v9141_v30 = vcombine.low %v95_v16, %v103_v17  ;;  %v9143_v31 = vcombine.low %v96_v53, %v104_v18  ;;  %v207_v16 = vld [vmem:[%s14475_s1 + $0x590] sm:$0xff]  ;;  %v208_v53 = vld [vmem:[%s14475_s1 + $0x598] sm:$0xff] }
  0xfb   :  { %6436 = vmatprep.subr.bf16.mxu0 %v10066_v15  ;;  %6600 = vmatprep.subr.bf16.mxu1 %v10068_v32  ;;  %v9158_v15 = vcombine.high %v111_v26, %v119_v27  ;;  %v9160_v32 = vcombine.high %v112_v28, %v120_v29  ;;  %v215_v17 = vld [vmem:[%s14475_s1 + $0x5d0] sm:$0xff]  ;;  %v216_v18 = vld [vmem:[%s14475_s1 + $0x5d8] sm:$0xff] }
  0xfe   :  { %6437 = vmatpush1.bf16.msra.mxu0 %v10065_v40  ;;  %6601 = vmatpush1.bf16.msra.mxu1 %v10067_v41  ;;  %v9157_v40 = vcombine.low %v111_v26, %v119_v27  ;;  %v9159_v41 = vcombine.low %v112_v28, %v120_v29  ;;  %v223_v26 = vld [vmem:[%s14475_s1 + $0x610] sm:$0xff]  ;;  %v224_v28 = vld [vmem:[%s14475_s1 + $0x618] sm:$0xff] }
  0xff   :  { %6438 = vmatprep.subr.bf16.mxu0 %v10082_v42  ;;  %6602 = vmatprep.subr.bf16.mxu1 %v10084_v43  ;;  %v9174_v42 = vcombine.high %v127_v34, %v135_v35  ;;  %v9176_v43 = vcombine.high %v128_v36, %v136_v37  ;;  %v231_v27 = vld [vmem:[%s14475_s1 + $0x650] sm:$0xff]  ;;  %v232_v29 = vld [vmem:[%s14475_s1 + $0x658] sm:$0xff] }
 0x102   :  { %6439 = vmatpush1.bf16.msra.mxu0 %v10081_v48  ;;  %6603 = vmatpush1.bf16.msra.mxu1 %v10083_v49  ;;  %v9173_v48 = vcombine.low %v127_v34, %v135_v35  ;;  %v9175_v49 = vcombine.low %v128_v36, %v136_v37  ;;  %v239_v34 = vld [vmem:[%s14475_s1 + $0x690] sm:$0xff]  ;;  %v240_v36 = vld [vmem:[%s14475_s1 + $0x698] sm:$0xff] }
 0x103   :  { %6613 = vmatprep.subr.bf16.mxu0 %v9078_v50  ;;  %6777 = vmatprep.subr.bf16.mxu1 %v9080_v51  ;;  %v9190_v50 = vcombine.high %v143_v44, %v151_v45  ;;  %v9192_v51 = vcombine.high %v144_v46, %v152_v47  ;;  %v247_v35 = vld [vmem:[%s14475_s1 + $0x6d0] sm:$0xff]  ;;  %v248_v37 = vld [vmem:[%s14475_s1 + $0x6d8] sm:$0xff] }
 0x105   :  { %6441 = vmatmul.mubr.bf16.vlgmr.msra.gmra.mrb[0].mxu0 %v11604_v55  ;;  %6605 = vmatmul.mubr.bf16.vlgmr.msra.gmra.mrb[0].mxu1 %v11604_v55 }
 0x106   :  { %6614 = vmatpush1.bf16.msra.mxu0 %v9077_v59  ;;  %6778 = vmatpush1.bf16.msra.mxu1 %v9079_v60  ;;  %v9189_v59 = vcombine.low %v143_v44, %v151_v45  ;;  %v9191_v60 = vcombine.low %v144_v46, %v152_v47  ;;  %v255_v44 = vld [vmem:[%s14475_s1 + $0x710] sm:$0xff]  ;;  %v256_v46 = vld [vmem:[%s14475_s1 + $0x718] sm:$0xff] }
 0x107   :  { %6615 = vmatprep.subr.bf16.mxu0 %v9094_v61  ;;  %6779 = vmatprep.subr.bf16.mxu1 %v9096_v62  ;;  %v9206_v61 = vcombine.high %v159_v52, %v167_v54  ;;  %v9208_v62 = vcombine.high %v160_v56, %v168_v58  ;;  %v263_v45 = vld [vmem:[%s14475_s1 + $0x750] sm:$0xff]  ;;  %v264_v47 = vld [vmem:[%s14475_s1 + $0x758] sm:$0xff] }
 0x108   :  { %6645 = vmatprep.mubr.bf16.mxu0 %v10851_v57  ;;  %6809 = vmatprep.mubr.bf16.mxu1 %v10851_v57 }
 0x10a   :  { %6616 = vmatpush1.bf16.msra.mxu0 %v9093_v2  ;;  %6780 = vmatpush1.bf16.msra.mxu1 %v9095_v3  ;;  %v9205_v2 = vcombine.low %v159_v52, %v167_v54  ;;  %v9207_v3 = vcombine.low %v160_v56, %v168_v58  ;;  %v271_v52 = vld [vmem:[%s14475_s1 + $0x790] sm:$0xff]  ;;  %v272_v56 = vld [vmem:[%s14475_s1 + $0x798] sm:$0xff] }
 0x10b   :  { %6617 = vmatprep.subr.bf16.mxu0 %v9110_v4  ;;  %6781 = vmatprep.subr.bf16.mxu1 %v9112_v5  ;;  %v9222_v4 = vcombine.high %v175_v38, %v183_v63  ;;  %v9224_v5 = vcombine.high %v176_v0, %v184_v1  ;;  %v279_v54 = vld [vmem:[%s14475_s1 + $0x7d0] sm:$0xff]  ;;  %v280_v58 = vld [vmem:[%s14475_s1 + $0x7d8] sm:$0xff] }
 0x10e   :  { %6618 = vmatpush1.bf16.msra.mxu0 %v9109_v10  ;;  %6782 = vmatpush1.bf16.msra.mxu1 %v9111_v11  ;;  %v9221_v10 = vcombine.low %v175_v38, %v183_v63  ;;  %v9223_v11 = vcombine.low %v176_v0, %v184_v1  ;;  %v287_v38 = vld [vmem:[%s14475_s1 + $0x810] sm:$0xff]  ;;  %v288_v0 = vld [vmem:[%s14475_s1 + $0x818] sm:$0xff] }
 0x10f   :  { %6619 = vmatprep.subr.bf16.mxu0 %v9126_v13  ;;  %6783 = vmatprep.subr.bf16.mxu1 %v9128_v14  ;;  %v9238_v13 = vcombine.high %v191_v6, %v199_v7  ;;  %v9240_v14 = vcombine.high %v192_v8, %v200_v9  ;;  %v295_v63 = vld [vmem:[%s14475_s1 + $0x850] sm:$0xff]  ;;  %v296_v1 = vld [vmem:[%s14475_s1 + $0x858] sm:$0xff] }
 0x112   :  { %6620 = vmatpush1.bf16.msra.mxu0 %v9125_v19  ;;  %6784 = vmatpush1.bf16.msra.mxu1 %v9127_v20  ;;  %v9237_v19 = vcombine.low %v191_v6, %v199_v7  ;;  %v9239_v20 = vcombine.low %v192_v8, %v200_v9  ;;  %v303_v6 = vld [vmem:[%s14475_s1 + $0x890] sm:$0xff]  ;;  %v304_v8 = vld [vmem:[%s14475_s1 + $0x898] sm:$0xff] }
 0x113   :  { %6621 = vmatprep.subr.bf16.mxu0 %v9142_v21  ;;  %6785 = vmatprep.subr.bf16.mxu1 %v9144_v22  ;;  %v9254_v21 = vcombine.high %v207_v16, %v215_v17  ;;  %v9256_v22 = vcombine.high %v208_v53, %v216_v18  ;;  %v311_v7 = vld [vmem:[%s14475_s1 + $0x8d0] sm:$0xff]  ;;  %v312_v9 = vld [vmem:[%s14475_s1 + $0x8d8] sm:$0xff] }
 0x116   :  { %6622 = vmatpush1.bf16.msra.mxu0 %v9141_v30  ;;  %6786 = vmatpush1.bf16.msra.mxu1 %v9143_v31  ;;  %v9253_v30 = vcombine.low %v207_v16, %v215_v17  ;;  %v9255_v31 = vcombine.low %v208_v53, %v216_v18  ;;  %v319_v16 = vld [vmem:[%s14475_s1 + $0x910] sm:$0xff]  ;;  %v320_v53 = vld [vmem:[%s14475_s1 + $0x918] sm:$0xff] }
 0x117   :  { %6623 = vmatprep.subr.bf16.mxu0 %v9158_v15  ;;  %6787 = vmatprep.subr.bf16.mxu1 %v9160_v32  ;;  %v9270_v15 = vcombine.high %v223_v26, %v231_v27  ;;  %v9272_v32 = vcombine.high %v224_v28, %v232_v29  ;;  %v327_v17 = vld [vmem:[%s14475_s1 + $0x950] sm:$0xff]  ;;  %v328_v18 = vld [vmem:[%s14475_s1 + $0x958] sm:$0xff] }
 0x11a   :  { %6624 = vmatpush1.bf16.msra.mxu0 %v9157_v40  ;;  %6788 = vmatpush1.bf16.msra.mxu1 %v9159_v41  ;;  %v9269_v40 = vcombine.low %v223_v26, %v231_v27  ;;  %v9271_v41 = vcombine.low %v224_v28, %v232_v29  ;;  %v335_v26 = vld [vmem:[%s14475_s1 + $0x990] sm:$0xff]  ;;  %v336_v28 = vld [vmem:[%s14475_s1 + $0x998] sm:$0xff] }
 0x11b   :  { %6625 = vmatprep.subr.bf16.mxu0 %v9174_v42  ;;  %6789 = vmatprep.subr.bf16.mxu1 %v9176_v43  ;;  %v9286_v42 = vcombine.high %v239_v34, %v247_v35  ;;  %v9288_v43 = vcombine.high %v240_v36, %v248_v37  ;;  %v343_v27 = vld [vmem:[%s14475_s1 + $0x9d0] sm:$0xff]  ;;  %v344_v29 = vld [vmem:[%s14475_s1 + $0x9d8] sm:$0xff] }
 0x11e   :  { %6626 = vmatpush1.bf16.msra.mxu0 %v9173_v48  ;;  %6790 = vmatpush1.bf16.msra.mxu1 %v9175_v49  ;;  %v9285_v48 = vcombine.low %v239_v34, %v247_v35  ;;  %v9287_v49 = vcombine.low %v240_v36, %v248_v37  ;;  %v351_v34 = vld [vmem:[%s14475_s1 + $0xa10] sm:$0xff]  ;;  %v352_v36 = vld [vmem:[%s14475_s1 + $0xa18] sm:$0xff] }
 0x11f   :  { %6627 = vmatprep.subr.bf16.mxu0 %v9190_v50  ;;  %6791 = vmatprep.subr.bf16.mxu1 %v9192_v51  ;;  %v9302_v50 = vcombine.high %v255_v44, %v263_v45  ;;  %v9304_v51 = vcombine.high %v256_v46, %v264_v47  ;;  %v359_v35 = vld [vmem:[%s14475_s1 + $0xa50] sm:$0xff]  ;;  %v360_v37 = vld [vmem:[%s14475_s1 + $0xa58] sm:$0xff] }
 0x122   :  { %6628 = vmatpush1.bf16.msra.mxu0 %v9189_v59  ;;  %6792 = vmatpush1.bf16.msra.mxu1 %v9191_v60  ;;  %v9301_v59 = vcombine.low %v255_v44, %v263_v45  ;;  %v9303_v60 = vcombine.low %v256_v46, %v264_v47  ;;  %v367_v44 = vld [vmem:[%s14475_s1 + $0xa90] sm:$0xff]  ;;  %v368_v46 = vld [vmem:[%s14475_s1 + $0xa98] sm:$0xff] }
 0x123   :  { %6629 = vmatprep.subr.bf16.mxu0 %v9206_v61  ;;  %6793 = vmatprep.subr.bf16.mxu1 %v9208_v62  ;;  %v9318_v61 = vcombine.high %v271_v52, %v279_v54  ;;  %v9320_v62 = vcombine.high %v272_v56, %v280_v58  ;;  %v375_v45 = vld [vmem:[%s14475_s1 + $0xad0] sm:$0xff]  ;;  %v376_v47 = vld [vmem:[%s14475_s1 + $0xad8] sm:$0xff] }
 0x126   :  { %6630 = vmatpush1.bf16.msra.mxu0 %v9205_v2  ;;  %6794 = vmatpush1.bf16.msra.mxu1 %v9207_v3  ;;  %v9317_v2 = vcombine.low %v271_v52, %v279_v54  ;;  %v9319_v3 = vcombine.low %v272_v56, %v280_v58  ;;  %v383_v52 = vld [vmem:[%s14475_s1 + $0xb10] sm:$0xff]  ;;  %v384_v56 = vld [vmem:[%s14475_s1 + $0xb18] sm:$0xff] }
 0x127   :  { %6631 = vmatprep.subr.bf16.mxu0 %v9222_v4  ;;  %6795 = vmatprep.subr.bf16.mxu1 %v9224_v5  ;;  %v9334_v4 = vcombine.high %v287_v38, %v295_v63  ;;  %v9336_v5 = vcombine.high %v288_v0, %v296_v1  ;;  %v391_v54 = vld [vmem:[%s14475_s1 + $0xb50] sm:$0xff]  ;;  %v392_v58 = vld [vmem:[%s14475_s1 + $0xb58] sm:$0xff] }
 0x12a   :  { %6632 = vmatpush1.bf16.msra.mxu0 %v9221_v10  ;;  %6796 = vmatpush1.bf16.msra.mxu1 %v9223_v11  ;;  %v9333_v10 = vcombine.low %v287_v38, %v295_v63  ;;  %v9335_v11 = vcombine.low %v288_v0, %v296_v1  ;;  %v399_v38 = vld [vmem:[%s14475_s1 + $0xb90] sm:$0xff]  ;;  %v400_v0 = vld [vmem:[%s14475_s1 + $0xb98] sm:$0xff] }
 0x12b   :  { %6633 = vmatprep.subr.bf16.mxu0 %v9238_v13  ;;  %6797 = vmatprep.subr.bf16.mxu1 %v9240_v14  ;;  %v9350_v13 = vcombine.high %v303_v6, %v311_v7  ;;  %v9352_v14 = vcombine.high %v304_v8, %v312_v9  ;;  %v407_v63 = vld [vmem:[%s14475_s1 + $0xbd0] sm:$0xff]  ;;  %v408_v1 = vld [vmem:[%s14475_s1 + $0xbd8] sm:$0xff] }
 0x12e   :  { %6634 = vmatpush1.bf16.msra.mxu0 %v9237_v19  ;;  %6798 = vmatpush1.bf16.msra.mxu1 %v9239_v20  ;;  %v9349_v19 = vcombine.low %v303_v6, %v311_v7  ;;  %v9351_v20 = vcombine.low %v304_v8, %v312_v9  ;;  %v415_v6 = vld [vmem:[%s14475_s1 + $0xc10] sm:$0xff]  ;;  %v416_v8 = vld [vmem:[%s14475_s1 + $0xc18] sm:$0xff] }
 0x12f   :  { %6635 = vmatprep.subr.bf16.mxu0 %v9254_v21  ;;  %6799 = vmatprep.subr.bf16.mxu1 %v9256_v22  ;;  %v9366_v21 = vcombine.high %v319_v16, %v327_v17  ;;  %v9368_v22 = vcombine.high %v320_v53, %v328_v18  ;;  %v423_v7 = vld [vmem:[%s14475_s1 + $0xc50] sm:$0xff]  ;;  %v424_v9 = vld [vmem:[%s14475_s1 + $0xc58] sm:$0xff] }
 0x132   :  { %6636 = vmatpush1.bf16.msra.mxu0 %v9253_v30  ;;  %6800 = vmatpush1.bf16.msra.mxu1 %v9255_v31  ;;  %v9365_v30 = vcombine.low %v319_v16, %v327_v17  ;;  %v9367_v31 = vcombine.low %v320_v53, %v328_v18  ;;  %v431_v16 = vld [vmem:[%s14475_s1 + $0xc90] sm:$0xff]  ;;  %v432_v53 = vld [vmem:[%s14475_s1 + $0xc98] sm:$0xff] }
 0x133   :  { %6637 = vmatprep.subr.bf16.mxu0 %v9270_v15  ;;  %6801 = vmatprep.subr.bf16.mxu1 %v9272_v32  ;;  %v9382_v15 = vcombine.high %v335_v26, %v343_v27  ;;  %v9384_v32 = vcombine.high %v336_v28, %v344_v29  ;;  %v439_v17 = vld [vmem:[%s14475_s1 + $0xcd0] sm:$0xff]  ;;  %v440_v18 = vld [vmem:[%s14475_s1 + $0xcd8] sm:$0xff] }
 0x136   :  { %6638 = vmatpush1.bf16.msra.mxu0 %v9269_v40  ;;  %6802 = vmatpush1.bf16.msra.mxu1 %v9271_v41  ;;  %v9381_v40 = vcombine.low %v335_v26, %v343_v27  ;;  %v9383_v41 = vcombine.low %v336_v28, %v344_v29  ;;  %v447_v26 = vld [vmem:[%s14475_s1 + $0xd10] sm:$0xff]  ;;  %v448_v28 = vld [vmem:[%s14475_s1 + $0xd18] sm:$0xff] }
 0x137   :  { %6639 = vmatprep.subr.bf16.mxu0 %v9286_v42  ;;  %6803 = vmatprep.subr.bf16.mxu1 %v9288_v43  ;;  %v9398_v42 = vcombine.high %v351_v34, %v359_v35  ;;  %v9400_v43 = vcombine.high %v352_v36, %v360_v37  ;;  %v455_v27 = vld [vmem:[%s14475_s1 + $0xd50] sm:$0xff]  ;;  %v456_v29 = vld [vmem:[%s14475_s1 + $0xd58] sm:$0xff] }
 0x13a   :  { %6640 = vmatpush1.bf16.msra.mxu0 %v9285_v48  ;;  %6804 = vmatpush1.bf16.msra.mxu1 %v9287_v49  ;;  %v9397_v48 = vcombine.low %v351_v34, %v359_v35  ;;  %v9399_v49 = vcombine.low %v352_v36, %v360_v37  ;;  %v463_v34 = vld [vmem:[%s14475_s1 + $0xd90] sm:$0xff]  ;;  %v464_v36 = vld [vmem:[%s14475_s1 + $0xd98] sm:$0xff] }
 0x13b   :  { %6641 = vmatprep.subr.bf16.mxu0 %v9302_v50  ;;  %6805 = vmatprep.subr.bf16.mxu1 %v9304_v51  ;;  %v9414_v50 = vcombine.high %v367_v44, %v375_v45  ;;  %v9416_v51 = vcombine.high %v368_v46, %v376_v47  ;;  %v471_v35 = vld [vmem:[%s14475_s1 + $0xdd0] sm:$0xff]  ;;  %v472_v37 = vld [vmem:[%s14475_s1 + $0xdd8] sm:$0xff] }
 0x13e   :  { %6642 = vmatpush1.bf16.msra.mxu0 %v9301_v59  ;;  %6806 = vmatpush1.bf16.msra.mxu1 %v9303_v60  ;;  %v9413_v59 = vcombine.low %v367_v44, %v375_v45  ;;  %v9415_v60 = vcombine.low %v368_v46, %v376_v47  ;;  %v479_v44 = vld [vmem:[%s14475_s1 + $0xe10] sm:$0xff]  ;;  %v480_v46 = vld [vmem:[%s14475_s1 + $0xe18] sm:$0xff] }
 0x13f   :  { %6643 = vmatprep.subr.bf16.mxu0 %v9318_v61  ;;  %6807 = vmatprep.subr.bf16.mxu1 %v9320_v62  ;;  %v9430_v61 = vcombine.high %v383_v52, %v391_v54  ;;  %v9432_v62 = vcombine.high %v384_v56, %v392_v58  ;;  %v487_v45 = vld [vmem:[%s14475_s1 + $0xe50] sm:$0xff]  ;;  %v488_v47 = vld [vmem:[%s14475_s1 + $0xe58] sm:$0xff] }
 0x142   :  { %6644 = vmatpush1.bf16.msra.mxu0 %v9317_v2  ;;  %6808 = vmatpush1.bf16.msra.mxu1 %v9319_v3  ;;  %v9429_v2 = vcombine.low %v383_v52, %v391_v54  ;;  %v9431_v3 = vcombine.low %v384_v56, %v392_v58  ;;  %v495_v52 = vld [vmem:[%s14475_s1 + $0xe90] sm:$0xff]  ;;  %v496_v56 = vld [vmem:[%s14475_s1 + $0xe98] sm:$0xff] }
 0x143   :  { %6654 = vmatprep.subr.bf16.mxu0 %v9334_v4  ;;  %6818 = vmatprep.subr.bf16.mxu1 %v9336_v5  ;;  %v9446_v4 = vcombine.high %v399_v38, %v407_v63  ;;  %v9448_v5 = vcombine.high %v400_v0, %v408_v1  ;;  %v503_v54 = vld [vmem:[%s14475_s1 + $0xed0] sm:$0xff]  ;;  %v504_v58 = vld [vmem:[%s14475_s1 + $0xed8] sm:$0xff] }
 0x145   :  { %6646 = vmatmul.mubr.bf16.vlgmr.msra.gmra.mrb[4].mxu0 %v10977_v12  ;;  %6810 = vmatmul.mubr.bf16.vlgmr.msra.gmra.mrb[4].mxu1 %v10977_v12 }
 0x146   :  { %6655 = vmatpush1.bf16.msra.mxu0 %v9333_v10  ;;  %6819 = vmatpush1.bf16.msra.mxu1 %v9335_v11  ;;  %v9445_v10 = vcombine.low %v399_v38, %v407_v63  ;;  %v9447_v11 = vcombine.low %v400_v0, %v408_v1  ;;  %v511_v38 = vld [vmem:[%s14475_s1 + $0xf10] sm:$0xff]  ;;  %v512_v0 = vld [vmem:[%s14475_s1 + $0xf18] sm:$0xff] }
 0x147   :  { %6656 = vmatprep.subr.bf16.mxu0 %v9350_v13  ;;  %6820 = vmatprep.subr.bf16.mxu1 %v9352_v14  ;;  %v9462_v13 = vcombine.high %v415_v6, %v423_v7  ;;  %v9464_v14 = vcombine.high %v416_v8, %v424_v9  ;;  %v519_v63 = vld [vmem:[%s14475_s1 + $0xf50] sm:$0xff]  ;;  %v520_v1 = vld [vmem:[%s14475_s1 + $0xf58] sm:$0xff] }
 0x148   :  { %6686 = vmatprep.mubr.bf16.mxu0 %v11004_v23  ;;  %6850 = vmatprep.mubr.bf16.mxu1 %v11004_v23 }
 0x14a   :  { %6657 = vmatpush1.bf16.msra.mxu0 %v9349_v19  ;;  %6821 = vmatpush1.bf16.msra.mxu1 %v9351_v20  ;;  %v9461_v19 = vcombine.low %v415_v6, %v423_v7  ;;  %v9463_v20 = vcombine.low %v416_v8, %v424_v9  ;;  %v527_v6 = vld [vmem:[%s14475_s1 + $0xf90] sm:$0xff]  ;;  %v528_v8 = vld [vmem:[%s14475_s1 + $0xf98] sm:$0xff] }
 0x14b   :  { %6658 = vmatprep.subr.bf16.mxu0 %v9366_v21  ;;  %6822 = vmatprep.subr.bf16.mxu1 %v9368_v22  ;;  %v9478_v21 = vcombine.high %v431_v16, %v439_v17  ;;  %v9480_v22 = vcombine.high %v432_v53, %v440_v18  ;;  %v535_v7 = vld [vmem:[%s14475_s1 + $0xfd0] sm:$0xff]  ;;  %v536_v9 = vld [vmem:[%s14475_s1 + $0xfd8] sm:$0xff] }
 0x14e   :  { %6659 = vmatpush1.bf16.msra.mxu0 %v9365_v30  ;;  %6823 = vmatpush1.bf16.msra.mxu1 %v9367_v31  ;;  %v9477_v30 = vcombine.low %v431_v16, %v439_v17  ;;  %v9479_v31 = vcombine.low %v432_v53, %v440_v18  ;;  %v543_v16 = vld [vmem:[%s14475_s1 + $0x1010] sm:$0xff]  ;;  %v544_v53 = vld [vmem:[%s14475_s1 + $0x1018] sm:$0xff] }
 0x14f   :  { %6660 = vmatprep.subr.bf16.mxu0 %v9382_v15  ;;  %6824 = vmatprep.subr.bf16.mxu1 %v9384_v32  ;;  %v9494_v15 = vcombine.high %v447_v26, %v455_v27  ;;  %v9496_v32 = vcombine.high %v448_v28, %v456_v29  ;;  %v551_v17 = vld [vmem:[%s14475_s1 + $0x1050] sm:$0xff]  ;;  %v552_v18 = vld [vmem:[%s14475_s1 + $0x1058] sm:$0xff] }
 0x152   :  { %6661 = vmatpush1.bf16.msra.mxu0 %v9381_v40  ;;  %6825 = vmatpush1.bf16.msra.mxu1 %v9383_v41  ;;  %v9493_v40 = vcombine.low %v447_v26, %v455_v27  ;;  %v9495_v41 = vcombine.low %v448_v28, %v456_v29  ;;  %v559_v26 = vld [vmem:[%s14475_s1 + $0x1090] sm:$0xff]  ;;  %v560_v28 = vld [vmem:[%s14475_s1 + $0x1098] sm:$0xff] }
 0x153   :  { %6662 = vmatprep.subr.bf16.mxu0 %v9398_v42  ;;  %6826 = vmatprep.subr.bf16.mxu1 %v9400_v43  ;;  %v9510_v42 = vcombine.high %v463_v34, %v471_v35  ;;  %v9512_v43 = vcombine.high %v464_v36, %v472_v37  ;;  %v567_v27 = vld [vmem:[%s14475_s1 + $0x10d0] sm:$0xff]  ;;  %v568_v29 = vld [vmem:[%s14475_s1 + $0x10d8] sm:$0xff] }
 0x156   :  { %6663 = vmatpush1.bf16.msra.mxu0 %v9397_v48  ;;  %6827 = vmatpush1.bf16.msra.mxu1 %v9399_v49  ;;  %v9509_v48 = vcombine.low %v463_v34, %v471_v35  ;;  %v9511_v49 = vcombine.low %v464_v36, %v472_v37  ;;  %v575_v34 = vld [vmem:[%s14475_s1 + $0x1110] sm:$0xff]  ;;  %v576_v36 = vld [vmem:[%s14475_s1 + $0x1118] sm:$0xff] }
 0x157   :  { %6664 = vmatprep.subr.bf16.mxu0 %v9414_v50  ;;  %6828 = vmatprep.subr.bf16.mxu1 %v9416_v51  ;;  %v9526_v50 = vcombine.high %v479_v44, %v487_v45  ;;  %v9528_v51 = vcombine.high %v480_v46, %v488_v47  ;;  %v583_v35 = vld [vmem:[%s14475_s1 + $0x1150] sm:$0xff]  ;;  %v584_v37 = vld [vmem:[%s14475_s1 + $0x1158] sm:$0xff] }
 0x15a   :  { %6665 = vmatpush1.bf16.msra.mxu0 %v9413_v59  ;;  %6829 = vmatpush1.bf16.msra.mxu1 %v9415_v60  ;;  %v9525_v59 = vcombine.low %v479_v44, %v487_v45  ;;  %v9527_v60 = vcombine.low %v480_v46, %v488_v47  ;;  %v591_v44 = vld [vmem:[%s14475_s1 + $0x1190] sm:$0xff]  ;;  %v592_v46 = vld [vmem:[%s14475_s1 + $0x1198] sm:$0xff] }
 0x15b   :  { %6666 = vmatprep.subr.bf16.mxu0 %v9430_v61  ;;  %6830 = vmatprep.subr.bf16.mxu1 %v9432_v62  ;;  %v9542_v61 = vcombine.high %v495_v52, %v503_v54  ;;  %v9544_v62 = vcombine.high %v496_v56, %v504_v58  ;;  %v599_v45 = vld [vmem:[%s14475_s1 + $0x11d0] sm:$0xff]  ;;  %v600_v47 = vld [vmem:[%s14475_s1 + $0x11d8] sm:$0xff] }
 0x15e   :  { %6667 = vmatpush1.bf16.msra.mxu0 %v9429_v2  ;;  %6831 = vmatpush1.bf16.msra.mxu1 %v9431_v3  ;;  %v9541_v2 = vcombine.low %v495_v52, %v503_v54  ;;  %v9543_v3 = vcombine.low %v496_v56, %v504_v58  ;;  %v607_v52 = vld [vmem:[%s14475_s1 + $0x1210] sm:$0xff]  ;;  %v608_v56 = vld [vmem:[%s14475_s1 + $0x1218] sm:$0xff] }
 0x15f   :  { %6668 = vmatprep.subr.bf16.mxu0 %v9446_v4  ;;  %6832 = vmatprep.subr.bf16.mxu1 %v9448_v5  ;;  %v9558_v4 = vcombine.high %v511_v38, %v519_v63  ;;  %v9560_v5 = vcombine.high %v512_v0, %v520_v1  ;;  %v615_v54 = vld [vmem:[%s14475_s1 + $0x1250] sm:$0xff]  ;;  %v616_v58 = vld [vmem:[%s14475_s1 + $0x1258] sm:$0xff] }
 0x162   :  { %6669 = vmatpush1.bf16.msra.mxu0 %v9445_v10  ;;  %6833 = vmatpush1.bf16.msra.mxu1 %v9447_v11  ;;  %v9557_v10 = vcombine.low %v511_v38, %v519_v63  ;;  %v9559_v11 = vcombine.low %v512_v0, %v520_v1  ;;  %v623_v38 = vld [vmem:[%s14475_s1 + $0x1290] sm:$0xff]  ;;  %v624_v0 = vld [vmem:[%s14475_s1 + $0x1298] sm:$0xff] }
 0x163   :  { %6670 = vmatprep.subr.bf16.mxu0 %v9462_v13  ;;  %6834 = vmatprep.subr.bf16.mxu1 %v9464_v14  ;;  %v9574_v13 = vcombine.high %v527_v6, %v535_v7  ;;  %v9576_v14 = vcombine.high %v528_v8, %v536_v9  ;;  %v631_v63 = vld [vmem:[%s14475_s1 + $0x12d0] sm:$0xff]  ;;  %v632_v1 = vld [vmem:[%s14475_s1 + $0x12d8] sm:$0xff] }
 0x166   :  { %6671 = vmatpush1.bf16.msra.mxu0 %v9461_v19  ;;  %6835 = vmatpush1.bf16.msra.mxu1 %v9463_v20  ;;  %v9573_v19 = vcombine.low %v527_v6, %v535_v7  ;;  %v9575_v20 = vcombine.low %v528_v8, %v536_v9  ;;  %v639_v6 = vld [vmem:[%s14475_s1 + $0x1310] sm:$0xff]  ;;  %v640_v8 = vld [vmem:[%s14475_s1 + $0x1318] sm:$0xff] }
 0x167   :  { %6672 = vmatprep.subr.bf16.mxu0 %v9478_v21  ;;  %6836 = vmatprep.subr.bf16.mxu1 %v9480_v22  ;;  %v9590_v21 = vcombine.high %v543_v16, %v551_v17  ;;  %v9592_v22 = vcombine.high %v544_v53, %v552_v18  ;;  %v647_v7 = vld [vmem:[%s14475_s1 + $0x1350] sm:$0xff]  ;;  %v648_v9 = vld [vmem:[%s14475_s1 + $0x1358] sm:$0xff] }
 0x16a   :  { %6673 = vmatpush1.bf16.msra.mxu0 %v9477_v30  ;;  %6837 = vmatpush1.bf16.msra.mxu1 %v9479_v31  ;;  %v9589_v30 = vcombine.low %v543_v16, %v551_v17  ;;  %v9591_v31 = vcombine.low %v544_v53, %v552_v18  ;;  %v655_v16 = vld [vmem:[%s14475_s1 + $0x1390] sm:$0xff]  ;;  %v656_v53 = vld [vmem:[%s14475_s1 + $0x1398] sm:$0xff] }
 0x16b   :  { %6674 = vmatprep.subr.bf16.mxu0 %v9494_v15  ;;  %6838 = vmatprep.subr.bf16.mxu1 %v9496_v32  ;;  %v9606_v15 = vcombine.high %v559_v26, %v567_v27  ;;  %v9608_v32 = vcombine.high %v560_v28, %v568_v29  ;;  %v663_v17 = vld [vmem:[%s14475_s1 + $0x13d0] sm:$0xff]  ;;  %v664_v18 = vld [vmem:[%s14475_s1 + $0x13d8] sm:$0xff] }
 0x16e   :  { %6675 = vmatpush1.bf16.msra.mxu0 %v9493_v40  ;;  %6839 = vmatpush1.bf16.msra.mxu1 %v9495_v41  ;;  %v9605_v40 = vcombine.low %v559_v26, %v567_v27  ;;  %v9607_v41 = vcombine.low %v560_v28, %v568_v29  ;;  %v671_v26 = vld [vmem:[%s14475_s1 + $0x1410] sm:$0xff]  ;;  %v672_v28 = vld [vmem:[%s14475_s1 + $0x1418] sm:$0xff] }
 0x16f   :  { %6676 = vmatprep.subr.bf16.mxu0 %v9510_v42  ;;  %6840 = vmatprep.subr.bf16.mxu1 %v9512_v43  ;;  %v9622_v42 = vcombine.high %v575_v34, %v583_v35  ;;  %v9624_v43 = vcombine.high %v576_v36, %v584_v37  ;;  %v679_v27 = vld [vmem:[%s14475_s1 + $0x1450] sm:$0xff]  ;;  %v680_v29 = vld [vmem:[%s14475_s1 + $0x1458] sm:$0xff] }
 0x172   :  { %6677 = vmatpush1.bf16.msra.mxu0 %v9509_v48  ;;  %6841 = vmatpush1.bf16.msra.mxu1 %v9511_v49  ;;  %v9621_v48 = vcombine.low %v575_v34, %v583_v35  ;;  %v9623_v49 = vcombine.low %v576_v36, %v584_v37  ;;  %v687_v34 = vld [vmem:[%s14475_s1 + $0x1490] sm:$0xff]  ;;  %v688_v36 = vld [vmem:[%s14475_s1 + $0x1498] sm:$0xff] }
 0x173   :  { %6678 = vmatprep.subr.bf16.mxu0 %v9526_v50  ;;  %6842 = vmatprep.subr.bf16.mxu1 %v9528_v51  ;;  %v9638_v50 = vcombine.high %v591_v44, %v599_v45  ;;  %v9640_v51 = vcombine.high %v592_v46, %v600_v47  ;;  %v695_v35 = vld [vmem:[%s14475_s1 + $0x14d0] sm:$0xff]  ;;  %v696_v37 = vld [vmem:[%s14475_s1 + $0x14d8] sm:$0xff] }
 0x176   :  { %6679 = vmatpush1.bf16.msra.mxu0 %v9525_v59  ;;  %6843 = vmatpush1.bf16.msra.mxu1 %v9527_v60  ;;  %v9637_v59 = vcombine.low %v591_v44, %v599_v45  ;;  %v9639_v60 = vcombine.low %v592_v46, %v600_v47  ;;  %v703_v44 = vld [vmem:[%s14475_s1 + $0x1510] sm:$0xff]  ;;  %v704_v46 = vld [vmem:[%s14475_s1 + $0x1518] sm:$0xff] }
 0x177   :  { %6680 = vmatprep.subr.bf16.mxu0 %v9542_v61  ;;  %6844 = vmatprep.subr.bf16.mxu1 %v9544_v62  ;;  %v9654_v61 = vcombine.high %v607_v52, %v615_v54  ;;  %v9656_v62 = vcombine.high %v608_v56, %v616_v58  ;;  %v711_v45 = vld [vmem:[%s14475_s1 + $0x1550] sm:$0xff]  ;;  %v712_v47 = vld [vmem:[%s14475_s1 + $0x1558] sm:$0xff] }
 0x17a   :  { %6681 = vmatpush1.bf16.msra.mxu0 %v9541_v2  ;;  %6845 = vmatpush1.bf16.msra.mxu1 %v9543_v3  ;;  %v9653_v2 = vcombine.low %v607_v52, %v615_v54  ;;  %v9655_v3 = vcombine.low %v608_v56, %v616_v58  ;;  %v719_v52 = vld [vmem:[%s14475_s1 + $0x1590] sm:$0xff]  ;;  %v720_v56 = vld [vmem:[%s14475_s1 + $0x1598] sm:$0xff] }
 0x17b   :  { %6682 = vmatprep.subr.bf16.mxu0 %v9558_v4  ;;  %6846 = vmatprep.subr.bf16.mxu1 %v9560_v5  ;;  %v9670_v4 = vcombine.high %v623_v38, %v631_v63  ;;  %v9672_v5 = vcombine.high %v624_v0, %v632_v1  ;;  %v727_v54 = vld [vmem:[%s14475_s1 + $0x15d0] sm:$0xff]  ;;  %v728_v58 = vld [vmem:[%s14475_s1 + $0x15d8] sm:$0xff] }
 0x17e   :  { %6683 = vmatpush1.bf16.msra.mxu0 %v9557_v10  ;;  %6847 = vmatpush1.bf16.msra.mxu1 %v9559_v11  ;;  %v9669_v10 = vcombine.low %v623_v38, %v631_v63  ;;  %v9671_v11 = vcombine.low %v624_v0, %v632_v1  ;;  %v735_v38 = vld [vmem:[%s14475_s1 + $0x1610] sm:$0xff]  ;;  %v736_v0 = vld [vmem:[%s14475_s1 + $0x1618] sm:$0xff] }
 0x17f   :  { %6684 = vmatprep.subr.bf16.mxu0 %v9574_v13  ;;  %6848 = vmatprep.subr.bf16.mxu1 %v9576_v14  ;;  %v9686_v13 = vcombine.high %v639_v6, %v647_v7  ;;  %v9688_v14 = vcombine.high %v640_v8, %v648_v9  ;;  %v743_v63 = vld [vmem:[%s14475_s1 + $0x1650] sm:$0xff]  ;;  %v744_v1 = vld [vmem:[%s14475_s1 + $0x1658] sm:$0xff] }
 0x182   :  { %6685 = vmatpush1.bf16.msra.mxu0 %v9573_v19  ;;  %6849 = vmatpush1.bf16.msra.mxu1 %v9575_v20  ;;  %v9685_v19 = vcombine.low %v639_v6, %v647_v7  ;;  %v9687_v20 = vcombine.low %v640_v8, %v648_v9  ;;  %v751_v6 = vld [vmem:[%s14475_s1 + $0x1690] sm:$0xff]  ;;  %v752_v8 = vld [vmem:[%s14475_s1 + $0x1698] sm:$0xff] }
 0x183   :  { %6695 = vmatprep.subr.bf16.mxu0 %v9590_v21  ;;  %6859 = vmatprep.subr.bf16.mxu1 %v9592_v22  ;;  %v9702_v21 = vcombine.high %v655_v16, %v663_v17  ;;  %v9704_v22 = vcombine.high %v656_v53, %v664_v18  ;;  %v759_v7 = vld [vmem:[%s14475_s1 + $0x16d0] sm:$0xff]  ;;  %v760_v9 = vld [vmem:[%s14475_s1 + $0x16d8] sm:$0xff] }
 0x185   :  { %6687 = vmatmul.mubr.bf16.vlgmr.msra.gmra.mrb[4].mxu0 %v11197_v25  ;;  %6851 = vmatmul.mubr.bf16.vlgmr.msra.gmra.mrb[4].mxu1 %v11197_v25 }
 0x186   :  { %6696 = vmatpush1.bf16.msra.mxu0 %v9589_v30  ;;  %6860 = vmatpush1.bf16.msra.mxu1 %v9591_v31  ;;  %v9701_v30 = vcombine.low %v655_v16, %v663_v17  ;;  %v9703_v31 = vcombine.low %v656_v53, %v664_v18  ;;  %v767_v16 = vld [vmem:[%s14475_s1 + $0x1710] sm:$0xff]  ;;  %v768_v53 = vld [vmem:[%s14475_s1 + $0x1718] sm:$0xff] }
 0x187   :  { %6697 = vmatprep.subr.bf16.mxu0 %v9606_v15  ;;  %6861 = vmatprep.subr.bf16.mxu1 %v9608_v32  ;;  %v9718_v15 = vcombine.high %v671_v26, %v679_v27  ;;  %v9720_v32 = vcombine.high %v672_v28, %v680_v29  ;;  %v775_v17 = vld [vmem:[%s14475_s1 + $0x1750] sm:$0xff]  ;;  %v776_v18 = vld [vmem:[%s14475_s1 + $0x1758] sm:$0xff] }
 0x188   :  { %6727 = vmatprep.mubr.bf16.mxu0 %v11213_v33  ;;  %6891 = vmatprep.mubr.bf16.mxu1 %v11213_v33 }
 0x18a   :  { %6698 = vmatpush1.bf16.msra.mxu0 %v9605_v40  ;;  %6862 = vmatpush1.bf16.msra.mxu1 %v9607_v41  ;;  %v9717_v40 = vcombine.low %v671_v26, %v679_v27  ;;  %v9719_v41 = vcombine.low %v672_v28, %v680_v29  ;;  %v783_v26 = vld [vmem:[%s14475_s1 + $0x1790] sm:$0xff]  ;;  %v784_v28 = vld [vmem:[%s14475_s1 + $0x1798] sm:$0xff] }
 0x18b   :  { %6699 = vmatprep.subr.bf16.mxu0 %v9622_v42  ;;  %6863 = vmatprep.subr.bf16.mxu1 %v9624_v43  ;;  %v9734_v42 = vcombine.high %v687_v34, %v695_v35  ;;  %v9736_v43 = vcombine.high %v688_v36, %v696_v37  ;;  %v791_v27 = vld [vmem:[%s14475_s1 + $0x17d0] sm:$0xff]  ;;  %v792_v29 = vld [vmem:[%s14475_s1 + $0x17d8] sm:$0xff] }
 0x18e   :  { %6700 = vmatpush1.bf16.msra.mxu0 %v9621_v48  ;;  %6864 = vmatpush1.bf16.msra.mxu1 %v9623_v49  ;;  %v9733_v48 = vcombine.low %v687_v34, %v695_v35  ;;  %v9735_v49 = vcombine.low %v688_v36, %v696_v37  ;;  %v799_v34 = vld [vmem:[%s14475_s1 + $0x1810] sm:$0xff]  ;;  %v800_v36 = vld [vmem:[%s14475_s1 + $0x1818] sm:$0xff] }
 0x18f   :  { %6701 = vmatprep.subr.bf16.mxu0 %v9638_v50  ;;  %6865 = vmatprep.subr.bf16.mxu1 %v9640_v51  ;;  %v9750_v50 = vcombine.high %v703_v44, %v711_v45  ;;  %v9752_v51 = vcombine.high %v704_v46, %v712_v47  ;;  %v807_v35 = vld [vmem:[%s14475_s1 + $0x1850] sm:$0xff]  ;;  %v808_v37 = vld [vmem:[%s14475_s1 + $0x1858] sm:$0xff] }
 0x192   :  { %6702 = vmatpush1.bf16.msra.mxu0 %v9637_v59  ;;  %6866 = vmatpush1.bf16.msra.mxu1 %v9639_v60  ;;  %v9749_v59 = vcombine.low %v703_v44, %v711_v45  ;;  %v9751_v60 = vcombine.low %v704_v46, %v712_v47  ;;  %v815_v44 = vld [vmem:[%s14475_s1 + $0x1890] sm:$0xff]  ;;  %v816_v46 = vld [vmem:[%s14475_s1 + $0x1898] sm:$0xff] }
 0x193   :  { %6703 = vmatprep.subr.bf16.mxu0 %v9654_v61  ;;  %6867 = vmatprep.subr.bf16.mxu1 %v9656_v62  ;;  %v9766_v61 = vcombine.high %v719_v52, %v727_v54  ;;  %v9768_v62 = vcombine.high %v720_v56, %v728_v58  ;;  %v823_v45 = vld [vmem:[%s14475_s1 + $0x18d0] sm:$0xff]  ;;  %v824_v47 = vld [vmem:[%s14475_s1 + $0x18d8] sm:$0xff] }
 0x196   :  { %6704 = vmatpush1.bf16.msra.mxu0 %v9653_v2  ;;  %6868 = vmatpush1.bf16.msra.mxu1 %v9655_v3  ;;  %v9765_v2 = vcombine.low %v719_v52, %v727_v54  ;;  %v9767_v3 = vcombine.low %v720_v56, %v728_v58  ;;  %v831_v52 = vld [vmem:[%s14475_s1 + $0x1910] sm:$0xff]  ;;  %v832_v56 = vld [vmem:[%s14475_s1 + $0x1918] sm:$0xff] }
 0x197   :  { %6705 = vmatprep.subr.bf16.mxu0 %v9670_v4  ;;  %6869 = vmatprep.subr.bf16.mxu1 %v9672_v5  ;;  %v9782_v4 = vcombine.high %v735_v38, %v743_v63  ;;  %v9784_v5 = vcombine.high %v736_v0, %v744_v1  ;;  %v839_v54 = vld [vmem:[%s14475_s1 + $0x1950] sm:$0xff]  ;;  %v840_v58 = vld [vmem:[%s14475_s1 + $0x1958] sm:$0xff] }
 0x19a   :  { %6706 = vmatpush1.bf16.msra.mxu0 %v9669_v10  ;;  %6870 = vmatpush1.bf16.msra.mxu1 %v9671_v11  ;;  %v9781_v10 = vcombine.low %v735_v38, %v743_v63  ;;  %v9783_v11 = vcombine.low %v736_v0, %v744_v1  ;;  %v847_v38 = vld [vmem:[%s14475_s1 + $0x1990] sm:$0xff]  ;;  %v848_v0 = vld [vmem:[%s14475_s1 + $0x1998] sm:$0xff] }
 0x19b   :  { %6707 = vmatprep.subr.bf16.mxu0 %v9686_v13  ;;  %6871 = vmatprep.subr.bf16.mxu1 %v9688_v14  ;;  %v9798_v13 = vcombine.high %v751_v6, %v759_v7  ;;  %v9800_v14 = vcombine.high %v752_v8, %v760_v9  ;;  %v855_v63 = vld [vmem:[%s14475_s1 + $0x19d0] sm:$0xff]  ;;  %v856_v1 = vld [vmem:[%s14475_s1 + $0x19d8] sm:$0xff] }
 0x19e   :  { %6708 = vmatpush1.bf16.msra.mxu0 %v9685_v19  ;;  %6872 = vmatpush1.bf16.msra.mxu1 %v9687_v20  ;;  %v9797_v19 = vcombine.low %v751_v6, %v759_v7  ;;  %v9799_v20 = vcombine.low %v752_v8, %v760_v9  ;;  %v9896_v6 = vcombine.high %v848_v0, %v856_v1  ;;  %v863_v7 = vld [vmem:[%s14475_s1 + $0x1a10] sm:$0xff]  ;;  %v864_v9 = vld [vmem:[%s14475_s1 + $0x1a18] sm:$0xff] }
 0x19f   :  { %6709 = vmatprep.subr.bf16.mxu0 %v9702_v21  ;;  %6873 = vmatprep.subr.bf16.mxu1 %v9704_v22  ;;  %v9814_v21 = vcombine.high %v767_v16, %v775_v17  ;;  %v9816_v22 = vcombine.high %v768_v53, %v776_v18  ;;  %v871_v8 = vld [vmem:[%s14475_s1 + $0x1a50] sm:$0xff] }
 0x1a2   :  { %6710 = vmatpush1.bf16.msra.mxu0 %v9701_v30  ;;  %6874 = vmatpush1.bf16.msra.mxu1 %v9703_v31  ;;  %v9813_v30 = vcombine.low %v767_v16, %v775_v17  ;;  %v9815_v31 = vcombine.low %v768_v53, %v776_v18  ;;  %v9910_v16 = vcombine.high %v863_v7, %v871_v8  ;;  %v879_v53 = vld [vmem:[%s14475_s1 + $0x1a90] sm:$0xff] }
 0x1a3   :  { %6711 = vmatprep.subr.bf16.mxu0 %v9718_v15  ;;  %6875 = vmatprep.subr.bf16.mxu1 %v9720_v32  ;;  %v9830_v15 = vcombine.high %v783_v26, %v791_v27  ;;  %v9832_v32 = vcombine.high %v784_v28, %v792_v29  ;;  %v887_v18 = vld [vmem:[%s14475_s1 + $0x1ad0] sm:$0xff] }
 0x1a6   :  { %6712 = vmatpush1.bf16.msra.mxu0 %v9717_v40  ;;  %6876 = vmatpush1.bf16.msra.mxu1 %v9719_v41  ;;  %v9829_v40 = vcombine.low %v783_v26, %v791_v27  ;;  %v9831_v41 = vcombine.low %v784_v28, %v792_v29  ;;  %v1053_v26 = vld [vmem:[%s14476_s2] sm:$0xff] }
 0x1a7   :  { %6713 = vmatprep.subr.bf16.mxu0 %v9734_v42  ;;  %6877 = vmatprep.subr.bf16.mxu1 %v9736_v43  ;;  %v9846_v42 = vcombine.high %v799_v34, %v807_v35  ;;  %v9848_v43 = vcombine.high %v800_v36, %v808_v37 }
 0x1aa   :  { %6714 = vmatpush1.bf16.msra.mxu0 %v9733_v48  ;;  %6878 = vmatpush1.bf16.msra.mxu1 %v9735_v49  ;;  %v9845_v48 = vcombine.low %v799_v34, %v807_v35  ;;  %v9847_v49 = vcombine.low %v800_v36, %v808_v37  ;;  %v903_v34 = vld [vmem:[%s14475_s1 + $0x1b50] sm:$0xff]  ;;  %v896_v36 = vld [vmem:[%s14475_s1 + $0x1b18] sm:$0xff] }
 0x1ab   :  { %6715 = vmatprep.subr.bf16.mxu0 %v9750_v50  ;;  %6879 = vmatprep.subr.bf16.mxu1 %v9752_v51  ;;  %v9862_v50 = vcombine.high %v815_v44, %v823_v45  ;;  %v9864_v51 = vcombine.high %v816_v46, %v824_v47  ;;  %v904_v37 = vld [vmem:[%s14475_s1 + $0x1b58] sm:$0xff] }
 0x1ae   :  { %6716 = vmatpush1.bf16.msra.mxu0 %v9749_v59  ;;  %6880 = vmatpush1.bf16.msra.mxu1 %v9751_v60  ;;  %v9861_v59 = vcombine.low %v815_v44, %v823_v45  ;;  %v9863_v60 = vcombine.low %v816_v46, %v824_v47  ;;  %v9944_v47 = vcombine.high %v896_v36, %v904_v37 }
 0x1af   :  { %6717 = vmatprep.subr.bf16.mxu0 %v9766_v61  ;;  %6881 = vmatprep.subr.bf16.mxu1 %v9768_v62  ;;  %v9878_v61 = vcombine.high %v831_v52, %v839_v54  ;;  %v9880_v62 = vcombine.high %v832_v56, %v840_v58 }
 0x1b2   :  { %6718 = vmatpush1.bf16.msra.mxu0 %v9765_v2  ;;  %6882 = vmatpush1.bf16.msra.mxu1 %v9767_v3  ;;  %v1057_v2 = vlaneseq  ;;  %v9877_v3 = vcombine.low %v831_v52, %v839_v54  ;;  %v912_v54 = vld [vmem:[%s14475_s1 + $0x1b98] sm:$0xff] }
 0x1b3   :  { %6719 = vmatprep.subr.bf16.mxu0 %v9782_v4  ;;  %6883 = vmatprep.subr.bf16.mxu1 %v9784_v5  ;;  %v9879_v4 = vcombine.low %v832_v56, %v840_v58  ;;  %v9894_v5 = vcombine.high %v847_v38, %v855_v63  ;;  %v920_v56 = vld [vmem:[%s14475_s1 + $0x1bd8] sm:$0xff] }
 0x1b6   :  { %6720 = vmatpush1.bf16.msra.mxu0 %v9781_v10  ;;  %6884 = vmatpush1.bf16.msra.mxu1 %v9783_v11  ;;  %v872_v10 = vld [vmem:[%s14475_s1 + $0x1a58] sm:$0xff]  ;;  %v12240_v11 = vshrl.u32 %v1057_v2, 7  ;;  %v9943_v2 = vcombine.low %v896_v36, %v904_v37  ;;  %v959_v36 = vld [vmem:[%s14475_s1 + $0x1d10] sm:$0xff] }
 0x1b7   :  { %6721 = vmatprep.subr.bf16.mxu0 %v9798_v13  ;;  %6885 = vmatprep.subr.bf16.mxu1 %v9800_v14  ;;  %v9893_v13 = vcombine.low %v847_v38, %v855_v63  ;;  %v9895_v14 = vcombine.low %v848_v0, %v856_v1  ;;  %v9912_v17 = vcombine.high %v864_v9, %v872_v10  ;;  %v967_v37 = vld [vmem:[%s14475_s1 + $0x1d50] sm:$0xff] }
 0x1b8   :  { %v1067_v27 = vsub.s32 2, %v12240_v11  ;;  %v1063_v28 = vsub.s32 1, %v12240_v11  ;;  %v9911_v29 = vcombine.low %v864_v9, %v872_v10  ;;  %v935_v9 = vld [vmem:[%s14475_s1 + $0x1c50] sm:$0xff] }
 0x1ba   :  { %6722 = vmatpush1.bf16.msra.mxu0 %v9797_v19  ;;  %6886 = vmatpush1.bf16.msra.mxu1 %v9799_v20  ;;  %v1059_v19 = vsub.s32 0, %v12240_v11  ;;  %v880_v20 = vld [vmem:[%s14475_s1 + $0x1a98] sm:$0xff] }
 0x1bb   :  { %6723 = vmatprep.subr.bf16.mxu0 %v9814_v21  ;;  %6887 = vmatprep.subr.bf16.mxu1 %v9816_v22  ;;  %v888_v21 = vld [vmem:[%s14475_s1 + $0x1ad8] sm:$0xff]  ;;  %v9909_v22 = vcombine.low %v863_v7, %v871_v8  ;;  %v9960_v7 = vcombine.high %v912_v54, %v920_v56  ;;  %v927_v8 = vld [vmem:[%s14475_s1 + $0x1c10] sm:$0xff] }
 0x1bc   :  { %v1060_v35 = vrot.slane %v1053_v26, %v1059_v19  ;;  %v9927_v44 = vcombine.low %v880_v20, %v888_v21 }
 0x1be   :  { %6724 = vmatpush1.bf16.msra.mxu0 %v9813_v30  ;;  %6888 = vmatpush1.bf16.msra.mxu1 %v9815_v31  ;;  %v1071_v30 = vsub.s32 3, %v12240_v11  ;;  %v9926_v31 = vcombine.high %v879_v53, %v887_v18 }
 0x1bf   :  { %6725 = vmatprep.subr.bf16.mxu0 %v9830_v15  ;;  %6889 = vmatprep.subr.bf16.mxu1 %v9832_v32  ;;  %v9928_v15 = vcombine.high %v880_v20, %v888_v21  ;;  %v895_v32 = vld [vmem:[%s14475_s1 + $0x1b10] sm:$0xff]  ;;  %v9974_v20 = vcombine.high %v927_v8, %v935_v9 }
 0x1c0   :  { %v9942_v45 = vcombine.high %v895_v32, %v903_v34 }
 0x1c2   :  { %6726 = vmatpush1.bf16.msra.mxu0 %v9829_v40  ;;  %6890 = vmatpush1.bf16.msra.mxu1 %v9831_v41  ;;  %v1068_v40 = vrot.slane %v1053_v26, %v1067_v27  ;;  %v1064_v41 = vrot.slane %v1053_v26, %v1063_v28 }
 0x1c3   :  { %6736 = vmatprep.subr.bf16.mxu0 %v9846_v42  ;;  %6900 = vmatprep.subr.bf16.mxu1 %v9848_v43  ;;  %v9925_v42 = vcombine.low %v879_v53, %v887_v18  ;;  %v1072_v43 = vrot.slane %v1053_v26, %v1071_v30  ;;  %v9959_v18 = vcombine.low %v912_v54, %v920_v56  ;;  %v951_v26 = vld [vmem:[%s14475_s1 + $0x1cd0] sm:$0xff] }
 0x1c4   :  { %v991_v56 = vld [vmem:[%s14475_s1 + $0x1e10] sm:$0xff] }
 0x1c5   :  { %6728 = vmatmul.mubr.bf16.vlgmr.msra.gmra.mrb[4].mxu0 %v11406_v39  ;;  %6892 = vmatmul.mubr.bf16.vlgmr.msra.gmra.mrb[4].mxu1 %v11406_v39 }
 0x1c6   :  { %6737 = vmatpush1.bf16.msra.mxu0 %v9845_v48  ;;  %6901 = vmatpush1.bf16.msra.mxu1 %v9847_v49  ;;  %v911_v48 = vld [vmem:[%s14475_s1 + $0x1b90] sm:$0xff] }
 0x1c7   :  { %6738 = vmatprep.subr.bf16.mxu0 %v9862_v50  ;;  %6902 = vmatprep.subr.bf16.mxu1 %v9864_v51  ;;  %v919_v49 = vld [vmem:[%s14475_s1 + $0x1bd0] sm:$0xff] }
 0x1c8   :  { %6768 = vmatprep.mubr.bf16.mxu0 %v11416_v24  ;;  %6932 = vmatprep.mubr.bf16.mxu1 %v11416_v24 }
 0x1ca   :  { %6739 = vmatpush1.bf16.msra.mxu0 %v9861_v59  ;;  %6903 = vmatpush1.bf16.msra.mxu1 %v9863_v60 }
 0x1cb   :  { %6740 = vmatprep.subr.bf16.mxu0 %v9878_v61  ;;  %6904 = vmatprep.subr.bf16.mxu1 %v9880_v62  ;;  %v9941_v62 = vcombine.low %v895_v32, %v903_v34 }
 0x1ce   :  { %6741 = vmatpush1.bf16.msra.mxu0 %v9877_v3  ;;  %6905 = vmatpush1.bf16.msra.mxu1 %v9879_v4  ;;  %v9958_v3 = vcombine.high %v911_v48, %v919_v49 }
 0x1cf   :  { %6742 = vmatprep.subr.bf16.mxu0 %v9894_v5  ;;  %6906 = vmatprep.subr.bf16.mxu1 %v9896_v6 }
 0x1d2   :  { %6743 = vmatpush1.bf16.msra.mxu0 %v9893_v13  ;;  %6907 = vmatpush1.bf16.msra.mxu1 %v9895_v14  ;;  %v928_v13 = vld [vmem:[%s14475_s1 + $0x1c18] sm:$0xff] }
 0x1d3   :  { %6744 = vmatprep.subr.bf16.mxu0 %v9910_v16  ;;  %6908 = vmatprep.subr.bf16.mxu1 %v9912_v17  ;;  %v936_v14 = vld [vmem:[%s14475_s1 + $0x1c58] sm:$0xff]  ;;  %v9957_v17 = vcombine.low %v911_v48, %v919_v49 }
 0x1d4   :  { %v9976_v21 = vcombine.high %v928_v13, %v936_v14  ;;  %v9975_v32 = vcombine.low %v928_v13, %v936_v14  ;;  %v976_v48 = vld [vmem:[%s14475_s1 + $0x1d98] sm:$0xff]  ;;  %v1023_v14 = vld [vmem:[%s14475_s1 + $0x1f10] sm:$0xff] }
 0x1d5   :  { %v984_v49 = vld [vmem:[%s14475_s1 + $0x1dd8] sm:$0xff] }
 0x1d6   :  { %6745 = vmatpush1.bf16.msra.mxu0 %v9909_v22  ;;  %6909 = vmatpush1.bf16.msra.mxu1 %v9911_v29  ;;  %v943_v22 = vld [vmem:[%s14475_s1 + $0x1c90] sm:$0xff]  ;;  %v944_v29 = vld [vmem:[%s14475_s1 + $0x1c98] sm:$0xff]  ;;  %v10024_v54 = vcombine.high %v976_v48, %v984_v49 }
 0x1d7   :  { %6746 = vmatprep.subr.bf16.mxu0 %v9926_v31  ;;  %6910 = vmatprep.subr.bf16.mxu1 %v9928_v15  ;;  %v952_v31 = vld [vmem:[%s14475_s1 + $0x1cd8] sm:$0xff]  ;;  %v9973_v15 = vcombine.low %v927_v8, %v935_v9  ;;  %v9990_v34 = vcombine.high %v943_v22, %v951_v26 }
 0x1d8   :  { %v6442_v46 = vpop.f32.mrb[0].mxu0  ;;  %v6606_v51 = vpop.f32.mrb[0].mxu1 }
 0x1d9   :  { %v10418_v50 = vadd.f32 %v6442_v46, %v1060_v35  ;;  %v6444_v52 = vpop.f32.mrb[1].mxu0  ;;  %v10420_v58 = vadd.f32 %v6606_v51, %v1068_v40  ;;  %v6608_v60 = vpop.f32.mrb[1].mxu1  ;;  %v9992_v35 = vcombine.high %v944_v29, %v952_v31  ;;  %v960_v40 = vld [vmem:[%s14475_s1 + $0x1d18] sm:$0xff]  ;;  %v975_v46 = vld [vmem:[%s14475_s1 + $0x1d90] sm:$0xff] }
 0x1da   :  { %v10419_v59 = vadd.f32 %v6444_v52, %v1064_v41  ;;  %v6446_v61 = vpop.f32.mrb[2].mxu0  ;;  %6747 = vmatpush1.bf16.msra.mxu0 %v9925_v42  ;;  %v10421_v63 = vadd.f32 %v6608_v60, %v1072_v43  ;;  %v6610_v0 = vpop.f32.mrb[2].mxu1  ;;  %6911 = vmatpush1.bf16.msra.mxu1 %v9927_v44  ;;  %v968_v41 = vld [vmem:[%s14475_s1 + $0x1d58] sm:$0xff]  ;;  %v9989_v42 = vcombine.low %v943_v22, %v951_v26  ;;  %v1039_v26 = vld [vmem:[%s14475_s1 + $0x1f90] sm:$0xff] }
 0x1db   :  { %v12293_v38 = vmax.f32 %v10418_v50, 0.0  ;;  %v6447_v1 = vpop.f32.mrb[3].mxu0  ;;  %6748 = vmatprep.subr.bf16.mxu0 %v9942_v45  ;;  %v12295_v4 = vmax.f32 %v10420_v58, 0.0  ;;  %v6611_v6 = vpop.f32.mrb[3].mxu1  ;;  %6912 = vmatprep.subr.bf16.mxu1 %v9944_v47  ;;  %v9991_v43 = vcombine.low %v944_v29, %v952_v31  ;;  %v10006_v44 = vcombine.high %v959_v36, %v967_v37  ;;  %v983_v47 = vld [vmem:[%s14475_s1 + $0x1dd0] sm:$0xff]  ;;  %v1000_v60 = vld [vmem:[%s14475_s1 + $0x1e58] sm:$0xff] }
 0x1dc   :  { %v12297_v5 = vmax.f32 %v10419_v59, 0.0  ;;  %v12305_v10 = vmax.f32 %v10421_v63, 0.0  ;;  %v10008_v45 = vcombine.high %v960_v40, %v968_v41  ;;  %v10005_v50 = vcombine.low %v959_v36, %v967_v37  ;;  %v999_v58 = vld [vmem:[%s14475_s1 + $0x1e50] sm:$0xff]  ;;  %v992_v59 = vld [vmem:[%s14475_s1 + $0x1e18] sm:$0xff]  ;;  %v33_v37 = vld [vmem:[%s14475_s1 + $0x20] sm:$0xff] }
 0x1dd   :  { %v10007_v51 = vcombine.low %v960_v40, %v968_v41  ;;  %v10022_v52 = vcombine.high %v975_v46, %v983_v47  ;;  %v10021_v61 = vcombine.low %v975_v46, %v983_v47  ;;  %v10038_v63 = vcombine.high %v991_v56, %v999_v58  ;;  %v1007_v1 = vld [vmem:[%s14475_s1 + $0x1e90] sm:$0xff]  ;;  %v1016_v6 = vld [vmem:[%s14475_s1 + $0x1ed8] sm:$0xff]  ;;  %v41_v40 = vld [vmem:[%s14475_s1 + $0x60] sm:$0xff] }
 0x1de   :  { %v10234_v16 = vpack.c.bf16 %v12297_v5, %v12293_v38  ;;  %6749 = vmatpush1.bf16.msra.mxu0 %v9941_v62  ;;  %v10235_v53 = vpack.c.bf16 %v12305_v10, %v12295_v4  ;;  %6913 = vmatpush1.bf16.msra.mxu1 %v9943_v2  ;;  %v10023_v62 = vcombine.low %v976_v48, %v984_v49  ;;  %v1015_v2 = vld [vmem:[%s14475_s1 + $0x1ed0] sm:$0xff]  ;;  %v1040_v31 = vld [vmem:[%s14475_s1 + $0x1f98] sm:$0xff]  ;;  %v34_v41 = vld [vmem:[%s14475_s1 + $0x28] sm:$0xff] }
 0x1df   :  { %6750 = vmatprep.subr.bf16.mxu0 %v9958_v3  ;;  %6914 = vmatprep.subr.bf16.mxu1 %v9960_v7  ;;  %v10040_v0 = vcombine.high %v992_v59, %v1000_v60  ;;  %v1008_v3 = vld [vmem:[%s14475_s1 + $0x1e98] sm:$0xff]  ;;  %v10037_v7 = vcombine.low %v991_v56, %v999_v58  ;;  %v10039_v8 = vcombine.low %v992_v59, %v1000_v60  ;;  %v1047_v29 = vld [vmem:[%s14475_s1 + $0x1fd0] sm:$0xff]  ;;  %v49_v47 = vld [vmem:[%s14475_s1 + $0xa0] sm:$0xff] }
 0x1e0   :  { %7677 = vst [vmem:[#allocation2] sm:$0xff] %v10234_v16  ;;  %7678 = vst [vmem:[#allocation2 + $0x8] sm:$0xff] %v10235_v53  ;;  %v10054_v9 = vcombine.high %v1007_v1, %v1015_v2  ;;  %v10056_v13 = vcombine.high %v1008_v3, %v1016_v6  ;;  %v1031_v16 = vld [vmem:[%s14475_s1 + $0x1f50] sm:$0xff]  ;;  %v1032_v53 = vld [vmem:[%s14475_s1 + $0x1f58] sm:$0xff] }
 0x1e1   :  { %v57_v48 = vld [vmem:[%s14475_s1 + $0xe0] sm:$0xff]  ;;  %v50_v49 = vld [vmem:[%s14475_s1 + $0xa8] sm:$0xff] }
 0x1e2   :  { %6751 = vmatpush1.bf16.msra.mxu0 %v9957_v17  ;;  %6915 = vmatpush1.bf16.msra.mxu1 %v9959_v18  ;;  %v1024_v17 = vld [vmem:[%s14475_s1 + $0x1f18] sm:$0xff]  ;;  %v10053_v18 = vcombine.low %v1007_v1, %v1015_v2  ;;  %v65_v58 = vld [vmem:[%s14475_s1 + $0x120] sm:$0xff]  ;;  %v66_v60 = vld [vmem:[%s14475_s1 + $0x128] sm:$0xff] }
 0x1e3   :  { %6752 = vmatprep.subr.bf16.mxu0 %v9974_v20  ;;  %6916 = vmatprep.subr.bf16.mxu1 %v9976_v21  ;;  %v10055_v20 = vcombine.low %v1008_v3, %v1016_v6  ;;  %v10070_v21 = vcombine.high %v1023_v14, %v1031_v16  ;;  %v10072_v22 = vcombine.high %v1024_v17, %v1032_v53  ;;  %v73_v59 = vld [vmem:[%s14475_s1 + $0x160] sm:$0xff]  ;;  %v82_v6 = vld [vmem:[%s14475_s1 + $0x1a8] sm:$0xff] }
 0x1e4   :  { %v81_v2 = vld [vmem:[%s14475_s1 + $0x1a0] sm:$0xff] }
 0x1e5   :  { %v89_v3 = vld [vmem:[%s14475_s1 + $0x1e0] sm:$0xff] }
 0x1e6   :  { %6753 = vmatpush1.bf16.msra.mxu0 %v9973_v15  ;;  %6917 = vmatpush1.bf16.msra.mxu1 %v9975_v32  ;;  %v1048_v15 = vld [vmem:[%s14475_s1 + $0x1fd8] sm:$0xff]  ;;  %v10069_v32 = vcombine.low %v1023_v14, %v1031_v16  ;;  %v97_v16 = vld [vmem:[%s14475_s1 + $0x220] sm:$0xff] }
 0x1e7   :  { %6754 = vmatprep.subr.bf16.mxu0 %v9990_v34  ;;  %6918 = vmatprep.subr.bf16.mxu1 %v9992_v35  ;;  %v10071_v34 = vcombine.low %v1024_v17, %v1032_v53  ;;  %v10086_v35 = vcombine.high %v1039_v26, %v1047_v29  ;;  %v10088_v36 = vcombine.high %v1040_v31, %v1048_v15  ;;  %v105_v17 = vld [vmem:[%s14475_s1 + $0x260] sm:$0xff]  ;;  %v98_v53 = vld [vmem:[%s14475_s1 + $0x228] sm:$0xff] }
 0x1ea   :  { %6755 = vmatpush1.bf16.msra.mxu0 %v9989_v42  ;;  %6919 = vmatpush1.bf16.msra.mxu1 %v9991_v43  ;;  %v42_v42 = vld [vmem:[%s14475_s1 + $0x68] sm:$0xff]  ;;  %v10085_v43 = vcombine.low %v1039_v26, %v1047_v29  ;;  %v113_v29 = vld [vmem:[%s14475_s1 + $0x2a0] sm:$0xff] }
 0x1eb   :  { %6756 = vmatprep.subr.bf16.mxu0 %v10006_v44  ;;  %6920 = vmatprep.subr.bf16.mxu1 %v10008_v45  ;;  %v10087_v44 = vcombine.low %v1040_v31, %v1048_v15  ;;  %v9082_v45 = vcombine.high %v33_v37, %v41_v40  ;;  %v9084_v46 = vcombine.high %v34_v41, %v42_v42  ;;  %v121_v31 = vld [vmem:[%s14475_s1 + $0x2e0] sm:$0xff]  ;;  %v114_v15 = vld [vmem:[%s14475_s1 + $0x2a8] sm:$0xff] }
 0x1ee   :  { %6757 = vmatpush1.bf16.msra.mxu0 %v10005_v50  ;;  %6921 = vmatpush1.bf16.msra.mxu1 %v10007_v51  ;;  %v58_v50 = vld [vmem:[%s14475_s1 + $0xe8] sm:$0xff]  ;;  %v9081_v51 = vcombine.low %v33_v37, %v41_v40  ;;  %v129_v40 = vld [vmem:[%s14475_s1 + $0x320] sm:$0xff] }
 0x1ef   :  { %6758 = vmatprep.subr.bf16.mxu0 %v10022_v52  ;;  %6922 = vmatprep.subr.bf16.mxu1 %v10024_v54  ;;  %v9083_v52 = vcombine.low %v34_v41, %v42_v42  ;;  %v9098_v54 = vcombine.high %v49_v47, %v57_v48  ;;  %v9100_v56 = vcombine.high %v50_v49, %v58_v50  ;;  %v137_v41 = vld [vmem:[%s14475_s1 + $0x360] sm:$0xff]  ;;  %v130_v42 = vld [vmem:[%s14475_s1 + $0x328] sm:$0xff] }
 0x1f2   :  { %6759 = vmatpush1.bf16.msra.mxu0 %v10021_v61  ;;  %6923 = vmatpush1.bf16.msra.mxu1 %v10023_v62  ;;  %v74_v61 = vld [vmem:[%s14475_s1 + $0x168] sm:$0xff]  ;;  %v9097_v62 = vcombine.low %v49_v47, %v57_v48  ;;  %v145_v48 = vld [vmem:[%s14475_s1 + $0x3a0] sm:$0xff] }
 0x1f3   :  { %6760 = vmatprep.subr.bf16.mxu0 %v10038_v63  ;;  %6924 = vmatprep.subr.bf16.mxu1 %v10040_v0  ;;  %v9099_v63 = vcombine.low %v50_v49, %v58_v50  ;;  %v9114_v0 = vcombine.high %v65_v58, %v73_v59  ;;  %v9116_v1 = vcombine.high %v66_v60, %v74_v61  ;;  %v153_v49 = vld [vmem:[%s14475_s1 + $0x3e0] sm:$0xff]  ;;  %v146_v50 = vld [vmem:[%s14475_s1 + $0x3a8] sm:$0xff] }
 0x1f6   :  { %6761 = vmatpush1.bf16.msra.mxu0 %v10037_v7  ;;  %6925 = vmatpush1.bf16.msra.mxu1 %v10039_v8  ;;  %v90_v7 = vld [vmem:[%s14475_s1 + $0x1e8] sm:$0xff]  ;;  %v9113_v8 = vcombine.low %v65_v58, %v73_v59  ;;  %v161_v59 = vld [vmem:[%s14475_s1 + $0x420] sm:$0xff] }
 0x1f7   :  { %6762 = vmatprep.subr.bf16.mxu0 %v10054_v9  ;;  %6926 = vmatprep.subr.bf16.mxu1 %v10056_v13  ;;  %v9115_v9 = vcombine.low %v66_v60, %v74_v61  ;;  %v9130_v13 = vcombine.high %v81_v2, %v89_v3  ;;  %v9132_v14 = vcombine.high %v82_v6, %v90_v7  ;;  %v169_v60 = vld [vmem:[%s14475_s1 + $0x460] sm:$0xff]  ;;  %v162_v61 = vld [vmem:[%s14475_s1 + $0x428] sm:$0xff] }
 0x1fa   :  { %6763 = vmatpush1.bf16.msra.mxu0 %v10053_v18  ;;  %6927 = vmatpush1.bf16.msra.mxu1 %v10055_v20  ;;  %v106_v18 = vld [vmem:[%s14475_s1 + $0x268] sm:$0xff]  ;;  %v9129_v20 = vcombine.low %v81_v2, %v89_v3  ;;  %v177_v3 = vld [vmem:[%s14475_s1 + $0x4a0] sm:$0xff] }
 0x1fb   :  { %6764 = vmatprep.subr.bf16.mxu0 %v10070_v21  ;;  %6928 = vmatprep.subr.bf16.mxu1 %v10072_v22  ;;  %v9131_v21 = vcombine.low %v82_v6, %v90_v7  ;;  %v9146_v22 = vcombine.high %v97_v16, %v105_v17  ;;  %v9148_v26 = vcombine.high %v98_v53, %v106_v18  ;;  %v185_v6 = vld [vmem:[%s14475_s1 + $0x4e0] sm:$0xff]  ;;  %v178_v7 = vld [vmem:[%s14475_s1 + $0x4a8] sm:$0xff] }
 0x1fe   :  { %6765 = vmatpush1.bf16.msra.mxu0 %v10069_v32  ;;  %6929 = vmatpush1.bf16.msra.mxu1 %v10071_v34  ;;  %v122_v32 = vld [vmem:[%s14475_s1 + $0x2e8] sm:$0xff]  ;;  %v9145_v34 = vcombine.low %v97_v16, %v105_v17  ;;  %v193_v17 = vld [vmem:[%s14475_s1 + $0x520] sm:$0xff] }
 0x1ff   :  { %6766 = vmatprep.subr.bf16.mxu0 %v10086_v35  ;;  %6930 = vmatprep.subr.bf16.mxu1 %v10088_v36  ;;  %v9147_v35 = vcombine.low %v98_v53, %v106_v18  ;;  %v9162_v36 = vcombine.high %v113_v29, %v121_v31  ;;  %v9164_v37 = vcombine.high %v114_v15, %v122_v32  ;;  %v201_v53 = vld [vmem:[%s14475_s1 + $0x560] sm:$0xff]  ;;  %v194_v18 = vld [vmem:[%s14475_s1 + $0x528] sm:$0xff] }
 0x202   :  { %6767 = vmatpush1.bf16.msra.mxu0 %v10085_v43  ;;  %6931 = vmatpush1.bf16.msra.mxu1 %v10087_v44  ;;  %v138_v43 = vld [vmem:[%s14475_s1 + $0x368] sm:$0xff]  ;;  %v9161_v44 = vcombine.low %v113_v29, %v121_v31  ;;  %v209_v31 = vld [vmem:[%s14475_s1 + $0x5a0] sm:$0xff] }
 0x203   :  { %6941 = vmatprep.subr.bf16.mxu0 %v9082_v45  ;;  %7105 = vmatprep.subr.bf16.mxu1 %v9084_v46  ;;  %v9163_v45 = vcombine.low %v114_v15, %v122_v32  ;;  %v9178_v46 = vcombine.high %v129_v40, %v137_v41  ;;  %v9180_v47 = vcombine.high %v130_v42, %v138_v43  ;;  %v217_v15 = vld [vmem:[%s14475_s1 + $0x5e0] sm:$0xff]  ;;  %v210_v32 = vld [vmem:[%s14475_s1 + $0x5a8] sm:$0xff] }
 0x205   :  { %6769 = vmatmul.mubr.bf16.vlgmr.msra.gmra.mrb[4].mxu0 %v11604_v55  ;;  %6933 = vmatmul.mubr.bf16.vlgmr.msra.gmra.mrb[4].mxu1 %v11604_v55 }
 0x206   :  { %6942 = vmatpush1.bf16.msra.mxu0 %v9081_v51  ;;  %7106 = vmatpush1.bf16.msra.mxu1 %v9083_v52  ;;  %v154_v51 = vld [vmem:[%s14475_s1 + $0x3e8] sm:$0xff]  ;;  %v9177_v52 = vcombine.low %v129_v40, %v137_v41  ;;  %v225_v41 = vld [vmem:[%s14475_s1 + $0x620] sm:$0xff] }
 0x207   :  { %6943 = vmatprep.subr.bf16.mxu0 %v9098_v54  ;;  %7107 = vmatprep.subr.bf16.mxu1 %v9100_v56  ;;  %v9179_v54 = vcombine.low %v130_v42, %v138_v43  ;;  %v9194_v56 = vcombine.high %v145_v48, %v153_v49  ;;  %v9196_v58 = vcombine.high %v146_v50, %v154_v51  ;;  %v233_v42 = vld [vmem:[%s14475_s1 + $0x660] sm:$0xff]  ;;  %v226_v43 = vld [vmem:[%s14475_s1 + $0x628] sm:$0xff] }
 0x208   :  { %6973 = vmatprep.mubr.bf16.mxu0 %v10851_v57  ;;  %7137 = vmatprep.mubr.bf16.mxu1 %v10851_v57 }
 0x20a   :  { %6944 = vmatpush1.bf16.msra.mxu0 %v9097_v62  ;;  %7108 = vmatpush1.bf16.msra.mxu1 %v9099_v63  ;;  %v170_v62 = vld [vmem:[%s14475_s1 + $0x468] sm:$0xff]  ;;  %v9193_v63 = vcombine.low %v145_v48, %v153_v49  ;;  %v241_v49 = vld [vmem:[%s14475_s1 + $0x6a0] sm:$0xff] }
 0x20b   :  { %6945 = vmatprep.subr.bf16.mxu0 %v9114_v0  ;;  %7109 = vmatprep.subr.bf16.mxu1 %v9116_v1  ;;  %v9195_v0 = vcombine.low %v146_v50, %v154_v51  ;;  %v9210_v1 = vcombine.high %v161_v59, %v169_v60  ;;  %v9212_v2 = vcombine.high %v162_v61, %v170_v62  ;;  %v249_v50 = vld [vmem:[%s14475_s1 + $0x6e0] sm:$0xff]  ;;  %v242_v51 = vld [vmem:[%s14475_s1 + $0x6a8] sm:$0xff] }
 0x20e   :  { %6946 = vmatpush1.bf16.msra.mxu0 %v9113_v8  ;;  %7110 = vmatpush1.bf16.msra.mxu1 %v9115_v9  ;;  %v186_v8 = vld [vmem:[%s14475_s1 + $0x4e8] sm:$0xff]  ;;  %v9209_v9 = vcombine.low %v161_v59, %v169_v60  ;;  %v257_v60 = vld [vmem:[%s14475_s1 + $0x720] sm:$0xff] }
 0x20f   :  { %6947 = vmatprep.subr.bf16.mxu0 %v9130_v13  ;;  %7111 = vmatprep.subr.bf16.mxu1 %v9132_v14  ;;  %v9211_v13 = vcombine.low %v162_v61, %v170_v62  ;;  %v9226_v14 = vcombine.high %v177_v3, %v185_v6  ;;  %v9228_v16 = vcombine.high %v178_v7, %v186_v8  ;;  %v265_v61 = vld [vmem:[%s14475_s1 + $0x760] sm:$0xff]  ;;  %v258_v62 = vld [vmem:[%s14475_s1 + $0x728] sm:$0xff] }
 0x212   :  { %6948 = vmatpush1.bf16.msra.mxu0 %v9129_v20  ;;  %7112 = vmatpush1.bf16.msra.mxu1 %v9131_v21  ;;  %v202_v20 = vld [vmem:[%s14475_s1 + $0x568] sm:$0xff]  ;;  %v9225_v21 = vcombine.low %v177_v3, %v185_v6  ;;  %v273_v6 = vld [vmem:[%s14475_s1 + $0x7a0] sm:$0xff] }
 0x213   :  { %6949 = vmatprep.subr.bf16.mxu0 %v9146_v22  ;;  %7113 = vmatprep.subr.bf16.mxu1 %v9148_v26  ;;  %v9227_v22 = vcombine.low %v178_v7, %v186_v8  ;;  %v9242_v26 = vcombine.high %v193_v17, %v201_v53  ;;  %v9244_v29 = vcombine.high %v194_v18, %v202_v20  ;;  %v281_v7 = vld [vmem:[%s14475_s1 + $0x7e0] sm:$0xff]  ;;  %v274_v8 = vld [vmem:[%s14475_s1 + $0x7a8] sm:$0xff] }
 0x216   :  { %6950 = vmatpush1.bf16.msra.mxu0 %v9145_v34  ;;  %7114 = vmatpush1.bf16.msra.mxu1 %v9147_v35  ;;  %v218_v34 = vld [vmem:[%s14475_s1 + $0x5e8] sm:$0xff]  ;;  %v9241_v35 = vcombine.low %v193_v17, %v201_v53  ;;  %v289_v53 = vld [vmem:[%s14475_s1 + $0x820] sm:$0xff] }
 0x217   :  { %6951 = vmatprep.subr.bf16.mxu0 %v9162_v36  ;;  %7115 = vmatprep.subr.bf16.mxu1 %v9164_v37  ;;  %v9243_v36 = vcombine.low %v194_v18, %v202_v20  ;;  %v9258_v37 = vcombine.high %v209_v31, %v217_v15  ;;  %v9260_v40 = vcombine.high %v210_v32, %v218_v34  ;;  %v297_v18 = vld [vmem:[%s14475_s1 + $0x860] sm:$0xff]  ;;  %v290_v20 = vld [vmem:[%s14475_s1 + $0x828] sm:$0xff] }
 0x21a   :  { %6952 = vmatpush1.bf16.msra.mxu0 %v9161_v44  ;;  %7116 = vmatpush1.bf16.msra.mxu1 %v9163_v45  ;;  %v234_v44 = vld [vmem:[%s14475_s1 + $0x668] sm:$0xff]  ;;  %v9257_v45 = vcombine.low %v209_v31, %v217_v15  ;;  %v305_v15 = vld [vmem:[%s14475_s1 + $0x8a0] sm:$0xff] }
 0x21b   :  { %6953 = vmatprep.subr.bf16.mxu0 %v9178_v46  ;;  %7117 = vmatprep.subr.bf16.mxu1 %v9180_v47  ;;  %v9259_v46 = vcombine.low %v210_v32, %v218_v34  ;;  %v9274_v47 = vcombine.high %v225_v41, %v233_v42  ;;  %v9276_v48 = vcombine.high %v226_v43, %v234_v44  ;;  %v313_v32 = vld [vmem:[%s14475_s1 + $0x8e0] sm:$0xff]  ;;  %v306_v34 = vld [vmem:[%s14475_s1 + $0x8a8] sm:$0xff] }
 0x21e   :  { %6954 = vmatpush1.bf16.msra.mxu0 %v9177_v52  ;;  %7118 = vmatpush1.bf16.msra.mxu1 %v9179_v54  ;;  %v250_v52 = vld [vmem:[%s14475_s1 + $0x6e8] sm:$0xff]  ;;  %v9273_v54 = vcombine.low %v225_v41, %v233_v42  ;;  %v321_v42 = vld [vmem:[%s14475_s1 + $0x920] sm:$0xff] }
 0x21f   :  { %6955 = vmatprep.subr.bf16.mxu0 %v9194_v56  ;;  %7119 = vmatprep.subr.bf16.mxu1 %v9196_v58  ;;  %v9275_v56 = vcombine.low %v226_v43, %v234_v44  ;;  %v9290_v58 = vcombine.high %v241_v49, %v249_v50  ;;  %v9292_v59 = vcombine.high %v242_v51, %v250_v52  ;;  %v329_v43 = vld [vmem:[%s14475_s1 + $0x960] sm:$0xff]  ;;  %v322_v44 = vld [vmem:[%s14475_s1 + $0x928] sm:$0xff] }
 0x222   :  { %6956 = vmatpush1.bf16.msra.mxu0 %v9193_v63  ;;  %7120 = vmatpush1.bf16.msra.mxu1 %v9195_v0  ;;  %v266_v63 = vld [vmem:[%s14475_s1 + $0x768] sm:$0xff]  ;;  %v9289_v0 = vcombine.low %v241_v49, %v249_v50  ;;  %v337_v50 = vld [vmem:[%s14475_s1 + $0x9a0] sm:$0xff] }
 0x223   :  { %6957 = vmatprep.subr.bf16.mxu0 %v9210_v1  ;;  %7121 = vmatprep.subr.bf16.mxu1 %v9212_v2  ;;  %v9291_v1 = vcombine.low %v242_v51, %v250_v52  ;;  %v9306_v2 = vcombine.high %v257_v60, %v265_v61  ;;  %v9308_v3 = vcombine.high %v258_v62, %v266_v63  ;;  %v345_v51 = vld [vmem:[%s14475_s1 + $0x9e0] sm:$0xff]  ;;  %v338_v52 = vld [vmem:[%s14475_s1 + $0x9a8] sm:$0xff] }
 0x226   :  { %6958 = vmatpush1.bf16.msra.mxu0 %v9209_v9  ;;  %7122 = vmatpush1.bf16.msra.mxu1 %v9211_v13  ;;  %v282_v9 = vld [vmem:[%s14475_s1 + $0x7e8] sm:$0xff]  ;;  %v9305_v13 = vcombine.low %v257_v60, %v265_v61  ;;  %v353_v61 = vld [vmem:[%s14475_s1 + $0xa20] sm:$0xff] }
 0x227   :  { %6959 = vmatprep.subr.bf16.mxu0 %v9226_v14  ;;  %7123 = vmatprep.subr.bf16.mxu1 %v9228_v16  ;;  %v9307_v14 = vcombine.low %v258_v62, %v266_v63  ;;  %v9322_v16 = vcombine.high %v273_v6, %v281_v7  ;;  %v9324_v17 = vcombine.high %v274_v8, %v282_v9  ;;  %v361_v62 = vld [vmem:[%s14475_s1 + $0xa60] sm:$0xff]  ;;  %v354_v63 = vld [vmem:[%s14475_s1 + $0xa28] sm:$0xff] }
 0x22a   :  { %6960 = vmatpush1.bf16.msra.mxu0 %v9225_v21  ;;  %7124 = vmatpush1.bf16.msra.mxu1 %v9227_v22  ;;  %v298_v21 = vld [vmem:[%s14475_s1 + $0x868] sm:$0xff]  ;;  %v9321_v22 = vcombine.low %v273_v6, %v281_v7  ;;  %v369_v7 = vld [vmem:[%s14475_s1 + $0xaa0] sm:$0xff] }
 0x22b   :  { %6961 = vmatprep.subr.bf16.mxu0 %v9242_v26  ;;  %7125 = vmatprep.subr.bf16.mxu1 %v9244_v29  ;;  %v9323_v26 = vcombine.low %v274_v8, %v282_v9  ;;  %v9338_v29 = vcombine.high %v289_v53, %v297_v18  ;;  %v9340_v31 = vcombine.high %v290_v20, %v298_v21  ;;  %v377_v8 = vld [vmem:[%s14475_s1 + $0xae0] sm:$0xff]  ;;  %v370_v9 = vld [vmem:[%s14475_s1 + $0xaa8] sm:$0xff] }
 0x22e   :  { %6962 = vmatpush1.bf16.msra.mxu0 %v9241_v35  ;;  %7126 = vmatpush1.bf16.msra.mxu1 %v9243_v36  ;;  %v314_v35 = vld [vmem:[%s14475_s1 + $0x8e8] sm:$0xff]  ;;  %v9337_v36 = vcombine.low %v289_v53, %v297_v18  ;;  %v385_v18 = vld [vmem:[%s14475_s1 + $0xb20] sm:$0xff] }
 0x22f   :  { %6963 = vmatprep.subr.bf16.mxu0 %v9258_v37  ;;  %7127 = vmatprep.subr.bf16.mxu1 %v9260_v40  ;;  %v9339_v37 = vcombine.low %v290_v20, %v298_v21  ;;  %v9354_v40 = vcombine.high %v305_v15, %v313_v32  ;;  %v9356_v41 = vcombine.high %v306_v34, %v314_v35  ;;  %v393_v20 = vld [vmem:[%s14475_s1 + $0xb60] sm:$0xff]  ;;  %v386_v21 = vld [vmem:[%s14475_s1 + $0xb28] sm:$0xff] }
 0x232   :  { %6964 = vmatpush1.bf16.msra.mxu0 %v9257_v45  ;;  %7128 = vmatpush1.bf16.msra.mxu1 %v9259_v46  ;;  %v330_v45 = vld [vmem:[%s14475_s1 + $0x968] sm:$0xff]  ;;  %v9353_v46 = vcombine.low %v305_v15, %v313_v32  ;;  %v401_v32 = vld [vmem:[%s14475_s1 + $0xba0] sm:$0xff] }
 0x233   :  { %6965 = vmatprep.subr.bf16.mxu0 %v9274_v47  ;;  %7129 = vmatprep.subr.bf16.mxu1 %v9276_v48  ;;  %v9355_v47 = vcombine.low %v306_v34, %v314_v35  ;;  %v9370_v48 = vcombine.high %v321_v42, %v329_v43  ;;  %v9372_v49 = vcombine.high %v322_v44, %v330_v45  ;;  %v409_v34 = vld [vmem:[%s14475_s1 + $0xbe0] sm:$0xff]  ;;  %v402_v35 = vld [vmem:[%s14475_s1 + $0xba8] sm:$0xff] }
 0x236   :  { %6966 = vmatpush1.bf16.msra.mxu0 %v9273_v54  ;;  %7130 = vmatpush1.bf16.msra.mxu1 %v9275_v56  ;;  %v346_v54 = vld [vmem:[%s14475_s1 + $0x9e8] sm:$0xff]  ;;  %v9369_v56 = vcombine.low %v321_v42, %v329_v43  ;;  %v417_v43 = vld [vmem:[%s14475_s1 + $0xc20] sm:$0xff] }
 0x237   :  { %6967 = vmatprep.subr.bf16.mxu0 %v9290_v58  ;;  %7131 = vmatprep.subr.bf16.mxu1 %v9292_v59  ;;  %v9371_v58 = vcombine.low %v322_v44, %v330_v45  ;;  %v9386_v59 = vcombine.high %v337_v50, %v345_v51  ;;  %v9388_v60 = vcombine.high %v338_v52, %v346_v54  ;;  %v425_v44 = vld [vmem:[%s14475_s1 + $0xc60] sm:$0xff]  ;;  %v418_v45 = vld [vmem:[%s14475_s1 + $0xc28] sm:$0xff] }
 0x23a   :  { %6968 = vmatpush1.bf16.msra.mxu0 %v9289_v0  ;;  %7132 = vmatpush1.bf16.msra.mxu1 %v9291_v1  ;;  %v362_v0 = vld [vmem:[%s14475_s1 + $0xa68] sm:$0xff]  ;;  %v9385_v1 = vcombine.low %v337_v50, %v345_v51  ;;  %v433_v51 = vld [vmem:[%s14475_s1 + $0xca0] sm:$0xff] }
 0x23b   :  { %6969 = vmatprep.subr.bf16.mxu0 %v9306_v2  ;;  %7133 = vmatprep.subr.bf16.mxu1 %v9308_v3  ;;  %v9387_v2 = vcombine.low %v338_v52, %v346_v54  ;;  %v9402_v3 = vcombine.high %v353_v61, %v361_v62  ;;  %v9404_v6 = vcombine.high %v354_v63, %v362_v0  ;;  %v441_v52 = vld [vmem:[%s14475_s1 + $0xce0] sm:$0xff]  ;;  %v434_v54 = vld [vmem:[%s14475_s1 + $0xca8] sm:$0xff] }
 0x23e   :  { %6970 = vmatpush1.bf16.msra.mxu0 %v9305_v13  ;;  %7134 = vmatpush1.bf16.msra.mxu1 %v9307_v14  ;;  %v378_v13 = vld [vmem:[%s14475_s1 + $0xae8] sm:$0xff]  ;;  %v9401_v14 = vcombine.low %v353_v61, %v361_v62  ;;  %v449_v62 = vld [vmem:[%s14475_s1 + $0xd20] sm:$0xff] }
 0x23f   :  { %6971 = vmatprep.subr.bf16.mxu0 %v9322_v16  ;;  %7135 = vmatprep.subr.bf16.mxu1 %v9324_v17  ;;  %v9403_v16 = vcombine.low %v354_v63, %v362_v0  ;;  %v9418_v17 = vcombine.high %v369_v7, %v377_v8  ;;  %v9420_v53 = vcombine.high %v370_v9, %v378_v13  ;;  %v457_v63 = vld [vmem:[%s14475_s1 + $0xd60] sm:$0xff]  ;;  %v450_v0 = vld [vmem:[%s14475_s1 + $0xd28] sm:$0xff] }
 0x242   :  { %6972 = vmatpush1.bf16.msra.mxu0 %v9321_v22  ;;  %7136 = vmatpush1.bf16.msra.mxu1 %v9323_v26  ;;  %v394_v22 = vld [vmem:[%s14475_s1 + $0xb68] sm:$0xff]  ;;  %v9417_v26 = vcombine.low %v369_v7, %v377_v8  ;;  %v465_v8 = vld [vmem:[%s14475_s1 + $0xda0] sm:$0xff] }
 0x243   :  { %6982 = vmatprep.subr.bf16.mxu0 %v9338_v29  ;;  %7146 = vmatprep.subr.bf16.mxu1 %v9340_v31  ;;  %v9419_v29 = vcombine.low %v370_v9, %v378_v13  ;;  %v9434_v31 = vcombine.high %v385_v18, %v393_v20  ;;  %v9436_v15 = vcombine.high %v386_v21, %v394_v22  ;;  %v473_v9 = vld [vmem:[%s14475_s1 + $0xde0] sm:$0xff]  ;;  %v466_v13 = vld [vmem:[%s14475_s1 + $0xda8] sm:$0xff] }
 0x245   :  { %6974 = vmatmul.mubr.bf16.vlgmr.msra.gmra.mrb[8].mxu0 %v10977_v12  ;;  %7138 = vmatmul.mubr.bf16.vlgmr.msra.gmra.mrb[8].mxu1 %v10977_v12 }
 0x246   :  { %6983 = vmatpush1.bf16.msra.mxu0 %v9337_v36  ;;  %7147 = vmatpush1.bf16.msra.mxu1 %v9339_v37  ;;  %v410_v36 = vld [vmem:[%s14475_s1 + $0xbe8] sm:$0xff]  ;;  %v9433_v37 = vcombine.low %v385_v18, %v393_v20  ;;  %v481_v20 = vld [vmem:[%s14475_s1 + $0xe20] sm:$0xff] }
 0x247   :  { %6984 = vmatprep.subr.bf16.mxu0 %v9354_v40  ;;  %7148 = vmatprep.subr.bf16.mxu1 %v9356_v41  ;;  %v9435_v40 = vcombine.low %v386_v21, %v394_v22  ;;  %v9450_v41 = vcombine.high %v401_v32, %v409_v34  ;;  %v9452_v42 = vcombine.high %v402_v35, %v410_v36  ;;  %v489_v21 = vld [vmem:[%s14475_s1 + $0xe60] sm:$0xff]  ;;  %v482_v22 = vld [vmem:[%s14475_s1 + $0xe28] sm:$0xff] }
 0x248   :  { %7014 = vmatprep.mubr.bf16.mxu0 %v11004_v23  ;;  %7178 = vmatprep.mubr.bf16.mxu1 %v11004_v23 }
 0x24a   :  { %6985 = vmatpush1.bf16.msra.mxu0 %v9353_v46  ;;  %7149 = vmatpush1.bf16.msra.mxu1 %v9355_v47  ;;  %v426_v46 = vld [vmem:[%s14475_s1 + $0xc68] sm:$0xff]  ;;  %v9449_v47 = vcombine.low %v401_v32, %v409_v34  ;;  %v497_v34 = vld [vmem:[%s14475_s1 + $0xea0] sm:$0xff] }
 0x24b   :  { %6986 = vmatprep.subr.bf16.mxu0 %v9370_v48  ;;  %7150 = vmatprep.subr.bf16.mxu1 %v9372_v49  ;;  %v9451_v48 = vcombine.low %v402_v35, %v410_v36  ;;  %v9466_v49 = vcombine.high %v417_v43, %v425_v44  ;;  %v9468_v50 = vcombine.high %v418_v45, %v426_v46  ;;  %v505_v35 = vld [vmem:[%s14475_s1 + $0xee0] sm:$0xff]  ;;  %v498_v36 = vld [vmem:[%s14475_s1 + $0xea8] sm:$0xff] }
 0x24e   :  { %6987 = vmatpush1.bf16.msra.mxu0 %v9369_v56  ;;  %7151 = vmatpush1.bf16.msra.mxu1 %v9371_v58  ;;  %v442_v56 = vld [vmem:[%s14475_s1 + $0xce8] sm:$0xff]  ;;  %v9465_v58 = vcombine.low %v417_v43, %v425_v44  ;;  %v513_v44 = vld [vmem:[%s14475_s1 + $0xf20] sm:$0xff] }
 0x24f   :  { %6988 = vmatprep.subr.bf16.mxu0 %v9386_v59  ;;  %7152 = vmatprep.subr.bf16.mxu1 %v9388_v60  ;;  %v9467_v59 = vcombine.low %v418_v45, %v426_v46  ;;  %v9482_v60 = vcombine.high %v433_v51, %v441_v52  ;;  %v9484_v61 = vcombine.high %v434_v54, %v442_v56  ;;  %v521_v45 = vld [vmem:[%s14475_s1 + $0xf60] sm:$0xff]  ;;  %v514_v46 = vld [vmem:[%s14475_s1 + $0xf28] sm:$0xff] }
 0x252   :  { %6989 = vmatpush1.bf16.msra.mxu0 %v9385_v1  ;;  %7153 = vmatpush1.bf16.msra.mxu1 %v9387_v2  ;;  %v458_v1 = vld [vmem:[%s14475_s1 + $0xd68] sm:$0xff]  ;;  %v9481_v2 = vcombine.low %v433_v51, %v441_v52  ;;  %v529_v52 = vld [vmem:[%s14475_s1 + $0xfa0] sm:$0xff] }
 0x253   :  { %6990 = vmatprep.subr.bf16.mxu0 %v9402_v3  ;;  %7154 = vmatprep.subr.bf16.mxu1 %v9404_v6  ;;  %v9483_v3 = vcombine.low %v434_v54, %v442_v56  ;;  %v9498_v6 = vcombine.high %v449_v62, %v457_v63  ;;  %v9500_v7 = vcombine.high %v450_v0, %v458_v1  ;;  %v537_v54 = vld [vmem:[%s14475_s1 + $0xfe0] sm:$0xff]  ;;  %v530_v56 = vld [vmem:[%s14475_s1 + $0xfa8] sm:$0xff] }
 0x256   :  { %6991 = vmatpush1.bf16.msra.mxu0 %v9401_v14  ;;  %7155 = vmatpush1.bf16.msra.mxu1 %v9403_v16  ;;  %v474_v14 = vld [vmem:[%s14475_s1 + $0xde8] sm:$0xff]  ;;  %v9497_v16 = vcombine.low %v449_v62, %v457_v63  ;;  %v545_v63 = vld [vmem:[%s14475_s1 + $0x1020] sm:$0xff] }
 0x257   :  { %6992 = vmatprep.subr.bf16.mxu0 %v9418_v17  ;;  %7156 = vmatprep.subr.bf16.mxu1 %v9420_v53  ;;  %v9499_v17 = vcombine.low %v450_v0, %v458_v1  ;;  %v9514_v53 = vcombine.high %v465_v8, %v473_v9  ;;  %v9516_v18 = vcombine.high %v466_v13, %v474_v14  ;;  %v553_v0 = vld [vmem:[%s14475_s1 + $0x1060] sm:$0xff]  ;;  %v546_v1 = vld [vmem:[%s14475_s1 + $0x1028] sm:$0xff] }
 0x25a   :  { %6993 = vmatpush1.bf16.msra.mxu0 %v9417_v26  ;;  %7157 = vmatpush1.bf16.msra.mxu1 %v9419_v29  ;;  %v490_v26 = vld [vmem:[%s14475_s1 + $0xe68] sm:$0xff]  ;;  %v9513_v29 = vcombine.low %v465_v8, %v473_v9  ;;  %v561_v9 = vld [vmem:[%s14475_s1 + $0x10a0] sm:$0xff] }
 0x25b   :  { %6994 = vmatprep.subr.bf16.mxu0 %v9434_v31  ;;  %7158 = vmatprep.subr.bf16.mxu1 %v9436_v15  ;;  %v9515_v31 = vcombine.low %v466_v13, %v474_v14  ;;  %v9530_v15 = vcombine.high %v481_v20, %v489_v21  ;;  %v9532_v32 = vcombine.high %v482_v22, %v490_v26  ;;  %v569_v13 = vld [vmem:[%s14475_s1 + $0x10e0] sm:$0xff]  ;;  %v562_v14 = vld [vmem:[%s14475_s1 + $0x10a8] sm:$0xff] }
 0x25e   :  { %6995 = vmatpush1.bf16.msra.mxu0 %v9433_v37  ;;  %7159 = vmatpush1.bf16.msra.mxu1 %v9435_v40  ;;  %v506_v37 = vld [vmem:[%s14475_s1 + $0xee8] sm:$0xff]  ;;  %v9529_v40 = vcombine.low %v481_v20, %v489_v21  ;;  %v577_v21 = vld [vmem:[%s14475_s1 + $0x1120] sm:$0xff] }
 0x25f   :  { %6996 = vmatprep.subr.bf16.mxu0 %v9450_v41  ;;  %7160 = vmatprep.subr.bf16.mxu1 %v9452_v42  ;;  %v9531_v41 = vcombine.low %v482_v22, %v490_v26  ;;  %v9546_v42 = vcombine.high %v497_v34, %v505_v35  ;;  %v9548_v43 = vcombine.high %v498_v36, %v506_v37  ;;  %v585_v22 = vld [vmem:[%s14475_s1 + $0x1160] sm:$0xff]  ;;  %v578_v26 = vld [vmem:[%s14475_s1 + $0x1128] sm:$0xff] }
 0x262   :  { %6997 = vmatpush1.bf16.msra.mxu0 %v9449_v47  ;;  %7161 = vmatpush1.bf16.msra.mxu1 %v9451_v48  ;;  %v522_v47 = vld [vmem:[%s14475_s1 + $0xf68] sm:$0xff]  ;;  %v9545_v48 = vcombine.low %v497_v34, %v505_v35  ;;  %v593_v35 = vld [vmem:[%s14475_s1 + $0x11a0] sm:$0xff] }
 0x263   :  { %6998 = vmatprep.subr.bf16.mxu0 %v9466_v49  ;;  %7162 = vmatprep.subr.bf16.mxu1 %v9468_v50  ;;  %v9547_v49 = vcombine.low %v498_v36, %v506_v37  ;;  %v9562_v50 = vcombine.high %v513_v44, %v521_v45  ;;  %v9564_v51 = vcombine.high %v514_v46, %v522_v47  ;;  %v601_v36 = vld [vmem:[%s14475_s1 + $0x11e0] sm:$0xff]  ;;  %v594_v37 = vld [vmem:[%s14475_s1 + $0x11a8] sm:$0xff] }
 0x266   :  { %6999 = vmatpush1.bf16.msra.mxu0 %v9465_v58  ;;  %7163 = vmatpush1.bf16.msra.mxu1 %v9467_v59  ;;  %v538_v58 = vld [vmem:[%s14475_s1 + $0xfe8] sm:$0xff]  ;;  %v9561_v59 = vcombine.low %v513_v44, %v521_v45  ;;  %v609_v45 = vld [vmem:[%s14475_s1 + $0x1220] sm:$0xff] }
 0x267   :  { %7000 = vmatprep.subr.bf16.mxu0 %v9482_v60  ;;  %7164 = vmatprep.subr.bf16.mxu1 %v9484_v61  ;;  %v9563_v60 = vcombine.low %v514_v46, %v522_v47  ;;  %v9578_v61 = vcombine.high %v529_v52, %v537_v54  ;;  %v9580_v62 = vcombine.high %v530_v56, %v538_v58  ;;  %v617_v46 = vld [vmem:[%s14475_s1 + $0x1260] sm:$0xff]  ;;  %v610_v47 = vld [vmem:[%s14475_s1 + $0x1228] sm:$0xff] }
 0x26a   :  { %7001 = vmatpush1.bf16.msra.mxu0 %v9481_v2  ;;  %7165 = vmatpush1.bf16.msra.mxu1 %v9483_v3  ;;  %v554_v2 = vld [vmem:[%s14475_s1 + $0x1068] sm:$0xff]  ;;  %v9577_v3 = vcombine.low %v529_v52, %v537_v54  ;;  %v625_v54 = vld [vmem:[%s14475_s1 + $0x12a0] sm:$0xff] }
 0x26b   :  { %7002 = vmatprep.subr.bf16.mxu0 %v9498_v6  ;;  %7166 = vmatprep.subr.bf16.mxu1 %v9500_v7  ;;  %v9579_v6 = vcombine.low %v530_v56, %v538_v58  ;;  %v9594_v7 = vcombine.high %v545_v63, %v553_v0  ;;  %v9596_v8 = vcombine.high %v546_v1, %v554_v2  ;;  %v633_v56 = vld [vmem:[%s14475_s1 + $0x12e0] sm:$0xff]  ;;  %v626_v58 = vld [vmem:[%s14475_s1 + $0x12a8] sm:$0xff] }
 0x26e   :  { %7003 = vmatpush1.bf16.msra.mxu0 %v9497_v16  ;;  %7167 = vmatpush1.bf16.msra.mxu1 %v9499_v17  ;;  %v570_v16 = vld [vmem:[%s14475_s1 + $0x10e8] sm:$0xff]  ;;  %v9593_v17 = vcombine.low %v545_v63, %v553_v0  ;;  %v641_v0 = vld [vmem:[%s14475_s1 + $0x1320] sm:$0xff] }
 0x26f   :  { %7004 = vmatprep.subr.bf16.mxu0 %v9514_v53  ;;  %7168 = vmatprep.subr.bf16.mxu1 %v9516_v18  ;;  %v9595_v53 = vcombine.low %v546_v1, %v554_v2  ;;  %v9610_v18 = vcombine.high %v561_v9, %v569_v13  ;;  %v9612_v20 = vcombine.high %v562_v14, %v570_v16  ;;  %v649_v1 = vld [vmem:[%s14475_s1 + $0x1360] sm:$0xff]  ;;  %v642_v2 = vld [vmem:[%s14475_s1 + $0x1328] sm:$0xff] }
 0x272   :  { %7005 = vmatpush1.bf16.msra.mxu0 %v9513_v29  ;;  %7169 = vmatpush1.bf16.msra.mxu1 %v9515_v31  ;;  %v586_v29 = vld [vmem:[%s14475_s1 + $0x1168] sm:$0xff]  ;;  %v9609_v31 = vcombine.low %v561_v9, %v569_v13  ;;  %v657_v13 = vld [vmem:[%s14475_s1 + $0x13a0] sm:$0xff] }
 0x273   :  { %7006 = vmatprep.subr.bf16.mxu0 %v9530_v15  ;;  %7170 = vmatprep.subr.bf16.mxu1 %v9532_v32  ;;  %v9611_v15 = vcombine.low %v562_v14, %v570_v16  ;;  %v9626_v32 = vcombine.high %v577_v21, %v585_v22  ;;  %v9628_v34 = vcombine.high %v578_v26, %v586_v29  ;;  %v665_v14 = vld [vmem:[%s14475_s1 + $0x13e0] sm:$0xff]  ;;  %v658_v16 = vld [vmem:[%s14475_s1 + $0x13a8] sm:$0xff] }
 0x276   :  { %7007 = vmatpush1.bf16.msra.mxu0 %v9529_v40  ;;  %7171 = vmatpush1.bf16.msra.mxu1 %v9531_v41  ;;  %v602_v40 = vld [vmem:[%s14475_s1 + $0x11e8] sm:$0xff]  ;;  %v9625_v41 = vcombine.low %v577_v21, %v585_v22  ;;  %v673_v22 = vld [vmem:[%s14475_s1 + $0x1420] sm:$0xff] }
 0x277   :  { %7008 = vmatprep.subr.bf16.mxu0 %v9546_v42  ;;  %7172 = vmatprep.subr.bf16.mxu1 %v9548_v43  ;;  %v9627_v42 = vcombine.low %v578_v26, %v586_v29  ;;  %v9642_v43 = vcombine.high %v593_v35, %v601_v36  ;;  %v9644_v44 = vcombine.high %v594_v37, %v602_v40  ;;  %v681_v26 = vld [vmem:[%s14475_s1 + $0x1460] sm:$0xff]  ;;  %v674_v29 = vld [vmem:[%s14475_s1 + $0x1428] sm:$0xff] }
 0x27a   :  { %7009 = vmatpush1.bf16.msra.mxu0 %v9545_v48  ;;  %7173 = vmatpush1.bf16.msra.mxu1 %v9547_v49  ;;  %v618_v48 = vld [vmem:[%s14475_s1 + $0x1268] sm:$0xff]  ;;  %v9641_v49 = vcombine.low %v593_v35, %v601_v36  ;;  %v689_v36 = vld [vmem:[%s14475_s1 + $0x14a0] sm:$0xff] }
 0x27b   :  { %7010 = vmatprep.subr.bf16.mxu0 %v9562_v50  ;;  %7174 = vmatprep.subr.bf16.mxu1 %v9564_v51  ;;  %v9643_v50 = vcombine.low %v594_v37, %v602_v40  ;;  %v9658_v51 = vcombine.high %v609_v45, %v617_v46  ;;  %v9660_v52 = vcombine.high %v610_v47, %v618_v48  ;;  %v697_v37 = vld [vmem:[%s14475_s1 + $0x14e0] sm:$0xff]  ;;  %v690_v40 = vld [vmem:[%s14475_s1 + $0x14a8] sm:$0xff] }
 0x27e   :  { %7011 = vmatpush1.bf16.msra.mxu0 %v9561_v59  ;;  %7175 = vmatpush1.bf16.msra.mxu1 %v9563_v60  ;;  %v634_v59 = vld [vmem:[%s14475_s1 + $0x12e8] sm:$0xff]  ;;  %v9657_v60 = vcombine.low %v609_v45, %v617_v46  ;;  %v705_v46 = vld [vmem:[%s14475_s1 + $0x1520] sm:$0xff] }
 0x27f   :  { %7012 = vmatprep.subr.bf16.mxu0 %v9578_v61  ;;  %7176 = vmatprep.subr.bf16.mxu1 %v9580_v62  ;;  %v9659_v61 = vcombine.low %v610_v47, %v618_v48  ;;  %v9674_v62 = vcombine.high %v625_v54, %v633_v56  ;;  %v9676_v63 = vcombine.high %v626_v58, %v634_v59  ;;  %v713_v47 = vld [vmem:[%s14475_s1 + $0x1560] sm:$0xff]  ;;  %v706_v48 = vld [vmem:[%s14475_s1 + $0x1528] sm:$0xff] }
 0x282   :  { %7013 = vmatpush1.bf16.msra.mxu0 %v9577_v3  ;;  %7177 = vmatpush1.bf16.msra.mxu1 %v9579_v6  ;;  %v650_v3 = vld [vmem:[%s14475_s1 + $0x1368] sm:$0xff]  ;;  %v9673_v6 = vcombine.low %v625_v54, %v633_v56  ;;  %v721_v56 = vld [vmem:[%s14475_s1 + $0x15a0] sm:$0xff] }
 0x283   :  { %7023 = vmatprep.subr.bf16.mxu0 %v9594_v7  ;;  %7187 = vmatprep.subr.bf16.mxu1 %v9596_v8  ;;  %v9675_v7 = vcombine.low %v626_v58, %v634_v59  ;;  %v9690_v8 = vcombine.high %v641_v0, %v649_v1  ;;  %v9692_v9 = vcombine.high %v642_v2, %v650_v3  ;;  %v729_v58 = vld [vmem:[%s14475_s1 + $0x15e0] sm:$0xff]  ;;  %v722_v59 = vld [vmem:[%s14475_s1 + $0x15a8] sm:$0xff] }
 0x285   :  { %7015 = vmatmul.mubr.bf16.vlgmr.msra.gmra.mrb[8].mxu0 %v11197_v25  ;;  %7179 = vmatmul.mubr.bf16.vlgmr.msra.gmra.mrb[8].mxu1 %v11197_v25 }
 0x286   :  { %7024 = vmatpush1.bf16.msra.mxu0 %v9593_v17  ;;  %7188 = vmatpush1.bf16.msra.mxu1 %v9595_v53  ;;  %v666_v17 = vld [vmem:[%s14475_s1 + $0x13e8] sm:$0xff]  ;;  %v9689_v53 = vcombine.low %v641_v0, %v649_v1  ;;  %v737_v1 = vld [vmem:[%s14475_s1 + $0x1620] sm:$0xff] }
 0x287   :  { %7025 = vmatprep.subr.bf16.mxu0 %v9610_v18  ;;  %7189 = vmatprep.subr.bf16.mxu1 %v9612_v20  ;;  %v9691_v18 = vcombine.low %v642_v2, %v650_v3  ;;  %v9706_v20 = vcombine.high %v657_v13, %v665_v14  ;;  %v9708_v21 = vcombine.high %v658_v16, %v666_v17  ;;  %v745_v2 = vld [vmem:[%s14475_s1 + $0x1660] sm:$0xff]  ;;  %v738_v3 = vld [vmem:[%s14475_s1 + $0x1628] sm:$0xff] }
 0x288   :  { %7055 = vmatprep.mubr.bf16.mxu0 %v11213_v33  ;;  %7219 = vmatprep.mubr.bf16.mxu1 %v11213_v33 }
 0x28a   :  { %7026 = vmatpush1.bf16.msra.mxu0 %v9609_v31  ;;  %7190 = vmatpush1.bf16.msra.mxu1 %v9611_v15  ;;  %v682_v31 = vld [vmem:[%s14475_s1 + $0x1468] sm:$0xff]  ;;  %v9705_v15 = vcombine.low %v657_v13, %v665_v14  ;;  %v753_v14 = vld [vmem:[%s14475_s1 + $0x16a0] sm:$0xff] }
 0x28b   :  { %7027 = vmatprep.subr.bf16.mxu0 %v9626_v32  ;;  %7191 = vmatprep.subr.bf16.mxu1 %v9628_v34  ;;  %v9707_v32 = vcombine.low %v658_v16, %v666_v17  ;;  %v9722_v34 = vcombine.high %v673_v22, %v681_v26  ;;  %v9724_v35 = vcombine.high %v674_v29, %v682_v31  ;;  %v761_v16 = vld [vmem:[%s14475_s1 + $0x16e0] sm:$0xff]  ;;  %v754_v17 = vld [vmem:[%s14475_s1 + $0x16a8] sm:$0xff] }
 0x28e   :  { %7028 = vmatpush1.bf16.msra.mxu0 %v9625_v41  ;;  %7192 = vmatpush1.bf16.msra.mxu1 %v9627_v42  ;;  %v698_v41 = vld [vmem:[%s14475_s1 + $0x14e8] sm:$0xff]  ;;  %v9721_v42 = vcombine.low %v673_v22, %v681_v26  ;;  %v769_v26 = vld [vmem:[%s14475_s1 + $0x1720] sm:$0xff] }
 0x28f   :  { %7029 = vmatprep.subr.bf16.mxu0 %v9642_v43  ;;  %7193 = vmatprep.subr.bf16.mxu1 %v9644_v44  ;;  %v9723_v43 = vcombine.low %v674_v29, %v682_v31  ;;  %v9738_v44 = vcombine.high %v689_v36, %v697_v37  ;;  %v9740_v45 = vcombine.high %v690_v40, %v698_v41  ;;  %v777_v29 = vld [vmem:[%s14475_s1 + $0x1760] sm:$0xff]  ;;  %v770_v31 = vld [vmem:[%s14475_s1 + $0x1728] sm:$0xff] }
 0x292   :  { %7030 = vmatpush1.bf16.msra.mxu0 %v9641_v49  ;;  %7194 = vmatpush1.bf16.msra.mxu1 %v9643_v50  ;;  %v714_v49 = vld [vmem:[%s14475_s1 + $0x1568] sm:$0xff]  ;;  %v9737_v50 = vcombine.low %v689_v36, %v697_v37  ;;  %v785_v37 = vld [vmem:[%s14475_s1 + $0x17a0] sm:$0xff] }
 0x293   :  { %7031 = vmatprep.subr.bf16.mxu0 %v9658_v51  ;;  %7195 = vmatprep.subr.bf16.mxu1 %v9660_v52  ;;  %v9739_v51 = vcombine.low %v690_v40, %v698_v41  ;;  %v9754_v52 = vcombine.high %v705_v46, %v713_v47  ;;  %v9756_v54 = vcombine.high %v706_v48, %v714_v49  ;;  %v793_v40 = vld [vmem:[%s14475_s1 + $0x17e0] sm:$0xff]  ;;  %v786_v41 = vld [vmem:[%s14475_s1 + $0x17a8] sm:$0xff] }
 0x296   :  { %7032 = vmatpush1.bf16.msra.mxu0 %v9657_v60  ;;  %7196 = vmatpush1.bf16.msra.mxu1 %v9659_v61  ;;  %v730_v60 = vld [vmem:[%s14475_s1 + $0x15e8] sm:$0xff]  ;;  %v9753_v61 = vcombine.low %v705_v46, %v713_v47  ;;  %v801_v47 = vld [vmem:[%s14475_s1 + $0x1820] sm:$0xff] }
 0x297   :  { %7033 = vmatprep.subr.bf16.mxu0 %v9674_v62  ;;  %7197 = vmatprep.subr.bf16.mxu1 %v9676_v63  ;;  %v9755_v62 = vcombine.low %v706_v48, %v714_v49  ;;  %v9770_v63 = vcombine.high %v721_v56, %v729_v58  ;;  %v9772_v0 = vcombine.high %v722_v59, %v730_v60  ;;  %v809_v48 = vld [vmem:[%s14475_s1 + $0x1860] sm:$0xff]  ;;  %v802_v49 = vld [vmem:[%s14475_s1 + $0x1828] sm:$0xff] }
 0x29a   :  { %7034 = vmatpush1.bf16.msra.mxu0 %v9673_v6  ;;  %7198 = vmatpush1.bf16.msra.mxu1 %v9675_v7  ;;  %v746_v6 = vld [vmem:[%s14475_s1 + $0x1668] sm:$0xff]  ;;  %v9769_v7 = vcombine.low %v721_v56, %v729_v58  ;;  %v817_v58 = vld [vmem:[%s14475_s1 + $0x18a0] sm:$0xff] }
 0x29b   :  { %7035 = vmatprep.subr.bf16.mxu0 %v9690_v8  ;;  %7199 = vmatprep.subr.bf16.mxu1 %v9692_v9  ;;  %v9771_v8 = vcombine.low %v722_v59, %v730_v60  ;;  %v9786_v9 = vcombine.high %v737_v1, %v745_v2  ;;  %v9788_v13 = vcombine.high %v738_v3, %v746_v6  ;;  %v825_v59 = vld [vmem:[%s14475_s1 + $0x18e0] sm:$0xff]  ;;  %v818_v60 = vld [vmem:[%s14475_s1 + $0x18a8] sm:$0xff] }
 0x29e   :  { %7036 = vmatpush1.bf16.msra.mxu0 %v9689_v53  ;;  %7200 = vmatpush1.bf16.msra.mxu1 %v9691_v18  ;;  %v762_v53 = vld [vmem:[%s14475_s1 + $0x16e8] sm:$0xff]  ;;  %v9785_v18 = vcombine.low %v737_v1, %v745_v2  ;;  %v833_v2 = vld [vmem:[%s14475_s1 + $0x1920] sm:$0xff] }
 0x29f   :  { %7037 = vmatprep.subr.bf16.mxu0 %v9706_v20  ;;  %7201 = vmatprep.subr.bf16.mxu1 %v9708_v21  ;;  %v9787_v20 = vcombine.low %v738_v3, %v746_v6  ;;  %v9802_v21 = vcombine.high %v753_v14, %v761_v16  ;;  %v9804_v22 = vcombine.high %v754_v17, %v762_v53  ;;  %v841_v3 = vld [vmem:[%s14475_s1 + $0x1960] sm:$0xff]  ;;  %v834_v6 = vld [vmem:[%s14475_s1 + $0x1928] sm:$0xff] }
 0x2a2   :  { %7038 = vmatpush1.bf16.msra.mxu0 %v9705_v15  ;;  %7202 = vmatpush1.bf16.msra.mxu1 %v9707_v32  ;;  %v778_v15 = vld [vmem:[%s14475_s1 + $0x1768] sm:$0xff]  ;;  %v9801_v32 = vcombine.low %v753_v14, %v761_v16  ;;  %v849_v16 = vld [vmem:[%s14475_s1 + $0x19a0] sm:$0xff] }
 0x2a3   :  { %7039 = vmatprep.subr.bf16.mxu0 %v9722_v34  ;;  %7203 = vmatprep.subr.bf16.mxu1 %v9724_v35  ;;  %v9803_v34 = vcombine.low %v754_v17, %v762_v53  ;;  %v9818_v35 = vcombine.high %v769_v26, %v777_v29  ;;  %v9820_v36 = vcombine.high %v770_v31, %v778_v15  ;;  %v857_v17 = vld [vmem:[%s14475_s1 + $0x19e0] sm:$0xff]  ;;  %v850_v53 = vld [vmem:[%s14475_s1 + $0x19a8] sm:$0xff] }
 0x2a6   :  { %7040 = vmatpush1.bf16.msra.mxu0 %v9721_v42  ;;  %7204 = vmatpush1.bf16.msra.mxu1 %v9723_v43  ;;  %v794_v42 = vld [vmem:[%s14475_s1 + $0x17e8] sm:$0xff]  ;;  %v9817_v43 = vcombine.low %v769_v26, %v777_v29  ;;  %v865_v29 = vld [vmem:[%s14475_s1 + $0x1a20] sm:$0xff] }
 0x2a7   :  { %7041 = vmatprep.subr.bf16.mxu0 %v9738_v44  ;;  %7205 = vmatprep.subr.bf16.mxu1 %v9740_v45  ;;  %v9819_v44 = vcombine.low %v770_v31, %v778_v15  ;;  %v9834_v45 = vcombine.high %v785_v37, %v793_v40  ;;  %v9836_v46 = vcombine.high %v786_v41, %v794_v42  ;;  %v873_v31 = vld [vmem:[%s14475_s1 + $0x1a60] sm:$0xff]  ;;  %v866_v15 = vld [vmem:[%s14475_s1 + $0x1a28] sm:$0xff] }
 0x2aa   :  { %7042 = vmatpush1.bf16.msra.mxu0 %v9737_v50  ;;  %7206 = vmatpush1.bf16.msra.mxu1 %v9739_v51  ;;  %v810_v50 = vld [vmem:[%s14475_s1 + $0x1868] sm:$0xff]  ;;  %v9833_v51 = vcombine.low %v785_v37, %v793_v40  ;;  %v881_v40 = vld [vmem:[%s14475_s1 + $0x1aa0] sm:$0xff] }
 0x2ab   :  { %7043 = vmatprep.subr.bf16.mxu0 %v9754_v52  ;;  %7207 = vmatprep.subr.bf16.mxu1 %v9756_v54  ;;  %v9835_v52 = vcombine.low %v786_v41, %v794_v42  ;;  %v9850_v54 = vcombine.high %v801_v47, %v809_v48  ;;  %v9852_v56 = vcombine.high %v802_v49, %v810_v50  ;;  %v889_v41 = vld [vmem:[%s14475_s1 + $0x1ae0] sm:$0xff]  ;;  %v1075_v42 = vsub.s32 4, %v12240_v11 }
 0x2ae   :  { %7044 = vmatpush1.bf16.msra.mxu0 %v9753_v61  ;;  %7208 = vmatpush1.bf16.msra.mxu1 %v9755_v62  ;;  %v826_v61 = vld [vmem:[%s14475_s1 + $0x18e8] sm:$0xff]  ;;  %v9849_v62 = vcombine.low %v801_v47, %v809_v48  ;;  %v1079_v47 = vsub.s32 5, %v12240_v11 }
 0x2af   :  { %7045 = vmatprep.subr.bf16.mxu0 %v9770_v63  ;;  %7209 = vmatprep.subr.bf16.mxu1 %v9772_v0  ;;  %v9851_v63 = vcombine.low %v802_v49, %v810_v50  ;;  %v9866_v0 = vcombine.high %v817_v58, %v825_v59  ;;  %v9868_v1 = vcombine.high %v818_v60, %v826_v61  ;;  %v1087_v49 = vsub.s32 7, %v12240_v11 }
 0x2b0   :  { %v9930_v50 = vcombine.high %v881_v40, %v889_v41 }
 0x2b2   :  { %7046 = vmatpush1.bf16.msra.mxu0 %v9769_v7  ;;  %7210 = vmatpush1.bf16.msra.mxu1 %v9771_v8  ;;  %v842_v7 = vld [vmem:[%s14475_s1 + $0x1968] sm:$0xff]  ;;  %v9865_v8 = vcombine.low %v817_v58, %v825_v59 }
 0x2b3   :  { %7047 = vmatprep.subr.bf16.mxu0 %v9786_v9  ;;  %7211 = vmatprep.subr.bf16.mxu1 %v9788_v13  ;;  %v9867_v9 = vcombine.low %v818_v60, %v826_v61  ;;  %v9882_v13 = vcombine.high %v833_v2, %v841_v3  ;;  %v9884_v14 = vcombine.high %v834_v6, %v842_v7  ;;  %v898_v59 = vld [vmem:[%s14475_s1 + $0x1b28] sm:$0xff] }
 0x2b4   :  { %v906_v60 = vld [vmem:[%s14475_s1 + $0x1b68] sm:$0xff] }
 0x2b6   :  { %7048 = vmatpush1.bf16.msra.mxu0 %v9785_v18  ;;  %7212 = vmatpush1.bf16.msra.mxu1 %v9787_v20  ;;  %v858_v18 = vld [vmem:[%s14475_s1 + $0x19e8] sm:$0xff]  ;;  %v9881_v20 = vcombine.low %v833_v2, %v841_v3 }
 0x2b7   :  { %7049 = vmatprep.subr.bf16.mxu0 %v9802_v21  ;;  %7213 = vmatprep.subr.bf16.mxu1 %v9804_v22  ;;  %v9883_v21 = vcombine.low %v834_v6, %v842_v7  ;;  %v9898_v22 = vcombine.high %v849_v16, %v857_v17  ;;  %v9900_v26 = vcombine.high %v850_v53, %v858_v18  ;;  %v913_v7 = vld [vmem:[%s14475_s1 + $0x1ba0] sm:$0xff] }
 0x2b8   :  { %v9948_v6 = vcombine.high %v898_v59, %v906_v60 }
 0x2ba   :  { %7050 = vmatpush1.bf16.msra.mxu0 %v9801_v32  ;;  %7214 = vmatpush1.bf16.msra.mxu1 %v9803_v34  ;;  %v874_v32 = vld [vmem:[%s14475_s1 + $0x1a68] sm:$0xff]  ;;  %v9897_v34 = vcombine.low %v849_v16, %v857_v17 }
 0x2bb   :  { %7051 = vmatprep.subr.bf16.mxu0 %v9818_v35  ;;  %7215 = vmatprep.subr.bf16.mxu1 %v9820_v36  ;;  %v9899_v35 = vcombine.low %v850_v53, %v858_v18  ;;  %v9914_v36 = vcombine.high %v865_v29, %v873_v31  ;;  %v9916_v37 = vcombine.high %v866_v15, %v874_v32  ;;  %v914_v16 = vld [vmem:[%s14475_s1 + $0x1ba8] sm:$0xff] }
 0x2bc   :  { %v9915_v48 = vcombine.low %v866_v15, %v874_v32  ;;  %v922_v17 = vld [vmem:[%s14475_s1 + $0x1be8] sm:$0xff]  ;;  %v9947_v32 = vcombine.low %v898_v59, %v906_v60  ;;  %v945_v59 = vld [vmem:[%s14475_s1 + $0x1ca0] sm:$0xff] }
 0x2bd   :  { %v953_v60 = vld [vmem:[%s14475_s1 + $0x1ce0] sm:$0xff] }
 0x2be   :  { %7052 = vmatpush1.bf16.msra.mxu0 %v9817_v43  ;;  %7216 = vmatpush1.bf16.msra.mxu1 %v9819_v44  ;;  %v882_v43 = vld [vmem:[%s14475_s1 + $0x1aa8] sm:$0xff] }
 0x2bf   :  { %7053 = vmatprep.subr.bf16.mxu0 %v9834_v45  ;;  %7217 = vmatprep.subr.bf16.mxu1 %v9836_v46  ;;  %v890_v44 = vld [vmem:[%s14475_s1 + $0x1ae8] sm:$0xff]  ;;  %v9913_v45 = vcombine.low %v865_v29, %v873_v31  ;;  %v1083_v46 = vsub.s32 6, %v12240_v11 }
 0x2c2   :  { %7054 = vmatpush1.bf16.msra.mxu0 %v9833_v51  ;;  %7218 = vmatpush1.bf16.msra.mxu1 %v9835_v52  ;;  %v9932_v51 = vcombine.high %v882_v43, %v890_v44  ;;  %v897_v52 = vld [vmem:[%s14475_s1 + $0x1b20] sm:$0xff] }
 0x2c3   :  { %7064 = vmatprep.subr.bf16.mxu0 %v9850_v54  ;;  %7228 = vmatprep.subr.bf16.mxu1 %v9852_v56  ;;  %v905_v54 = vld [vmem:[%s14475_s1 + $0x1b60] sm:$0xff] }
 0x2c4   :  { %v10668_v56 = vld [vmem:[%s14476_s2] sm:$0xff]  ;;  %v9946_v2 = vcombine.high %v897_v52, %v905_v54 }
 0x2c5   :  { %7056 = vmatmul.mubr.bf16.vlgmr.msra.gmra.mrb[8].mxu0 %v11406_v39  ;;  %7220 = vmatmul.mubr.bf16.vlgmr.msra.gmra.mrb[8].mxu1 %v11406_v39  ;;  %v1076_v58 = vrot.slane %v10668_v56, %v1075_v42  ;;  %v1084_v61 = vrot.slane %v10668_v56, %v1083_v46 }
 0x2c6   :  { %7065 = vmatpush1.bf16.msra.mxu0 %v9849_v62  ;;  %7229 = vmatpush1.bf16.msra.mxu1 %v9851_v63  ;;  %v1080_v62 = vrot.slane %v10668_v56, %v1079_v47  ;;  %v9929_v63 = vcombine.low %v881_v40, %v889_v41  ;;  %v9964_v40 = vcombine.high %v914_v16, %v922_v17  ;;  %v929_v41 = vld [vmem:[%s14475_s1 + $0x1c20] sm:$0xff] }
 0x2c7   :  { %7066 = vmatprep.subr.bf16.mxu0 %v9866_v0  ;;  %7230 = vmatprep.subr.bf16.mxu1 %v9868_v1  ;;  %v1088_v0 = vrot.slane %v10668_v56, %v1087_v49  ;;  %v9931_v1 = vcombine.low %v882_v43, %v890_v44  ;;  %v937_v43 = vld [vmem:[%s14475_s1 + $0x1c60] sm:$0xff] }
 0x2c8   :  { %7096 = vmatprep.mubr.bf16.mxu0 %v11416_v24  ;;  %7260 = vmatprep.mubr.bf16.mxu1 %v11416_v24  ;;  %v9978_v56 = vcombine.high %v929_v41, %v937_v43 }
 0x2ca   :  { %7067 = vmatpush1.bf16.msra.mxu0 %v9865_v8  ;;  %7231 = vmatpush1.bf16.msra.mxu1 %v9867_v9  ;;  %v921_v8 = vld [vmem:[%s14475_s1 + $0x1be0] sm:$0xff] }
 0x2cb   :  { %7068 = vmatprep.subr.bf16.mxu0 %v9882_v13  ;;  %7232 = vmatprep.subr.bf16.mxu1 %v9884_v14 }
 0x2ce   :  { %7069 = vmatpush1.bf16.msra.mxu0 %v9881_v20  ;;  %7233 = vmatpush1.bf16.msra.mxu1 %v9883_v21 }
 0x2cf   :  { %7070 = vmatprep.subr.bf16.mxu0 %v9898_v22  ;;  %7234 = vmatprep.subr.bf16.mxu1 %v9900_v26  ;;  %v9945_v22 = vcombine.low %v897_v52, %v905_v54  ;;  %v9963_v54 = vcombine.low %v914_v16, %v922_v17  ;;  %v977_v17 = vld [vmem:[%s14475_s1 + $0x1da0] sm:$0xff] }
 0x2d2   :  { %7071 = vmatpush1.bf16.msra.mxu0 %v9897_v34  ;;  %7235 = vmatpush1.bf16.msra.mxu1 %v9899_v35  ;;  %v9962_v34 = vcombine.high %v913_v7, %v921_v8 }
 0x2d3   :  { %7072 = vmatprep.subr.bf16.mxu0 %v9914_v36  ;;  %7236 = vmatprep.subr.bf16.mxu1 %v9916_v37 }
 0x2d6   :  { %7073 = vmatpush1.bf16.msra.mxu0 %v9913_v45  ;;  %7237 = vmatpush1.bf16.msra.mxu1 %v9915_v48  ;;  %v930_v45 = vld [vmem:[%s14475_s1 + $0x1c28] sm:$0xff] }
 0x2d7   :  { %7074 = vmatprep.subr.bf16.mxu0 %v9930_v50  ;;  %7238 = vmatprep.subr.bf16.mxu1 %v9932_v51  ;;  %v938_v48 = vld [vmem:[%s14475_s1 + $0x1c68] sm:$0xff]  ;;  %v9961_v51 = vcombine.low %v913_v7, %v921_v8 }
 0x2d8   :  { %v6770_v3 = vpop.f32.mrb[4].mxu0  ;;  %v6934_v13 = vpop.f32.mrb[4].mxu1  ;;  %v962_v7 = vld [vmem:[%s14475_s1 + $0x1d28] sm:$0xff] }
 0x2d9   :  { %v10422_v9 = vadd.f32 %v6770_v3, %v1076_v58  ;;  %v6772_v14 = vpop.f32.mrb[5].mxu0  ;;  %v10424_v53 = vadd.f32 %v6934_v13, %v1084_v61  ;;  %v6936_v20 = vpop.f32.mrb[5].mxu1  ;;  %v9980_v58 = vcombine.high %v930_v45, %v938_v48  ;;  %v946_v61 = vld [vmem:[%s14475_s1 + $0x1ca8] sm:$0xff]  ;;  %v961_v3 = vld [vmem:[%s14475_s1 + $0x1d20] sm:$0xff] }
 0x2da   :  { %v10423_v18 = vadd.f32 %v6772_v14, %v1080_v62  ;;  %v6774_v21 = vpop.f32.mrb[6].mxu0  ;;  %7075 = vmatpush1.bf16.msra.mxu0 %v9929_v63  ;;  %v10425_v29 = vadd.f32 %v6936_v20, %v1088_v0  ;;  %v6938_v31 = vpop.f32.mrb[6].mxu1  ;;  %7239 = vmatpush1.bf16.msra.mxu1 %v9931_v1  ;;  %v954_v62 = vld [vmem:[%s14475_s1 + $0x1ce8] sm:$0xff]  ;;  %v9977_v63 = vcombine.low %v929_v41, %v937_v43 }
 0x2db   :  { %v13104_v26 = vmax.f32 %v10422_v9, 0.0  ;;  %v6775_v15 = vpop.f32.mrb[7].mxu0  ;;  %7076 = vmatprep.subr.bf16.mxu0 %v9946_v2  ;;  %v13106_v35 = vmax.f32 %v10424_v53, 0.0  ;;  %v6939_v37 = vpop.f32.mrb[7].mxu1  ;;  %7240 = vmatprep.subr.bf16.mxu1 %v9948_v6  ;;  %v9979_v0 = vcombine.low %v930_v45, %v938_v48  ;;  %v9994_v1 = vcombine.high %v945_v59, %v953_v60  ;;  %v969_v6 = vld [vmem:[%s14475_s1 + $0x1d60] sm:$0xff]  ;;  %v970_v8 = vld [vmem:[%s14475_s1 + $0x1d68] sm:$0xff] }
 0x2dc   :  { %v13108_v36 = vmax.f32 %v10423_v18, 0.0  ;;  %v13116_v44 = vmax.f32 %v10425_v29, 0.0  ;;  %v9996_v2 = vcombine.high %v946_v61, %v954_v62  ;;  %v9993_v9 = vcombine.low %v945_v59, %v953_v60  ;;  %v985_v53 = vld [vmem:[%s14475_s1 + $0x1de0] sm:$0xff]  ;;  %v978_v18 = vld [vmem:[%s14475_s1 + $0x1da8] sm:$0xff] }
 0x2dd   :  { %v9995_v13 = vcombine.low %v946_v61, %v954_v62  ;;  %v10010_v14 = vcombine.high %v961_v3, %v969_v6  ;;  %v10012_v16 = vcombine.high %v962_v7, %v970_v8  ;;  %v986_v20 = vld [vmem:[%s14475_s1 + $0x1de8] sm:$0xff]  ;;  %v10009_v21 = vcombine.low %v961_v3, %v969_v6  ;;  %v993_v15 = vld [vmem:[%s14475_s1 + $0x1e20] sm:$0xff] }
 0x2de   :  { %v10236_v50 = vpack.c.bf16 %v13108_v36, %v13104_v26  ;;  %7077 = vmatpush1.bf16.msra.mxu0 %v9945_v22  ;;  %v10237_v52 = vpack.c.bf16 %v13116_v44, %v13106_v35  ;;  %7241 = vmatpush1.bf16.msra.mxu1 %v9947_v32  ;;  %v10011_v22 = vcombine.low %v962_v7, %v970_v8  ;;  %v1001_v32 = vld [vmem:[%s14475_s1 + $0x1e60] sm:$0xff]  ;;  %v1002_v37 = vld [vmem:[%s14475_s1 + $0x1e68] sm:$0xff] }
 0x2df   :  { %7078 = vmatprep.subr.bf16.mxu0 %v9962_v34  ;;  %7242 = vmatprep.subr.bf16.mxu1 %v9964_v40  ;;  %v10026_v29 = vcombine.high %v977_v17, %v985_v53  ;;  %v10028_v31 = vcombine.high %v978_v18, %v986_v20  ;;  %v994_v34 = vld [vmem:[%s14475_s1 + $0x1e28] sm:$0xff]  ;;  %v10025_v40 = vcombine.low %v977_v17, %v985_v53  ;;  %v1009_v48 = vld [vmem:[%s14475_s1 + $0x1ea0] sm:$0xff]  ;;  %v35_v53 = vld [vmem:[%s14475_s1 + $0x30] sm:$0xff] }
 0x2e0   :  { %7679 = vst [vmem:[#allocation2 + $0x10] sm:$0xff] %v10236_v50  ;;  %7680 = vst [vmem:[#allocation2 + $0x18] sm:$0xff] %v10237_v52  ;;  %v10027_v41 = vcombine.low %v978_v18, %v986_v20  ;;  %v10042_v43 = vcombine.high %v993_v15, %v1001_v32  ;;  %v10044_v45 = vcombine.high %v994_v34, %v1002_v37  ;;  %v1017_v50 = vld [vmem:[%s14475_s1 + $0x1ee0] sm:$0xff]  ;;  %v1018_v52 = vld [vmem:[%s14475_s1 + $0x1ee8] sm:$0xff] }
 0x2e1   :  { %v1025_v60 = vld [vmem:[%s14475_s1 + $0x1f20] sm:$0xff]  ;;  %v1026_v62 = vld [vmem:[%s14475_s1 + $0x1f28] sm:$0xff]  ;;  %v43_v18 = vld [vmem:[%s14475_s1 + $0x70] sm:$0xff] }
 0x2e2   :  { %7079 = vmatpush1.bf16.msra.mxu0 %v9961_v51  ;;  %7243 = vmatpush1.bf16.msra.mxu1 %v9963_v54  ;;  %v1010_v51 = vld [vmem:[%s14475_s1 + $0x1ea8] sm:$0xff]  ;;  %v10041_v54 = vcombine.low %v993_v15, %v1001_v32  ;;  %v1033_v61 = vld [vmem:[%s14475_s1 + $0x1f60] sm:$0xff]  ;;  %v36_v20 = vld [vmem:[%s14475_s1 + $0x38] sm:$0xff] }
 0x2e3   :  { %7080 = vmatprep.subr.bf16.mxu0 %v9978_v56  ;;  %7244 = vmatprep.subr.bf16.mxu1 %v9980_v58  ;;  %v10043_v56 = vcombine.low %v994_v34, %v1002_v37  ;;  %v10058_v58 = vcombine.high %v1009_v48, %v1017_v50  ;;  %v10060_v59 = vcombine.high %v1010_v51, %v1018_v52  ;;  %v1041_v6 = vld [vmem:[%s14475_s1 + $0x1fa0] sm:$0xff]  ;;  %v1042_v8 = vld [vmem:[%s14475_s1 + $0x1fa8] sm:$0xff]  ;;  %v51_v32 = vld [vmem:[%s14475_s1 + $0xb0] sm:$0xff] }
 0x2e4   :  { %v1049_v7 = vld [vmem:[%s14475_s1 + $0x1fe0] sm:$0xff]  ;;  %v59_v34 = vld [vmem:[%s14475_s1 + $0xf0] sm:$0xff]  ;;  %v52_v37 = vld [vmem:[%s14475_s1 + $0xb8] sm:$0xff] }
 0x2e6   :  { %7081 = vmatpush1.bf16.msra.mxu0 %v9977_v63  ;;  %7245 = vmatpush1.bf16.msra.mxu1 %v9979_v0  ;;  %v1034_v63 = vld [vmem:[%s14475_s1 + $0x1f68] sm:$0xff]  ;;  %v10057_v0 = vcombine.low %v1009_v48, %v1017_v50  ;;  %v67_v50 = vld [vmem:[%s14475_s1 + $0x130] sm:$0xff] }
 0x2e7   :  { %7082 = vmatprep.subr.bf16.mxu0 %v9994_v1  ;;  %7246 = vmatprep.subr.bf16.mxu1 %v9996_v2  ;;  %v10059_v1 = vcombine.low %v1010_v51, %v1018_v52  ;;  %v10074_v2 = vcombine.high %v1025_v60, %v1033_v61  ;;  %v10076_v3 = vcombine.high %v1026_v62, %v1034_v63  ;;  %v75_v51 = vld [vmem:[%s14475_s1 + $0x170] sm:$0xff]  ;;  %v68_v52 = vld [vmem:[%s14475_s1 + $0x138] sm:$0xff] }
 0x2ea   :  { %7083 = vmatpush1.bf16.msra.mxu0 %v9993_v9  ;;  %7247 = vmatpush1.bf16.msra.mxu1 %v9995_v13  ;;  %v1050_v9 = vld [vmem:[%s14475_s1 + $0x1fe8] sm:$0xff]  ;;  %v10073_v13 = vcombine.low %v1025_v60, %v1033_v61  ;;  %v83_v61 = vld [vmem:[%s14475_s1 + $0x1b0] sm:$0xff] }
 0x2eb   :  { %7084 = vmatprep.subr.bf16.mxu0 %v10010_v14  ;;  %7248 = vmatprep.subr.bf16.mxu1 %v10012_v16  ;;  %v10075_v14 = vcombine.low %v1026_v62, %v1034_v63  ;;  %v10090_v16 = vcombine.high %v1041_v6, %v1049_v7  ;;  %v10092_v17 = vcombine.high %v1042_v8, %v1050_v9  ;;  %v91_v62 = vld [vmem:[%s14475_s1 + $0x1f0] sm:$0xff]  ;;  %v84_v63 = vld [vmem:[%s14475_s1 + $0x1b8] sm:$0xff] }
 0x2ee   :  { %7085 = vmatpush1.bf16.msra.mxu0 %v10009_v21  ;;  %7249 = vmatpush1.bf16.msra.mxu1 %v10011_v22  ;;  %v44_v21 = vld [vmem:[%s14475_s1 + $0x78] sm:$0xff]  ;;  %v10089_v22 = vcombine.low %v1041_v6, %v1049_v7  ;;  %v99_v7 = vld [vmem:[%s14475_s1 + $0x230] sm:$0xff] }
 0x2ef   :  { %7086 = vmatprep.subr.bf16.mxu0 %v10026_v29  ;;  %7250 = vmatprep.subr.bf16.mxu1 %v10028_v31  ;;  %v10091_v29 = vcombine.low %v1042_v8, %v1050_v9  ;;  %v9086_v31 = vcombine.high %v35_v53, %v43_v18  ;;  %v9088_v15 = vcombine.high %v36_v20, %v44_v21  ;;  %v107_v8 = vld [vmem:[%s14475_s1 + $0x270] sm:$0xff]  ;;  %v108_v9 = vld [vmem:[%s14475_s1 + $0x278] sm:$0xff] }
 0x2f2   :  { %7087 = vmatpush1.bf16.msra.mxu0 %v10025_v40  ;;  %7251 = vmatpush1.bf16.msra.mxu1 %v10027_v41  ;;  %v60_v40 = vld [vmem:[%s14475_s1 + $0xf8] sm:$0xff]  ;;  %v9085_v41 = vcombine.low %v35_v53, %v43_v18  ;;  %v115_v53 = vld [vmem:[%s14475_s1 + $0x2b0] sm:$0xff] }
 0x2f3   :  { %7088 = vmatprep.subr.bf16.mxu0 %v10042_v43  ;;  %7252 = vmatprep.subr.bf16.mxu1 %v10044_v45  ;;  %v9087_v43 = vcombine.low %v36_v20, %v44_v21  ;;  %v9102_v45 = vcombine.high %v51_v32, %v59_v34  ;;  %v9104_v48 = vcombine.high %v52_v37, %v60_v40  ;;  %v123_v18 = vld [vmem:[%s14475_s1 + $0x2f0] sm:$0xff]  ;;  %v116_v20 = vld [vmem:[%s14475_s1 + $0x2b8] sm:$0xff] }
 0x2f4   :  { %v124_v21 = vld [vmem:[%s14475_s1 + $0x2f8] sm:$0xff] }
 0x2f6   :  { %7089 = vmatpush1.bf16.msra.mxu0 %v10041_v54  ;;  %7253 = vmatpush1.bf16.msra.mxu1 %v10043_v56  ;;  %v76_v54 = vld [vmem:[%s14475_s1 + $0x178] sm:$0xff]  ;;  %v9101_v56 = vcombine.low %v51_v32, %v59_v34  ;;  %v131_v32 = vld [vmem:[%s14475_s1 + $0x330] sm:$0xff] }
 0x2f7   :  { %7090 = vmatprep.subr.bf16.mxu0 %v10058_v58  ;;  %7254 = vmatprep.subr.bf16.mxu1 %v10060_v59  ;;  %v9103_v58 = vcombine.low %v52_v37, %v60_v40  ;;  %v9118_v59 = vcombine.high %v67_v50, %v75_v51  ;;  %v9120_v60 = vcombine.high %v68_v52, %v76_v54  ;;  %v139_v34 = vld [vmem:[%s14475_s1 + $0x370] sm:$0xff]  ;;  %v132_v37 = vld [vmem:[%s14475_s1 + $0x338] sm:$0xff] }
 0x2f8   :  { %v140_v40 = vld [vmem:[%s14475_s1 + $0x378] sm:$0xff] }
 0x2fa   :  { %7091 = vmatpush1.bf16.msra.mxu0 %v10057_v0  ;;  %7255 = vmatpush1.bf16.msra.mxu1 %v10059_v1  ;;  %v92_v0 = vld [vmem:[%s14475_s1 + $0x1f8] sm:$0xff]  ;;  %v9117_v1 = vcombine.low %v67_v50, %v75_v51  ;;  %v147_v50 = vld [vmem:[%s14475_s1 + $0x3b0] sm:$0xff] }
 0x2fb   :  { %7092 = vmatprep.subr.bf16.mxu0 %v10074_v2  ;;  %7256 = vmatprep.subr.bf16.mxu1 %v10076_v3  ;;  %v9119_v2 = vcombine.low %v68_v52, %v76_v54  ;;  %v9134_v3 = vcombine.high %v83_v61, %v91_v62  ;;  %v9136_v6 = vcombine.high %v84_v63, %v92_v0  ;;  %v155_v51 = vld [vmem:[%s14475_s1 + $0x3f0] sm:$0xff]  ;;  %v148_v52 = vld [vmem:[%s14475_s1 + $0x3b8] sm:$0xff] }
 0x2fc   :  { %v156_v54 = vld [vmem:[%s14475_s1 + $0x3f8] sm:$0xff] }
 0x2fe   :  { %7093 = vmatpush1.bf16.msra.mxu0 %v10073_v13  ;;  %7257 = vmatpush1.bf16.msra.mxu1 %v10075_v14  ;;  %v9133_v13 = vcombine.low %v83_v61, %v91_v62  ;;  %v9135_v14 = vcombine.low %v84_v63, %v92_v0  ;;  %v163_v61 = vld [vmem:[%s14475_s1 + $0x430] sm:$0xff]  ;;  %v164_v63 = vld [vmem:[%s14475_s1 + $0x438] sm:$0xff] }
 0x2ff   :  { %7094 = vmatprep.subr.bf16.mxu0 %v10090_v16  ;;  %7258 = vmatprep.subr.bf16.mxu1 %v10092_v17  ;;  %v9150_v16 = vcombine.high %v99_v7, %v107_v8  ;;  %v171_v62 = vld [vmem:[%s14475_s1 + $0x470] sm:$0xff]  ;;  %v172_v0 = vld [vmem:[%s14475_s1 + $0x478] sm:$0xff] }
 0x302   :  { %7095 = vmatpush1.bf16.msra.mxu0 %v10089_v22  ;;  %7259 = vmatpush1.bf16.msra.mxu1 %v10091_v29  ;;  %v9149_v22 = vcombine.low %v99_v7, %v107_v8  ;;  %v179_v7 = vld [vmem:[%s14475_s1 + $0x4b0] sm:$0xff] }
 0x303   :  { %7269 = vmatprep.subr.bf16.mxu0 %v9086_v31  ;;  %7433 = vmatprep.subr.bf16.mxu1 %v9088_v15  ;;  %v9166_v31 = vcombine.high %v115_v53, %v123_v18  ;;  %v9168_v15 = vcombine.high %v116_v20, %v124_v21  ;;  %v187_v8 = vld [vmem:[%s14475_s1 + $0x4f0] sm:$0xff] }
 0x305   :  { %7097 = vmatmul.mubr.bf16.vlgmr.msra.gmra.mrb[8].mxu0 %v11604_v55  ;;  %7261 = vmatmul.mubr.bf16.vlgmr.msra.gmra.mrb[8].mxu1 %v11604_v55 }
 0x306   :  { %7270 = vmatpush1.bf16.msra.mxu0 %v9085_v41  ;;  %7434 = vmatpush1.bf16.msra.mxu1 %v9087_v43  ;;  %v9165_v41 = vcombine.low %v115_v53, %v123_v18  ;;  %v9167_v43 = vcombine.low %v116_v20, %v124_v21  ;;  %v195_v53 = vld [vmem:[%s14475_s1 + $0x530] sm:$0xff]  ;;  %v196_v20 = vld [vmem:[%s14475_s1 + $0x538] sm:$0xff] }
 0x307   :  { %7271 = vmatprep.subr.bf16.mxu0 %v9102_v45  ;;  %7435 = vmatprep.subr.bf16.mxu1 %v9104_v48  ;;  %v9182_v45 = vcombine.high %v131_v32, %v139_v34  ;;  %v9184_v48 = vcombine.high %v132_v37, %v140_v40  ;;  %v203_v18 = vld [vmem:[%s14475_s1 + $0x570] sm:$0xff]  ;;  %v204_v21 = vld [vmem:[%s14475_s1 + $0x578] sm:$0xff] }
 0x308   :  { %7301 = vmatprep.mubr.bf16.mxu0 %v10851_v57  ;;  %7465 = vmatprep.mubr.bf16.mxu1 %v10851_v57  ;;  %v100_v57 = vld [vmem:[%s14475_s1 + $0x238] sm:$0xff] }
 0x309   :  { %v9152_v17 = vcombine.high %v100_v57, %v108_v9  ;;  %v9151_v29 = vcombine.low %v100_v57, %v108_v9  ;;  %v180_v57 = vld [vmem:[%s14475_s1 + $0x4b8] sm:$0xff] }
 0x30a   :  { %7272 = vmatpush1.bf16.msra.mxu0 %v9101_v56  ;;  %7436 = vmatpush1.bf16.msra.mxu1 %v9103_v58  ;;  %v9181_v56 = vcombine.low %v131_v32, %v139_v34  ;;  %v9183_v58 = vcombine.low %v132_v37, %v140_v40  ;;  %v188_v9 = vld [vmem:[%s14475_s1 + $0x4f8] sm:$0xff]  ;;  %v211_v32 = vld [vmem:[%s14475_s1 + $0x5b0] sm:$0xff] }
 0x30b   :  { %7273 = vmatprep.subr.bf16.mxu0 %v9118_v59  ;;  %7437 = vmatprep.subr.bf16.mxu1 %v9120_v60  ;;  %v9198_v59 = vcombine.high %v147_v50, %v155_v51  ;;  %v9200_v60 = vcombine.high %v148_v52, %v156_v54  ;;  %v219_v34 = vld [vmem:[%s14475_s1 + $0x5f0] sm:$0xff]  ;;  %v212_v37 = vld [vmem:[%s14475_s1 + $0x5b8] sm:$0xff] }
 0x30c   :  { %v220_v40 = vld [vmem:[%s14475_s1 + $0x5f8] sm:$0xff] }
 0x30e   :  { %7274 = vmatpush1.bf16.msra.mxu0 %v9117_v1  ;;  %7438 = vmatpush1.bf16.msra.mxu1 %v9119_v2  ;;  %v9197_v1 = vcombine.low %v147_v50, %v155_v51  ;;  %v9199_v2 = vcombine.low %v148_v52, %v156_v54  ;;  %v227_v50 = vld [vmem:[%s14475_s1 + $0x630] sm:$0xff]  ;;  %v228_v52 = vld [vmem:[%s14475_s1 + $0x638] sm:$0xff] }
 0x30f   :  { %7275 = vmatprep.subr.bf16.mxu0 %v9134_v3  ;;  %7439 = vmatprep.subr.bf16.mxu1 %v9136_v6  ;;  %v9214_v3 = vcombine.high %v163_v61, %v171_v62  ;;  %v9216_v6 = vcombine.high %v164_v63, %v172_v0  ;;  %v235_v51 = vld [vmem:[%s14475_s1 + $0x670] sm:$0xff]  ;;  %v236_v54 = vld [vmem:[%s14475_s1 + $0x678] sm:$0xff] }
 0x312   :  { %7276 = vmatpush1.bf16.msra.mxu0 %v9133_v13  ;;  %7440 = vmatpush1.bf16.msra.mxu1 %v9135_v14  ;;  %v9213_v13 = vcombine.low %v163_v61, %v171_v62  ;;  %v9215_v14 = vcombine.low %v164_v63, %v172_v0  ;;  %v243_v61 = vld [vmem:[%s14475_s1 + $0x6b0] sm:$0xff]  ;;  %v244_v63 = vld [vmem:[%s14475_s1 + $0x6b8] sm:$0xff] }
 0x313   :  { %7277 = vmatprep.subr.bf16.mxu0 %v9150_v16  ;;  %7441 = vmatprep.subr.bf16.mxu1 %v9152_v17  ;;  %v9230_v16 = vcombine.high %v179_v7, %v187_v8  ;;  %v9232_v17 = vcombine.high %v180_v57, %v188_v9  ;;  %v251_v62 = vld [vmem:[%s14475_s1 + $0x6f0] sm:$0xff]  ;;  %v252_v0 = vld [vmem:[%s14475_s1 + $0x6f8] sm:$0xff] }
 0x316   :  { %7278 = vmatpush1.bf16.msra.mxu0 %v9149_v22  ;;  %7442 = vmatpush1.bf16.msra.mxu1 %v9151_v29  ;;  %v9229_v22 = vcombine.low %v179_v7, %v187_v8  ;;  %v9231_v29 = vcombine.low %v180_v57, %v188_v9  ;;  %v259_v7 = vld [vmem:[%s14475_s1 + $0x730] sm:$0xff]  ;;  %v260_v57 = vld [vmem:[%s14475_s1 + $0x738] sm:$0xff] }
 0x317   :  { %7279 = vmatprep.subr.bf16.mxu0 %v9166_v31  ;;  %7443 = vmatprep.subr.bf16.mxu1 %v9168_v15  ;;  %v9246_v31 = vcombine.high %v195_v53, %v203_v18  ;;  %v9248_v15 = vcombine.high %v196_v20, %v204_v21  ;;  %v267_v8 = vld [vmem:[%s14475_s1 + $0x770] sm:$0xff]  ;;  %v268_v9 = vld [vmem:[%s14475_s1 + $0x778] sm:$0xff] }
 0x31a   :  { %7280 = vmatpush1.bf16.msra.mxu0 %v9165_v41  ;;  %7444 = vmatpush1.bf16.msra.mxu1 %v9167_v43  ;;  %v9245_v41 = vcombine.low %v195_v53, %v203_v18  ;;  %v9247_v43 = vcombine.low %v196_v20, %v204_v21  ;;  %v275_v53 = vld [vmem:[%s14475_s1 + $0x7b0] sm:$0xff]  ;;  %v276_v20 = vld [vmem:[%s14475_s1 + $0x7b8] sm:$0xff] }
 0x31b   :  { %7281 = vmatprep.subr.bf16.mxu0 %v9182_v45  ;;  %7445 = vmatprep.subr.bf16.mxu1 %v9184_v48  ;;  %v9262_v45 = vcombine.high %v211_v32, %v219_v34  ;;  %v9264_v48 = vcombine.high %v212_v37, %v220_v40  ;;  %v283_v18 = vld [vmem:[%s14475_s1 + $0x7f0] sm:$0xff]  ;;  %v284_v21 = vld [vmem:[%s14475_s1 + $0x7f8] sm:$0xff] }
 0x31e   :  { %7282 = vmatpush1.bf16.msra.mxu0 %v9181_v56  ;;  %7446 = vmatpush1.bf16.msra.mxu1 %v9183_v58  ;;  %v9261_v56 = vcombine.low %v211_v32, %v219_v34  ;;  %v9263_v58 = vcombine.low %v212_v37, %v220_v40  ;;  %v291_v32 = vld [vmem:[%s14475_s1 + $0x830] sm:$0xff]  ;;  %v292_v37 = vld [vmem:[%s14475_s1 + $0x838] sm:$0xff] }
 0x31f   :  { %7283 = vmatprep.subr.bf16.mxu0 %v9198_v59  ;;  %7447 = vmatprep.subr.bf16.mxu1 %v9200_v60  ;;  %v9278_v59 = vcombine.high %v227_v50, %v235_v51  ;;  %v9280_v60 = vcombine.high %v228_v52, %v236_v54  ;;  %v299_v34 = vld [vmem:[%s14475_s1 + $0x870] sm:$0xff]  ;;  %v300_v40 = vld [vmem:[%s14475_s1 + $0x878] sm:$0xff] }
 0x322   :  { %7284 = vmatpush1.bf16.msra.mxu0 %v9197_v1  ;;  %7448 = vmatpush1.bf16.msra.mxu1 %v9199_v2  ;;  %v9277_v1 = vcombine.low %v227_v50, %v235_v51  ;;  %v9279_v2 = vcombine.low %v228_v52, %v236_v54  ;;  %v307_v50 = vld [vmem:[%s14475_s1 + $0x8b0] sm:$0xff]  ;;  %v308_v52 = vld [vmem:[%s14475_s1 + $0x8b8] sm:$0xff] }
 0x323   :  { %7285 = vmatprep.subr.bf16.mxu0 %v9214_v3  ;;  %7449 = vmatprep.subr.bf16.mxu1 %v9216_v6  ;;  %v9294_v3 = vcombine.high %v243_v61, %v251_v62  ;;  %v9296_v6 = vcombine.high %v244_v63, %v252_v0  ;;  %v315_v51 = vld [vmem:[%s14475_s1 + $0x8f0] sm:$0xff]  ;;  %v316_v54 = vld [vmem:[%s14475_s1 + $0x8f8] sm:$0xff] }
 0x326   :  { %7286 = vmatpush1.bf16.msra.mxu0 %v9213_v13  ;;  %7450 = vmatpush1.bf16.msra.mxu1 %v9215_v14  ;;  %v9293_v13 = vcombine.low %v243_v61, %v251_v62  ;;  %v9295_v14 = vcombine.low %v244_v63, %v252_v0  ;;  %v323_v61 = vld [vmem:[%s14475_s1 + $0x930] sm:$0xff]  ;;  %v324_v63 = vld [vmem:[%s14475_s1 + $0x938] sm:$0xff] }
 0x327   :  { %7287 = vmatprep.subr.bf16.mxu0 %v9230_v16  ;;  %7451 = vmatprep.subr.bf16.mxu1 %v9232_v17  ;;  %v9310_v16 = vcombine.high %v259_v7, %v267_v8  ;;  %v9312_v17 = vcombine.high %v260_v57, %v268_v9  ;;  %v331_v62 = vld [vmem:[%s14475_s1 + $0x970] sm:$0xff]  ;;  %v332_v0 = vld [vmem:[%s14475_s1 + $0x978] sm:$0xff] }
 0x32a   :  { %7288 = vmatpush1.bf16.msra.mxu0 %v9229_v22  ;;  %7452 = vmatpush1.bf16.msra.mxu1 %v9231_v29  ;;  %v9309_v22 = vcombine.low %v259_v7, %v267_v8  ;;  %v9311_v29 = vcombine.low %v260_v57, %v268_v9  ;;  %v339_v7 = vld [vmem:[%s14475_s1 + $0x9b0] sm:$0xff]  ;;  %v348_v57 = vld [vmem:[%s14475_s1 + $0x9f8] sm:$0xff]  ;;  %v9373_v9 = vcombine.low %v323_v61, %v331_v62 }
 0x32b   :  { %7289 = vmatprep.subr.bf16.mxu0 %v9246_v31  ;;  %7453 = vmatprep.subr.bf16.mxu1 %v9248_v15  ;;  %v9326_v31 = vcombine.high %v275_v53, %v283_v18  ;;  %v9328_v15 = vcombine.high %v276_v20, %v284_v21  ;;  %v347_v8 = vld [vmem:[%s14475_s1 + $0x9f0] sm:$0xff] }
 0x32e   :  { %7290 = vmatpush1.bf16.msra.mxu0 %v9245_v41  ;;  %7454 = vmatpush1.bf16.msra.mxu1 %v9247_v43  ;;  %v9325_v41 = vcombine.low %v275_v53, %v283_v18  ;;  %v9327_v43 = vcombine.low %v276_v20, %v284_v21  ;;  %v363_v53 = vld [vmem:[%s14475_s1 + $0xa70] sm:$0xff]  ;;  %v364_v18 = vld [vmem:[%s14475_s1 + $0xa78] sm:$0xff]  ;;  %v9389_v20 = vcombine.low %v339_v7, %v347_v8 }
 0x32f   :  { %7291 = vmatprep.subr.bf16.mxu0 %v9262_v45  ;;  %7455 = vmatprep.subr.bf16.mxu1 %v9264_v48  ;;  %v9342_v45 = vcombine.high %v291_v32, %v299_v34  ;;  %v9344_v48 = vcombine.high %v292_v37, %v300_v40 }
 0x332   :  { %7292 = vmatpush1.bf16.msra.mxu0 %v9261_v56  ;;  %7456 = vmatpush1.bf16.msra.mxu1 %v9263_v58  ;;  %v9341_v56 = vcombine.low %v291_v32, %v299_v34  ;;  %v9343_v58 = vcombine.low %v292_v37, %v300_v40  ;;  %v372_v32 = vld [vmem:[%s14475_s1 + $0xab8] sm:$0xff] }
 0x333   :  { %7293 = vmatprep.subr.bf16.mxu0 %v9278_v59  ;;  %7457 = vmatprep.subr.bf16.mxu1 %v9280_v60  ;;  %v9358_v59 = vcombine.high %v307_v50, %v315_v51  ;;  %v9360_v60 = vcombine.high %v308_v52, %v316_v54  ;;  %v380_v34 = vld [vmem:[%s14475_s1 + $0xaf8] sm:$0xff] }
 0x336   :  { %7294 = vmatpush1.bf16.msra.mxu0 %v9277_v1  ;;  %7458 = vmatpush1.bf16.msra.mxu1 %v9279_v2  ;;  %v9357_v1 = vcombine.low %v307_v50, %v315_v51  ;;  %v9359_v2 = vcombine.low %v308_v52, %v316_v54  ;;  %v388_v50 = vld [vmem:[%s14475_s1 + $0xb38] sm:$0xff]  ;;  %v9423_v54 = vcombine.low %v372_v32, %v380_v34 }
 0x337   :  { %7295 = vmatprep.subr.bf16.mxu0 %v9294_v3  ;;  %7459 = vmatprep.subr.bf16.mxu1 %v9296_v6  ;;  %v9374_v3 = vcombine.high %v323_v61, %v331_v62  ;;  %v9376_v6 = vcombine.high %v324_v63, %v332_v0  ;;  %v396_v51 = vld [vmem:[%s14475_s1 + $0xb78] sm:$0xff] }
 0x338   :  { %v404_v61 = vld [vmem:[%s14475_s1 + $0xbb8] sm:$0xff] }
 0x339   :  { %v412_v62 = vld [vmem:[%s14475_s1 + $0xbf8] sm:$0xff] }
 0x33a   :  { %7296 = vmatpush1.bf16.msra.mxu0 %v9293_v13  ;;  %7460 = vmatpush1.bf16.msra.mxu1 %v9295_v14  ;;  %v9375_v13 = vcombine.low %v324_v63, %v332_v0  ;;  %v9390_v14 = vcombine.high %v339_v7, %v347_v8  ;;  %v9439_v0 = vcombine.low %v388_v50, %v396_v51  ;;  %v420_v7 = vld [vmem:[%s14475_s1 + $0xc38] sm:$0xff] }
 0x33b   :  { %7297 = vmatprep.subr.bf16.mxu0 %v9310_v16  ;;  %7461 = vmatprep.subr.bf16.mxu1 %v9312_v17  ;;  %v355_v17 = vld [vmem:[%s14475_s1 + $0xa30] sm:$0xff]  ;;  %v428_v8 = vld [vmem:[%s14475_s1 + $0xc78] sm:$0xff] }
 0x33c   :  { %v9405_v37 = vcombine.low %v355_v17, %v363_v53 }
 0x33e   :  { %7298 = vmatpush1.bf16.msra.mxu0 %v9309_v22  ;;  %7462 = vmatpush1.bf16.msra.mxu1 %v9311_v29  ;;  %v9406_v22 = vcombine.high %v355_v17, %v363_v53  ;;  %v436_v17 = vld [vmem:[%s14475_s1 + $0xcb8] sm:$0xff] }
 0x33f   :  { %7299 = vmatprep.subr.bf16.mxu0 %v9326_v31  ;;  %7463 = vmatprep.subr.bf16.mxu1 %v9328_v15  ;;  %v371_v31 = vld [vmem:[%s14475_s1 + $0xab0] sm:$0xff]  ;;  %v444_v53 = vld [vmem:[%s14475_s1 + $0xcf8] sm:$0xff] }
 0x340   :  { %v379_v15 = vld [vmem:[%s14475_s1 + $0xaf0] sm:$0xff] }
 0x341   :  { %v9421_v52 = vcombine.low %v371_v31, %v379_v15 }
 0x342   :  { %7300 = vmatpush1.bf16.msra.mxu0 %v9325_v41  ;;  %7464 = vmatpush1.bf16.msra.mxu1 %v9327_v43  ;;  %v9422_v41 = vcombine.high %v371_v31, %v379_v15  ;;  %v9424_v43 = vcombine.high %v372_v32, %v380_v34  ;;  %v452_v31 = vld [vmem:[%s14475_s1 + $0xd38] sm:$0xff]  ;;  %v9487_v34 = vcombine.low %v436_v17, %v444_v53 }
 0x343   :  { %7310 = vmatprep.subr.bf16.mxu0 %v9342_v45  ;;  %7474 = vmatprep.subr.bf16.mxu1 %v9344_v48  ;;  %v387_v45 = vld [vmem:[%s14475_s1 + $0xb30] sm:$0xff]  ;;  %v460_v15 = vld [vmem:[%s14475_s1 + $0xd78] sm:$0xff] }
 0x344   :  { %v395_v48 = vld [vmem:[%s14475_s1 + $0xb70] sm:$0xff] }
 0x345   :  { %7302 = vmatmul.mubr.bf16.vlgmr.msra.gmra.mrb[12].mxu0 %v10977_v12  ;;  %7466 = vmatmul.mubr.bf16.vlgmr.msra.gmra.mrb[12].mxu1 %v10977_v12  ;;  %v340_v12 = vld [vmem:[%s14475_s1 + $0x9b8] sm:$0xff]  ;;  %v9437_v63 = vcombine.low %v387_v45, %v395_v48 }
 0x346   :  { %7311 = vmatpush1.bf16.msra.mxu0 %v9341_v56  ;;  %7475 = vmatpush1.bf16.msra.mxu1 %v9343_v58  ;;  %v9392_v16 = vcombine.high %v340_v12, %v348_v57  ;;  %v9391_v21 = vcombine.low %v340_v12, %v348_v57  ;;  %v9438_v56 = vcombine.high %v387_v45, %v395_v48  ;;  %v468_v45 = vld [vmem:[%s14475_s1 + $0xdb8] sm:$0xff] }
 0x347   :  { %7312 = vmatprep.subr.bf16.mxu0 %v9358_v59  ;;  %7476 = vmatprep.subr.bf16.mxu1 %v9360_v60  ;;  %v9440_v58 = vcombine.high %v388_v50, %v396_v51  ;;  %v403_v59 = vld [vmem:[%s14475_s1 + $0xbb0] sm:$0xff]  ;;  %v9455_v57 = vcombine.low %v404_v61, %v412_v62  ;;  %v476_v48 = vld [vmem:[%s14475_s1 + $0xdf8] sm:$0xff]  ;;  %v9503_v51 = vcombine.low %v452_v31, %v460_v15 }
 0x348   :  { %7342 = vmatprep.mubr.bf16.mxu0 %v11004_v23  ;;  %7506 = vmatprep.mubr.bf16.mxu1 %v11004_v23  ;;  %v356_v23 = vld [vmem:[%s14475_s1 + $0xa38] sm:$0xff]  ;;  %v411_v60 = vld [vmem:[%s14475_s1 + $0xbf0] sm:$0xff] }
 0x349   :  { %v9408_v29 = vcombine.high %v356_v23, %v364_v18  ;;  %v9407_v40 = vcombine.low %v356_v23, %v364_v18  ;;  %v9453_v12 = vcombine.low %v403_v59, %v411_v60  ;;  %v9471_v18 = vcombine.low %v420_v7, %v428_v8 }
 0x34a   :  { %7313 = vmatpush1.bf16.msra.mxu0 %v9357_v1  ;;  %7477 = vmatpush1.bf16.msra.mxu1 %v9359_v2  ;;  %v9454_v1 = vcombine.high %v403_v59, %v411_v60  ;;  %v9456_v2 = vcombine.high %v404_v61, %v412_v62  ;;  %v484_v59 = vld [vmem:[%s14475_s1 + $0xe38] sm:$0xff]  ;;  %v9519_v62 = vcombine.low %v468_v45, %v476_v48 }
 0x34b   :  { %7314 = vmatprep.subr.bf16.mxu0 %v9374_v3  ;;  %7478 = vmatprep.subr.bf16.mxu1 %v9376_v6  ;;  %v419_v3 = vld [vmem:[%s14475_s1 + $0xc30] sm:$0xff]  ;;  %v492_v60 = vld [vmem:[%s14475_s1 + $0xe78] sm:$0xff] }
 0x34c   :  { %v427_v6 = vld [vmem:[%s14475_s1 + $0xc70] sm:$0xff] }
 0x34d   :  { %v9469_v23 = vcombine.low %v419_v3, %v427_v6 }
 0x34e   :  { %7315 = vmatpush1.bf16.msra.mxu0 %v9373_v9  ;;  %7479 = vmatpush1.bf16.msra.mxu1 %v9375_v13  ;;  %v9470_v9 = vcombine.high %v419_v3, %v427_v6  ;;  %v9472_v13 = vcombine.high %v420_v7, %v428_v8  ;;  %v500_v3 = vld [vmem:[%s14475_s1 + $0xeb8] sm:$0xff]  ;;  %v9535_v8 = vcombine.low %v484_v59, %v492_v60 }
 0x34f   :  { %7316 = vmatprep.subr.bf16.mxu0 %v9390_v14  ;;  %7480 = vmatprep.subr.bf16.mxu1 %v9392_v16  ;;  %v435_v14 = vld [vmem:[%s14475_s1 + $0xcb0] sm:$0xff]  ;;  %v508_v6 = vld [vmem:[%s14475_s1 + $0xef8] sm:$0xff] }
 0x350   :  { %v443_v16 = vld [vmem:[%s14475_s1 + $0xcf0] sm:$0xff] }
 0x351   :  { %v9485_v32 = vcombine.low %v435_v14, %v443_v16 }
 0x352   :  { %7317 = vmatpush1.bf16.msra.mxu0 %v9389_v20  ;;  %7481 = vmatpush1.bf16.msra.mxu1 %v9391_v21  ;;  %v9486_v20 = vcombine.high %v435_v14, %v443_v16  ;;  %v9488_v21 = vcombine.high %v436_v17, %v444_v53  ;;  %v516_v14 = vld [vmem:[%s14475_s1 + $0xf38] sm:$0xff]  ;;  %v9551_v53 = vcombine.low %v500_v3, %v508_v6 }
 0x353   :  { %7318 = vmatprep.subr.bf16.mxu0 %v9406_v22  ;;  %7482 = vmatprep.subr.bf16.mxu1 %v9408_v29  ;;  %v451_v22 = vld [vmem:[%s14475_s1 + $0xd30] sm:$0xff]  ;;  %v524_v16 = vld [vmem:[%s14475_s1 + $0xf78] sm:$0xff] }
 0x354   :  { %v459_v29 = vld [vmem:[%s14475_s1 + $0xd70] sm:$0xff] }
 0x355   :  { %v9501_v50 = vcombine.low %v451_v22, %v459_v29 }
 0x356   :  { %7319 = vmatpush1.bf16.msra.mxu0 %v9405_v37  ;;  %7483 = vmatpush1.bf16.msra.mxu1 %v9407_v40  ;;  %v9502_v37 = vcombine.high %v451_v22, %v459_v29  ;;  %v9504_v40 = vcombine.high %v452_v31, %v460_v15  ;;  %v532_v22 = vld [vmem:[%s14475_s1 + $0xfb8] sm:$0xff]  ;;  %v9567_v15 = vcombine.low %v516_v14, %v524_v16 }
 0x357   :  { %7320 = vmatprep.subr.bf16.mxu0 %v9422_v41  ;;  %7484 = vmatprep.subr.bf16.mxu1 %v9424_v43  ;;  %v467_v41 = vld [vmem:[%s14475_s1 + $0xdb0] sm:$0xff]  ;;  %v540_v29 = vld [vmem:[%s14475_s1 + $0xff8] sm:$0xff] }
 0x358   :  { %v475_v43 = vld [vmem:[%s14475_s1 + $0xdf0] sm:$0xff] }
 0x359   :  { %v9517_v61 = vcombine.low %v467_v41, %v475_v43 }
 0x35a   :  { %7321 = vmatpush1.bf16.msra.mxu0 %v9421_v52  ;;  %7485 = vmatpush1.bf16.msra.mxu1 %v9423_v54  ;;  %v9518_v52 = vcombine.high %v467_v41, %v475_v43  ;;  %v9520_v54 = vcombine.high %v468_v45, %v476_v48  ;;  %v548_v41 = vld [vmem:[%s14475_s1 + $0x1038] sm:$0xff]  ;;  %v9583_v48 = vcombine.low %v532_v22, %v540_v29 }
 0x35b   :  { %7322 = vmatprep.subr.bf16.mxu0 %v9438_v56  ;;  %7486 = vmatprep.subr.bf16.mxu1 %v9440_v58  ;;  %v483_v56 = vld [vmem:[%s14475_s1 + $0xe30] sm:$0xff]  ;;  %v556_v43 = vld [vmem:[%s14475_s1 + $0x1078] sm:$0xff] }
 0x35c   :  { %v491_v58 = vld [vmem:[%s14475_s1 + $0xe70] sm:$0xff] }
 0x35d   :  { %v9533_v7 = vcombine.low %v483_v56, %v491_v58 }
 0x35e   :  { %7323 = vmatpush1.bf16.msra.mxu0 %v9437_v63  ;;  %7487 = vmatpush1.bf16.msra.mxu1 %v9439_v0  ;;  %v9534_v63 = vcombine.high %v483_v56, %v491_v58  ;;  %v9536_v0 = vcombine.high %v484_v59, %v492_v60  ;;  %v564_v56 = vld [vmem:[%s14475_s1 + $0x10b8] sm:$0xff]  ;;  %v9599_v60 = vcombine.low %v548_v41, %v556_v43 }
 0x35f   :  { %7324 = vmatprep.subr.bf16.mxu0 %v9454_v1  ;;  %7488 = vmatprep.subr.bf16.mxu1 %v9456_v2  ;;  %v499_v1 = vld [vmem:[%s14475_s1 + $0xeb0] sm:$0xff]  ;;  %v572_v58 = vld [vmem:[%s14475_s1 + $0x10f8] sm:$0xff] }
 0x360   :  { %v507_v2 = vld [vmem:[%s14475_s1 + $0xef0] sm:$0xff] }
 0x361   :  { %v9549_v17 = vcombine.low %v499_v1, %v507_v2 }
 0x362   :  { %7325 = vmatpush1.bf16.msra.mxu0 %v9453_v12  ;;  %7489 = vmatpush1.bf16.msra.mxu1 %v9455_v57  ;;  %v9550_v12 = vcombine.high %v499_v1, %v507_v2  ;;  %v9552_v57 = vcombine.high %v500_v3, %v508_v6  ;;  %v580_v1 = vld [vmem:[%s14475_s1 + $0x1138] sm:$0xff]  ;;  %v9615_v6 = vcombine.low %v564_v56, %v572_v58 }
 0x363   :  { %7326 = vmatprep.subr.bf16.mxu0 %v9470_v9  ;;  %7490 = vmatprep.subr.bf16.mxu1 %v9472_v13  ;;  %v515_v9 = vld [vmem:[%s14475_s1 + $0xf30] sm:$0xff]  ;;  %v588_v2 = vld [vmem:[%s14475_s1 + $0x1178] sm:$0xff] }
 0x364   :  { %v523_v13 = vld [vmem:[%s14475_s1 + $0xf70] sm:$0xff] }
 0x365   :  { %v9565_v31 = vcombine.low %v515_v9, %v523_v13 }
 0x366   :  { %7327 = vmatpush1.bf16.msra.mxu0 %v9469_v23  ;;  %7491 = vmatpush1.bf16.msra.mxu1 %v9471_v18  ;;  %v9566_v23 = vcombine.high %v515_v9, %v523_v13  ;;  %v9568_v18 = vcombine.high %v516_v14, %v524_v16  ;;  %v604_v9 = vld [vmem:[%s14475_s1 + $0x11f8] sm:$0xff]  ;;  %v9631_v14 = vcombine.low %v580_v1, %v588_v2 }
 0x367   :  { %7328 = vmatprep.subr.bf16.mxu0 %v9486_v20  ;;  %7492 = vmatprep.subr.bf16.mxu1 %v9488_v21  ;;  %v531_v20 = vld [vmem:[%s14475_s1 + $0xfb0] sm:$0xff] }
 0x368   :  { %v539_v21 = vld [vmem:[%s14475_s1 + $0xff0] sm:$0xff] }
 0x369   :  { %v9581_v45 = vcombine.low %v531_v20, %v539_v21 }
 0x36a   :  { %7329 = vmatpush1.bf16.msra.mxu0 %v9485_v32  ;;  %7493 = vmatpush1.bf16.msra.mxu1 %v9487_v34  ;;  %v9582_v32 = vcombine.high %v531_v20, %v539_v21  ;;  %v9584_v34 = vcombine.high %v532_v22, %v540_v29 }
 0x36b   :  { %7330 = vmatprep.subr.bf16.mxu0 %v9502_v37  ;;  %7494 = vmatprep.subr.bf16.mxu1 %v9504_v40  ;;  %v547_v37 = vld [vmem:[%s14475_s1 + $0x1030] sm:$0xff] }
 0x36c   :  { %v555_v40 = vld [vmem:[%s14475_s1 + $0x1070] sm:$0xff] }
 0x36d   :  { %v9597_v59 = vcombine.low %v547_v37, %v555_v40 }
 0x36e   :  { %7331 = vmatpush1.bf16.msra.mxu0 %v9501_v50  ;;  %7495 = vmatpush1.bf16.msra.mxu1 %v9503_v51  ;;  %v9598_v50 = vcombine.high %v547_v37, %v555_v40  ;;  %v9600_v51 = vcombine.high %v548_v41, %v556_v43 }
 0x36f   :  { %7332 = vmatprep.subr.bf16.mxu0 %v9518_v52  ;;  %7496 = vmatprep.subr.bf16.mxu1 %v9520_v54  ;;  %v563_v52 = vld [vmem:[%s14475_s1 + $0x10b0] sm:$0xff] }
 0x370   :  { %v571_v54 = vld [vmem:[%s14475_s1 + $0x10f0] sm:$0xff] }
 0x371   :  { %v9613_v3 = vcombine.low %v563_v52, %v571_v54 }
 0x372   :  { %7333 = vmatpush1.bf16.msra.mxu0 %v9517_v61  ;;  %7497 = vmatpush1.bf16.msra.mxu1 %v9519_v62  ;;  %v9614_v61 = vcombine.high %v563_v52, %v571_v54  ;;  %v9616_v62 = vcombine.high %v564_v56, %v572_v58 }
 0x373   :  { %7334 = vmatprep.subr.bf16.mxu0 %v9534_v63  ;;  %7498 = vmatprep.subr.bf16.mxu1 %v9536_v0  ;;  %v579_v63 = vld [vmem:[%s14475_s1 + $0x1130] sm:$0xff] }
 0x374   :  { %v587_v0 = vld [vmem:[%s14475_s1 + $0x1170] sm:$0xff] }
 0x375   :  { %v9629_v13 = vcombine.low %v579_v63, %v587_v0 }
 0x376   :  { %7335 = vmatpush1.bf16.msra.mxu0 %v9533_v7  ;;  %7499 = vmatpush1.bf16.msra.mxu1 %v9535_v8  ;;  %v9630_v7 = vcombine.high %v579_v63, %v587_v0  ;;  %v9632_v8 = vcombine.high %v580_v1, %v588_v2 }
 0x377   :  { %7336 = vmatprep.subr.bf16.mxu0 %v9550_v12  ;;  %7500 = vmatprep.subr.bf16.mxu1 %v9552_v57  ;;  %v595_v12 = vld [vmem:[%s14475_s1 + $0x11b0] sm:$0xff] }
 0x378   :  { %v603_v57 = vld [vmem:[%s14475_s1 + $0x11f0] sm:$0xff] }
 0x379   :  { %v9646_v16 = vcombine.high %v595_v12, %v603_v57  ;;  %v9645_v20 = vcombine.low %v595_v12, %v603_v57 }
 0x37a   :  { %7337 = vmatpush1.bf16.msra.mxu0 %v9549_v17  ;;  %7501 = vmatpush1.bf16.msra.mxu1 %v9551_v53  ;;  %v611_v53 = vld [vmem:[%s14475_s1 + $0x1230] sm:$0xff] }
 0x37b   :  { %7338 = vmatprep.subr.bf16.mxu0 %v9566_v23  ;;  %7502 = vmatprep.subr.bf16.mxu1 %v9568_v18  ;;  %v619_v23 = vld [vmem:[%s14475_s1 + $0x1270] sm:$0xff]  ;;  %v620_v18 = vld [vmem:[%s14475_s1 + $0x1278] sm:$0xff] }
 0x37c   :  { %v9662_v22 = vcombine.high %v611_v53, %v619_v23  ;;  %v9661_v37 = vcombine.low %v611_v53, %v619_v23 }
 0x37e   :  { %7339 = vmatpush1.bf16.msra.mxu0 %v9565_v31  ;;  %7503 = vmatpush1.bf16.msra.mxu1 %v9567_v15  ;;  %v627_v31 = vld [vmem:[%s14475_s1 + $0x12b0] sm:$0xff] }
 0x37f   :  { %7340 = vmatprep.subr.bf16.mxu0 %v9582_v32  ;;  %7504 = vmatprep.subr.bf16.mxu1 %v9584_v34  ;;  %v635_v15 = vld [vmem:[%s14475_s1 + $0x12f0] sm:$0xff]  ;;  %v628_v32 = vld [vmem:[%s14475_s1 + $0x12b8] sm:$0xff] }
 0x380   :  { %v636_v34 = vld [vmem:[%s14475_s1 + $0x12f8] sm:$0xff]  ;;  %v9678_v41 = vcombine.high %v627_v31, %v635_v15  ;;  %v9677_v52 = vcombine.low %v627_v31, %v635_v15 }
 0x381   :  { %v9680_v43 = vcombine.high %v628_v32, %v636_v34  ;;  %v9679_v54 = vcombine.low %v628_v32, %v636_v34 }
 0x382   :  { %7341 = vmatpush1.bf16.msra.mxu0 %v9581_v45  ;;  %7505 = vmatpush1.bf16.msra.mxu1 %v9583_v48  ;;  %v643_v45 = vld [vmem:[%s14475_s1 + $0x1330] sm:$0xff] }
 0x383   :  { %7351 = vmatprep.subr.bf16.mxu0 %v9598_v50  ;;  %7515 = vmatprep.subr.bf16.mxu1 %v9600_v51  ;;  %v651_v48 = vld [vmem:[%s14475_s1 + $0x1370] sm:$0xff]  ;;  %v644_v50 = vld [vmem:[%s14475_s1 + $0x1338] sm:$0xff] }
 0x384   :  { %v652_v51 = vld [vmem:[%s14475_s1 + $0x1378] sm:$0xff]  ;;  %v9694_v56 = vcombine.high %v643_v45, %v651_v48  ;;  %v9693_v63 = vcombine.low %v643_v45, %v651_v48 }
 0x385   :  { %7343 = vmatmul.mubr.bf16.vlgmr.msra.gmra.mrb[12].mxu0 %v11197_v25  ;;  %7507 = vmatmul.mubr.bf16.vlgmr.msra.gmra.mrb[12].mxu1 %v11197_v25  ;;  %v596_v25 = vld [vmem:[%s14475_s1 + $0x11b8] sm:$0xff]  ;;  %v9696_v58 = vcombine.high %v644_v50, %v652_v51  ;;  %v9695_v0 = vcombine.low %v644_v50, %v652_v51 }
 0x386   :  { %7352 = vmatpush1.bf16.msra.mxu0 %v9597_v59  ;;  %7516 = vmatpush1.bf16.msra.mxu1 %v9599_v60  ;;  %v9648_v17 = vcombine.high %v596_v25, %v604_v9  ;;  %v9647_v21 = vcombine.low %v596_v25, %v604_v9  ;;  %v659_v59 = vld [vmem:[%s14475_s1 + $0x13b0] sm:$0xff] }
 0x387   :  { %7353 = vmatprep.subr.bf16.mxu0 %v9614_v61  ;;  %7517 = vmatprep.subr.bf16.mxu1 %v9616_v62  ;;  %v667_v60 = vld [vmem:[%s14475_s1 + $0x13f0] sm:$0xff]  ;;  %v660_v61 = vld [vmem:[%s14475_s1 + $0x13b8] sm:$0xff] }
 0x388   :  { %7383 = vmatprep.mubr.bf16.mxu0 %v11213_v33  ;;  %7547 = vmatprep.mubr.bf16.mxu1 %v11213_v33  ;;  %v612_v33 = vld [vmem:[%s14475_s1 + $0x1238] sm:$0xff]  ;;  %v9710_v1 = vcombine.high %v659_v59, %v667_v60  ;;  %v9709_v12 = vcombine.low %v659_v59, %v667_v60 }
 0x389   :  { %v9664_v29 = vcombine.high %v612_v33, %v620_v18  ;;  %v9663_v40 = vcombine.low %v612_v33, %v620_v18  ;;  %v668_v62 = vld [vmem:[%s14475_s1 + $0x13f8] sm:$0xff] }
 0x38a   :  { %7354 = vmatpush1.bf16.msra.mxu0 %v9613_v3  ;;  %7518 = vmatpush1.bf16.msra.mxu1 %v9615_v6  ;;  %v9712_v2 = vcombine.high %v660_v61, %v668_v62  ;;  %v675_v3 = vld [vmem:[%s14475_s1 + $0x1430] sm:$0xff]  ;;  %v9711_v57 = vcombine.low %v660_v61, %v668_v62 }
 0x38b   :  { %7355 = vmatprep.subr.bf16.mxu0 %v9630_v7  ;;  %7519 = vmatprep.subr.bf16.mxu1 %v9632_v8  ;;  %v683_v6 = vld [vmem:[%s14475_s1 + $0x1470] sm:$0xff]  ;;  %v676_v7 = vld [vmem:[%s14475_s1 + $0x1438] sm:$0xff] }
 0x38c   :  { %v684_v8 = vld [vmem:[%s14475_s1 + $0x1478] sm:$0xff]  ;;  %v9726_v25 = vcombine.high %v675_v3, %v683_v6  ;;  %v9725_v53 = vcombine.low %v675_v3, %v683_v6 }
 0x38d   :  { %v9728_v9 = vcombine.high %v676_v7, %v684_v8  ;;  %v9727_v23 = vcombine.low %v676_v7, %v684_v8 }
 0x38e   :  { %7356 = vmatpush1.bf16.msra.mxu0 %v9629_v13  ;;  %7520 = vmatpush1.bf16.msra.mxu1 %v9631_v14  ;;  %v691_v13 = vld [vmem:[%s14475_s1 + $0x14b0] sm:$0xff] }
 0x38f   :  { %7357 = vmatprep.subr.bf16.mxu0 %v9646_v16  ;;  %7521 = vmatprep.subr.bf16.mxu1 %v9648_v17  ;;  %v699_v14 = vld [vmem:[%s14475_s1 + $0x14f0] sm:$0xff]  ;;  %v692_v16 = vld [vmem:[%s14475_s1 + $0x14b8] sm:$0xff] }
 0x390   :  { %v700_v17 = vld [vmem:[%s14475_s1 + $0x14f8] sm:$0xff]  ;;  %v9742_v33 = vcombine.high %v691_v13, %v699_v14  ;;  %v9741_v31 = vcombine.low %v691_v13, %v699_v14 }
 0x391   :  { %v9744_v18 = vcombine.high %v692_v16, %v700_v17  ;;  %v9743_v15 = vcombine.low %v692_v16, %v700_v17 }
 0x392   :  { %7358 = vmatpush1.bf16.msra.mxu0 %v9645_v20  ;;  %7522 = vmatpush1.bf16.msra.mxu1 %v9647_v21  ;;  %v707_v20 = vld [vmem:[%s14475_s1 + $0x1530] sm:$0xff] }
 0x393   :  { %7359 = vmatprep.subr.bf16.mxu0 %v9662_v22  ;;  %7523 = vmatprep.subr.bf16.mxu1 %v9664_v29  ;;  %v715_v21 = vld [vmem:[%s14475_s1 + $0x1570] sm:$0xff]  ;;  %v708_v22 = vld [vmem:[%s14475_s1 + $0x1538] sm:$0xff] }
 0x394   :  { %v716_v29 = vld [vmem:[%s14475_s1 + $0x1578] sm:$0xff]  ;;  %v9758_v32 = vcombine.high %v707_v20, %v715_v21  ;;  %v9757_v45 = vcombine.low %v707_v20, %v715_v21 }
 0x395   :  { %v9760_v34 = vcombine.high %v708_v22, %v716_v29  ;;  %v9759_v48 = vcombine.low %v708_v22, %v716_v29 }
 0x396   :  { %7360 = vmatpush1.bf16.msra.mxu0 %v9661_v37  ;;  %7524 = vmatpush1.bf16.msra.mxu1 %v9663_v40  ;;  %v723_v37 = vld [vmem:[%s14475_s1 + $0x15b0] sm:$0xff] }
 0x397   :  { %7361 = vmatprep.subr.bf16.mxu0 %v9678_v41  ;;  %7525 = vmatprep.subr.bf16.mxu1 %v9680_v43  ;;  %v731_v40 = vld [vmem:[%s14475_s1 + $0x15f0] sm:$0xff]  ;;  %v724_v41 = vld [vmem:[%s14475_s1 + $0x15b8] sm:$0xff] }
 0x398   :  { %v732_v43 = vld [vmem:[%s14475_s1 + $0x15f8] sm:$0xff]  ;;  %v9774_v50 = vcombine.high %v723_v37, %v731_v40  ;;  %v9773_v59 = vcombine.low %v723_v37, %v731_v40 }
 0x399   :  { %v9776_v51 = vcombine.high %v724_v41, %v732_v43  ;;  %v9775_v60 = vcombine.low %v724_v41, %v732_v43 }
 0x39a   :  { %7362 = vmatpush1.bf16.msra.mxu0 %v9677_v52  ;;  %7526 = vmatpush1.bf16.msra.mxu1 %v9679_v54  ;;  %v739_v52 = vld [vmem:[%s14475_s1 + $0x1630] sm:$0xff] }
 0x39b   :  { %7363 = vmatprep.subr.bf16.mxu0 %v9694_v56  ;;  %7527 = vmatprep.subr.bf16.mxu1 %v9696_v58  ;;  %v747_v54 = vld [vmem:[%s14475_s1 + $0x1670] sm:$0xff]  ;;  %v740_v56 = vld [vmem:[%s14475_s1 + $0x1638] sm:$0xff] }
 0x39c   :  { %v748_v58 = vld [vmem:[%s14475_s1 + $0x1678] sm:$0xff]  ;;  %v9790_v61 = vcombine.high %v739_v52, %v747_v54  ;;  %v9789_v3 = vcombine.low %v739_v52, %v747_v54 }
 0x39d   :  { %v9792_v62 = vcombine.high %v740_v56, %v748_v58  ;;  %v9791_v6 = vcombine.low %v740_v56, %v748_v58 }
 0x39e   :  { %7364 = vmatpush1.bf16.msra.mxu0 %v9693_v63  ;;  %7528 = vmatpush1.bf16.msra.mxu1 %v9695_v0  ;;  %v755_v63 = vld [vmem:[%s14475_s1 + $0x16b0] sm:$0xff] }
 0x39f   :  { %7365 = vmatprep.subr.bf16.mxu0 %v9710_v1  ;;  %7529 = vmatprep.subr.bf16.mxu1 %v9712_v2  ;;  %v763_v0 = vld [vmem:[%s14475_s1 + $0x16f0] sm:$0xff]  ;;  %v756_v1 = vld [vmem:[%s14475_s1 + $0x16b8] sm:$0xff] }
 0x3a0   :  { %v764_v2 = vld [vmem:[%s14475_s1 + $0x16f8] sm:$0xff]  ;;  %v9806_v7 = vcombine.high %v755_v63, %v763_v0  ;;  %v9805_v13 = vcombine.low %v755_v63, %v763_v0 }
 0x3a1   :  { %v9808_v8 = vcombine.high %v756_v1, %v764_v2  ;;  %v9807_v14 = vcombine.low %v756_v1, %v764_v2 }
 0x3a2   :  { %7366 = vmatpush1.bf16.msra.mxu0 %v9709_v12  ;;  %7530 = vmatpush1.bf16.msra.mxu1 %v9711_v57  ;;  %v771_v12 = vld [vmem:[%s14475_s1 + $0x1730] sm:$0xff] }
 0x3a3   :  { %7367 = vmatprep.subr.bf16.mxu0 %v9726_v25  ;;  %7531 = vmatprep.subr.bf16.mxu1 %v9728_v9  ;;  %v779_v57 = vld [vmem:[%s14475_s1 + $0x1770] sm:$0xff]  ;;  %v772_v25 = vld [vmem:[%s14475_s1 + $0x1738] sm:$0xff] }
 0x3a4   :  { %v780_v9 = vld [vmem:[%s14475_s1 + $0x1778] sm:$0xff]  ;;  %v9822_v16 = vcombine.high %v771_v12, %v779_v57  ;;  %v9821_v20 = vcombine.low %v771_v12, %v779_v57 }
 0x3a5   :  { %v9824_v17 = vcombine.high %v772_v25, %v780_v9  ;;  %v9823_v21 = vcombine.low %v772_v25, %v780_v9  ;;  %v867_v9 = vld [vmem:[%s14475_s1 + $0x1a30] sm:$0xff] }
 0x3a6   :  { %7368 = vmatpush1.bf16.msra.mxu0 %v9725_v53  ;;  %7532 = vmatpush1.bf16.msra.mxu1 %v9727_v23  ;;  %v787_v53 = vld [vmem:[%s14475_s1 + $0x17b0] sm:$0xff] }
 0x3a7   :  { %7369 = vmatprep.subr.bf16.mxu0 %v9742_v33  ;;  %7533 = vmatprep.subr.bf16.mxu1 %v9744_v18  ;;  %v795_v23 = vld [vmem:[%s14475_s1 + $0x17f0] sm:$0xff]  ;;  %v788_v33 = vld [vmem:[%s14475_s1 + $0x17b8] sm:$0xff] }
 0x3a8   :  { %v796_v18 = vld [vmem:[%s14475_s1 + $0x17f8] sm:$0xff]  ;;  %v9838_v22 = vcombine.high %v787_v53, %v795_v23  ;;  %v9837_v37 = vcombine.low %v787_v53, %v795_v23 }
 0x3a9   :  { %v9840_v29 = vcombine.high %v788_v33, %v796_v18  ;;  %v9839_v40 = vcombine.low %v788_v33, %v796_v18  ;;  %v883_v33 = vld [vmem:[%s14475_s1 + $0x1ab0] sm:$0xff] }
 0x3aa   :  { %7370 = vmatpush1.bf16.msra.mxu0 %v9741_v31  ;;  %7534 = vmatpush1.bf16.msra.mxu1 %v9743_v15  ;;  %v803_v31 = vld [vmem:[%s14475_s1 + $0x1830] sm:$0xff] }
 0x3ab   :  { %7371 = vmatprep.subr.bf16.mxu0 %v9758_v32  ;;  %7535 = vmatprep.subr.bf16.mxu1 %v9760_v34  ;;  %v811_v15 = vld [vmem:[%s14475_s1 + $0x1870] sm:$0xff]  ;;  %v804_v32 = vld [vmem:[%s14475_s1 + $0x1838] sm:$0xff] }
 0x3ac   :  { %v812_v34 = vld [vmem:[%s14475_s1 + $0x1878] sm:$0xff]  ;;  %v9854_v41 = vcombine.high %v803_v31, %v811_v15  ;;  %v9853_v52 = vcombine.low %v803_v31, %v811_v15  ;;  %v891_v18 = vld [vmem:[%s14475_s1 + $0x1af0] sm:$0xff] }
 0x3ad   :  { %v9856_v43 = vcombine.high %v804_v32, %v812_v34  ;;  %v9855_v54 = vcombine.low %v804_v32, %v812_v34  ;;  %v9934_v15 = vcombine.high %v883_v33, %v891_v18  ;;  %v899_v34 = vld [vmem:[%s14475_s1 + $0x1b30] sm:$0xff] }
 0x3ae   :  { %7372 = vmatpush1.bf16.msra.mxu0 %v9757_v45  ;;  %7536 = vmatpush1.bf16.msra.mxu1 %v9759_v48  ;;  %v819_v45 = vld [vmem:[%s14475_s1 + $0x18b0] sm:$0xff] }
 0x3af   :  { %7373 = vmatprep.subr.bf16.mxu0 %v9774_v50  ;;  %7537 = vmatprep.subr.bf16.mxu1 %v9776_v51  ;;  %v827_v48 = vld [vmem:[%s14475_s1 + $0x18f0] sm:$0xff]  ;;  %v820_v50 = vld [vmem:[%s14475_s1 + $0x18b8] sm:$0xff] }
 0x3b0   :  { %v828_v51 = vld [vmem:[%s14475_s1 + $0x18f8] sm:$0xff]  ;;  %v9870_v56 = vcombine.high %v819_v45, %v827_v48  ;;  %v9869_v63 = vcombine.low %v819_v45, %v827_v48 }
 0x3b1   :  { %v9872_v58 = vcombine.high %v820_v50, %v828_v51  ;;  %v9871_v0 = vcombine.low %v820_v50, %v828_v51  ;;  %v9933_v50 = vcombine.low %v883_v33, %v891_v18 }
 0x3b2   :  { %7374 = vmatpush1.bf16.msra.mxu0 %v9773_v59  ;;  %7538 = vmatpush1.bf16.msra.mxu1 %v9775_v60  ;;  %v835_v59 = vld [vmem:[%s14475_s1 + $0x1930] sm:$0xff] }
 0x3b3   :  { %7375 = vmatprep.subr.bf16.mxu0 %v9790_v61  ;;  %7539 = vmatprep.subr.bf16.mxu1 %v9792_v62  ;;  %v843_v60 = vld [vmem:[%s14475_s1 + $0x1970] sm:$0xff]  ;;  %v836_v61 = vld [vmem:[%s14475_s1 + $0x1938] sm:$0xff] }
 0x3b4   :  { %v844_v62 = vld [vmem:[%s14475_s1 + $0x1978] sm:$0xff]  ;;  %v9886_v1 = vcombine.high %v835_v59, %v843_v60 }
 0x3b5   :  { %v9888_v2 = vcombine.high %v836_v61, %v844_v62  ;;  %v9887_v12 = vcombine.low %v836_v61, %v844_v62  ;;  %v924_v61 = vld [vmem:[%s14475_s1 + $0x1bf8] sm:$0xff] }
 0x3b6   :  { %7376 = vmatpush1.bf16.msra.mxu0 %v9789_v3  ;;  %7540 = vmatpush1.bf16.msra.mxu1 %v9791_v6  ;;  %v851_v3 = vld [vmem:[%s14475_s1 + $0x19b0] sm:$0xff] }
 0x3b7   :  { %7377 = vmatprep.subr.bf16.mxu0 %v9806_v7  ;;  %7541 = vmatprep.subr.bf16.mxu1 %v9808_v8  ;;  %v859_v6 = vld [vmem:[%s14475_s1 + $0x19f0] sm:$0xff]  ;;  %v860_v7 = vld [vmem:[%s14475_s1 + $0x19f8] sm:$0xff]  ;;  %v9885_v8 = vcombine.low %v835_v59, %v843_v60 }
 0x3b8   :  { %v9902_v57 = vcombine.high %v851_v3, %v859_v6 }
 0x3ba   :  { %7378 = vmatpush1.bf16.msra.mxu0 %v9805_v13  ;;  %7542 = vmatpush1.bf16.msra.mxu1 %v9807_v14  ;;  %v875_v13 = vld [vmem:[%s14475_s1 + $0x1a70] sm:$0xff]  ;;  %v876_v14 = vld [vmem:[%s14475_s1 + $0x1a78] sm:$0xff] }
 0x3bb   :  { %7379 = vmatprep.subr.bf16.mxu0 %v9822_v16  ;;  %7543 = vmatprep.subr.bf16.mxu1 %v9824_v17  ;;  %v9901_v16 = vcombine.low %v851_v3, %v859_v6  ;;  %v9918_v53 = vcombine.high %v867_v9, %v875_v13 }
 0x3be   :  { %7380 = vmatpush1.bf16.msra.mxu0 %v9821_v20  ;;  %7544 = vmatpush1.bf16.msra.mxu1 %v9823_v21  ;;  %v884_v20 = vld [vmem:[%s14475_s1 + $0x1ab8] sm:$0xff] }
 0x3bf   :  { %7381 = vmatprep.subr.bf16.mxu0 %v9838_v22  ;;  %7545 = vmatprep.subr.bf16.mxu1 %v9840_v29  ;;  %v892_v21 = vld [vmem:[%s14475_s1 + $0x1af8] sm:$0xff]  ;;  %v9917_v22 = vcombine.low %v867_v9, %v875_v13  ;;  %v13879_v29 = vld [vmem:[%s14476_s2 + $0x8] sm:$0xff] }
 0x3c0   :  { %v9936_v32 = vcombine.high %v884_v20, %v892_v21  ;;  %v1100_v45 = vrot.slane %v13879_v29, %v1067_v27  ;;  %v1096_v48 = vrot.slane %v13879_v29, %v1063_v28  ;;  %v9935_v51 = vcombine.low %v884_v20, %v892_v21  ;;  %v915_v27 = vld [vmem:[%s14475_s1 + $0x1bb0] sm:$0xff] }
 0x3c1   :  { %v923_v28 = vld [vmem:[%s14475_s1 + $0x1bf0] sm:$0xff] }
 0x3c2   :  { %7382 = vmatpush1.bf16.msra.mxu0 %v9837_v37  ;;  %7546 = vmatpush1.bf16.msra.mxu1 %v9839_v40  ;;  %v907_v37 = vld [vmem:[%s14475_s1 + $0x1b70] sm:$0xff]  ;;  %v1092_v40 = vrot.slane %v13879_v29, %v1059_v19  ;;  %v1104_v19 = vrot.slane %v13879_v29, %v1071_v30  ;;  %v916_v30 = vld [vmem:[%s14475_s1 + $0x1bb8] sm:$0xff]  ;;  %v9965_v33 = vcombine.low %v915_v27, %v923_v28 }
 0x3c3   :  { %7392 = vmatprep.subr.bf16.mxu0 %v9854_v41  ;;  %7556 = vmatprep.subr.bf16.mxu1 %v9856_v43  ;;  %v900_v41 = vld [vmem:[%s14475_s1 + $0x1b38] sm:$0xff]  ;;  %v9968_v13 = vcombine.high %v916_v30, %v924_v61  ;;  %v9967_v20 = vcombine.low %v916_v30, %v924_v61 }
 0x3c4   :  { %v908_v43 = vld [vmem:[%s14475_s1 + $0x1b78] sm:$0xff] }
 0x3c5   :  { %7384 = vmatmul.mubr.bf16.vlgmr.msra.gmra.mrb[12].mxu0 %v11406_v39  ;;  %7548 = vmatmul.mubr.bf16.vlgmr.msra.gmra.mrb[12].mxu1 %v11406_v39  ;;  %v852_v39 = vld [vmem:[%s14475_s1 + $0x19b8] sm:$0xff] }
 0x3c6   :  { %7393 = vmatpush1.bf16.msra.mxu0 %v9853_v52  ;;  %7557 = vmatpush1.bf16.msra.mxu1 %v9855_v54  ;;  %v9904_v25 = vcombine.high %v852_v39, %v860_v7  ;;  %v9903_v17 = vcombine.low %v852_v39, %v860_v7  ;;  %v9950_v52 = vcombine.high %v899_v34, %v907_v37 }
 0x3c7   :  { %7394 = vmatprep.subr.bf16.mxu0 %v9870_v56  ;;  %7558 = vmatprep.subr.bf16.mxu1 %v9872_v58  ;;  %v9952_v56 = vcombine.high %v900_v41, %v908_v43 }
 0x3c8   :  { %7424 = vmatprep.mubr.bf16.mxu0 %v11416_v24  ;;  %7588 = vmatprep.mubr.bf16.mxu1 %v11416_v24  ;;  %v868_v24 = vld [vmem:[%s14475_s1 + $0x1a38] sm:$0xff] }
 0x3c9   :  { %v9920_v23 = vcombine.high %v868_v24, %v876_v14  ;;  %v9919_v31 = vcombine.low %v868_v24, %v876_v14  ;;  %v931_v24 = vld [vmem:[%s14475_s1 + $0x1c30] sm:$0xff] }
 0x3ca   :  { %7395 = vmatpush1.bf16.msra.mxu0 %v9869_v63  ;;  %7559 = vmatpush1.bf16.msra.mxu1 %v9871_v0  ;;  %v939_v14 = vld [vmem:[%s14475_s1 + $0x1c70] sm:$0xff] }
 0x3cb   :  { %7396 = vmatprep.subr.bf16.mxu0 %v9886_v1  ;;  %7560 = vmatprep.subr.bf16.mxu1 %v9888_v2  ;;  %v9949_v2 = vcombine.low %v899_v34, %v907_v37  ;;  %v9982_v21 = vcombine.high %v931_v24, %v939_v14  ;;  %v956_v34 = vld [vmem:[%s14475_s1 + $0x1cf8] sm:$0xff]  ;;  %v9981_v37 = vcombine.low %v931_v24, %v939_v14 }
 0x3cc   :  { %v1020_v24 = vld [vmem:[%s14475_s1 + $0x1ef8] sm:$0xff] }
 0x3ce   :  { %7397 = vmatpush1.bf16.msra.mxu0 %v9885_v8  ;;  %7561 = vmatpush1.bf16.msra.mxu1 %v9887_v12  ;;  %v9951_v8 = vcombine.low %v900_v41, %v908_v43  ;;  %v9966_v12 = vcombine.high %v915_v27, %v923_v28  ;;  %v979_v27 = vld [vmem:[%s14475_s1 + $0x1db0] sm:$0xff] }
 0x3cf   :  { %7398 = vmatprep.subr.bf16.mxu0 %v9902_v57  ;;  %7562 = vmatprep.subr.bf16.mxu1 %v9904_v25  ;;  %v987_v28 = vld [vmem:[%s14475_s1 + $0x1df0] sm:$0xff] }
 0x3d0   :  { %v10030_v61 = vcombine.high %v979_v27, %v987_v28 }
 0x3d2   :  { %7399 = vmatpush1.bf16.msra.mxu0 %v9901_v16  ;;  %7563 = vmatpush1.bf16.msra.mxu1 %v9903_v17  ;;  %v932_v17 = vld [vmem:[%s14475_s1 + $0x1c38] sm:$0xff] }
 0x3d3   :  { %7400 = vmatprep.subr.bf16.mxu0 %v9918_v53  ;;  %7564 = vmatprep.subr.bf16.mxu1 %v9920_v23  ;;  %v940_v53 = vld [vmem:[%s14475_s1 + $0x1c78] sm:$0xff] }
 0x3d6   :  { %7401 = vmatpush1.bf16.msra.mxu0 %v9917_v22  ;;  %7565 = vmatpush1.bf16.msra.mxu1 %v9919_v31  ;;  %v9984_v22 = vcombine.high %v932_v17, %v940_v53  ;;  %v947_v31 = vld [vmem:[%s14475_s1 + $0x1cb0] sm:$0xff] }
 0x3d7   :  { %7402 = vmatprep.subr.bf16.mxu0 %v9934_v15  ;;  %7566 = vmatprep.subr.bf16.mxu1 %v9936_v32  ;;  %v955_v15 = vld [vmem:[%s14475_s1 + $0x1cf0] sm:$0xff]  ;;  %v948_v32 = vld [vmem:[%s14475_s1 + $0x1cb8] sm:$0xff] }
 0x3d8   :  { %v7098_v54 = vpop.f32.mrb[8].mxu0  ;;  %v7262_v59 = vpop.f32.mrb[8].mxu1  ;;  %v9998_v41 = vcombine.high %v947_v31, %v955_v15  ;;  %v10000_v43 = vcombine.high %v948_v32, %v956_v34 }
 0x3d9   :  { %v10426_v58 = vadd.f32 %v7098_v54, %v1092_v40  ;;  %v7100_v60 = vpop.f32.mrb[9].mxu0  ;;  %v10428_v62 = vadd.f32 %v7262_v59, %v1100_v45  ;;  %v7264_v0 = vpop.f32.mrb[9].mxu1  ;;  %v9983_v40 = vcombine.low %v932_v17, %v940_v53  ;;  %v963_v45 = vld [vmem:[%s14475_s1 + $0x1d30] sm:$0xff]  ;;  %v988_v59 = vld [vmem:[%s14475_s1 + $0x1df8] sm:$0xff] }
 0x3da   :  { %v10427_v63 = vadd.f32 %v7100_v60, %v1096_v48  ;;  %v7102_v1 = vpop.f32.mrb[10].mxu0  ;;  %7403 = vmatpush1.bf16.msra.mxu0 %v9933_v50  ;;  %v10429_v6 = vadd.f32 %v7264_v0, %v1104_v19  ;;  %v7266_v39 = vpop.f32.mrb[10].mxu1  ;;  %7567 = vmatpush1.bf16.msra.mxu1 %v9935_v51  ;;  %v971_v48 = vld [vmem:[%s14475_s1 + $0x1d70] sm:$0xff]  ;;  %v964_v50 = vld [vmem:[%s14475_s1 + $0x1d38] sm:$0xff]  ;;  %v9997_v51 = vcombine.low %v947_v31, %v955_v15 }
 0x3db   :  { %v13917_v3 = vmax.f32 %v10426_v58, 0.0  ;;  %v7103_v7 = vpop.f32.mrb[11].mxu0  ;;  %7404 = vmatprep.subr.bf16.mxu0 %v9950_v52  ;;  %v13919_v57 = vmax.f32 %v10428_v62, 0.0  ;;  %v7267_v9 = vpop.f32.mrb[11].mxu1  ;;  %7568 = vmatprep.subr.bf16.mxu1 %v9952_v56  ;;  %v972_v19 = vld [vmem:[%s14475_s1 + $0x1d78] sm:$0xff]  ;;  %v9999_v52 = vcombine.low %v948_v32, %v956_v34  ;;  %v10014_v54 = vcombine.high %v963_v45, %v971_v48  ;;  %v1003_v0 = vld [vmem:[%s14475_s1 + $0x1e70] sm:$0xff] }
 0x3dc   :  { %v13921_v25 = vmax.f32 %v10427_v63, 0.0  ;;  %v13929_v16 = vmax.f32 %v10429_v6, 0.0  ;;  %v10016_v56 = vcombine.high %v964_v50, %v972_v19  ;;  %v980_v58 = vld [vmem:[%s14475_s1 + $0x1db8] sm:$0xff]  ;;  %v10013_v60 = vcombine.low %v963_v45, %v971_v48  ;;  %v995_v63 = vld [vmem:[%s14475_s1 + $0x1e30] sm:$0xff] }
 0x3dd   :  { %v10015_v30 = vcombine.low %v964_v50, %v972_v19  ;;  %v10032_v62 = vcombine.high %v980_v58, %v988_v59  ;;  %v996_v1 = vld [vmem:[%s14475_s1 + $0x1e38] sm:$0xff]  ;;  %v10029_v6 = vcombine.low %v979_v27, %v987_v28  ;;  %v10031_v39 = vcombine.low %v980_v58, %v988_v59  ;;  %v1019_v9 = vld [vmem:[%s14475_s1 + $0x1ef0] sm:$0xff]  ;;  %v10543_v27 = vld [vmem:[%s14477_s3 + $0x80] sm:$0xff]  }
 0x3de   :  { %v10238_v23 = vpack.c.bf16 %v13921_v25, %v13917_v3  ;;  %7405 = vmatpush1.bf16.msra.mxu0 %v9949_v2  ;;  %v10239_v18 = vpack.c.bf16 %v13929_v16, %v13919_v57  ;;  %7569 = vmatpush1.bf16.msra.mxu1 %v9951_v8  ;;  %v1004_v2 = vld [vmem:[%s14475_s1 + $0x1e78] sm:$0xff]  ;;  %v10046_v7 = vcombine.high %v995_v63, %v1003_v0  ;;  %v1043_v34 = vld [vmem:[%s14475_s1 + $0x1fb0] sm:$0xff]  ;;  %v10544_v28 = vld [vmem:[%s14477_s3 + $0x48] sm:$0xff]  }
 0x3df   :  { %7406 = vmatprep.subr.bf16.mxu0 %v9966_v12  ;;  %7570 = vmatprep.subr.bf16.mxu1 %v9968_v13  ;;  %v10048_v8 = vcombine.high %v996_v1, %v1004_v2  ;;  %v1011_v12 = vld [vmem:[%s14475_s1 + $0x1eb0] sm:$0xff]  ;;  %v1012_v13 = vld [vmem:[%s14475_s1 + $0x1eb8] sm:$0xff]  ;;  %v10045_v14 = vcombine.low %v995_v63, %v1003_v0  ;;  %v10047_v17 = vcombine.low %v996_v1, %v1004_v2  ;;  %v10545_v59 = vld [vmem:[%s14477_s3 + $0xc8] sm:$0xff]  }
 0x3e0   :  { %7681 = vst [vmem:[#allocation2 + $0x20] sm:$0xff] %v10238_v23  ;;  %7682 = vst [vmem:[#allocation2 + $0x28] sm:$0xff] %v10239_v18  ;;  %v10062_v53 = vcombine.high %v1011_v12, %v1019_v9  ;;  %v10064_v23 = vcombine.high %v1012_v13, %v1020_v24  ;;  %v1035_v18 = vld [vmem:[%s14475_s1 + $0x1f70] sm:$0xff]  ;;  %v10063_v31 = vcombine.low %v1012_v13, %v1020_v24  ;;  %v10552_v63 = vld [vmem:[%s14477_s3 + $0x58] sm:$0xff]  }
 0x3e1   :  { %v7614_v58 = vpack.c.bf16 %v12297_v5, %v12297_v5  ;;  %v10547_v5 = vld [vmem:[%s14477_s3 + $0x88] sm:$0xff]   ;;  %v10553_v0 = vld [vmem:[%s14477_s3 + $0xd8] sm:$0xff]  }
 0x3e2   :  { %7407 = vmatpush1.bf16.msra.mxu0 %v9965_v33  ;;  %7571 = vmatpush1.bf16.msra.mxu1 %v9967_v20  ;;  %v1027_v33 = vld [vmem:[%s14475_s1 + $0x1f30] sm:$0xff]  ;;  %v1028_v20 = vld [vmem:[%s14475_s1 + $0x1f38] sm:$0xff]  ;;  %v10562_v13 = vld [vmem:[%s14477_s3 + $0x28] sm:$0xff]  }
 0x3e3   :  { %7408 = vmatprep.subr.bf16.mxu0 %v9982_v21  ;;  %7572 = vmatprep.subr.bf16.mxu1 %v9984_v22  ;;  %v1036_v21 = vld [vmem:[%s14475_s1 + $0x1f78] sm:$0xff]  ;;  %v10061_v22 = vcombine.low %v1011_v12, %v1019_v9  ;;  %v10078_v15 = vcombine.high %v1027_v33, %v1035_v18  ;;  %v10560_v12 = vld [vmem:[%s14477_s3 + $0x68] sm:$0xff]  }
 0x3e4   :  { %v10080_v32 = vcombine.high %v1028_v20, %v1036_v21  ;;  %v10079_v45 = vcombine.low %v1028_v20, %v1036_v21  ;;  %v10554_v1 = vld [vmem:[%s14477_s3 + $0x18] sm:$0xff]   ;;  %v10561_v9 = vld [vmem:[%s14477_s3 + $0xe8] sm:$0xff]  }
 0x3e5   :  { %v10555_v2 = vld [vmem:[%s14477_s3 + $0x98] sm:$0xff]   ;;  %v10563_v24 = vld [vmem:[%s14477_s3 + $0xa8] sm:$0xff]  }
 0x3e6   :  { %7409 = vmatpush1.bf16.msra.mxu0 %v9981_v37  ;;  %7573 = vmatpush1.bf16.msra.mxu1 %v9983_v40  ;;  %v1051_v37 = vld [vmem:[%s14475_s1 + $0x1ff0] sm:$0xff]  ;;  %v1044_v40 = vld [vmem:[%s14475_s1 + $0x1fb8] sm:$0xff] }
 0x3e7   :  { %7410 = vmatprep.subr.bf16.mxu0 %v9998_v41  ;;  %7574 = vmatprep.subr.bf16.mxu1 %v10000_v43  ;;  %v1052_v41 = vld [vmem:[%s14475_s1 + $0x1ff8] sm:$0xff]  ;;  %v10077_v43 = vcombine.low %v1027_v33, %v1035_v18  ;;  %v10094_v48 = vcombine.high %v1043_v34, %v1051_v37  ;;  %v10093_v19 = vcombine.low %v1043_v34, %v1051_v37  ;;  %v10575_v34 = vld [vmem:[%s14477_s3 + $0x180] sm:$0xff]  }
 0x3e8   :  { %v10096_v50 = vcombine.high %v1044_v40, %v1052_v41  ;;  %v10568_v33 = vld [vmem:[%s14477_s3 + $0x78] sm:$0xff]   ;;  %v7615_v37 = vpack.c.bf16 %v12295_v4, %v12295_v4  ;;  %v10578_v4 = vld [vmem:[%s14477_s3 + $0x108] sm:$0xff]  }
 0x3e9   :  { %v10569_v18 = vld [vmem:[%s14477_s3 + $0xf8] sm:$0xff]  }
 0x3ea   :  { %7411 = vmatpush1.bf16.msra.mxu0 %v9997_v51  ;;  %7575 = vmatpush1.bf16.msra.mxu1 %v9999_v52  ;;  %v10095_v51 = vcombine.low %v1044_v40, %v1052_v41  ;;  %v10540_v52 = vld [vmem:[%s14477_s3 + $0x40] sm:$0xff]   ;;  %v10570_v20 = vld [vmem:[%s14477_s3 + $0x38] sm:$0xff]   ;;  %v10576_v40 = vld [vmem:[%s14477_s3 + $0x148] sm:$0xff]   ;;  %v7618_v41 = vpack.c.bf16 %v13108_v36, %v13108_v36 }
 0x3eb   :  { %7412 = vmatprep.subr.bf16.mxu0 %v10014_v54  ;;  %7576 = vmatprep.subr.bf16.mxu1 %v10016_v56  ;;  %v10541_v54 = vld [vmem:[%s14477_s3 + $0xc0] sm:$0xff]   ;;  %v10571_v21 = vld [vmem:[%s14477_s3 + $0xb8] sm:$0xff]   ;;  %v10579_v36 = vld [vmem:[%s14477_s3 + $0x188] sm:$0xff]  }
 0x3ec   :  { %v10542_v56 = vld [vmem:[%s14477_s3] sm:$0xff]  }
 0x3ee   :  { %7413 = vmatpush1.bf16.msra.mxu0 %v10013_v60  ;;  %7577 = vmatpush1.bf16.msra.mxu1 %v10015_v30  ;;  %v7616_v60 = vpack.c.bf16 %v12305_v10, %v12305_v10  ;;  %v10546_v30 = vld [vmem:[%s14477_s3 + $0x8] sm:$0xff]   ;;  %v10550_v10 = vld [vmem:[%s14477_s3 + $0x10] sm:$0xff]  }
 0x3ef   :  { %7414 = vmatprep.subr.bf16.mxu0 %v10030_v61  ;;  %7578 = vmatprep.subr.bf16.mxu1 %v10032_v62  ;;  %v10548_v61 = vld [vmem:[%s14477_s3 + $0x50] sm:$0xff]  }
 0x3f0   :  { %v10551_v62 = vld [vmem:[%s14477_s3 + $0x90] sm:$0xff]  }
 0x3f2   :  { %7415 = vmatpush1.bf16.msra.mxu0 %v10029_v6  ;;  %7579 = vmatpush1.bf16.msra.mxu1 %v10031_v39  ;;  %v10556_v6 = vld [vmem:[%s14477_s3 + $0x60] sm:$0xff]  }
 0x3f3   :  { %7416 = vmatprep.subr.bf16.mxu0 %v10046_v7  ;;  %7580 = vmatprep.subr.bf16.mxu1 %v10048_v8  ;;  %v10557_v39 = vld [vmem:[%s14477_s3 + $0xe0] sm:$0xff]  }
 0x3f4   :  { %v10558_v7 = vld [vmem:[%s14477_s3 + $0x20] sm:$0xff]  }
 0x3f5   :  { %v10559_v8 = vld [vmem:[%s14477_s3 + $0xa0] sm:$0xff]  }
 0x3f6   :  { %7417 = vmatpush1.bf16.msra.mxu0 %v10045_v14  ;;  %7581 = vmatpush1.bf16.msra.mxu1 %v10047_v17  ;;  %v10564_v14 = vld [vmem:[%s14477_s3 + $0x70] sm:$0xff]  }
 0x3f7   :  { %7418 = vmatprep.subr.bf16.mxu0 %v10062_v53  ;;  %7582 = vmatprep.subr.bf16.mxu1 %v10064_v23  ;;  %v10565_v17 = vld [vmem:[%s14477_s3 + $0xf0] sm:$0xff]  }
 0x3f8   :  { %v10566_v53 = vld [vmem:[%s14477_s3 + $0x30] sm:$0xff]  }
 0x3f9   :  { %v10567_v23 = vld [vmem:[%s14477_s3 + $0xb0] sm:$0xff]  }
 0x3fa   :  { %7419 = vmatpush1.bf16.msra.mxu0 %v10061_v22  ;;  %7583 = vmatpush1.bf16.msra.mxu1 %v10063_v31  ;;  %v10572_v22 = vld [vmem:[%s14477_s3 + $0x140] sm:$0xff]  }
 0x3fb   :  { %7420 = vmatprep.subr.bf16.mxu0 %v10078_v15  ;;  %7584 = vmatprep.subr.bf16.mxu1 %v10080_v32  ;;  %v10573_v31 = vld [vmem:[%s14477_s3 + $0x1c0] sm:$0xff]   ;;  %v7613_v32 = vpack.c.bf16 %v12293_v38, %v12293_v38  ;;  %v10577_v38 = vld [vmem:[%s14477_s3 + $0x1c8] sm:$0xff]  }
 0x3fc   :  { %v10574_v15 = vld [vmem:[%s14477_s3 + $0x100] sm:$0xff]  }
 0x3fe   :  { %7421 = vmatpush1.bf16.msra.mxu0 %v10077_v43  ;;  %7585 = vmatpush1.bf16.msra.mxu1 %v10079_v45  ;;  %v7620_v43 = vpack.c.bf16 %v13116_v44, %v13116_v44  ;;  %v10580_v45 = vld [vmem:[%s14477_s3 + $0x150] sm:$0xff]  }
 0x3ff   :  { %7422 = vmatprep.subr.bf16.mxu0 %v10094_v48  ;;  %7586 = vmatprep.subr.bf16.mxu1 %v10096_v50  ;;  %v10581_v44 = vld [vmem:[%s14477_s3 + $0x1d0] sm:$0xff]  }
 0x400   :  { %v10582_v48 = vld [vmem:[%s14477_s3 + $0x110] sm:$0xff]  }
 0x401   :  { %v10583_v50 = vld [vmem:[%s14477_s3 + $0x190] sm:$0xff]  }
 0x402   :  { %7423 = vmatpush1.bf16.msra.mxu0 %v10093_v19  ;;  %7587 = vmatpush1.bf16.msra.mxu1 %v10095_v51  ;;  %v10584_v19 = vld [vmem:[%s14477_s3 + $0x158] sm:$0xff]  }
 0x403   :  { %10242 = vmatprep.subr.bf16.mxu0 %v10540_v52  ;;  %10264 = vmatprep.subr.bf16.mxu1 %v10541_v54  ;;  %v10585_v51 = vld [vmem:[%s14477_s3 + $0x1d8] sm:$0xff]  }
 0x404   :  { %v10586_v52 = vld [vmem:[%s14477_s3 + $0x118] sm:$0xff]  }
 0x405   :  { %7425 = vmatmul.mubr.bf16.vlgmr.msra.gmra.mrb[12].mxu0 %v11604_v55  ;;  %7589 = vmatmul.mubr.bf16.vlgmr.msra.gmra.mrb[12].mxu1 %v11604_v55  ;;  %v10549_v55 = vld [vmem:[%s14477_s3 + $0xd0] sm:$0xff]   ;;  %v10587_v54 = vld [vmem:[%s14477_s3 + $0x198] sm:$0xff]  }
 0x406   :  { %10243 = vmatpush3.bf16.msra.mxu0 %v10542_v56  ;;  %8748 = vmatprep.mubr.bf16.mxu0 %v7614_v58  ;;  %v10588_v56 = vld [vmem:[%s14477_s3 + $0x160] sm:$0xff]  }
 0x407   :  { %10265 = vmatpush3.bf16.msra.mxu1 %v10543_v27  ;;  %8788 = vmatprep.mubr.bf16.mxu1 %v7616_v60  ;;  %v10589_v27 = vld [vmem:[%s14477_s3 + $0x1e0] sm:$0xff]   ;;  %v10593_v60 = vld [vmem:[%s14477_s3 + $0x1e8] sm:$0xff]  }
 0x408   :  { %10244 = vmatprep.subr.bf16.mxu0 %v10544_v28  ;;  %10266 = vmatprep.subr.bf16.mxu1 %v10545_v59  ;;  %v10590_v28 = vld [vmem:[%s14477_s3 + $0x120] sm:$0xff]   ;;  %v10592_v59 = vld [vmem:[%s14477_s3 + $0x168] sm:$0xff]  }
 0x409   :  { %v10591_v58 = vld [vmem:[%s14477_s3 + $0x1a0] sm:$0xff]  }
 0x40a   :  { %10245 = vmatpush3.bf16.msra.mxu0 %v10546_v30  ;;  %v10594_v30 = vld [vmem:[%s14477_s3 + $0x128] sm:$0xff]  }
 0x40b   :  { %10267 = vmatpush3.bf16.msra.mxu1 %v10547_v5  ;;  %10246 = vmatprep.subr.bf16.mxu0 %v10548_v61  ;;  %v10595_v5 = vld [vmem:[%s14477_s3 + $0x1a8] sm:$0xff]   ;;  %v10596_v61 = vld [vmem:[%s14477_s3 + $0x170] sm:$0xff]  }
 0x40c   :  { %10268 = vmatprep.subr.bf16.mxu1 %v10549_v55  ;;  %v10597_v55 = vld [vmem:[%s14477_s3 + $0x1f0] sm:$0xff]  }
 0x40e   :  { %10247 = vmatpush3.bf16.msra.mxu0 %v10550_v10  ;;  %v10598_v10 = vld [vmem:[%s14477_s3 + $0x130] sm:$0xff]  }
 0x40f   :  { %10269 = vmatpush3.bf16.msra.mxu1 %v10551_v62  ;;  %10248 = vmatprep.subr.bf16.mxu0 %v10552_v63  ;;  %v10599_v62 = vld [vmem:[%s14477_s3 + $0x1b0] sm:$0xff]   ;;  %v10600_v63 = vld [vmem:[%s14477_s3 + $0x178] sm:$0xff]  }
 0x410   :  { %10270 = vmatprep.subr.bf16.mxu1 %v10553_v0  ;;  %v10601_v0 = vld [vmem:[%s14477_s3 + $0x1f8] sm:$0xff]  }
 0x412   :  { %10249 = vmatpush3.bf16.msra.mxu0 %v10554_v1  ;;  %v10602_v1 = vld [vmem:[%s14477_s3 + $0x138] sm:$0xff]  }
 0x413   :  { %10271 = vmatpush3.bf16.msra.mxu1 %v10555_v2  ;;  %10250 = vmatprep.subr.bf16.mxu0 %v10556_v6  ;;  %v10603_v2 = vld [vmem:[%s14477_s3 + $0x1b8] sm:$0xff]   ;;  %v10604_v6 = vld [vmem:[%s14477_s3 + $0x240] sm:$0xff]  }
 0x414   :  { %10272 = vmatprep.subr.bf16.mxu1 %v10557_v39  ;;  %v10605_v39 = vld [vmem:[%s14477_s3 + $0x2c0] sm:$0xff]  }
 0x416   :  { %10251 = vmatpush3.bf16.msra.mxu0 %v10558_v7  ;;  %v10606_v7 = vld [vmem:[%s14477_s3 + $0x200] sm:$0xff]  }
 0x417   :  { %10273 = vmatpush3.bf16.msra.mxu1 %v10559_v8  ;;  %10252 = vmatprep.subr.bf16.mxu0 %v10560_v12  ;;  %v7617_v8 = vpack.c.bf16 %v13104_v26, %v13104_v26  ;;  %v10607_v12 = vld [vmem:[%s14477_s3 + $0x280] sm:$0xff]   ;;  %v10609_v26 = vld [vmem:[%s14477_s3 + $0x2c8] sm:$0xff]  }
 0x418   :  { %10274 = vmatprep.subr.bf16.mxu1 %v10561_v9  ;;  %v7619_v9 = vpack.c.bf16 %v13106_v35, %v13106_v35  ;;  %v10610_v35 = vld [vmem:[%s14477_s3 + $0x208] sm:$0xff]  }
 0x41a   :  { %10253 = vmatpush3.bf16.msra.mxu0 %v10562_v13  ;;  %v10608_v13 = vld [vmem:[%s14477_s3 + $0x248] sm:$0xff]  }
 0x41b   :  { %10275 = vmatpush3.bf16.msra.mxu1 %v10563_v24  ;;  %10254 = vmatprep.subr.bf16.mxu0 %v10564_v14  ;;  %v7622_v24 = vpack.c.bf16 %v13921_v25, %v13921_v25  ;;  %v7624_v14 = vpack.c.bf16 %v13929_v16, %v13929_v16  ;;  %v10611_v25 = vld [vmem:[%s14477_s3 + $0x288] sm:$0xff]   ;;  %v10613_v16 = vld [vmem:[%s14477_s3 + $0x2d0] sm:$0xff]  }
 0x41c   :  { %10276 = vmatprep.subr.bf16.mxu1 %v10565_v17  ;;  %v10612_v17 = vld [vmem:[%s14477_s3 + $0x250] sm:$0xff]  }
 0x41e   :  { %10255 = vmatpush3.bf16.msra.mxu0 %v10566_v53  ;;  %v10614_v53 = vld [vmem:[%s14477_s3 + $0x210] sm:$0xff]  }
 0x41f   :  { %10277 = vmatpush3.bf16.msra.mxu1 %v10567_v23  ;;  %10256 = vmatprep.subr.bf16.mxu0 %v10568_v33  ;;  %v10615_v23 = vld [vmem:[%s14477_s3 + $0x290] sm:$0xff]   ;;  %v10616_v33 = vld [vmem:[%s14477_s3 + $0x258] sm:$0xff]  }
 0x420   :  { %10278 = vmatprep.subr.bf16.mxu1 %v10569_v18  ;;  %v10617_v18 = vld [vmem:[%s14477_s3 + $0x2d8] sm:$0xff]  }
 0x422   :  { %10257 = vmatpush3.bf16.msra.mxu0 %v10570_v20  ;;  %v10618_v20 = vld [vmem:[%s14477_s3 + $0x218] sm:$0xff]  }
 0x423   :  { %10279 = vmatpush3.bf16.msra.mxu1 %v10571_v21  ;;  %10286 = vmatprep.subr.bf16.mxu0 %v10572_v22  ;;  %v10619_v21 = vld [vmem:[%s14477_s3 + $0x298] sm:$0xff]   ;;  %v10620_v22 = vld [vmem:[%s14477_s3 + $0x260] sm:$0xff]  }
 0x424   :  { %10308 = vmatprep.subr.bf16.mxu1 %v10573_v31  ;;  %v10621_v31 = vld [vmem:[%s14477_s3 + $0x2e0] sm:$0xff]  }
 0x425   :  { %8749 = vmatmul.mubr.bf16.vlgmr.msra.gmra.mrb[16].mxu0 %v7613_v32  ;;  %v10623_v32 = vld [vmem:[%s14477_s3 + $0x2a0] sm:$0xff]  }
 0x426   :  { %8789 = vmatmul.mubr.bf16.vlgmr.msra.gmra.mrb[16].mxu1 %v7615_v37  ;;  %10287 = vmatpush3.bf16.msra.mxu0 %v10574_v15  ;;  %v10622_v15 = vld [vmem:[%s14477_s3 + $0x220] sm:$0xff]   ;;  %v10625_v37 = vld [vmem:[%s14477_s3 + $0x2e8] sm:$0xff]  }
 0x427   :  { %8828 = vmatprep.mubr.bf16.mxu0 %v7618_v41  ;;  %10309 = vmatpush3.bf16.msra.mxu1 %v10575_v34  ;;  %v10624_v34 = vld [vmem:[%s14477_s3 + $0x268] sm:$0xff]  }
 0x428   :  { %8868 = vmatprep.mubr.bf16.mxu1 %v7620_v43  ;;  %10288 = vmatprep.subr.bf16.mxu0 %v10576_v40  ;;  %v10626_v40 = vld [vmem:[%s14477_s3 + $0x228] sm:$0xff]   ;;  %v10629_v43 = vld [vmem:[%s14477_s3 + $0x2f0] sm:$0xff]  }
 0x429   :  { %10310 = vmatprep.subr.bf16.mxu1 %v10577_v38  ;;  %v10627_v41 = vld [vmem:[%s14477_s3 + $0x2a8] sm:$0xff]   ;;  %v10628_v38 = vld [vmem:[%s14477_s3 + $0x270] sm:$0xff]  }
 0x42a   :  { %10289 = vmatpush3.bf16.msra.mxu0 %v10578_v4  ;;  %v10630_v4 = vld [vmem:[%s14477_s3 + $0x230] sm:$0xff]  }
 0x42b   :  { %10311 = vmatpush3.bf16.msra.mxu1 %v10579_v36  ;;  %10290 = vmatprep.subr.bf16.mxu0 %v10580_v45  ;;  %v10631_v36 = vld [vmem:[%s14477_s3 + $0x2b0] sm:$0xff]   ;;  %v10632_v45 = vld [vmem:[%s14477_s3 + $0x278] sm:$0xff]  }
 0x42c   :  { %10312 = vmatprep.subr.bf16.mxu1 %v10581_v44  ;;  %v10633_v44 = vld [vmem:[%s14477_s3 + $0x2f8] sm:$0xff]  }
 0x42e   :  { %10291 = vmatpush3.bf16.msra.mxu0 %v10582_v48  ;;  %v10634_v48 = vld [vmem:[%s14477_s3 + $0x238] sm:$0xff]  }
 0x42f   :  { %10313 = vmatpush3.bf16.msra.mxu1 %v10583_v50  ;;  %10292 = vmatprep.subr.bf16.mxu0 %v10584_v19  ;;  %v10635_v50 = vld [vmem:[%s14477_s3 + $0x2b8] sm:$0xff]   ;;  %v10636_v19 = vld [vmem:[%s14477_s3 + $0x340] sm:$0xff]  }
 0x430   :  { %10314 = vmatprep.subr.bf16.mxu1 %v10585_v51  ;;  %v10637_v51 = vld [vmem:[%s14477_s3 + $0x3c0] sm:$0xff]  }
 0x432   :  { %10293 = vmatpush3.bf16.msra.mxu0 %v10586_v52  ;;  %v10638_v52 = vld [vmem:[%s14477_s3 + $0x300] sm:$0xff]  }
 0x433   :  { %10315 = vmatpush3.bf16.msra.mxu1 %v10587_v54  ;;  %10294 = vmatprep.subr.bf16.mxu0 %v10588_v56  ;;  %v7621_v54 = vpack.c.bf16 %v13917_v3, %v13917_v3  ;;  %v10639_v56 = vld [vmem:[%s14477_s3 + $0x380] sm:$0xff]   ;;  %v10642_v3 = vld [vmem:[%s14477_s3 + $0x308] sm:$0xff]  }
 0x434   :  { %10316 = vmatprep.subr.bf16.mxu1 %v10589_v27  ;;  %v10640_v27 = vld [vmem:[%s14477_s3 + $0x348] sm:$0xff]  }
 0x436   :  { %10295 = vmatpush3.bf16.msra.mxu0 %v10590_v28  ;;  %v7623_v28 = vpack.c.bf16 %v13919_v57, %v13919_v57  ;;  %v10644_v57 = vld [vmem:[%s14477_s3 + $0x350] sm:$0xff]  }
 0x437   :  { %10317 = vmatpush3.bf16.msra.mxu1 %v10591_v58  ;;  %10296 = vmatprep.subr.bf16.mxu0 %v10592_v59  ;;  %v10641_v58 = vld [vmem:[%s14477_s3 + $0x3c8] sm:$0xff]  }
 0x438   :  { %10318 = vmatprep.subr.bf16.mxu1 %v10593_v60  ;;  %v10643_v59 = vld [vmem:[%s14477_s3 + $0x388] sm:$0xff]   ;;  %v10645_v60 = vld [vmem:[%s14477_s3 + $0x3d0] sm:$0xff]  }
 0x43a   :  { %10297 = vmatpush3.bf16.msra.mxu0 %v10594_v30  ;;  %v10646_v30 = vld [vmem:[%s14477_s3 + $0x310] sm:$0xff]  }
 0x43b   :  { %10319 = vmatpush3.bf16.msra.mxu1 %v10595_v5  ;;  %10298 = vmatprep.subr.bf16.mxu0 %v10596_v61  ;;  %v10647_v5 = vld [vmem:[%s14477_s3 + $0x390] sm:$0xff]   ;;  %v10648_v61 = vld [vmem:[%s14477_s3 + $0x358] sm:$0xff]  }
 0x43c   :  { %10320 = vmatprep.subr.bf16.mxu1 %v10597_v55  ;;  %v10649_v55 = vld [vmem:[%s14477_s3 + $0x3d8] sm:$0xff]  }
 0x43e   :  { %10299 = vmatpush3.bf16.msra.mxu0 %v10598_v10  ;;  %v10650_v10 = vld [vmem:[%s14477_s3 + $0x318] sm:$0xff]  }
 0x43f   :  { %10321 = vmatpush3.bf16.msra.mxu1 %v10599_v62  ;;  %10300 = vmatprep.subr.bf16.mxu0 %v10600_v63  ;;  %v10651_v62 = vld [vmem:[%s14477_s3 + $0x398] sm:$0xff]   ;;  %v10652_v63 = vld [vmem:[%s14477_s3 + $0x360] sm:$0xff]  }
 0x440   :  { %10322 = vmatprep.subr.bf16.mxu1 %v10601_v0  ;;  %v10653_v0 = vld [vmem:[%s14477_s3 + $0x3e0] sm:$0xff]  }
 0x442   :  { %10301 = vmatpush3.bf16.msra.mxu0 %v10602_v1  ;;  %v10654_v1 = vld [vmem:[%s14477_s3 + $0x320] sm:$0xff]  }
 0x443   :  { %10323 = vmatpush3.bf16.msra.mxu1 %v10603_v2  ;;  %10330 = vmatprep.subr.bf16.mxu0 %v10604_v6  ;;  %v10655_v2 = vld [vmem:[%s14477_s3 + $0x3a0] sm:$0xff]   ;;  %v10656_v6 = vld [vmem:[%s14477_s3 + $0x368] sm:$0xff]  }
 0x444   :  { %10352 = vmatprep.subr.bf16.mxu1 %v10605_v39  ;;  %v10657_v39 = vld [vmem:[%s14477_s3 + $0x3e8] sm:$0xff]  }
 0x445   :  { %8829 = vmatmul.mubr.bf16.vlgmr.msra.gmra.mrb[20].mxu0 %v7617_v8  ;;  %v10659_v8 = vld [vmem:[%s14477_s3 + $0x3a8] sm:$0xff]  }
 0x446   :  { %8869 = vmatmul.mubr.bf16.vlgmr.msra.gmra.mrb[20].mxu1 %v7619_v9  ;;  %10331 = vmatpush3.bf16.msra.mxu0 %v10606_v7  ;;  %v10658_v7 = vld [vmem:[%s14477_s3 + $0x328] sm:$0xff]   ;;  %v10661_v9 = vld [vmem:[%s14477_s3 + $0x3f0] sm:$0xff]  }
 0x447   :  { %8908 = vmatprep.mubr.bf16.mxu0 %v7622_v24  ;;  %10353 = vmatpush3.bf16.msra.mxu1 %v10607_v12  ;;  %v10660_v12 = vld [vmem:[%s14477_s3 + $0x370] sm:$0xff]  }
 0x448   :  { %8948 = vmatprep.mubr.bf16.mxu1 %v7624_v14  ;;  %10332 = vmatprep.subr.bf16.mxu0 %v10608_v13  ;;  %v10662_v13 = vld [vmem:[%s14477_s3 + $0x330] sm:$0xff]   ;;  %v10665_v14 = vld [vmem:[%s14477_s3 + $0x3f8] sm:$0xff]  }
 0x449   :  { %10354 = vmatprep.subr.bf16.mxu1 %v10609_v26  ;;  %v10663_v24 = vld [vmem:[%s14477_s3 + $0x3b0] sm:$0xff]   ;;  %v10664_v26 = vld [vmem:[%s14477_s3 + $0x378] sm:$0xff]  }
 0x44a   :  { %10333 = vmatpush3.bf16.msra.mxu0 %v10610_v35  ;;  %v10666_v35 = vld [vmem:[%s14477_s3 + $0x338] sm:$0xff]  }
 0x44b   :  { %10355 = vmatpush3.bf16.msra.mxu1 %v10611_v25  ;;  %10334 = vmatprep.subr.bf16.mxu0 %v10612_v17  ;;  %v10667_v25 = vld [vmem:[%s14477_s3 + $0x3b8] sm:$0xff]   ;;  %v1108_v17 = vrot.slane %v13879_v29, %v1075_v42 }
 0x44c   :  { %10356 = vmatprep.subr.bf16.mxu1 %v10613_v16  ;;  %v1116_v16 = vrot.slane %v13879_v29, %v1083_v46 }
 0x44e   :  { %10335 = vmatpush3.bf16.msra.mxu0 %v10614_v53  ;;  %v1112_v53 = vrot.slane %v13879_v29, %v1079_v47 }
 0x44f   :  { %10357 = vmatpush3.bf16.msra.mxu1 %v10615_v23  ;;  %10336 = vmatprep.subr.bf16.mxu0 %v10616_v33  ;;  %v1120_v23 = vrot.slane %v13879_v29, %v1087_v49 }
 0x450   :  { %10358 = vmatprep.subr.bf16.mxu1 %v10617_v18 }
 0x452   :  { %10337 = vmatpush3.bf16.msra.mxu0 %v10618_v20 }
 0x453   :  { %10359 = vmatpush3.bf16.msra.mxu1 %v10619_v21  ;;  %10338 = vmatprep.subr.bf16.mxu0 %v10620_v22 }
 0x454   :  { %10360 = vmatprep.subr.bf16.mxu1 %v10621_v31 }
 0x456   :  { %10339 = vmatpush3.bf16.msra.mxu0 %v10622_v15 }
 0x457   :  { %10361 = vmatpush3.bf16.msra.mxu1 %v10623_v32  ;;  %10340 = vmatprep.subr.bf16.mxu0 %v10624_v34 }
 0x458   :  { %10362 = vmatprep.subr.bf16.mxu1 %v10625_v37 }
 0x45a   :  { %10341 = vmatpush3.bf16.msra.mxu0 %v10626_v40 }
 0x45b   :  { %10363 = vmatpush3.bf16.msra.mxu1 %v10627_v41  ;;  %10342 = vmatprep.subr.bf16.mxu0 %v10628_v38 }
 0x45c   :  { %10364 = vmatprep.subr.bf16.mxu1 %v10629_v43 }
 0x45e   :  { %10343 = vmatpush3.bf16.msra.mxu0 %v10630_v4 }
 0x45f   :  { %10365 = vmatpush3.bf16.msra.mxu1 %v10631_v36  ;;  %10344 = vmatprep.subr.bf16.mxu0 %v10632_v45 }
 0x460   :  { %10366 = vmatprep.subr.bf16.mxu1 %v10633_v44 }
 0x462   :  { %10345 = vmatpush3.bf16.msra.mxu0 %v10634_v48  ;;  %v10105_v48 = vld [vmem:[%s14478_s4] ss:$0 sm:$0xff]  ;;  %s10717_s4 = smov [#allocation2]  }
 0x463   :  { %10367 = vmatpush3.bf16.msra.mxu1 %v10635_v50  ;;  %10374 = vmatprep.subr.bf16.mxu0 %v10636_v19  ;;  %s9043_s9 = sshll.u32 %s10717_s4, 4  ;;  %s9044_s9 = int_to_ptr.vmem [resolvable:$true] %s9043_s9 }
 0x464   :  { %10396 = vmatprep.subr.bf16.mxu1 %v10637_v51  ;;  %s10669_s10 = scalar_lea.vmem %s9044_s9, 1024  ;;  %p10674_p1 = scmp.lt.s32.totalorder %s9044_s9, %s9044_s9 }
 0x465   :  { %8909 = vmatmul.mubr.bf16.vlgmr.msra.gmra.mrb[24].mxu0 %v7621_v54  ;;  %p10670_p0 = scmp.ne.s32.totalorder %s9044_s9, %s10669_s10  ;;  %p10675_p2 = scmp.lt.s32.totalorder %s10669_s10, %s10669_s10 }
 0x466   :  { %8949 = vmatmul.mubr.bf16.vlgmr.msra.gmra.mrb[24].mxu1 %v7623_v28  ;;  %10375 = vmatpush3.bf16.msra.mxu0 %v10638_v52 }
 0x467   :  { %10397 = vmatpush3.bf16.msra.mxu1 %v10639_v56  ;;  %10376 = vmatprep.subr.bf16.mxu0 %v10640_v27  ;;  %p10676_p3 = por %p10675_p2, %p10674_p1 }
 0x468   :  { %10398 = vmatprep.subr.bf16.mxu1 %v10641_v58 }
 0x469   :  { %p10677_p4 = pnand %p10676_p3, %p10670_p0 }
 0x46a   :  { %10377 = vmatpush3.bf16.msra.mxu0 %v10642_v3 }
 0x46b   :  { %10399 = vmatpush3.bf16.msra.mxu1 %v10643_v59  ;;  %10378 = vmatprep.subr.bf16.mxu0 %v10644_v57 }
 0x46c   :  { %10400 = vmatprep.subr.bf16.mxu1 %v10645_v60 }
 0x46e   :  { %10379 = vmatpush3.bf16.msra.mxu0 %v10646_v30 }
 0x46f   :  { %10401 = vmatpush3.bf16.msra.mxu1 %v10647_v5  ;;  %10380 = vmatprep.subr.bf16.mxu0 %v10648_v61 }
 0x470   :  { %10402 = vmatprep.subr.bf16.mxu1 %v10649_v55 }
 0x472   :  { %10381 = vmatpush3.bf16.msra.mxu0 %v10650_v10 }
 0x473   :  { %10403 = vmatpush3.bf16.msra.mxu1 %v10651_v62  ;;  %10382 = vmatprep.subr.bf16.mxu0 %v10652_v63 }
 0x474   :  { %10404 = vmatprep.subr.bf16.mxu1 %v10653_v0 }
 0x476   :  { %10383 = vmatpush3.bf16.msra.mxu0 %v10654_v1 }
 0x477   :  { %10405 = vmatpush3.bf16.msra.mxu1 %v10655_v2  ;;  %10384 = vmatprep.subr.bf16.mxu0 %v10656_v6 }
 0x478   :  { %10406 = vmatprep.subr.bf16.mxu1 %v10657_v39 }
 0x47a   :  { %10385 = vmatpush3.bf16.msra.mxu0 %v10658_v7 }
 0x47b   :  { %10407 = vmatpush3.bf16.msra.mxu1 %v10659_v8  ;;  %10386 = vmatprep.subr.bf16.mxu0 %v10660_v12 }
 0x47c   :  { %10408 = vmatprep.subr.bf16.mxu1 %v10661_v9 }
 0x47e   :  { %10387 = vmatpush3.bf16.msra.mxu0 %v10662_v13 }
 0x47f   :  { %10409 = vmatpush3.bf16.msra.mxu1 %v10663_v24  ;;  %10388 = vmatprep.subr.bf16.mxu0 %v10664_v26 }
 0x480   :  { %10410 = vmatprep.subr.bf16.mxu1 %v10665_v14 }
 0x482   :  { %10389 = vmatpush3.bf16.msra.mxu0 %v10666_v35 }
 0x483   :  { %10411 = vmatpush3.bf16.msra.mxu1 %v10667_v25 }
 0x4d8   :  { %v7426_v33 = vpop.f32.mrb[12].mxu0  ;;  %v7590_v20 = vpop.f32.mrb[12].mxu1 }
 0x4d9   :  { %v10430_v18 = vadd.f32 %v7426_v33, %v1108_v17  ;;  %v7428_v21 = vpop.f32.mrb[13].mxu0  ;;  %v10432_v22 = vadd.f32 %v7590_v20, %v1116_v16  ;;  %v7592_v15 = vpop.f32.mrb[13].mxu1 }
 0x4da   :  { %v10431_v31 = vadd.f32 %v7428_v21, %v1112_v53  ;;  %v7430_v42 = vpop.f32.mrb[14].mxu0  ;;  %v10433_v34 = vadd.f32 %v7592_v15, %v1120_v23  ;;  %v7594_v37 = vpop.f32.mrb[14].mxu1 }
 0x4db   :  { %v7609_v32 = vmax.f32 %v10430_v18, 0.0  ;;  %v7431_v46 = vpop.f32.mrb[15].mxu0  ;;  %v7611_v40 = vmax.f32 %v10432_v22, 0.0  ;;  %v7595_v38 = vpop.f32.mrb[15].mxu1 }
 0x4dc   :  { %v7610_v41 = vmax.f32 %v10431_v31, 0.0  ;;  %v7612_v47 = vmax.f32 %v10433_v34, 0.0 }
 0x4dd   :  { %v7625_v4 = vpack.c.bf16 %v7609_v32, %v7609_v32  ;;  %v7627_v36 = vpack.c.bf16 %v7611_v40, %v7611_v40 }
 0x4de   :  { %v7626_v43 = vpack.c.bf16 %v7610_v41, %v7610_v41  ;;  %v10240_v11 = vpack.c.bf16 %v7610_v41, %v7609_v32  ;;  %v7628_v49 = vpack.c.bf16 %v7612_v47, %v7612_v47  ;;  %v10241_v29 = vpack.c.bf16 %v7612_v47, %v7611_v40 }
 0x4e0   :  { %7683 = vst [vmem:[#allocation2 + $0x30] sm:$0xff] %v10240_v11  ;;  %8988 = vmatprep.mubr.bf16.mxu0 %v7626_v43  ;;  %7684 = vst [vmem:[#allocation2 + $0x38] sm:$0xff] %v10241_v29  ;;  %9028 = vmatprep.mubr.bf16.mxu1 %v7628_v49 }
 0x4e1   :  { %8989 = vmatmul.mubr.bf16.vlgmr.msra.gmra.mrb[28].mxu0 %v7625_v4  ;;  %9029 = vmatmul.mubr.bf16.vlgmr.msra.gmra.mrb[28].mxu1 %v7627_v36 }
 0x4f8   :  { %v10258_v45 = vpop.f32.mrb[16].mxu0 }
 0x4f9   :  { %v10280_v44 = vpop.f32.mrb[16].mxu1  ;;  %v10259_v50 = vpop.f32.mrb[17].mxu0 }
 0x4fa   :  { %v10260_v19 = vadd.f32 %v10259_v50, %v10258_v45  ;;  %v10281_v51 = vpop.f32.mrb[17].mxu1  ;;  %v10261_v52 = vpop.f32.mrb[18].mxu0 }
 0x4fb   :  { %v10282_v54 = vadd.f32 %v10281_v51, %v10280_v44  ;;  %v10283_v56 = vpop.f32.mrb[18].mxu1  ;;  %v10262_v27 = vpop.f32.mrb[19].mxu0 }
 0x4fc   :  { %v8751_v28 = vadd.f32 %v10260_v19, %v10105_v48  ;;  %v10284_v58 = vpop.f32.mrb[19].mxu1 }
 0x4fe   :  { %v8791_v3 = vadd.f32 %v10282_v54, %v8751_v28 }
 0x518   :  { %v10302_v59 = vpop.f32.mrb[20].mxu0 }
 0x519   :  { %v10324_v57 = vpop.f32.mrb[20].mxu1  ;;  %v10303_v60 = vpop.f32.mrb[21].mxu0 }
 0x51a   :  { %v10304_v30 = vadd.f32 %v10303_v60, %v10302_v59  ;;  %v10325_v5 = vpop.f32.mrb[21].mxu1  ;;  %v10305_v61 = vpop.f32.mrb[22].mxu0 }
 0x51b   :  { %v10326_v55 = vadd.f32 %v10325_v5, %v10324_v57  ;;  %v10327_v10 = vpop.f32.mrb[22].mxu1  ;;  %v10306_v62 = vpop.f32.mrb[23].mxu0 }
 0x51c   :  { %v8831_v63 = vadd.f32 %v10304_v30, %v8791_v3  ;;  %v10328_v0 = vpop.f32.mrb[23].mxu1 }
 0x51e   :  { %v8871_v1 = vadd.f32 %v10326_v55, %v8831_v63 }
 0x538   :  { %v10346_v2 = vpop.f32.mrb[24].mxu0 }
 0x539   :  { %v10368_v6 = vpop.f32.mrb[24].mxu1  ;;  %v10347_v39 = vpop.f32.mrb[25].mxu0 }
 0x53a   :  { %v10348_v7 = vadd.f32 %v10347_v39, %v10346_v2  ;;  %v10369_v8 = vpop.f32.mrb[25].mxu1  ;;  %v10349_v12 = vpop.f32.mrb[26].mxu0 }
 0x53b   :  { %v10370_v9 = vadd.f32 %v10369_v8, %v10368_v6  ;;  %v10371_v13 = vpop.f32.mrb[26].mxu1  ;;  %v10350_v24 = vpop.f32.mrb[27].mxu0 }
 0x53c   :  { %10680 = shalt.err (!%p10677_p4)
}
 0x53d   :  { %s10681_s13 = scalar_lea.hbm %s14479_s5, 1024 }
 0x53e   :  { %p10682_p5 = scmp.ne.s32.totalorder %s14479_s5, %s10681_s13  ;;  %p10685_p6 = scmp.lt.u32.totalorder %s10681_s13, %s14479_s5 }
 0x540   :  { %p10687_p7 = pnand %p10685_p6, %p10682_p5 }
 0x542   :  { %10690 = shalt.err (!%p10687_p7)
}
 0x543   :  { %9046 = dma.vmem_to_hbm [thread:$0]  %s9044_s9, 1024, %s14479_s5, [#allocation3]   ;;  %v8911_v26 = vadd.f32 %v10348_v7, %v8871_v1  ;;  %v10372_v14 = vpop.f32.mrb[27].mxu1 }
 0x544   :  { %s10718_s20 = smov [#allocation4]  }
 0x545   :  { %v8951_v35 = vadd.f32 %v10370_v9, %v8911_v26  ;;  %s9053_s21 = sshll.u32 %s10718_s20, 4  ;;  %s9054_s21 = int_to_ptr.vmem [resolvable:$true] %s9053_s21 }
 0x546   :  { %s10691_s5 = scalar_lea.vmem %s9054_s21, 128  ;;  %p10696_p9 = scmp.lt.s32.totalorder %s9054_s21, %s9054_s21 }
 0x547   :  { %p10692_p8 = scmp.ne.s32.totalorder %s9054_s21, %s10691_s5  ;;  %p10697_p10 = scmp.lt.s32.totalorder %s10691_s5, %s10691_s5 }
 0x549   :  { %p10698_p11 = por %p10697_p10, %p10696_p9 }
 0x54b   :  { %p10699_p12 = pnand %p10698_p11, %p10692_p8 }
 0x5b4   :  { %v10390_v25 = vpop.f32.mrb[28].mxu0  ;;  %v10412_v17 = vpop.f32.mrb[28].mxu1 }
 0x5b5   :  { %v10391_v16 = vpop.f32.mrb[29].mxu0  ;;  %v10413_v23 = vpop.f32.mrb[29].mxu1 }
 0x5b6   :  { %v10392_v53 = vadd.f32 %v10391_v16, %v10390_v25  ;;  %v10393_v33 = vpop.f32.mrb[30].mxu0  ;;  %v10414_v18 = vadd.f32 %v10413_v23, %v10412_v17  ;;  %v10415_v20 = vpop.f32.mrb[30].mxu1 }
 0x5b7   :  { %v10394_v21 = vpop.f32.mrb[31].mxu0  ;;  %v10416_v31 = vpop.f32.mrb[31].mxu1 }
 0x5b8   :  { %v8991_v22 = vadd.f32 %v10392_v53, %v8951_v35 }
 0x5ba   :  { %v9031_v15 = vadd.f32 %v10414_v18, %v8991_v22 }
 0x5bc   :  { %9036 = vst [vmem:[#allocation4] sm:$0xff] %v9031_v15 }
 0x5bd   :  { %10702 = shalt.err (!%p10699_p12)
}
 0x5be   :  { %s10703_s2 = scalar_lea.hbm %s14480_s6, 128 }
 0x5bf   :  { %p10704_p13 = scmp.ne.s32.totalorder %s14480_s6, %s10703_s2  ;;  %p10707_p0 = scmp.lt.u32.totalorder %s10703_s2, %s14480_s6 }
 0x5c1   :  { %p10709_p1 = pnand %p10707_p0, %p10704_p13 }
 0x5c3   :  { %10712 = shalt.err (!%p10709_p1)
}
 0x5c4   :  { %9056 = dma.vmem_to_hbm [thread:$0]  %s9054_s21, 128, %s14480_s6, [#allocation5]  }
 0x5c5   :  { %10713 = dma.done.wait [#allocation3], 1024  }
 0x5c6   :  { %10714 = vsyncadd [#allocation3], 4294966272 }
 0x5c7   :  { %10715 = dma.done.wait [#allocation5], 128  }
 0x5c8   :  { %10716 = vsyncadd [#allocation5], 4294967168 }
 0x5c9   :  { %9063 = vsyncpa [#allocation3], 1 }
 0x5ca   :  { %9064 = vsyncpa [#allocation5], 1 }

</bundles_post_ra>
